<compile_context>
chip_gen: v5e
topology: v5e:2x2
jax: 0.10.0
libtpu: 0.0.40
codegen_flags: <defaults>
</compile_context>

<pallas_src>
import functools

import jax
import jax.numpy as jnp
from jax.experimental import pallas as pl
from jax.experimental.pallas import tpu as pltpu


def _model1d_kernel(BT, L, L2, L4, O,
                    p_ref, w1_ref, b1_ref, w2_ref, b2_ref,
                    wlin_ref, blin_ref, whead_ref, bhead_ref,
                    phase_ref, wt_ref,
                    s1_ref, s2_ref):
    f32 = jnp.float32
    R1, R2 = BT * L, BT * L2
    OUT = phase_ref.shape[-1]                            # 256

    # ---- conv1: 1 -> 32, k=3, padding=1, ReLU -------------------------------
    # Neighbour taps via sublane rolls; per-sample zero padding via iota masks.
    # The roll wrap-around rows (block rows 0 and R1-1) have pos%L == 0 / L-1,
    # so the same masks zero them — no padded scratch needed.
    pm = p_ref[...]                                      # (R1, 1), rows = (b, l)
    pL = pltpu.roll(pm, shift=1, axis=0)                 # row r-1 at row r
    pR = pltpu.roll(pm, shift=R1 - 1, axis=0)            # row r+1 at row r
    pos1 = jax.lax.broadcasted_iota(jnp.int32, (R1, 1), 0) % L
    pL = jnp.where(pos1 == 0, 0.0, pL)                   # zero pad at sample start
    pR = jnp.where(pos1 == L - 1, 0.0, pR)               # zero pad at sample end
    y1 = (pL * w1_ref[0:1, :] + pm * w1_ref[1:2, :] + pR * w1_ref[2:3, :]
          + b1_ref[...])                                 # (R1, 32)
    s1_ref[...] = jnp.maximum(y1, 0.0)

    # ---- MaxPool1d(2): max of even/odd rows (rows stay (b, l2)-ordered) -----
    y1p = jnp.maximum(s1_ref[pl.ds(0, R2, stride=2), :],
                      s1_ref[pl.ds(1, R2, stride=2), :])             # (R2, 32)

    # ---- conv2: 32 -> 64, k=3, padding=1 as ONE bf16 im2col matmul (K=96) ---
    yL = pltpu.roll(y1p, shift=1, axis=0)
    yR = pltpu.roll(y1p, shift=R2 - 1, axis=0)
    pos2 = jax.lax.broadcasted_iota(jnp.int32, (R2, 1), 0) % L2
    yL = jnp.where(pos2 == 0, 0.0, yL)
    yR = jnp.where(pos2 == L2 - 1, 0.0, yR)
    col = jnp.concatenate([yL, y1p, yR], axis=1).astype(jnp.bfloat16)  # (R2, 96)
    y2 = jnp.dot(col, w2_ref[...], preferred_element_type=f32) + b2_ref[...]
    s2_ref[...] = jnp.maximum(y2, 0.0)                   # (R2, 64)

    # ---- MaxPool1d(2) + Linear(L4 -> O) over length (O(BT) work, no kron) ---
    # pooled[l] is the (BT, 64) slab of length-position l across the batch tile.
    pooled = [jnp.maximum(s2_ref[pl.ds(2 * l, BT, stride=L2), :],
                          s2_ref[pl.ds(2 * l + 1, BT, stride=L2), :])
              for l in range(L4)]
    z_blocks = []
    for o in range(O):                                   # O*L4 scalar-coeff FMAs
        acc = pooled[0] * wlin_ref[o:o + 1, 0:1]
        for l in range(1, L4):
            acc = acc + pooled[l] * wlin_ref[o:o + 1, l:l + 1]
        z_blocks.append(acc + blin_ref[o:o + 1, :])
    z = jnp.concatenate(z_blocks, axis=0)                # (O*BT, 64), rows = (o, b)

    # ---- fused heads (one bf16 MXU matmul) + Categorical log-prob normalize -
    logits = (jnp.dot(z.astype(jnp.bfloat16), whead_ref[...],
                      preferred_element_type=f32) + bhead_ref[...])  # (O*BT, 512)

    def logsoftmax(x):
        s = x - jnp.max(x, axis=-1, keepdims=True)
        return s - jnp.log(jnp.sum(jnp.exp(s), axis=-1, keepdims=True))

    ph = logsoftmax(logits[:, :OUT])
    wt = logsoftmax(logits[:, OUT:])
    for o in range(O):                                   # contiguous aligned stores
        phase_ref[o] = ph[o * BT:(o + 1) * BT, :]
        wt_ref[o] = wt[o * BT:(o + 1) * BT, :]


def _pick_batch_tile(B):
    # Largest sublane-aligned tile that keeps >= 2 grid steps (so the "parallel"
    # grid axis can be split across both v7x TensorCores), capped at 128.
    for bt in (128, 64, 32, 16, 8):
        if bt <= B // 2 and B % bt == 0:
            return bt
    return B  # tiny batches: single grid step


def model1d_forward(p, params, *, batch_tile=None):
    """p: (B, L) float32 power values.  params: PyTorch-layout weights.
    Returns (phase_logprobs, wt_logprobs), each (B, output_length, 256) — the
    normalized log-probabilities parameterizing the two Categorical heads."""
    B, L = p.shape
    assert L % 4 == 0 and L >= 4
    L2, L4 = L // 2, L // 4
    O = params["linear_w"].shape[0]
    out_dim = params["phase_w"].shape[0]

    BT = batch_tile if batch_tile is not None else _pick_batch_tile(B)
    assert B % BT == 0, "batch size must be divisible by the batch tile"
    assert BT % 8 == 0 or BT == B
    R1, R2 = BT * L, BT * L2
    assert R1 % 8 == 0
    f32, bf16 = jnp.float32, jnp.bfloat16

    # --- one-time weight re-layouts (tiny, outside the kernel) ---------------
    w1 = jnp.transpose(params["conv1_w"][:, 0, :], (1, 0)).astype(f32)        # (3, 32) [tap, out_ch]
    b1 = params["conv1_b"].reshape(1, 32).astype(f32)
    w2 = jnp.transpose(params["conv2_w"], (2, 1, 0)).reshape(96, 64).astype(bf16)  # im2col weight
    b2 = params["conv2_b"].reshape(1, 64).astype(f32)
    wlin = params["linear_w"].astype(f32)                                     # (O, L4)
    blin = params["linear_b"].reshape(O, 1).astype(f32)                       # (O, 1)
    whead = jnp.concatenate([params["phase_w"].T, params["wt_w"].T], axis=1).astype(bf16)  # (64, 512)
    bhead = jnp.concatenate([params["phase_b"], params["wt_b"]]).reshape(1, 2 * out_dim).astype(f32)

    p_col = p.reshape(B * L, 1).astype(f32)              # rows = (batch, length)

    kernel = functools.partial(_model1d_kernel, BT, L, L2, L4, O)

    def const_spec(shape):
        return pl.BlockSpec(shape, lambda i, _n=len(shape): (0,) * _n)

    in_specs = [
        pl.BlockSpec((R1, 1), lambda i: (i, 0)),         # p slab (BT batch elements)
        const_spec(w1.shape), const_spec(b1.shape),
        const_spec(w2.shape), const_spec(b2.shape),
        const_spec(wlin.shape), const_spec(blin.shape),
        const_spec(whead.shape), const_spec(bhead.shape),
    ]
    # Kernel emits rows grouped by output position: (O, BT, 256) blocks.
    out_specs = (
        pl.BlockSpec((O, BT, out_dim), lambda i: (0, i, 0)),
        pl.BlockSpec((O, BT, out_dim), lambda i: (0, i, 0)),
    )
    out_shape = (
        jax.ShapeDtypeStruct((O, B, out_dim), f32),
        jax.ShapeDtypeStruct((O, B, out_dim), f32),
    )
    scratch_shapes = [
        pltpu.VMEM((R1, 32), f32),    # conv1 output (pooled via stride-2 reads)
        pltpu.VMEM((R2, 64), f32),    # conv2 output (pooled via stride-L2 reads)
    ]

    phase_obk, wt_obk = pl.pallas_call(
        kernel,
        out_shape=out_shape,
        grid=(B // BT,),
        in_specs=in_specs,
        out_specs=out_specs,
        scratch_shapes=scratch_shapes,
        compiler_params=pltpu.CompilerParams(
            dimension_semantics=("parallel",)),
    )(p_col, w1, b1, w2, b2, wlin, blin, whead, bhead)

    # Single reorder back to (B, output_length, 256) — wrapper-side plumbing only.
    return (jnp.transpose(phase_obk, (1, 0, 2)),
            jnp.transpose(wt_obk, (1, 0, 2)))


def _reference_forward(p, params):
    """Pure-JAX f32 reference of model1D.forward (returns normalized log-probs)."""
    B, L = p.shape

    def conv1d(x, w, b):  # x (B, Ci, L), w (Co, Ci, 3), padding=1
        xp = jnp.pad(x, ((0, 0), (0, 0), (1, 1)))
        n = x.shape[-1]
        out = sum(jnp.einsum('bcl,oc->bol', xp[:, :, k:k + n], w[:, :, k])
                  for k in range(w.shape[-1]))
        return out + b[None, :, None]

    y = jax.nn.relu(conv1d(p[:, None, :], params["conv1_w"], params["conv1_b"]))
    y = jnp.max(y.reshape(B, 32, L // 2, 2), axis=-1)
    y = jax.nn.relu(conv1d(y, params["conv2_w"], params["conv2_b"]))
    y = jnp.max(y.reshape(B, 64, L // 4, 2), axis=-1)
    z = jnp.einsum('bcl,ol->bco', y, params["linear_w"]) + params["linear_b"]
    z = jnp.transpose(z, (0, 2, 1))                      # permute(0, 2, 1)
    ph = jnp.einsum('boc,kc->bok', z, params["phase_w"]) + params["phase_b"]
    wt = jnp.einsum('boc,kc->bok', z, params["wt_w"]) + params["wt_b"]
    return jax.nn.log_softmax(ph, axis=-1), jax.nn.log_softmax(wt, axis=-1)


if __name__ == "__main__":
    # model1D(input_length=16, output_length=8), batch=64 -> BT=32, grid of 2.
    B, L, O, OUT_DIM = 64, 16, 8, 256
    assert L % 4 == 0

    key = jax.random.PRNGKey(0)
    ks = jax.random.split(key, 11)
    # Parameters in PyTorch layout (conv: (out, in, k); linear: (out, in)).
    params = {
        "conv1_w":  0.3 * jax.random.normal(ks[0], (32, 1, 3), jnp.float32),
        "conv1_b":  0.3 * jax.random.normal(ks[1], (32,), jnp.float32),
        "conv2_w":  0.3 * jax.random.normal(ks[2], (64, 32, 3), jnp.float32),
        "conv2_b":  0.3 * jax.random.normal(ks[3], (64,), jnp.float32),
        "linear_w": 0.3 * jax.random.normal(ks[4], (O, L // 4), jnp.float32),
        "linear_b": 0.3 * jax.random.normal(ks[5], (O,), jnp.float32),
        "phase_w":  0.3 * jax.random.normal(ks[6], (OUT_DIM, 64), jnp.float32),
        "phase_b":  0.3 * jax.random.normal(ks[7], (OUT_DIM,), jnp.float32),
        "wt_w":     0.3 * jax.random.normal(ks[8], (OUT_DIM, 64), jnp.float32),
        "wt_b":     0.3 * jax.random.normal(ks[9], (OUT_DIM,), jnp.float32),
    }
    p = jax.random.normal(ks[10], (B, L), jnp.float32)

    # TODO(synk): torch.distributions.Categorical objects have no Pallas
    # equivalent; the kernel returns the normalized log-probabilities that
    # fully parameterize both distributions.
    phase_logprobs, wt_logprobs = model1d_forward(p, params)
    jax.block_until_ready((phase_logprobs, wt_logprobs))

    assert phase_logprobs.shape == (B, O, OUT_DIM)
    assert wt_logprobs.shape == (B, O, OUT_DIM)

    # Sanity: Categorical log-probs must normalize.
    assert float(jnp.max(jnp.abs(jnp.exp(phase_logprobs).sum(-1) - 1.0))) < 1e-3
    assert float(jnp.max(jnp.abs(jnp.exp(wt_logprobs).sum(-1) - 1.0))) < 1e-3

    # Loose check vs the pure-JAX f32 reference (bf16 MXU operands -> ~1e-2 drift).
    ref_ph, ref_wt = _reference_forward(p, params)
    err_ph = float(jnp.max(jnp.abs(phase_logprobs - ref_ph)))
    err_wt = float(jnp.max(jnp.abs(wt_logprobs - ref_wt)))
    assert err_ph < 0.5 and err_wt < 0.5, (err_ph, err_wt)

    print("KERNEL_OK")
</pallas_src>

<mosaic_0001>
module attributes {stable_mosaic.version = 11 : i64} {
  func.func @_model1d_kernel(%arg0: i32, %arg1: memref<512x1xf32, #tpu.memory_space<vmem>>, %arg2: memref<3x32xf32, #tpu.memory_space<vmem>>, %arg3: memref<1x32xf32, #tpu.memory_space<vmem>>, %arg4: memref<96x64xbf16, #tpu.memory_space<vmem>>, %arg5: memref<1x64xf32, #tpu.memory_space<vmem>>, %arg6: memref<8x4xf32, #tpu.memory_space<vmem>>, %arg7: memref<8x1xf32, #tpu.memory_space<vmem>>, %arg8: memref<64x512xbf16, #tpu.memory_space<vmem>>, %arg9: memref<1x512xf32, #tpu.memory_space<vmem>>, %arg10: memref<8x32x256xf32, #tpu.memory_space<vmem>>, %arg11: memref<8x32x256xf32, #tpu.memory_space<vmem>>, %arg12: memref<512x32xf32, #tpu.memory_space<vmem>>, %arg13: memref<256x64xf32, #tpu.memory_space<vmem>>) attributes {dimension_semantics = [#tpu.dimension_semantics<parallel>], iteration_bounds = array<i64: 2>, scalar_prefetch = 0 : i64, scratch_operands = 2 : i64, tpu.core_type = #tpu.core_type<tc>, window_params = [{transform_indices = @transform_0, window_bounds = array<i64: 512, 1>}, {pipeline_mode = #tpu.pipeline_mode<synchronous>, transform_indices = @transform_1, window_bounds = array<i64: 3, 32>}, {pipeline_mode = #tpu.pipeline_mode<synchronous>, transform_indices = @transform_2, window_bounds = array<i64: 1, 32>}, {pipeline_mode = #tpu.pipeline_mode<synchronous>, transform_indices = @transform_3, window_bounds = array<i64: 96, 64>}, {pipeline_mode = #tpu.pipeline_mode<synchronous>, transform_indices = @transform_4, window_bounds = array<i64: 1, 64>}, {pipeline_mode = #tpu.pipeline_mode<synchronous>, transform_indices = @transform_5, window_bounds = array<i64: 8, 4>}, {pipeline_mode = #tpu.pipeline_mode<synchronous>, transform_indices = @transform_6, window_bounds = array<i64: 8, 1>}, {pipeline_mode = #tpu.pipeline_mode<synchronous>, transform_indices = @transform_7, window_bounds = array<i64: 64, 512>}, {pipeline_mode = #tpu.pipeline_mode<synchronous>, transform_indices = @transform_8, window_bounds = array<i64: 1, 512>}, {transform_indices = @transform_9, window_bounds = array<i64: 8, 32, 256>}, {transform_indices = @transform_10, window_bounds = array<i64: 8, 32, 256>}]} {
    %c0 = arith.constant 0 : index
    %c0_0 = arith.constant 0 : index
    %0 = vector.load %arg1[%c0, %c0_0] : memref<512x1xf32, #tpu.memory_space<vmem>>, vector<512x1xf32>
    %c1_i32 = arith.constant 1 : i32
    %1 = tpu.dynamic_rotate %0 by %c1_i32 dim 0 : vector<512x1xf32>, i32 -> vector<512x1xf32>
    %c511_i32 = arith.constant 511 : i32
    %2 = tpu.dynamic_rotate %0 by %c511_i32 dim 0 : vector<512x1xf32>, i32 -> vector<512x1xf32>
    %3 = tpu.iota {dimensions = array<i32: 0>} : vector<512x1xi32>
    %c16_i32 = arith.constant 16 : i32
    %c0_i32 = arith.constant 0 : i32
    %4 = arith.cmpi eq, %c16_i32, %c0_i32 : i32
    %c1_i32_1 = arith.constant 1 : i32
    %5 = arith.select %4, %c1_i32_1, %c16_i32 : i32
    %6 = vector.broadcast %5 : i32 to vector<512x1xi32>
    %7 = arith.remsi %3, %6 : vector<512x1xi32>
    %c0_i32_2 = arith.constant 0 : i32
    %8 = vector.broadcast %c0_i32_2 : i32 to vector<512x1xi32>
    %9 = arith.cmpi ne, %7, %8 : vector<512x1xi32>
    %c0_i32_3 = arith.constant 0 : i32
    %10 = vector.broadcast %c0_i32_3 : i32 to vector<512x1xi32>
    %11 = arith.cmpi slt, %7, %10 : vector<512x1xi32>
    %c0_i32_4 = arith.constant 0 : i32
    %12 = arith.cmpi slt, %5, %c0_i32_4 : i32
    %13 = vector.broadcast %12 : i1 to vector<512x1xi1>
    %14 = vector.broadcast %13 : vector<512x1xi1> to vector<512x1xi1>
    %15 = arith.xori %11, %14 : vector<512x1xi1>
    %16 = arith.andi %15, %9 : vector<512x1xi1>
    %17 = vector.broadcast %5 : i32 to vector<512x1xi32>
    %18 = arith.addi %7, %17 : vector<512x1xi32>
    %19 = arith.select %16, %18, %7 : vector<512x1xi1>, vector<512x1xi32>
    %c0_i32_5 = arith.constant 0 : i32
    %20 = vector.broadcast %c0_i32_5 : i32 to vector<512x1xi32>
    %21 = arith.cmpi eq, %19, %20 : vector<512x1xi32>
    %cst = arith.constant 0.000000e+00 : f32
    %22 = vector.broadcast %cst : f32 to vector<512x1xf32>
    %23 = arith.select %21, %22, %1 : vector<512x1xi1>, vector<512x1xf32>
    %c15_i32 = arith.constant 15 : i32
    %24 = vector.broadcast %c15_i32 : i32 to vector<512x1xi32>
    %25 = arith.cmpi eq, %19, %24 : vector<512x1xi32>
    %cst_6 = arith.constant 0.000000e+00 : f32
    %26 = vector.broadcast %cst_6 : f32 to vector<512x1xf32>
    %27 = arith.select %25, %26, %2 : vector<512x1xi1>, vector<512x1xf32>
    %c0_7 = arith.constant 0 : index
    %c0_8 = arith.constant 0 : index
    %28 = vector.load %arg2[%c0_7, %c0_8] : memref<3x32xf32, #tpu.memory_space<vmem>>, vector<1x32xf32>
    %29 = vector.broadcast %23 : vector<512x1xf32> to vector<512x32xf32>
    %30 = vector.broadcast %28 : vector<1x32xf32> to vector<512x32xf32>
    %31 = arith.mulf %29, %30 : vector<512x32xf32>
    %c1 = arith.constant 1 : index
    %c0_9 = arith.constant 0 : index
    %32 = vector.load %arg2[%c1, %c0_9] : memref<3x32xf32, #tpu.memory_space<vmem>>, vector<1x32xf32>
    %33 = vector.broadcast %0 : vector<512x1xf32> to vector<512x32xf32>
    %34 = vector.broadcast %32 : vector<1x32xf32> to vector<512x32xf32>
    %35 = arith.mulf %33, %34 : vector<512x32xf32>
    %36 = arith.addf %31, %35 : vector<512x32xf32>
    %c2 = arith.constant 2 : index
    %c0_10 = arith.constant 0 : index
    %37 = vector.load %arg2[%c2, %c0_10] : memref<3x32xf32, #tpu.memory_space<vmem>>, vector<1x32xf32>
    %38 = vector.broadcast %27 : vector<512x1xf32> to vector<512x32xf32>
    %39 = vector.broadcast %37 : vector<1x32xf32> to vector<512x32xf32>
    %40 = arith.mulf %38, %39 : vector<512x32xf32>
    %41 = arith.addf %36, %40 : vector<512x32xf32>
    %c0_11 = arith.constant 0 : index
    %c0_12 = arith.constant 0 : index
    %42 = vector.load %arg3[%c0_11, %c0_12] : memref<1x32xf32, #tpu.memory_space<vmem>>, vector<1x32xf32>
    %43 = vector.broadcast %42 : vector<1x32xf32> to vector<512x32xf32>
    %44 = arith.addf %41, %43 : vector<512x32xf32>
    %cst_13 = arith.constant 0.000000e+00 : f32
    %45 = vector.broadcast %cst_13 : f32 to vector<512x32xf32>
    %46 = arith.maximumf %44, %45 : vector<512x32xf32>
    %c0_14 = arith.constant 0 : index
    %c0_15 = arith.constant 0 : index
    %47 = vector.load %arg12[%c0_14, %c0_15] : memref<512x32xf32, #tpu.memory_space<vmem>>, vector<512x32xf32>
    tpu.vector_store %arg12[%c0_14, %c0_15], %46 {strides = array<i32>} : memref<512x32xf32, #tpu.memory_space<vmem>>, vector<512x32xf32>,
    %c0_16 = arith.constant 0 : index
    %c0_17 = arith.constant 0 : index
    %48 = tpu.strided_load %arg12[%c0_16, %c0_17] {strides = array<i32: 2, 1>} : memref<512x32xf32, #tpu.memory_space<vmem>>, vector<256x32xf32>
    %c1_18 = arith.constant 1 : index
    %c0_19 = arith.constant 0 : index
    %49 = tpu.strided_load %arg12[%c1_18, %c0_19] {strides = array<i32: 2, 1>} : memref<512x32xf32, #tpu.memory_space<vmem>>, vector<256x32xf32>
    %50 = arith.maximumf %48, %49 : vector<256x32xf32>
    %c1_i32_20 = arith.constant 1 : i32
    %51 = tpu.dynamic_rotate %50 by %c1_i32_20 dim 0 : vector<256x32xf32>, i32 -> vector<256x32xf32>
    %c255_i32 = arith.constant 255 : i32
    %52 = tpu.dynamic_rotate %50 by %c255_i32 dim 0 : vector<256x32xf32>, i32 -> vector<256x32xf32>
    %53 = tpu.iota {dimensions = array<i32: 0>} : vector<256x1xi32>
    %c8_i32 = arith.constant 8 : i32
    %c0_i32_21 = arith.constant 0 : i32
    %54 = arith.cmpi eq, %c8_i32, %c0_i32_21 : i32
    %c1_i32_22 = arith.constant 1 : i32
    %55 = arith.select %54, %c1_i32_22, %c8_i32 : i32
    %56 = vector.broadcast %55 : i32 to vector<256x1xi32>
    %57 = arith.remsi %53, %56 : vector<256x1xi32>
    %c0_i32_23 = arith.constant 0 : i32
    %58 = vector.broadcast %c0_i32_23 : i32 to vector<256x1xi32>
    %59 = arith.cmpi ne, %57, %58 : vector<256x1xi32>
    %c0_i32_24 = arith.constant 0 : i32
    %60 = vector.broadcast %c0_i32_24 : i32 to vector<256x1xi32>
    %61 = arith.cmpi slt, %57, %60 : vector<256x1xi32>
    %c0_i32_25 = arith.constant 0 : i32
    %62 = arith.cmpi slt, %55, %c0_i32_25 : i32
    %63 = vector.broadcast %62 : i1 to vector<256x1xi1>
    %64 = vector.broadcast %63 : vector<256x1xi1> to vector<256x1xi1>
    %65 = arith.xori %61, %64 : vector<256x1xi1>
    %66 = arith.andi %65, %59 : vector<256x1xi1>
    %67 = vector.broadcast %55 : i32 to vector<256x1xi32>
    %68 = arith.addi %57, %67 : vector<256x1xi32>
    %69 = arith.select %66, %68, %57 : vector<256x1xi1>, vector<256x1xi32>
    %c0_i32_26 = arith.constant 0 : i32
    %70 = vector.broadcast %c0_i32_26 : i32 to vector<256x1xi32>
    %71 = arith.cmpi eq, %69, %70 : vector<256x1xi32>
    %cst_27 = arith.constant 0.000000e+00 : f32
    %72 = vector.shape_cast %71 : vector<256x1xi1> to vector<256x1xi1>
    %73 = vector.broadcast %72 : vector<256x1xi1> to vector<256x32xi1>
    %74 = vector.broadcast %cst_27 : f32 to vector<256x32xf32>
    %75 = arith.select %73, %74, %51 : vector<256x32xi1>, vector<256x32xf32>
    %c7_i32 = arith.constant 7 : i32
    %76 = vector.broadcast %c7_i32 : i32 to vector<256x1xi32>
    %77 = arith.cmpi eq, %69, %76 : vector<256x1xi32>
    %cst_28 = arith.constant 0.000000e+00 : f32
    %78 = vector.shape_cast %77 : vector<256x1xi1> to vector<256x1xi1>
    %79 = vector.broadcast %78 : vector<256x1xi1> to vector<256x32xi1>
    %80 = vector.broadcast %cst_28 : f32 to vector<256x32xf32>
    %81 = arith.select %79, %80, %52 : vector<256x32xi1>, vector<256x32xf32>
    %82 = tpu.concatenate %75, %50, %81 in 1 : vector<256x32xf32>, vector<256x32xf32>, vector<256x32xf32> -> vector<256x96xf32>
    %83 = arith.truncf %82 : vector<256x96xf32> to vector<256x96xbf16>
    %c0_29 = arith.constant 0 : index
    %c0_30 = arith.constant 0 : index
    %84 = vector.load %arg4[%c0_29, %c0_30] : memref<96x64xbf16, #tpu.memory_space<vmem>>, vector<96x64xbf16>
    %cst_31 = arith.constant dense<0.000000e+00> : vector<256x64xf32>
    %85 = tpu.matmul %83, %84, %cst_31 {dimension_numbers = #tpu.dot_dimension_numbers<[1], [0], [0], [1], [0, 0, 1, 1], [], []>} : vector<256x96xbf16>, vector<96x64xbf16>, vector<256x64xf32> -> vector<256x64xf32>
    %c0_32 = arith.constant 0 : index
    %c0_33 = arith.constant 0 : index
    %86 = vector.load %arg5[%c0_32, %c0_33] : memref<1x64xf32, #tpu.memory_space<vmem>>, vector<1x64xf32>
    %87 = vector.broadcast %86 : vector<1x64xf32> to vector<256x64xf32>
    %88 = arith.addf %85, %87 : vector<256x64xf32>
    %cst_34 = arith.constant 0.000000e+00 : f32
    %89 = vector.broadcast %cst_34 : f32 to vector<256x64xf32>
    %90 = arith.maximumf %88, %89 : vector<256x64xf32>
    %c0_35 = arith.constant 0 : index
    %c0_36 = arith.constant 0 : index
    %91 = vector.load %arg13[%c0_35, %c0_36] : memref<256x64xf32, #tpu.memory_space<vmem>>, vector<256x64xf32>
    tpu.vector_store %arg13[%c0_35, %c0_36], %90 {strides = array<i32>} : memref<256x64xf32, #tpu.memory_space<vmem>>, vector<256x64xf32>,
    %c0_37 = arith.constant 0 : index
    %c0_38 = arith.constant 0 : index
    %92 = tpu.strided_load %arg13[%c0_37, %c0_38] {strides = array<i32: 8, 1>} : memref<256x64xf32, #tpu.memory_space<vmem>>, vector<32x64xf32>
    %c1_39 = arith.constant 1 : index
    %c0_40 = arith.constant 0 : index
    %93 = tpu.strided_load %arg13[%c1_39, %c0_40] {strides = array<i32: 8, 1>} : memref<256x64xf32, #tpu.memory_space<vmem>>, vector<32x64xf32>
    %94 = arith.maximumf %92, %93 : vector<32x64xf32>
    %c2_41 = arith.constant 2 : index
    %c0_42 = arith.constant 0 : index
    %95 = tpu.strided_load %arg13[%c2_41, %c0_42] {strides = array<i32: 8, 1>} : memref<256x64xf32, #tpu.memory_space<vmem>>, vector<32x64xf32>
    %c3 = arith.constant 3 : index
    %c0_43 = arith.constant 0 : index
    %96 = tpu.strided_load %arg13[%c3, %c0_43] {strides = array<i32: 8, 1>} : memref<256x64xf32, #tpu.memory_space<vmem>>, vector<32x64xf32>
    %97 = arith.maximumf %95, %96 : vector<32x64xf32>
    %c4 = arith.constant 4 : index
    %c0_44 = arith.constant 0 : index
    %98 = tpu.strided_load %arg13[%c4, %c0_44] {strides = array<i32: 8, 1>} : memref<256x64xf32, #tpu.memory_space<vmem>>, vector<32x64xf32>
    %c5 = arith.constant 5 : index
    %c0_45 = arith.constant 0 : index
    %99 = tpu.strided_load %arg13[%c5, %c0_45] {strides = array<i32: 8, 1>} : memref<256x64xf32, #tpu.memory_space<vmem>>, vector<32x64xf32>
    %100 = arith.maximumf %98, %99 : vector<32x64xf32>
    %c6 = arith.constant 6 : index
    %c0_46 = arith.constant 0 : index
    %101 = tpu.strided_load %arg13[%c6, %c0_46] {strides = array<i32: 8, 1>} : memref<256x64xf32, #tpu.memory_space<vmem>>, vector<32x64xf32>
    %c7 = arith.constant 7 : index
    %c0_47 = arith.constant 0 : index
    %102 = tpu.strided_load %arg13[%c7, %c0_47] {strides = array<i32: 8, 1>} : memref<256x64xf32, #tpu.memory_space<vmem>>, vector<32x64xf32>
    %103 = arith.maximumf %101, %102 : vector<32x64xf32>
    %c0_48 = arith.constant 0 : index
    %c0_49 = arith.constant 0 : index
    %104 = vector.load %arg6[%c0_48, %c0_49] : memref<8x4xf32, #tpu.memory_space<vmem>>, vector<1x1xf32>
    %105 = vector.broadcast %104 : vector<1x1xf32> to vector<32x64xf32>
    %106 = arith.mulf %94, %105 : vector<32x64xf32>
    %c0_50 = arith.constant 0 : index
    %c1_51 = arith.constant 1 : index
    %107 = vector.load %arg6[%c0_50, %c1_51] : memref<8x4xf32, #tpu.memory_space<vmem>>, vector<1x1xf32>
    %108 = vector.broadcast %107 : vector<1x1xf32> to vector<32x64xf32>
    %109 = arith.mulf %97, %108 : vector<32x64xf32>
    %110 = arith.addf %106, %109 : vector<32x64xf32>
    %c0_52 = arith.constant 0 : index
    %c2_53 = arith.constant 2 : index
    %111 = vector.load %arg6[%c0_52, %c2_53] : memref<8x4xf32, #tpu.memory_space<vmem>>, vector<1x1xf32>
    %112 = vector.broadcast %111 : vector<1x1xf32> to vector<32x64xf32>
    %113 = arith.mulf %100, %112 : vector<32x64xf32>
    %114 = arith.addf %110, %113 : vector<32x64xf32>
    %c0_54 = arith.constant 0 : index
    %c3_55 = arith.constant 3 : index
    %115 = vector.load %arg6[%c0_54, %c3_55] : memref<8x4xf32, #tpu.memory_space<vmem>>, vector<1x1xf32>
    %116 = vector.broadcast %115 : vector<1x1xf32> to vector<32x64xf32>
    %117 = arith.mulf %103, %116 : vector<32x64xf32>
    %118 = arith.addf %114, %117 : vector<32x64xf32>
    %c0_56 = arith.constant 0 : index
    %c0_57 = arith.constant 0 : index
    %119 = vector.load %arg7[%c0_56, %c0_57] : memref<8x1xf32, #tpu.memory_space<vmem>>, vector<1x1xf32>
    %120 = vector.broadcast %119 : vector<1x1xf32> to vector<32x64xf32>
    %121 = arith.addf %118, %120 : vector<32x64xf32>
    %c1_58 = arith.constant 1 : index
    %c0_59 = arith.constant 0 : index
    %122 = vector.load %arg6[%c1_58, %c0_59] : memref<8x4xf32, #tpu.memory_space<vmem>>, vector<1x1xf32>
    %123 = vector.broadcast %122 : vector<1x1xf32> to vector<32x64xf32>
    %124 = arith.mulf %94, %123 : vector<32x64xf32>
    %c1_60 = arith.constant 1 : index
    %c1_61 = arith.constant 1 : index
    %125 = vector.load %arg6[%c1_60, %c1_61] : memref<8x4xf32, #tpu.memory_space<vmem>>, vector<1x1xf32>
    %126 = vector.broadcast %125 : vector<1x1xf32> to vector<32x64xf32>
    %127 = arith.mulf %97, %126 : vector<32x64xf32>
    %128 = arith.addf %124, %127 : vector<32x64xf32>
    %c1_62 = arith.constant 1 : index
    %c2_63 = arith.constant 2 : index
    %129 = vector.load %arg6[%c1_62, %c2_63] : memref<8x4xf32, #tpu.memory_space<vmem>>, vector<1x1xf32>
    %130 = vector.broadcast %129 : vector<1x1xf32> to vector<32x64xf32>
    %131 = arith.mulf %100, %130 : vector<32x64xf32>
    %132 = arith.addf %128, %131 : vector<32x64xf32>
    %c1_64 = arith.constant 1 : index
    %c3_65 = arith.constant 3 : index
    %133 = vector.load %arg6[%c1_64, %c3_65] : memref<8x4xf32, #tpu.memory_space<vmem>>, vector<1x1xf32>
    %134 = vector.broadcast %133 : vector<1x1xf32> to vector<32x64xf32>
    %135 = arith.mulf %103, %134 : vector<32x64xf32>
    %136 = arith.addf %132, %135 : vector<32x64xf32>
    %c1_66 = arith.constant 1 : index
    %c0_67 = arith.constant 0 : index
    %137 = vector.load %arg7[%c1_66, %c0_67] : memref<8x1xf32, #tpu.memory_space<vmem>>, vector<1x1xf32>
    %138 = vector.broadcast %137 : vector<1x1xf32> to vector<32x64xf32>
    %139 = arith.addf %136, %138 : vector<32x64xf32>
    %c2_68 = arith.constant 2 : index
    %c0_69 = arith.constant 0 : index
    %140 = vector.load %arg6[%c2_68, %c0_69] : memref<8x4xf32, #tpu.memory_space<vmem>>, vector<1x1xf32>
    %141 = vector.broadcast %140 : vector<1x1xf32> to vector<32x64xf32>
    %142 = arith.mulf %94, %141 : vector<32x64xf32>
    %c2_70 = arith.constant 2 : index
    %c1_71 = arith.constant 1 : index
    %143 = vector.load %arg6[%c2_70, %c1_71] : memref<8x4xf32, #tpu.memory_space<vmem>>, vector<1x1xf32>
    %144 = vector.broadcast %143 : vector<1x1xf32> to vector<32x64xf32>
    %145 = arith.mulf %97, %144 : vector<32x64xf32>
    %146 = arith.addf %142, %145 : vector<32x64xf32>
    %c2_72 = arith.constant 2 : index
    %c2_73 = arith.constant 2 : index
    %147 = vector.load %arg6[%c2_72, %c2_73] : memref<8x4xf32, #tpu.memory_space<vmem>>, vector<1x1xf32>
    %148 = vector.broadcast %147 : vector<1x1xf32> to vector<32x64xf32>
    %149 = arith.mulf %100, %148 : vector<32x64xf32>
    %150 = arith.addf %146, %149 : vector<32x64xf32>
    %c2_74 = arith.constant 2 : index
    %c3_75 = arith.constant 3 : index
    %151 = vector.load %arg6[%c2_74, %c3_75] : memref<8x4xf32, #tpu.memory_space<vmem>>, vector<1x1xf32>
    %152 = vector.broadcast %151 : vector<1x1xf32> to vector<32x64xf32>
    %153 = arith.mulf %103, %152 : vector<32x64xf32>
    %154 = arith.addf %150, %153 : vector<32x64xf32>
    %c2_76 = arith.constant 2 : index
    %c0_77 = arith.constant 0 : index
    %155 = vector.load %arg7[%c2_76, %c0_77] : memref<8x1xf32, #tpu.memory_space<vmem>>, vector<1x1xf32>
    %156 = vector.broadcast %155 : vector<1x1xf32> to vector<32x64xf32>
    %157 = arith.addf %154, %156 : vector<32x64xf32>
    %c3_78 = arith.constant 3 : index
    %c0_79 = arith.constant 0 : index
    %158 = vector.load %arg6[%c3_78, %c0_79] : memref<8x4xf32, #tpu.memory_space<vmem>>, vector<1x1xf32>
    %159 = vector.broadcast %158 : vector<1x1xf32> to vector<32x64xf32>
    %160 = arith.mulf %94, %159 : vector<32x64xf32>
    %c3_80 = arith.constant 3 : index
    %c1_81 = arith.constant 1 : index
    %161 = vector.load %arg6[%c3_80, %c1_81] : memref<8x4xf32, #tpu.memory_space<vmem>>, vector<1x1xf32>
    %162 = vector.broadcast %161 : vector<1x1xf32> to vector<32x64xf32>
    %163 = arith.mulf %97, %162 : vector<32x64xf32>
    %164 = arith.addf %160, %163 : vector<32x64xf32>
    %c3_82 = arith.constant 3 : index
    %c2_83 = arith.constant 2 : index
    %165 = vector.load %arg6[%c3_82, %c2_83] : memref<8x4xf32, #tpu.memory_space<vmem>>, vector<1x1xf32>
    %166 = vector.broadcast %165 : vector<1x1xf32> to vector<32x64xf32>
    %167 = arith.mulf %100, %166 : vector<32x64xf32>
    %168 = arith.addf %164, %167 : vector<32x64xf32>
    %c3_84 = arith.constant 3 : index
    %c3_85 = arith.constant 3 : index
    %169 = vector.load %arg6[%c3_84, %c3_85] : memref<8x4xf32, #tpu.memory_space<vmem>>, vector<1x1xf32>
    %170 = vector.broadcast %169 : vector<1x1xf32> to vector<32x64xf32>
    %171 = arith.mulf %103, %170 : vector<32x64xf32>
    %172 = arith.addf %168, %171 : vector<32x64xf32>
    %c3_86 = arith.constant 3 : index
    %c0_87 = arith.constant 0 : index
    %173 = vector.load %arg7[%c3_86, %c0_87] : memref<8x1xf32, #tpu.memory_space<vmem>>, vector<1x1xf32>
    %174 = vector.broadcast %173 : vector<1x1xf32> to vector<32x64xf32>
    %175 = arith.addf %172, %174 : vector<32x64xf32>
    %c4_88 = arith.constant 4 : index
    %c0_89 = arith.constant 0 : index
    %176 = vector.load %arg6[%c4_88, %c0_89] : memref<8x4xf32, #tpu.memory_space<vmem>>, vector<1x1xf32>
    %177 = vector.broadcast %176 : vector<1x1xf32> to vector<32x64xf32>
    %178 = arith.mulf %94, %177 : vector<32x64xf32>
    %c4_90 = arith.constant 4 : index
    %c1_91 = arith.constant 1 : index
    %179 = vector.load %arg6[%c4_90, %c1_91] : memref<8x4xf32, #tpu.memory_space<vmem>>, vector<1x1xf32>
    %180 = vector.broadcast %179 : vector<1x1xf32> to vector<32x64xf32>
    %181 = arith.mulf %97, %180 : vector<32x64xf32>
    %182 = arith.addf %178, %181 : vector<32x64xf32>
    %c4_92 = arith.constant 4 : index
    %c2_93 = arith.constant 2 : index
    %183 = vector.load %arg6[%c4_92, %c2_93] : memref<8x4xf32, #tpu.memory_space<vmem>>, vector<1x1xf32>
    %184 = vector.broadcast %183 : vector<1x1xf32> to vector<32x64xf32>
    %185 = arith.mulf %100, %184 : vector<32x64xf32>
    %186 = arith.addf %182, %185 : vector<32x64xf32>
    %c4_94 = arith.constant 4 : index
    %c3_95 = arith.constant 3 : index
    %187 = vector.load %arg6[%c4_94, %c3_95] : memref<8x4xf32, #tpu.memory_space<vmem>>, vector<1x1xf32>
    %188 = vector.broadcast %187 : vector<1x1xf32> to vector<32x64xf32>
    %189 = arith.mulf %103, %188 : vector<32x64xf32>
    %190 = arith.addf %186, %189 : vector<32x64xf32>
    %c4_96 = arith.constant 4 : index
    %c0_97 = arith.constant 0 : index
    %191 = vector.load %arg7[%c4_96, %c0_97] : memref<8x1xf32, #tpu.memory_space<vmem>>, vector<1x1xf32>
    %192 = vector.broadcast %191 : vector<1x1xf32> to vector<32x64xf32>
    %193 = arith.addf %190, %192 : vector<32x64xf32>
    %c5_98 = arith.constant 5 : index
    %c0_99 = arith.constant 0 : index
    %194 = vector.load %arg6[%c5_98, %c0_99] : memref<8x4xf32, #tpu.memory_space<vmem>>, vector<1x1xf32>
    %195 = vector.broadcast %194 : vector<1x1xf32> to vector<32x64xf32>
    %196 = arith.mulf %94, %195 : vector<32x64xf32>
    %c5_100 = arith.constant 5 : index
    %c1_101 = arith.constant 1 : index
    %197 = vector.load %arg6[%c5_100, %c1_101] : memref<8x4xf32, #tpu.memory_space<vmem>>, vector<1x1xf32>
    %198 = vector.broadcast %197 : vector<1x1xf32> to vector<32x64xf32>
    %199 = arith.mulf %97, %198 : vector<32x64xf32>
    %200 = arith.addf %196, %199 : vector<32x64xf32>
    %c5_102 = arith.constant 5 : index
    %c2_103 = arith.constant 2 : index
    %201 = vector.load %arg6[%c5_102, %c2_103] : memref<8x4xf32, #tpu.memory_space<vmem>>, vector<1x1xf32>
    %202 = vector.broadcast %201 : vector<1x1xf32> to vector<32x64xf32>
    %203 = arith.mulf %100, %202 : vector<32x64xf32>
    %204 = arith.addf %200, %203 : vector<32x64xf32>
    %c5_104 = arith.constant 5 : index
    %c3_105 = arith.constant 3 : index
    %205 = vector.load %arg6[%c5_104, %c3_105] : memref<8x4xf32, #tpu.memory_space<vmem>>, vector<1x1xf32>
    %206 = vector.broadcast %205 : vector<1x1xf32> to vector<32x64xf32>
    %207 = arith.mulf %103, %206 : vector<32x64xf32>
    %208 = arith.addf %204, %207 : vector<32x64xf32>
    %c5_106 = arith.constant 5 : index
    %c0_107 = arith.constant 0 : index
    %209 = vector.load %arg7[%c5_106, %c0_107] : memref<8x1xf32, #tpu.memory_space<vmem>>, vector<1x1xf32>
    %210 = vector.broadcast %209 : vector<1x1xf32> to vector<32x64xf32>
    %211 = arith.addf %208, %210 : vector<32x64xf32>
    %c6_108 = arith.constant 6 : index
    %c0_109 = arith.constant 0 : index
    %212 = vector.load %arg6[%c6_108, %c0_109] : memref<8x4xf32, #tpu.memory_space<vmem>>, vector<1x1xf32>
    %213 = vector.broadcast %212 : vector<1x1xf32> to vector<32x64xf32>
    %214 = arith.mulf %94, %213 : vector<32x64xf32>
    %c6_110 = arith.constant 6 : index
    %c1_111 = arith.constant 1 : index
    %215 = vector.load %arg6[%c6_110, %c1_111] : memref<8x4xf32, #tpu.memory_space<vmem>>, vector<1x1xf32>
    %216 = vector.broadcast %215 : vector<1x1xf32> to vector<32x64xf32>
    %217 = arith.mulf %97, %216 : vector<32x64xf32>
    %218 = arith.addf %214, %217 : vector<32x64xf32>
    %c6_112 = arith.constant 6 : index
    %c2_113 = arith.constant 2 : index
    %219 = vector.load %arg6[%c6_112, %c2_113] : memref<8x4xf32, #tpu.memory_space<vmem>>, vector<1x1xf32>
    %220 = vector.broadcast %219 : vector<1x1xf32> to vector<32x64xf32>
    %221 = arith.mulf %100, %220 : vector<32x64xf32>
    %222 = arith.addf %218, %221 : vector<32x64xf32>
    %c6_114 = arith.constant 6 : index
    %c3_115 = arith.constant 3 : index
    %223 = vector.load %arg6[%c6_114, %c3_115] : memref<8x4xf32, #tpu.memory_space<vmem>>, vector<1x1xf32>
    %224 = vector.broadcast %223 : vector<1x1xf32> to vector<32x64xf32>
    %225 = arith.mulf %103, %224 : vector<32x64xf32>
    %226 = arith.addf %222, %225 : vector<32x64xf32>
    %c6_116 = arith.constant 6 : index
    %c0_117 = arith.constant 0 : index
    %227 = vector.load %arg7[%c6_116, %c0_117] : memref<8x1xf32, #tpu.memory_space<vmem>>, vector<1x1xf32>
    %228 = vector.broadcast %227 : vector<1x1xf32> to vector<32x64xf32>
    %229 = arith.addf %226, %228 : vector<32x64xf32>
    %c7_118 = arith.constant 7 : index
    %c0_119 = arith.constant 0 : index
    %230 = vector.load %arg6[%c7_118, %c0_119] : memref<8x4xf32, #tpu.memory_space<vmem>>, vector<1x1xf32>
    %231 = vector.broadcast %230 : vector<1x1xf32> to vector<32x64xf32>
    %232 = arith.mulf %94, %231 : vector<32x64xf32>
    %c7_120 = arith.constant 7 : index
    %c1_121 = arith.constant 1 : index
    %233 = vector.load %arg6[%c7_120, %c1_121] : memref<8x4xf32, #tpu.memory_space<vmem>>, vector<1x1xf32>
    %234 = vector.broadcast %233 : vector<1x1xf32> to vector<32x64xf32>
    %235 = arith.mulf %97, %234 : vector<32x64xf32>
    %236 = arith.addf %232, %235 : vector<32x64xf32>
    %c7_122 = arith.constant 7 : index
    %c2_123 = arith.constant 2 : index
    %237 = vector.load %arg6[%c7_122, %c2_123] : memref<8x4xf32, #tpu.memory_space<vmem>>, vector<1x1xf32>
    %238 = vector.broadcast %237 : vector<1x1xf32> to vector<32x64xf32>
    %239 = arith.mulf %100, %238 : vector<32x64xf32>
    %240 = arith.addf %236, %239 : vector<32x64xf32>
    %c7_124 = arith.constant 7 : index
    %c3_125 = arith.constant 3 : index
    %241 = vector.load %arg6[%c7_124, %c3_125] : memref<8x4xf32, #tpu.memory_space<vmem>>, vector<1x1xf32>
    %242 = vector.broadcast %241 : vector<1x1xf32> to vector<32x64xf32>
    %243 = arith.mulf %103, %242 : vector<32x64xf32>
    %244 = arith.addf %240, %243 : vector<32x64xf32>
    %c7_126 = arith.constant 7 : index
    %c0_127 = arith.constant 0 : index
    %245 = vector.load %arg7[%c7_126, %c0_127] : memref<8x1xf32, #tpu.memory_space<vmem>>, vector<1x1xf32>
    %246 = vector.broadcast %245 : vector<1x1xf32> to vector<32x64xf32>
    %247 = arith.addf %244, %246 : vector<32x64xf32>
    %248 = tpu.concatenate %121, %139, %157, %175, %193, %211, %229, %247 in 0 : vector<32x64xf32>, vector<32x64xf32>, vector<32x64xf32>, vector<32x64xf32>, vector<32x64xf32>, vector<32x64xf32>, vector<32x64xf32>, vector<32x64xf32> -> vector<256x64xf32>
    %249 = arith.truncf %248 : vector<256x64xf32> to vector<256x64xbf16>
    %c0_128 = arith.constant 0 : index
    %c0_129 = arith.constant 0 : index
    %250 = vector.load %arg8[%c0_128, %c0_129] : memref<64x512xbf16, #tpu.memory_space<vmem>>, vector<64x512xbf16>
    %cst_130 = arith.constant dense<0.000000e+00> : vector<256x512xf32>
    %251 = tpu.matmul %249, %250, %cst_130 {dimension_numbers = #tpu.dot_dimension_numbers<[1], [0], [0], [1], [0, 0, 1, 1], [], []>} : vector<256x64xbf16>, vector<64x512xbf16>, vector<256x512xf32> -> vector<256x512xf32>
    %c0_131 = arith.constant 0 : index
    %c0_132 = arith.constant 0 : index
    %252 = vector.load %arg9[%c0_131, %c0_132] : memref<1x512xf32, #tpu.memory_space<vmem>>, vector<1x512xf32>
    %253 = vector.broadcast %252 : vector<1x512xf32> to vector<256x512xf32>
    %254 = arith.addf %251, %253 : vector<256x512xf32>
    %255 = vector.extract_strided_slice %254 {offsets = [0, 0], sizes = [256, 256], strides = [1, 1]} : vector<256x512xf32> to vector<256x256xf32>
    %cst_133 = arith.constant dense<0xFF800000> : vector<256xf32>
    %256 = vector.multi_reduction <maximumf>, %255, %cst_133 [1] : vector<256x256xf32> to vector<256xf32>
    %257 = vector.shape_cast %256 : vector<256xf32> to vector<256x1xf32>
    %258 = vector.broadcast %257 : vector<256x1xf32> to vector<256x256xf32>
    %259 = arith.subf %255, %258 : vector<256x256xf32>
    %260 = math.exp %259 : vector<256x256xf32>
    %cst_134 = arith.constant dense<0.000000e+00> : vector<256xf32>
    %261 = vector.multi_reduction <add>, %260, %cst_134 [1] : vector<256x256xf32> to vector<256xf32>
    %262 = vector.shape_cast %261 : vector<256xf32> to vector<256x1xf32>
    %263 = math.log %262 : vector<256x1xf32>
    %264 = vector.broadcast %263 : vector<256x1xf32> to vector<256x256xf32>
    %265 = arith.subf %259, %264 : vector<256x256xf32>
    %266 = vector.extract_strided_slice %254 {offsets = [0, 256], sizes = [256, 256], strides = [1, 1]} : vector<256x512xf32> to vector<256x256xf32>
    %cst_135 = arith.constant dense<0xFF800000> : vector<256xf32>
    %267 = vector.multi_reduction <maximumf>, %266, %cst_135 [1] : vector<256x256xf32> to vector<256xf32>
    %268 = vector.shape_cast %267 : vector<256xf32> to vector<256x1xf32>
    %269 = vector.broadcast %268 : vector<256x1xf32> to vector<256x256xf32>
    %270 = arith.subf %266, %269 : vector<256x256xf32>
    %271 = math.exp %270 : vector<256x256xf32>
    %cst_136 = arith.constant dense<0.000000e+00> : vector<256xf32>
    %272 = vector.multi_reduction <add>, %271, %cst_136 [1] : vector<256x256xf32> to vector<256xf32>
    %273 = vector.shape_cast %272 : vector<256xf32> to vector<256x1xf32>
    %274 = math.log %273 : vector<256x1xf32>
    %275 = vector.broadcast %274 : vector<256x1xf32> to vector<256x256xf32>
    %276 = arith.subf %270, %275 : vector<256x256xf32>
    %277 = vector.extract_strided_slice %265 {offsets = [0, 0], sizes = [32, 256], strides = [1, 1]} : vector<256x256xf32> to vector<32x256xf32>
    %c0_137 = arith.constant 0 : index
    %c0_138 = arith.constant 0 : index
    %c0_139 = arith.constant 0 : index
    %278 = vector.load %arg10[%c0_137, %c0_138, %c0_139] : memref<8x32x256xf32, #tpu.memory_space<vmem>>, vector<1x32x256xf32>
    %279 = vector.shape_cast %278 : vector<1x32x256xf32> to vector<32x256xf32>
    %280 = vector.shape_cast %277 : vector<32x256xf32> to vector<1x32x256xf32>
    tpu.vector_store %arg10[%c0_137, %c0_138, %c0_139], %280 {strides = array<i32>} : memref<8x32x256xf32, #tpu.memory_space<vmem>>, vector<1x32x256xf32>,
    %281 = vector.extract_strided_slice %276 {offsets = [0, 0], sizes = [32, 256], strides = [1, 1]} : vector<256x256xf32> to vector<32x256xf32>
    %c0_140 = arith.constant 0 : index
    %c0_141 = arith.constant 0 : index
    %c0_142 = arith.constant 0 : index
    %282 = vector.load %arg11[%c0_140, %c0_141, %c0_142] : memref<8x32x256xf32, #tpu.memory_space<vmem>>, vector<1x32x256xf32>
    %283 = vector.shape_cast %282 : vector<1x32x256xf32> to vector<32x256xf32>
    %284 = vector.shape_cast %281 : vector<32x256xf32> to vector<1x32x256xf32>
    tpu.vector_store %arg11[%c0_140, %c0_141, %c0_142], %284 {strides = array<i32>} : memref<8x32x256xf32, #tpu.memory_space<vmem>>, vector<1x32x256xf32>,
    %285 = vector.extract_strided_slice %265 {offsets = [32, 0], sizes = [32, 256], strides = [1, 1]} : vector<256x256xf32> to vector<32x256xf32>
    %c1_143 = arith.constant 1 : index
    %c0_144 = arith.constant 0 : index
    %c0_145 = arith.constant 0 : index
    %286 = vector.load %arg10[%c1_143, %c0_144, %c0_145] : memref<8x32x256xf32, #tpu.memory_space<vmem>>, vector<1x32x256xf32>
    %287 = vector.shape_cast %286 : vector<1x32x256xf32> to vector<32x256xf32>
    %288 = vector.shape_cast %285 : vector<32x256xf32> to vector<1x32x256xf32>
    tpu.vector_store %arg10[%c1_143, %c0_144, %c0_145], %288 {strides = array<i32>} : memref<8x32x256xf32, #tpu.memory_space<vmem>>, vector<1x32x256xf32>,
    %289 = vector.extract_strided_slice %276 {offsets = [32, 0], sizes = [32, 256], strides = [1, 1]} : vector<256x256xf32> to vector<32x256xf32>
    %c1_146 = arith.constant 1 : index
    %c0_147 = arith.constant 0 : index
    %c0_148 = arith.constant 0 : index
    %290 = vector.load %arg11[%c1_146, %c0_147, %c0_148] : memref<8x32x256xf32, #tpu.memory_space<vmem>>, vector<1x32x256xf32>
    %291 = vector.shape_cast %290 : vector<1x32x256xf32> to vector<32x256xf32>
    %292 = vector.shape_cast %289 : vector<32x256xf32> to vector<1x32x256xf32>
    tpu.vector_store %arg11[%c1_146, %c0_147, %c0_148], %292 {strides = array<i32>} : memref<8x32x256xf32, #tpu.memory_space<vmem>>, vector<1x32x256xf32>,
    %293 = vector.extract_strided_slice %265 {offsets = [64, 0], sizes = [32, 256], strides = [1, 1]} : vector<256x256xf32> to vector<32x256xf32>
    %c2_149 = arith.constant 2 : index
    %c0_150 = arith.constant 0 : index
    %c0_151 = arith.constant 0 : index
    %294 = vector.load %arg10[%c2_149, %c0_150, %c0_151] : memref<8x32x256xf32, #tpu.memory_space<vmem>>, vector<1x32x256xf32>
    %295 = vector.shape_cast %294 : vector<1x32x256xf32> to vector<32x256xf32>
    %296 = vector.shape_cast %293 : vector<32x256xf32> to vector<1x32x256xf32>
    tpu.vector_store %arg10[%c2_149, %c0_150, %c0_151], %296 {strides = array<i32>} : memref<8x32x256xf32, #tpu.memory_space<vmem>>, vector<1x32x256xf32>,
    %297 = vector.extract_strided_slice %276 {offsets = [64, 0], sizes = [32, 256], strides = [1, 1]} : vector<256x256xf32> to vector<32x256xf32>
    %c2_152 = arith.constant 2 : index
    %c0_153 = arith.constant 0 : index
    %c0_154 = arith.constant 0 : index
    %298 = vector.load %arg11[%c2_152, %c0_153, %c0_154] : memref<8x32x256xf32, #tpu.memory_space<vmem>>, vector<1x32x256xf32>
    %299 = vector.shape_cast %298 : vector<1x32x256xf32> to vector<32x256xf32>
    %300 = vector.shape_cast %297 : vector<32x256xf32> to vector<1x32x256xf32>
    tpu.vector_store %arg11[%c2_152, %c0_153, %c0_154], %300 {strides = array<i32>} : memref<8x32x256xf32, #tpu.memory_space<vmem>>, vector<1x32x256xf32>,
    %301 = vector.extract_strided_slice %265 {offsets = [96, 0], sizes = [32, 256], strides = [1, 1]} : vector<256x256xf32> to vector<32x256xf32>
    %c3_155 = arith.constant 3 : index
    %c0_156 = arith.constant 0 : index
    %c0_157 = arith.constant 0 : index
    %302 = vector.load %arg10[%c3_155, %c0_156, %c0_157] : memref<8x32x256xf32, #tpu.memory_space<vmem>>, vector<1x32x256xf32>
    %303 = vector.shape_cast %302 : vector<1x32x256xf32> to vector<32x256xf32>
    %304 = vector.shape_cast %301 : vector<32x256xf32> to vector<1x32x256xf32>
    tpu.vector_store %arg10[%c3_155, %c0_156, %c0_157], %304 {strides = array<i32>} : memref<8x32x256xf32, #tpu.memory_space<vmem>>, vector<1x32x256xf32>,
    %305 = vector.extract_strided_slice %276 {offsets = [96, 0], sizes = [32, 256], strides = [1, 1]} : vector<256x256xf32> to vector<32x256xf32>
    %c3_158 = arith.constant 3 : index
    %c0_159 = arith.constant 0 : index
    %c0_160 = arith.constant 0 : index
    %306 = vector.load %arg11[%c3_158, %c0_159, %c0_160] : memref<8x32x256xf32, #tpu.memory_space<vmem>>, vector<1x32x256xf32>
    %307 = vector.shape_cast %306 : vector<1x32x256xf32> to vector<32x256xf32>
    %308 = vector.shape_cast %305 : vector<32x256xf32> to vector<1x32x256xf32>
    tpu.vector_store %arg11[%c3_158, %c0_159, %c0_160], %308 {strides = array<i32>} : memref<8x32x256xf32, #tpu.memory_space<vmem>>, vector<1x32x256xf32>,
    %309 = vector.extract_strided_slice %265 {offsets = [128, 0], sizes = [32, 256], strides = [1, 1]} : vector<256x256xf32> to vector<32x256xf32>
    %c4_161 = arith.constant 4 : index
    %c0_162 = arith.constant 0 : index
    %c0_163 = arith.constant 0 : index
    %310 = vector.load %arg10[%c4_161, %c0_162, %c0_163] : memref<8x32x256xf32, #tpu.memory_space<vmem>>, vector<1x32x256xf32>
    %311 = vector.shape_cast %310 : vector<1x32x256xf32> to vector<32x256xf32>
    %312 = vector.shape_cast %309 : vector<32x256xf32> to vector<1x32x256xf32>
    tpu.vector_store %arg10[%c4_161, %c0_162, %c0_163], %312 {strides = array<i32>} : memref<8x32x256xf32, #tpu.memory_space<vmem>>, vector<1x32x256xf32>,
    %313 = vector.extract_strided_slice %276 {offsets = [128, 0], sizes = [32, 256], strides = [1, 1]} : vector<256x256xf32> to vector<32x256xf32>
    %c4_164 = arith.constant 4 : index
    %c0_165 = arith.constant 0 : index
    %c0_166 = arith.constant 0 : index
    %314 = vector.load %arg11[%c4_164, %c0_165, %c0_166] : memref<8x32x256xf32, #tpu.memory_space<vmem>>, vector<1x32x256xf32>
    %315 = vector.shape_cast %314 : vector<1x32x256xf32> to vector<32x256xf32>
    %316 = vector.shape_cast %313 : vector<32x256xf32> to vector<1x32x256xf32>
    tpu.vector_store %arg11[%c4_164, %c0_165, %c0_166], %316 {strides = array<i32>} : memref<8x32x256xf32, #tpu.memory_space<vmem>>, vector<1x32x256xf32>,
    %317 = vector.extract_strided_slice %265 {offsets = [160, 0], sizes = [32, 256], strides = [1, 1]} : vector<256x256xf32> to vector<32x256xf32>
    %c5_167 = arith.constant 5 : index
    %c0_168 = arith.constant 0 : index
    %c0_169 = arith.constant 0 : index
    %318 = vector.load %arg10[%c5_167, %c0_168, %c0_169] : memref<8x32x256xf32, #tpu.memory_space<vmem>>, vector<1x32x256xf32>
    %319 = vector.shape_cast %318 : vector<1x32x256xf32> to vector<32x256xf32>
    %320 = vector.shape_cast %317 : vector<32x256xf32> to vector<1x32x256xf32>
    tpu.vector_store %arg10[%c5_167, %c0_168, %c0_169], %320 {strides = array<i32>} : memref<8x32x256xf32, #tpu.memory_space<vmem>>, vector<1x32x256xf32>,
    %321 = vector.extract_strided_slice %276 {offsets = [160, 0], sizes = [32, 256], strides = [1, 1]} : vector<256x256xf32> to vector<32x256xf32>
    %c5_170 = arith.constant 5 : index
    %c0_171 = arith.constant 0 : index
    %c0_172 = arith.constant 0 : index
    %322 = vector.load %arg11[%c5_170, %c0_171, %c0_172] : memref<8x32x256xf32, #tpu.memory_space<vmem>>, vector<1x32x256xf32>
    %323 = vector.shape_cast %322 : vector<1x32x256xf32> to vector<32x256xf32>
    %324 = vector.shape_cast %321 : vector<32x256xf32> to vector<1x32x256xf32>
    tpu.vector_store %arg11[%c5_170, %c0_171, %c0_172], %324 {strides = array<i32>} : memref<8x32x256xf32, #tpu.memory_space<vmem>>, vector<1x32x256xf32>,
    %325 = vector.extract_strided_slice %265 {offsets = [192, 0], sizes = [32, 256], strides = [1, 1]} : vector<256x256xf32> to vector<32x256xf32>
    %c6_173 = arith.constant 6 : index
    %c0_174 = arith.constant 0 : index
    %c0_175 = arith.constant 0 : index
    %326 = vector.load %arg10[%c6_173, %c0_174, %c0_175] : memref<8x32x256xf32, #tpu.memory_space<vmem>>, vector<1x32x256xf32>
    %327 = vector.shape_cast %326 : vector<1x32x256xf32> to vector<32x256xf32>
    %328 = vector.shape_cast %325 : vector<32x256xf32> to vector<1x32x256xf32>
    tpu.vector_store %arg10[%c6_173, %c0_174, %c0_175], %328 {strides = array<i32>} : memref<8x32x256xf32, #tpu.memory_space<vmem>>, vector<1x32x256xf32>,
    %329 = vector.extract_strided_slice %276 {offsets = [192, 0], sizes = [32, 256], strides = [1, 1]} : vector<256x256xf32> to vector<32x256xf32>
    %c6_176 = arith.constant 6 : index
    %c0_177 = arith.constant 0 : index
    %c0_178 = arith.constant 0 : index
    %330 = vector.load %arg11[%c6_176, %c0_177, %c0_178] : memref<8x32x256xf32, #tpu.memory_space<vmem>>, vector<1x32x256xf32>
    %331 = vector.shape_cast %330 : vector<1x32x256xf32> to vector<32x256xf32>
    %332 = vector.shape_cast %329 : vector<32x256xf32> to vector<1x32x256xf32>
    tpu.vector_store %arg11[%c6_176, %c0_177, %c0_178], %332 {strides = array<i32>} : memref<8x32x256xf32, #tpu.memory_space<vmem>>, vector<1x32x256xf32>,
    %333 = vector.extract_strided_slice %265 {offsets = [224, 0], sizes = [32, 256], strides = [1, 1]} : vector<256x256xf32> to vector<32x256xf32>
    %c7_179 = arith.constant 7 : index
    %c0_180 = arith.constant 0 : index
    %c0_181 = arith.constant 0 : index
    %334 = vector.load %arg10[%c7_179, %c0_180, %c0_181] : memref<8x32x256xf32, #tpu.memory_space<vmem>>, vector<1x32x256xf32>
    %335 = vector.shape_cast %334 : vector<1x32x256xf32> to vector<32x256xf32>
    %336 = vector.shape_cast %333 : vector<32x256xf32> to vector<1x32x256xf32>
    tpu.vector_store %arg10[%c7_179, %c0_180, %c0_181], %336 {strides = array<i32>} : memref<8x32x256xf32, #tpu.memory_space<vmem>>, vector<1x32x256xf32>,
    %337 = vector.extract_strided_slice %276 {offsets = [224, 0], sizes = [32, 256], strides = [1, 1]} : vector<256x256xf32> to vector<32x256xf32>
    %c7_182 = arith.constant 7 : index
    %c0_183 = arith.constant 0 : index
    %c0_184 = arith.constant 0 : index
    %338 = vector.load %arg11[%c7_182, %c0_183, %c0_184] : memref<8x32x256xf32, #tpu.memory_space<vmem>>, vector<1x32x256xf32>
    %339 = vector.shape_cast %338 : vector<1x32x256xf32> to vector<32x256xf32>
    %340 = vector.shape_cast %337 : vector<32x256xf32> to vector<1x32x256xf32>
    tpu.vector_store %arg11[%c7_182, %c0_183, %c0_184], %340 {strides = array<i32>} : memref<8x32x256xf32, #tpu.memory_space<vmem>>, vector<1x32x256xf32>,
    return
  }
  func.func @transform_0(%arg0: i32) -> (i32, i32) {
    %c0_i32 = arith.constant 0 : i32
    %c0_i32_0 = arith.constant 0 : i32
    return %arg0, %c0_i32 : i32, i32
  }
  func.func @transform_1(%arg0: i32) -> (i32, i32) {
    %c0_i32 = arith.constant 0 : i32
    %c0_i32_0 = arith.constant 0 : i32
    %c0_i32_1 = arith.constant 0 : i32
    return %c0_i32, %c0_i32_0 : i32, i32
  }
  func.func @transform_2(%arg0: i32) -> (i32, i32) {
    %c0_i32 = arith.constant 0 : i32
    %c0_i32_0 = arith.constant 0 : i32
    %c0_i32_1 = arith.constant 0 : i32
    return %c0_i32, %c0_i32_0 : i32, i32
  }
  func.func @transform_3(%arg0: i32) -> (i32, i32) {
    %c0_i32 = arith.constant 0 : i32
    %c0_i32_0 = arith.constant 0 : i32
    %c0_i32_1 = arith.constant 0 : i32
    return %c0_i32, %c0_i32_0 : i32, i32
  }
  func.func @transform_4(%arg0: i32) -> (i32, i32) {
    %c0_i32 = arith.constant 0 : i32
    %c0_i32_0 = arith.constant 0 : i32
    %c0_i32_1 = arith.constant 0 : i32
    return %c0_i32, %c0_i32_0 : i32, i32
  }
  func.func @transform_5(%arg0: i32) -> (i32, i32) {
    %c0_i32 = arith.constant 0 : i32
    %c0_i32_0 = arith.constant 0 : i32
    %c0_i32_1 = arith.constant 0 : i32
    return %c0_i32, %c0_i32_0 : i32, i32
  }
  func.func @transform_6(%arg0: i32) -> (i32, i32) {
    %c0_i32 = arith.constant 0 : i32
    %c0_i32_0 = arith.constant 0 : i32
    %c0_i32_1 = arith.constant 0 : i32
    return %c0_i32, %c0_i32_0 : i32, i32
  }
  func.func @transform_7(%arg0: i32) -> (i32, i32) {
    %c0_i32 = arith.constant 0 : i32
    %c0_i32_0 = arith.constant 0 : i32
    %c0_i32_1 = arith.constant 0 : i32
    return %c0_i32, %c0_i32_0 : i32, i32
  }
  func.func @transform_8(%arg0: i32) -> (i32, i32) {
    %c0_i32 = arith.constant 0 : i32
    %c0_i32_0 = arith.constant 0 : i32
    %c0_i32_1 = arith.constant 0 : i32
    return %c0_i32, %c0_i32_0 : i32, i32
  }
  func.func @transform_9(%arg0: i32) -> (i32, i32, i32) {
    %c0_i32 = arith.constant 0 : i32
    %c0_i32_0 = arith.constant 0 : i32
    %c0_i32_1 = arith.constant 0 : i32
    return %c0_i32, %arg0, %c0_i32_0 : i32, i32, i32
  }
  func.func @transform_10(%arg0: i32) -> (i32, i32, i32) {
    %c0_i32 = arith.constant 0 : i32
    %c0_i32_0 = arith.constant 0 : i32
    %c0_i32_1 = arith.constant 0 : i32
    return %c0_i32, %arg0, %c0_i32_0 : i32, i32, i32
  }
}

</mosaic_0001>

<bundles_post_ra>
// kernel: tpu_custom_call.1
= control target key start
LH: loop header
LB: loop body
LE: loop exit
PB: predicated region body
PF: predicated region fallthrough
CT: control target
= control target key end

     0   :  { %s14019_s0 = inlined_call_operand.vmem [shape: f32[1024,1], index: 0, kind: input, shape index: {}]   ;;  %s14020_s1 = inlined_call_operand.vmem [shape: f32[3,32], index: 1, kind: input, shape index: {}]   ;;  %s14021_s2 = inlined_call_operand.vmem [shape: f32[1,32], index: 2, kind: input, shape index: {}]   ;;  %s14022_s3 = inlined_call_operand.vmem [shape: bf16[96,64], index: 3, kind: input, shape index: {}]   ;;  %s14023_s4 = inlined_call_operand.vmem [shape: f32[1,64], index: 4, kind: input, shape index: {}]   ;;  %s14024_s5 = inlined_call_operand.vmem [shape: f32[8,4], index: 5, kind: input, shape index: {}]   ;;  %s14025_s6 = inlined_call_operand.vmem [shape: f32[8,1], index: 6, kind: input, shape index: {}]   ;;  %s14026_s7 = inlined_call_operand.vmem [shape: bf16[64,512], index: 7, kind: input, shape index: {}]   ;;  %s14027_s8 = inlined_call_operand.vmem [shape: f32[1,512], index: 8, kind: input, shape index: {}]   ;;  %s14028_s9 = inlined_call_operand.hbm [shape: f32[8,64,256], index: 9, kind: output, shape index: {0}]   ;;  %s14029_s10 = inlined_call_operand.hbm [shape: f32[8,64,256], index: 10, kind: output, shape index: {1}]  }
   0x1   :  { %14283 = sst [smem:[#allocation133_spill]] %s14019_s0 }
   0x2   :  { %14284 = sst [smem:[#allocation134_spill]] %s14020_s1 }
   0x3   :  { %16 = vsyncpa [#allocation5], 0 }
   0x4   :  { %18 = vsyncpa [#allocation5 + $0x1], 0 }
   0x5   :  { %19 = vsyncpa [#allocation7], 0 }
   0x6   :  { %21 = vsyncpa [#allocation7 + $0x1], 0  ;;  %s8490_s13 = smov 0   ;;  %s8492_s14 = smov 0  }
   0x7   :  { %s8494_s15 = smov 0   ;;  %s8496_s16 = smov 0  }
   0x8 LB: > { %s7257_s17 = sadd.s32 4294967295, %s8413_s16   ;;  %s7258_s18 = sadd.s32 4294967294, %s8413_s16   ;;  %s8413_s16 = sphi %s8496_s16, %s15240_s16   ;;  %s8409_s15 = sphi %s8494_s15, %s15239_s15   ;;  %s8405_s14 = sphi %s8492_s14, %s15238_s14   ;;  %s8401_s13 = sphi %s8490_s13, %s15237_s13  }
   0x9   : > { %s8513_s19 = sadd.s32 1, %s8413_s16   ;;  %s228_s20 = sadd.s32 1, %s8409_s15 }
   0xa   : > { %s225_s21 = ssub.s32 %s8413_s16, %s8513_s19  ;;  %p238_p0 = scmp.ne.s32.totalorder %s8409_s15, %s8405_s14 }
   0xb   : > { %p226_p1 = scmp.eq.s32.totalorder %s225_s21, 0  ;;  %p239_p2 = scmp.eq.s32.totalorder %s7257_s17, 1 }
   0xc   : > { %p244_p3 = scmp.ne.s32.totalorder %s8405_s14, %s8401_s13  ;;  %p245_p4 = scmp.eq.s32.totalorder %s7258_s18, 1 }
   0xd   : > { %s8523_s22 = scalar_select %p226_p1, %s8409_s15, %s228_s20  }
   0xe   : > { %p8525_p5 = por %p239_p2, %p238_p0  ;;  %p8529_p6 = por %p245_p4, %p244_p3 }
   0xf   : > { %p7261_p7 = scmp.ge.s32.totalorder %s8413_s16, 1  ;;  %p322_p8 = scmp.lt.s32.totalorder %s8413_s16, 3 }
  0x11   : > { %p323_p9 = pnand %p7261_p7, %p322_p8 }
  0x13   : > { %326 = sbr.rel (%p323_p9) target bundleno = 2059 (0x80b), region = 56 }
  0x18   : > { %s8535_s25 = sshll.u32 %s7257_s17, 6  ;;  %v502_v0 = vlaneseq  ;;  %v8415_v1 = vmov 0   ;;  %s14288_s0 = sld [smem:[#allocation133_spill]] }
  0x19   : > { %7752 = vset.pattern.permute.xlu2 %v8415_v1  ;;  %7751 = vset.pattern.permute.xlu1 %v8415_v1  ;;  %p366_p10 = scmp.lt.s32.totalorder %s8535_s25, 127  ;;  %s14453_s1 = sld [smem:[#allocation134_spill]] }
  0x1a   : > { %7750 = vset.pattern.permute.xlu0 %v8415_v1  ;;  %v8539_v2 = vshrl.u32 %v502_v0, 7  ;;  %s8416_s28 = smov 32   ;;  %s8417_s29 = smov 64  }
  0x1b   : > { %s367_s26 = scalar_select %p366_p10, %s8535_s25, 127 }
  0x1c   : > { %v8542_v3 = vadd.s32 32, %v8539_v2  ;;  %v8550_v4 = vadd.s32 16, %v8539_v2  ;;  %vm504_vm0 = vcmp.lt.s32.totalorder %v8539_v2, 1  ;;  %v765_v21 = vand.u32 15, %v8539_v2  ;;  %s8418_s11 = smov 126   ;;  %s8419_s18 = smov 127  }
  0x1d   : > { %s7265_s27 = sshll.u32 %s367_s26, 3  ;;  %v8590_v24 = vadd.s32 64, %v8539_v2  ;;  %v8616_v33 = vadd.s32 48, %v8539_v2  ;;  %v8641_v46 = vadd.s32 80, %v8539_v2  ;;  %v8662_v58 = vadd.s32 112, %v8539_v2  ;;  %s8420_s26 = smov 125  }
  0x1e   : > { %14287 = vst [vmem:[#allocation14_spill] sm:$0xff] %v8542_v3  ;;  %s8547_s30 = scalar_lea.vmem %s14288_s0, %s7265_s27  ;;  %v793_v17 = vand.u32 15, %v8542_v3  ;;  %v779_v19 = vand.u32 15, %v8550_v4  ;;  %vm8605_vm3 = vcmp.eq.s32.totalorder %v765_v21, 0  ;;  %v8670_v61 = vadd.s32 96, %v8539_v2 }
  0x1f   : > { %14289 = vst [vmem:[#allocation15_spill] sm:$0xff] %v8550_v4  ;;  %v8553_v5 = vld [vmem:[%s8547_s30 + $0x20] sm:$0xff]  ;;  %v8556_v6 = vld [vmem:[%s8547_s30 + $0x28] sm:$0xff]  ;;  %v8560_v7 = vld [vmem:[%s8547_s30 + $0x10] sm:$0xff]  ;;  %v821_v37 = vand.u32 15, %v8590_v24  ;;  %v807_v43 = vand.u32 15, %v8616_v33 }
  0x20   : > { %v442_v8 = vrot.slane %v8553_v5, 7  ;;  %v443_v9 = vrot.slane %v8556_v6, 7  ;;  %v8565_v10 = vld [vmem:[%s8547_s30 + $0x18] sm:$0xff]  ;;  %v440_v11 = vrot.slane %v8560_v7, 7  ;;  %v8569_v12 = vld [vmem:[%s8547_s30] sm:$0xff]  ;;  %v8572_v13 = vld [vmem:[%s8547_s30 + $0x8] sm:$0xff] }
  0x21   : > { %v441_v14 = vrot.slane %v8565_v10, 7  ;;  %v438_v15 = vrot.slane %v8569_v12, 7  ;;  %v439_v16 = vrot.slane %v8572_v13, 7  ;;  %v8582_v20 = vld [vmem:[%s8547_s30 + $0x1f8] sm:$0xff]  ;;  %14290 = vst [vmem:[#allocation16_spill] sm:$0xff] %v8590_v24  ;;  %vm8594_vm1 = vcmp.eq.s32.totalorder %v793_v17, 0 }
  0x22   : > { %v563_v18 = vsel %vm504_vm0, %v442_v8, %v443_v9  ;;  %v14030_v27 = vrot.slane %v8582_v20, 7  ;;  %vm8601_vm2 = vcmp.eq.s32.totalorder %v779_v19, 0  ;;  %v8610_v31 = vld [vmem:[%s8547_s30 + $0x38] sm:$0xff]  ;;  %v8613_v32 = vld [vmem:[%s8547_s30 + $0x40] sm:$0xff]  ;;  %14297 = vst [vmem:[#allocation17_spill] sm:$0xff] %v8616_v33  ;;  %v8623_v35 = vld [vmem:[%s8547_s30 + $0x30] sm:$0xff] }
  0x23   : > { %1813 = vperm.xlu2 %7752, %v563_v18   ;;  %v565_v22 = vsel %vm504_vm0, %v440_v11, %v441_v14  ;;  %v567_v23 = vsel %vm504_vm0, %v438_v15, %v439_v16  ;;  %v564_v25 = vsel %vm504_vm0, %v441_v14, %v442_v8  ;;  %v566_v28 = vsel %vm504_vm0, %v439_v16, %v440_v11  ;;  %v8644_v47 = vld [vmem:[%s8547_s30 + $0x50] sm:$0xff]  ;;  %v8647_v48 = vld [vmem:[%s8547_s30 + $0x48] sm:$0xff]  ;;  %v8652_v52 = vld [vmem:[%s8547_s30 + $0x58] sm:$0xff] }
  0x24   : > { %1803 = vperm.xlu1 %7751, %v565_v22   ;;  %1793 = vperm.xlu0 %7750, %v567_v23   ;;  %v568_v34 = vsel %vm504_vm0, %v14030_v27, %v438_v15  ;;  %v1597_v36 = vsel %vm8594_vm1, 0.0, %v564_v25  ;;  %v1595_v38 = vsel %vm8601_vm2, 0.0, %v566_v28  ;;  %v445_v40 = vrot.slane %v8610_v31, 7  ;;  %14298 = vst [vmem:[#allocation18_spill] sm:$0xff] %v8641_v46  ;;  %v8659_v57 = vld [vmem:[%s8547_s30 + $0x68] sm:$0xff]  ;;  %v8667_v60 = vld [vmem:[%s8547_s30 + $0x70] sm:$0xff] }
  0x25   : > { %v1593_v39 = vsel %vm8605_vm3, 0.0, %v568_v34  ;;  %v446_v41 = vrot.slane %v8613_v32, 7  ;;  %v444_v42 = vrot.slane %v8623_v35, 7  ;;  %vm1537_vm4 = vcmp.eq.s32.totalorder %v821_v37, 0  ;;  %14299 = vst [vmem:[#allocation19_spill] sm:$0xff] %v8662_v58  ;;  %v8673_v62 = vld [vmem:[%s8547_s30 + $0x60] sm:$0xff] }
  0x26   : > { %vm1535_vm5 = vcmp.eq.s32.totalorder %v807_v43, 0  ;;  %v448_v53 = vrot.slane %v8644_v47, 7  ;;  %v447_v54 = vrot.slane %v8647_v48, 7  ;;  %v835_v55 = vand.u32 15, %v8641_v46  ;;  %14300 = vst [vmem:[#allocation20_spill] sm:$0xff] %v8670_v61  ;;  %v8692_v19 = vld [vmem:[%s8547_s30 + $0x80] sm:$0xff] }
  0x27   : > { %v560_v44 = vsel %vm504_vm0, %v445_v40, %v446_v41  ;;  %v562_v45 = vsel %vm504_vm0, %v443_v9, %v444_v42  ;;  %v561_v50 = vsel %vm504_vm0, %v444_v42, %v445_v40  ;;  %v449_v56 = vrot.slane %v8652_v52, 7  ;;  %v8695_v21 = vld [vmem:[%s8547_s30 + $0x78] sm:$0xff]  ;;  %v8700_v26 = vld [vmem:[%s8547_s30 + $0x88] sm:$0xff] }
  0x28   : > { %v1601_v49 = vsel %vm1537_vm4, 0.0, %v560_v44  ;;  %v1599_v51 = vsel %vm1535_vm5, 0.0, %v562_v45  ;;  %v558_v59 = vsel %vm504_vm0, %v447_v54, %v448_v53  ;;  %vm1539_vm6 = vcmp.eq.s32.totalorder %v835_v55, 0  ;;  %v8735_v55 = vld [vmem:[%s8547_s30 + $0xb0] sm:$0xff] }
  0x29   : > { %v557_v63 = vsel %vm504_vm0, %v448_v53, %v449_v56  ;;  %v451_v0 = vrot.slane %v8659_v57, 7  ;;  %v1603_v1 = vsel %vm1539_vm6, 0.0, %v558_v59  ;;  %v559_v8 = vsel %vm504_vm0, %v446_v41, %v447_v54  ;;  %v8721_v41 = vld [vmem:[%s8547_s30 + $0x90] sm:$0xff] }
  0x2a   : > { %v452_v9 = vrot.slane %v8667_v60, 7  ;;  %v863_v11 = vand.u32 15, %v8662_v58  ;;  %v450_v14 = vrot.slane %v8673_v62, 7  ;;  %v849_v15 = vand.u32 15, %v8670_v61 }
  0x2b   : > { %1808 = vperm.xlu2 %7752, %v1597_v36   ;;  %v8689_v18 = vadd.s32 128, %v8539_v2  ;;  %v454_v28 = vrot.slane %v8692_v19, 7  ;;  %v453_v29 = vrot.slane %v8695_v21, 7  ;;  %v455_v34 = vrot.slane %v8700_v26, 7 }
  0x2c   : > { %1798 = vperm.xlu1 %7751, %v1595_v38   ;;  %1788 = vperm.xlu0 %7750, %v1593_v39   ;;  %v554_v16 = vsel %vm504_vm0, %v451_v0, %v452_v9  ;;  %vm1543_vm7 = vcmp.eq.s32.totalorder %v863_v11, 0  ;;  %v556_v17 = vsel %vm504_vm0, %v449_v56, %v450_v14  ;;  %vm1541_vm8 = vcmp.eq.s32.totalorder %v849_v15, 0  ;;  %v8712_v38 = vld [vmem:[%s8547_s30 + $0x98] sm:$0xff]  ;;  %v8715_v39 = vld [vmem:[%s8547_s30 + $0xa0] sm:$0xff] }
  0x2d   : > { %14301 = vst [vmem:[#allocation21_spill] sm:$0xff] %v8689_v18  ;;  %v1607_v22 = vsel %vm1543_vm7, 0.0, %v554_v16  ;;  %v555_v23 = vsel %vm504_vm0, %v450_v14, %v451_v0  ;;  %v1605_v25 = vsel %vm1541_vm8, 0.0, %v556_v17  ;;  %v877_v30 = vand.u32 15, %v8689_v18  ;;  %v8749_v11 = vld [vmem:[%s8547_s30 + $0xb8] sm:$0xff] }
  0x2e   : > { %v8707_v36 = vadd.s32 160, %v8539_v2  ;;  %v552_v37 = vsel %vm504_vm0, %v453_v29, %v454_v28  ;;  %v8718_v40 = vadd.s32 144, %v8539_v2  ;;  %v551_v42 = vsel %vm504_vm0, %v454_v28, %v455_v34 }
  0x2f   : > { %vm1545_vm9 = vcmp.eq.s32.totalorder %v877_v30, 0  ;;  %v553_v43 = vsel %vm504_vm0, %v452_v9, %v453_v29  ;;  %v457_v45 = vrot.slane %v8712_v38, 7  ;;  %v8738_v56 = vadd.s32 176, %v8539_v2  ;;  %v8769_v29 = vld [vmem:[%s8547_s30 + $0xc0] sm:$0xff] }
  0x30   : > { %14302 = vst [vmem:[#allocation22_spill] sm:$0xff] %v8707_v36  ;;  %v1609_v44 = vsel %vm1545_vm9, 0.0, %v552_v37  ;;  %v891_v53 = vand.u32 15, %v8718_v40  ;;  %v461_v16 = vrot.slane %v8749_v11, 7  ;;  %v8766_v28 = vadd.s32 192, %v8539_v2 }
  0x31   : > { %14303 = vst [vmem:[#allocation23_spill] sm:$0xff] %v8718_v40  ;;  %v919_v15 = vand.u32 15, %v8738_v56  ;;  %v739_v46 = vadd.s32 336, %v8539_v2 }
  0x32   : > { %14304 = vst [vmem:[#allocation24_spill] sm:$0xff] %v8738_v56  ;;  %vm1547_vm11 = vcmp.eq.s32.totalorder %v891_v53, 0 }
  0x33   : > { %1828 = vperm.xlu2 %7752, %v1601_v49   ;;  %v458_v49 = vrot.slane %v8715_v39, 7  ;;  %vm1551_vm12 = vcmp.eq.s32.totalorder %v919_v15, 0  ;;  %14306 = vst [vmem:[#allocation26_spill] sm:$0xff] %v8766_v28  ;;  %v1059_v3 = vand.u32 15, %v739_v46 }
  0x34   : > { %1823 = vperm.xlu1 %7751, %v561_v50   ;;  %1818 = vperm.xlu0 %7750, %v1599_v51   ;;  %v905_v50 = vand.u32 15, %v8707_v36  ;;  %v456_v51 = vrot.slane %v8721_v41, 7 }
  0x35   : > { %v548_v54 = vsel %vm504_vm0, %v457_v45, %v458_v49  ;;  %vm1571_vm8 = vcmp.eq.s32.totalorder %v1059_v3, 0 }
  0x36   : > { %vm1549_vm10 = vcmp.eq.s32.totalorder %v905_v50, 0  ;;  %v550_v59 = vsel %vm504_vm0, %v455_v34, %v456_v51  ;;  %v933_v50 = vand.u32 15, %v8766_v28  ;;  %v8855_v28 = vld [vmem:[%s8547_s30 + $0x120] sm:$0xff] }
  0x37   : > { %v1613_v0 = vsel %vm1549_vm10, 0.0, %v548_v54  ;;  %v1611_v9 = vsel %vm1547_vm11, 0.0, %v550_v59  ;;  %v8788_v54 = vld [vmem:[%s8547_s30 + $0xe0] sm:$0xff]  ;;  %v8791_v59 = vld [vmem:[%s8547_s30 + $0xd8] sm:$0xff]  ;;  %v474_v36 = vrot.slane %v8855_v28, 7 }
  0x38   : > { %vm1553_vm14 = vcmp.eq.s32.totalorder %v933_v50, 0  ;;  %v465_v15 = vrot.slane %v8791_v59, 7 }
  0x3b   : > { %1843 = vperm.xlu2 %7752, %v557_v63   ;;  %v8743_v63 = vld [vmem:[%s8547_s30 + $0xa8] sm:$0xff] }
  0x3c   : > { %1838 = vperm.xlu1 %7751, %v1603_v1   ;;  %1833 = vperm.xlu0 %7750, %v559_v8   ;;  %v460_v1 = vrot.slane %v8735_v55, 7  ;;  %v549_v8 = vsel %vm504_vm0, %v456_v51, %v457_v45  ;;  %v459_v14 = vrot.slane %v8743_v63, 7  ;;  %v462_v45 = vrot.slane %v8769_v29, 7 }
  0x3e   : > { %v546_v17 = vsel %vm504_vm0, %v459_v14, %v460_v1  ;;  %v545_v30 = vsel %vm504_vm0, %v460_v1, %v461_v16  ;;  %v547_v37 = vsel %vm504_vm0, %v458_v49, %v459_v14  ;;  %v8783_v49 = vadd.s32 224, %v8539_v2 }
  0x3f   : > { %v1615_v34 = vsel %vm1551_vm12, 0.0, %v546_v17  ;;  %v544_v53 = vsel %vm504_vm0, %v461_v16, %v462_v45  ;;  %v466_v14 = vrot.slane %v8788_v54, 7 }
  0x40   : > { %14307 = vst [vmem:[#allocation27_spill] sm:$0xff] %v8783_v49  ;;  %v961_v16 = vand.u32 15, %v8783_v49 }
  0x42   : > { %vm1557_vm15 = vcmp.eq.s32.totalorder %v961_v16, 0 }
  0x43   : > { %1858 = vperm.xlu2 %7752, %v1607_v22   ;;  %v8757_v22 = vadd.s32 208, %v8539_v2 }
  0x44   : > { %1853 = vperm.xlu1 %7751, %v555_v23   ;;  %1848 = vperm.xlu0 %7750, %v1605_v25   ;;  %v8760_v23 = vld [vmem:[%s8547_s30 + $0xc8] sm:$0xff]  ;;  %v8763_v25 = vld [vmem:[%s8547_s30 + $0xd0] sm:$0xff] }
  0x45   : > { %14305 = vst [vmem:[#allocation25_spill] sm:$0xff] %v8757_v22 }
  0x4b   : > { %1873 = vperm.xlu2 %7752, %v551_v42   ;;  %v463_v42 = vrot.slane %v8760_v23, 7 }
  0x4c   : > { %1868 = vperm.xlu1 %7751, %v1609_v44   ;;  %1863 = vperm.xlu0 %7750, %v553_v43   ;;  %v464_v43 = vrot.slane %v8763_v25, 7  ;;  %v947_v44 = vand.u32 15, %v8757_v22  ;;  %v733_v22 = vadd.s32 288, %v8539_v2 }
  0x4d   : > { %v543_v1 = vsel %vm504_vm0, %v462_v45, %v463_v42  ;;  %v8815_v45 = vld [vmem:[%s8547_s30 + $0xf0] sm:$0xff] }
  0x4e   : > { %v542_v51 = vsel %vm504_vm0, %v463_v42, %v464_v43  ;;  %vm1555_vm13 = vcmp.eq.s32.totalorder %v947_v44, 0  ;;  %v8809_v42 = vld [vmem:[%s8547_s30 + $0x100] sm:$0xff]  ;;  %v8812_v44 = vadd.s32 240, %v8539_v2  ;;  %v468_v16 = vrot.slane %v8815_v45, 7 }
  0x4f   : > { %v1017_v40 = vand.u32 15, %v733_v22 }
  0x50   : > { %14308 = vst [vmem:[#allocation28_spill] sm:$0xff] %v8812_v44  ;;  %v975_v27 = vand.u32 15, %v8812_v44 }
  0x51   : > { %vm1565_vm5 = vcmp.eq.s32.totalorder %v1017_v40, 0 }
  0x52   : > { %vm1559_vm2 = vcmp.eq.s32.totalorder %v975_v27, 0 }
  0x53   : > { %1888 = vperm.xlu2 %7752, %v1613_v0   ;;  %v1619_v0 = vsel %vm1555_vm13, 0.0, %v542_v51 }
  0x54   : > { %1883 = vperm.xlu1 %7751, %v549_v8   ;;  %1878 = vperm.xlu0 %7750, %v1611_v9   ;;  %v1617_v8 = vsel %vm1553_vm14, 0.0, %v544_v53  ;;  %v8796_v9 = vld [vmem:[%s8547_s30 + $0xe8] sm:$0xff]  ;;  %v541_v53 = vsel %vm504_vm0, %v464_v43, %v465_v15 }
  0x55   : > { %v467_v17 = vrot.slane %v8796_v9, 7 }
  0x57   : > { %v539_v50 = vsel %vm504_vm0, %v466_v14, %v467_v17  ;;  %v538_v43 = vsel %vm504_vm0, %v467_v17, %v468_v16 }
  0x5b   : > { %1903 = vperm.xlu2 %7752, %v545_v30   ;;  %v540_v30 = vsel %vm504_vm0, %v465_v15, %v466_v14  ;;  %v8831_v15 = vld [vmem:[%s8547_s30 + $0x110] sm:$0xff] }
  0x5c   : > { %1898 = vperm.xlu1 %7751, %v1615_v34   ;;  %1893 = vperm.xlu0 %7750, %v547_v37   ;;  %v729_v34 = vadd.s32 256, %v8539_v2  ;;  %v8806_v37 = vld [vmem:[%s8547_s30 + $0xf8] sm:$0xff]  ;;  %v1621_v51 = vsel %vm1557_vm15, 0.0, %v540_v30  ;;  %v731_v30 = vadd.s32 272, %v8539_v2 }
  0x5e   : > { %v1003_v17 = vand.u32 15, %v731_v30 }
  0x60   : > { %vm1563_vm3 = vcmp.eq.s32.totalorder %v1003_v17, 0 }
  0x63   : > { %1918 = vperm.xlu2 %7752, %v1619_v0   ;;  %v469_v0 = vrot.slane %v8806_v37, 7 }
  0x64   : > { %1913 = vperm.xlu1 %7751, %v543_v1   ;;  %1908 = vperm.xlu0 %7750, %v1617_v8   ;;  %v470_v1 = vrot.slane %v8809_v42, 7  ;;  %v989_v8 = vand.u32 15, %v729_v34  ;;  %v8834_v34 = vld [vmem:[%s8547_s30 + $0x108] sm:$0xff] }
  0x65   : > { %v471_v49 = vrot.slane %v8834_v34, 7 }
  0x66   : > { %v536_v14 = vsel %vm504_vm0, %v469_v0, %v470_v1  ;;  %vm1561_vm1 = vcmp.eq.s32.totalorder %v989_v8, 0  ;;  %v472_v8 = vrot.slane %v8831_v15, 7 }
  0x67   : > { %v1625_v44 = vsel %vm1561_vm1, 0.0, %v536_v14 }
  0x68   : > { %v534_v14 = vsel %vm504_vm0, %v471_v49, %v472_v8 }
  0x69   : > { %v1627_v30 = vsel %vm1563_vm3, 0.0, %v534_v14  ;;  %v8872_v14 = vld [vmem:[%s8547_s30 + $0x140] sm:$0xff]  ;;  %vm633_vm3 = vcmp.lt.s32.totalorder %v8539_v2, 7 }
  0x6b   : > { %1933 = vperm.xlu2 %7752, %v539_v50   ;;  %v537_v50 = vsel %vm504_vm0, %v468_v16, %v469_v0  ;;  %v735_v0 = vadd.s32 304, %v8539_v2  ;;  %v8848_v16 = vld [vmem:[%s8547_s30 + $0x128] sm:$0xff] }
  0x6c   : > { %1928 = vperm.xlu1 %7751, %v1621_v51   ;;  %1923 = vperm.xlu0 %7750, %v541_v53   ;;  %v1623_v51 = vsel %vm1559_vm2, 0.0, %v538_v43  ;;  %v8839_v53 = vld [vmem:[%s8547_s30 + $0x118] sm:$0xff]  ;;  %v8851_v43 = vld [vmem:[%s8547_s30 + $0x130] sm:$0xff] }
  0x6d   : > { %v473_v27 = vrot.slane %v8839_v53, 7  ;;  %v476_v17 = vrot.slane %v8851_v43, 7  ;;  %v1031_v56 = vand.u32 15, %v735_v0  ;;  %v8875_v0 = vld [vmem:[%s8547_s30 + $0x138] sm:$0xff] }
  0x6e   : > { %v477_v58 = vrot.slane %v8875_v0, 7 }
  0x6f   : > { %vm1567_vm4 = vcmp.eq.s32.totalorder %v1031_v56, 0  ;;  %v478_v56 = vrot.slane %v8872_v14, 7 }
  0x73   : > { %1948 = vperm.xlu2 %7752, %v1625_v44   ;;  %v533_v44 = vsel %vm504_vm0, %v472_v8, %v473_v27 }
  0x74   : > { %1943 = vperm.xlu1 %7751, %v537_v50   ;;  %1938 = vperm.xlu0 %7750, %v1623_v51   ;;  %v535_v50 = vsel %vm504_vm0, %v470_v1, %v471_v49  ;;  %v475_v51 = vrot.slane %v8848_v16, 7  ;;  %v737_v49 = vadd.s32 320, %v8539_v2  ;;  %v532_v1 = vsel %vm504_vm0, %v473_v27, %v474_v36 }
  0x76   : > { %v530_v8 = vsel %vm504_vm0, %v475_v51, %v476_v17  ;;  %v1045_v27 = vand.u32 15, %v737_v49  ;;  %v8898_v49 = vld [vmem:[%s8547_s30 + $0x150] sm:$0xff] }
  0x77   : > { %v1631_v22 = vsel %vm1567_vm4, 0.0, %v530_v8  ;;  %v528_v8 = vsel %vm504_vm0, %v477_v58, %v478_v56  ;;  %14313 = vst [vmem:[#allocation33_spill] sm:$0xff] %v8898_v49  ;;  %v480_v4 = vrot.slane %v8898_v49, 7 }
  0x78   : > { %vm1569_vm6 = vcmp.eq.s32.totalorder %v1045_v27, 0 }
  0x7b   : > { %1963 = vperm.xlu2 %7752, %v533_v44   ;;  %v531_v44 = vsel %vm504_vm0, %v474_v36, %v475_v51  ;;  %v741_v36 = vadd.s32 352, %v8539_v2  ;;  %v8891_v51 = vld [vmem:[%s8547_s30 + $0x158] sm:$0xff] }
  0x7c   : > { %1958 = vperm.xlu1 %7751, %v1627_v30   ;;  %1953 = vperm.xlu0 %7750, %v535_v50   ;;  %v1629_v30 = vsel %vm1565_vm5, 0.0, %v532_v1  ;;  %v8880_v50 = vld [vmem:[%s8547_s30 + $0x148] sm:$0xff]  ;;  %v8894_v1 = vld [vmem:[%s8547_s30 + $0x160] sm:$0xff]  ;;  %v481_v27 = vrot.slane %v8891_v51, 7 }
  0x7d   : > { %v8864_v18 = vpop.permute.xlu2 %1813  ;;  %14310 = vst [vmem:[#allocation30_spill] sm:$0xff] %v8880_v50  ;;  %v479_v40 = vrot.slane %v8880_v50, 7  ;;  %v482_v24 = vrot.slane %v8894_v1, 7  ;;  %v1073_v33 = vand.u32 15, %v741_v36  ;;  %v8918_v36 = vld [vmem:[%s8547_s30 + $0x168] sm:$0xff] }
  0x7e   : > { %14309 = vst [vmem:[#allocation29_spill] sm:$0xff] %v8864_v18 }
  0x7f   : > { %14312 = vst [vmem:[#allocation32_spill] sm:$0xff] %v8894_v1  ;;  %vm1573_vm7 = vcmp.eq.s32.totalorder %v1073_v33, 0 }
  0x80   : > { %14316 = vst [vmem:[#allocation36_spill] sm:$0xff] %v8918_v36 }
  0x83   : > { %1978 = vperm.xlu2 %7752, %v1631_v22   ;;  %v527_v22 = vsel %vm504_vm0, %v478_v56, %v479_v40  ;;  %v524_v56 = vsel %vm504_vm0, %v481_v27, %v482_v24 }
  0x84   : > { %1973 = vperm.xlu1 %7751, %v531_v44   ;;  %1968 = vperm.xlu0 %7750, %v1629_v30   ;;  %v1633_v44 = vsel %vm1569_vm6, 0.0, %v528_v8  ;;  %v529_v30 = vsel %vm504_vm0, %v476_v17, %v477_v58  ;;  %v743_v58 = vadd.s32 368, %v8539_v2  ;;  %v526_v17 = vsel %vm504_vm0, %v479_v40, %v480_v4  ;;  %v8915_v8 = vld [vmem:[%s8547_s30 + $0x170] sm:$0xff] }
  0x85   : > { %v8885_v61 = vpop.permute.xlu2 %1808  ;;  %14315 = vst [vmem:[#allocation35_spill] sm:$0xff] %v8915_v8  ;;  %v1637_v46 = vsel %vm1573_vm7, 0.0, %v524_v56  ;;  %v484_v33 = vrot.slane %v8915_v8, 7 }
  0x86   : > { %14311 = vst [vmem:[#allocation31_spill] sm:$0xff] %v8885_v61  ;;  %v1087_v40 = vand.u32 15, %v743_v58  ;;  %v8942_v58 = vld [vmem:[%s8547_s30 + $0x188] sm:$0xff] }
  0x87   : > { %14323 = vst [vmem:[#allocation41_spill] sm:$0xff] %v8942_v58 }
  0x88   : > { %vm8932_vm9 = vcmp.eq.s32.totalorder %v1087_v40, 0 }
  0x8b   : > { %1993 = vperm.xlu2 %7752, %v527_v22   ;;  %v525_v22 = vsel %vm504_vm0, %v480_v4, %v481_v27 }
  0x8c   : > { %1988 = vperm.xlu1 %7751, %v1633_v44   ;;  %1983 = vperm.xlu0 %7750, %v529_v30   ;;  %v1635_v44 = vsel %vm1571_vm8, 0.0, %v526_v17  ;;  %v8923_v30 = vld [vmem:[%s8547_s30 + $0x178] sm:$0xff]  ;;  %v747_v17 = vadd.s32 400, %v8539_v2 }
  0x8d   : > { %v8907_v61 = vpop.permute.xlu2 %1828  ;;  %14317 = vst [vmem:[#allocation37_spill] sm:$0xff] %v8923_v30  ;;  %v485_v3 = vrot.slane %v8923_v30, 7 }
  0x8e   : > { %14314 = vst [vmem:[#allocation34_spill] sm:$0xff] %v8907_v61  ;;  %v483_v61 = vrot.slane %v8918_v36, 7  ;;  %v1115_v36 = vand.u32 15, %v747_v17 }
  0x8f   : > { %v521_v40 = vsel %vm504_vm0, %v484_v33, %v485_v3 }
  0x90   : > { %v522_v4 = vsel %vm504_vm0, %v483_v61, %v484_v33  ;;  %v523_v30 = vsel %vm504_vm0, %v482_v24, %v483_v61  ;;  %vm1579_vm10 = vcmp.eq.s32.totalorder %v1115_v36, 0  ;;  %v749_v24 = vadd.s32 416, %v8539_v2 }
  0x93   : > { %2008 = vperm.xlu2 %7752, %v1637_v46   ;;  %v8945_v46 = vld [vmem:[%s8547_s30 + $0x190] sm:$0xff] }
  0x94   : > { %2003 = vperm.xlu1 %7751, %v525_v22   ;;  %1998 = vperm.xlu0 %7750, %v1635_v44   ;;  %14324 = vst [vmem:[#allocation42_spill] sm:$0xff] %v8945_v46  ;;  %v745_v22 = vadd.s32 384, %v8539_v2  ;;  %v8949_v44 = vld [vmem:[%s8547_s30 + $0x180] sm:$0xff] }
  0x95   : > { %v8928_v56 = vpop.permute.xlu2 %1843  ;;  %14325 = vst [vmem:[#allocation43_spill] sm:$0xff] %v8949_v44  ;;  %v486_v8 = vrot.slane %v8949_v44, 7 }
  0x96   : > { %14318 = vst [vmem:[#allocation38_spill] sm:$0xff] %v8928_v56  ;;  %v8937_v18 = vpop.permute.xlu1 %1803  ;;  %v8939_v1 = vpop.permute.xlu0 %1793  ;;  %v1639_v56 = vsel %vm8932_vm9, 0.0, %v522_v4  ;;  %v1101_v50 = vand.u32 15, %v745_v22  ;;  %v8972_v22 = vld [vmem:[%s8547_s30 + $0x1a0] sm:$0xff] }
  0x97   : > { %14321 = vst [vmem:[#allocation39_spill] sm:$0xff] %v8937_v18  ;;  %v487_v18 = vrot.slane %v8942_v58, 7  ;;  %v520_v17 = vsel %vm504_vm0, %v485_v3, %v486_v8  ;;  %v1129_v3 = vand.u32 15, %v749_v24  ;;  %v8999_v24 = vld [vmem:[%s8547_s30 + $0x1b8] sm:$0xff] }
  0x98   : > { %14322 = vst [vmem:[#allocation40_spill] sm:$0xff] %v8939_v1  ;;  %v488_v1 = vrot.slane %v8945_v46, 7  ;;  %vm1577_vm11 = vcmp.eq.s32.totalorder %v1101_v50, 0 }
  0x99   : > { %14329 = vst [vmem:[#allocation47_spill] sm:$0xff] %v8972_v22  ;;  %v1641_v36 = vsel %vm1577_vm11, 0.0, %v520_v17  ;;  %vm8989_vm12 = vcmp.eq.s32.totalorder %v1129_v3, 0  ;;  %v753_v17 = vadd.s32 448, %v8539_v2 }
  0x9a   : > { %v518_v4 = vsel %vm504_vm0, %v487_v18, %v488_v1  ;;  %14337 = vst [vmem:[#allocation53_spill] sm:$0xff] %v8999_v24 }
  0x9b   : > { %2023 = vperm.xlu2 %7752, %v521_v40   ;;  %v519_v40 = vsel %vm504_vm0, %v486_v8, %v487_v18 }
  0x9c   : > { %2018 = vperm.xlu1 %7751, %v1639_v56   ;;  %2013 = vperm.xlu0 %7750, %v523_v30   ;;  %v8975_v56 = vld [vmem:[%s8547_s30 + $0x198] sm:$0xff]  ;;  %v1643_v30 = vsel %vm1579_vm10, 0.0, %v518_v4 }
  0x9d   : > { %v8960_v33 = vpop.permute.xlu2 %1858  ;;  %14330 = vst [vmem:[#allocation48_spill] sm:$0xff] %v8975_v56 }
  0x9e   : > { %14326 = vst [vmem:[#allocation44_spill] sm:$0xff] %v8960_v33  ;;  %v8965_v61 = vpop.permute.xlu1 %1798  ;;  %v8967_v27 = vpop.permute.xlu0 %1788  ;;  %v8980_v33 = vld [vmem:[%s8547_s30 + $0x1a8] sm:$0xff] }
  0x9f   : > { %14327 = vst [vmem:[#allocation45_spill] sm:$0xff] %v8965_v61  ;;  %v490_v61 = vrot.slane %v8972_v22, 7  ;;  %v491_v50 = vrot.slane %v8980_v33, 7  ;;  %v1157_v22 = vand.u32 15, %v753_v17 }
  0xa0   : > { %14328 = vst [vmem:[#allocation46_spill] sm:$0xff] %v8967_v27  ;;  %v489_v27 = vrot.slane %v8975_v56, 7 }
  0xa1   : > { %14331 = vst [vmem:[#allocation49_spill] sm:$0xff] %v8980_v33  ;;  %v515_v3 = vsel %vm504_vm0, %v490_v61, %v491_v50  ;;  %vm1585_vm13 = vcmp.eq.s32.totalorder %v1157_v22, 0 }
  0xa2   : > { %v516_v18 = vsel %vm504_vm0, %v489_v27, %v490_v61  ;;  %v517_v33 = vsel %vm504_vm0, %v488_v1, %v489_v27  ;;  %v755_v1 = vadd.s32 464, %v8539_v2 }
  0xa3   : > { %2038 = vperm.xlu2 %7752, %v1643_v30   ;;  %v9002_v30 = vld [vmem:[%s8547_s30 + $0x1c0] sm:$0xff] }
  0xa4   : > { %2033 = vperm.xlu1 %7751, %v519_v40   ;;  %2028 = vperm.xlu0 %7750, %v1641_v36   ;;  %14338 = vst [vmem:[#allocation54_spill] sm:$0xff] %v9002_v30  ;;  %v751_v40 = vadd.s32 432, %v8539_v2  ;;  %v9006_v36 = vld [vmem:[%s8547_s30 + $0x1b0] sm:$0xff] }
  0xa5   : > { %v8985_v4 = vpop.permute.xlu2 %1873  ;;  %14339 = vst [vmem:[#allocation55_spill] sm:$0xff] %v9006_v36  ;;  %v492_v44 = vrot.slane %v9006_v36, 7 }
  0xa6   : > { %14332 = vst [vmem:[#allocation50_spill] sm:$0xff] %v8985_v4  ;;  %v8994_v46 = vpop.permute.xlu1 %1823  ;;  %v8996_v56 = vpop.permute.xlu0 %1818  ;;  %v1645_v4 = vsel %vm8989_vm12, 0.0, %v516_v18  ;;  %v1143_v58 = vand.u32 15, %v751_v40  ;;  %v9029_v40 = vld [vmem:[%s8547_s30 + $0x1d0] sm:$0xff] }
  0xa7   : > { %14335 = vst [vmem:[#allocation51_spill] sm:$0xff] %v8994_v46  ;;  %v493_v46 = vrot.slane %v8999_v24, 7  ;;  %v514_v17 = vsel %vm504_vm0, %v491_v50, %v492_v44 }
  0xa8   : > { %14336 = vst [vmem:[#allocation52_spill] sm:$0xff] %v8996_v56  ;;  %v494_v56 = vrot.slane %v9002_v30, 7  ;;  %vm1583_vm14 = vcmp.eq.s32.totalorder %v1143_v58, 0  ;;  %v1171_v30 = vand.u32 15, %v755_v1  ;;  %v435_v1 = vld [vmem:[%s8547_s30 + $0x1e8] sm:$0xff] }
  0xa9   : > { %14343 = vst [vmem:[#allocation59_spill] sm:$0xff] %v9029_v40  ;;  %v1647_v22 = vsel %vm1583_vm14, 0.0, %v514_v17 }
  0xaa   : > { %v512_v18 = vsel %vm504_vm0, %v493_v46, %v494_v56  ;;  %vm9043_vm15 = vcmp.eq.s32.totalorder %v1171_v30, 0 }
  0xab   : > { %2053 = vperm.xlu2 %7752, %v515_v3   ;;  %v513_v3 = vsel %vm504_vm0, %v492_v44, %v493_v46  ;;  %v759_v44 = vadd.s32 496, %v8539_v2 }
  0xac   : > { %2048 = vperm.xlu1 %7751, %v1645_v4   ;;  %2043 = vperm.xlu0 %7750, %v517_v33   ;;  %v9032_v4 = vld [vmem:[%s8547_s30 + $0x1c8] sm:$0xff]  ;;  %v1649_v33 = vsel %vm1585_vm13, 0.0, %v512_v18 }
  0xad   : > { %v9017_v61 = vpop.permute.xlu2 %1888  ;;  %14344 = vst [vmem:[#allocation60_spill] sm:$0xff] %v9032_v4  ;;  %v1199_v36 = vand.u32 15, %v759_v44 }
  0xae   : > { %14340 = vst [vmem:[#allocation56_spill] sm:$0xff] %v9017_v61  ;;  %v9022_v27 = vpop.permute.xlu1 %1838  ;;  %v9024_v8 = vpop.permute.xlu0 %1833  ;;  %v433_v61 = vld [vmem:[%s8547_s30 + $0x1d8] sm:$0xff] }
  0xaf   : > { %14341 = vst [vmem:[#allocation57_spill] sm:$0xff] %v9022_v27  ;;  %v496_v27 = vrot.slane %v9029_v40, 7  ;;  %v497_v58 = vrot.slane %v433_v61, 7  ;;  %v757_v61 = vadd.s32 480, %v8539_v2  ;;  %vm1591_vm1 = vcmp.eq.s32.totalorder %v1199_v36, 0 }
  0xb0   : > { %14342 = vst [vmem:[#allocation58_spill] sm:$0xff] %v9024_v8  ;;  %v495_v8 = vrot.slane %v9032_v4, 7  ;;  %v499_v4 = vrot.slane %v435_v1, 7 }
  0xb1   : > { %v1185_v24 = vand.u32 15, %v757_v61 }
  0xb2   : > { %v510_v18 = vsel %vm504_vm0, %v495_v8, %v496_v27 }
  0xb3   : > { %2068 = vperm.xlu2 %7752, %v1649_v33   ;;  %v9054_v33 = vld [vmem:[%s8547_s30 + $0x1f0] sm:$0xff]  ;;  %v1651_v30 = vsel %vm9043_vm15, 0.0, %v510_v18  ;;  %vm1589_vm2 = vcmp.eq.s32.totalorder %v1185_v24, 0 }
  0xb4   : > { %2063 = vperm.xlu1 %7751, %v513_v3   ;;  %2058 = vperm.xlu0 %7750, %v1647_v22   ;;  %14350 = vst [vmem:[#allocation64_spill] sm:$0xff] %v9054_v33  ;;  %v434_v3 = vld [vmem:[%s8547_s30 + $0x1e0] sm:$0xff]  ;;  %v509_v22 = vsel %vm504_vm0, %v496_v27, %v497_v58 }
  0xb5   : > { %v9039_v50 = vpop.permute.xlu2 %1903 }
  0xb6   : > { %14345 = vst [vmem:[#allocation61_spill] sm:$0xff] %v9039_v50  ;;  %v9048_v17 = vpop.permute.xlu1 %1853  ;;  %v9050_v40 = vpop.permute.xlu0 %1848  ;;  %v511_v50 = vsel %vm504_vm0, %v494_v56, %v495_v8 }
  0xb7   : > { %14348 = vst [vmem:[#allocation62_spill] sm:$0xff] %v9048_v17  ;;  %v500_v17 = vrot.slane %v9054_v33, 7 }
  0xb8   : > { %14349 = vst [vmem:[#allocation63_spill] sm:$0xff] %v9050_v40  ;;  %v498_v40 = vrot.slane %v434_v3, 7  ;;  %v14354_v3 = vrot.slane %v8582_v20, 7 }
  0xb9   : > { %v506_v27 = vsel %vm504_vm0, %v499_v4, %v500_v17 }
  0xba   : > { %v508_v56 = vsel %vm504_vm0, %v497_v58, %v498_v40  ;;  %v1655_v8 = vsel %vm1591_vm1, 0.0, %v506_v27  ;;  %v507_v44 = vsel %vm504_vm0, %v498_v40, %v499_v4  ;;  %v505_v58 = vsel %vm504_vm0, %v500_v17, %v14354_v3 }
  0xbb   : > { %2083 = vperm.xlu2 %7752, %v509_v22   ;;  %v1653_v1 = vsel %vm1589_vm2, 0.0, %v508_v56  ;;  %vm3203_vm1 = vcmask 261120  }
  0xbc   : > { %2078 = vperm.xlu1 %7751, %v1651_v30   ;;  %2073 = vperm.xlu0 %7750, %v511_v50  }
  0xbd   : > { %v9065_v49 = vpop.permute.xlu2 %1918 }
  0xbe   : > { %14351 = vst [vmem:[#allocation65_spill] sm:$0xff] %v9065_v49  ;;  %v9069_v46 = vpop.permute.xlu1 %1868  ;;  %v9071_v18 = vpop.permute.xlu0 %1863 }
  0xc3   : > { %2098 = vperm.xlu2 %7752, %v1655_v8  }
  0xc4   : > { %2093 = vperm.xlu1 %7751, %v507_v44   ;;  %2088 = vperm.xlu0 %7750, %v1653_v1   ;;  %v14395_v44 = vld [vmem:[#allocation32_spill] sm:$0xff] }
  0xc5   : > { %v9077_v50 = vpop.permute.xlu2 %1933 }
  0xc6   : > { %14352 = vst [vmem:[#allocation66_spill] sm:$0xff] %v9077_v50  ;;  %v9079_v61 = vpop.permute.xlu1 %1883  ;;  %v9081_v36 = vpop.permute.xlu0 %1878 }
  0xc7   : > { %14353 = vst [vmem:[#allocation67_spill] sm:$0xff] %v9079_v61  ;;  %v8312_v61 = vld [vmem:[%s8547_s30 + $0x50] sm:$0xff] }
  0xcb   : > { %2179 = vperm.xlu2 %7752, %v8572_v13  }
  0xcc   : > { %2174 = vperm.xlu1 %7751, %v8569_v12   ;;  %2103 = vperm.xlu0 %7750, %v505_v58   ;;  %v14396_v58 = vld [vmem:[#allocation41_spill] sm:$0xff] }
  0xcd   : > { %v9089_v24 = vpop.permute.xlu2 %1948 }
  0xce   : > { %14355 = vst [vmem:[#allocation68_spill] sm:$0xff] %v9089_v24  ;;  %v9091_v40 = vpop.permute.xlu1 %1898  ;;  %v9093_v4 = vpop.permute.xlu0 %1893 }
  0xd3   : > { %2194 = vperm.xlu2 %7752, %v8553_v5  }
  0xd4   : > { %2189 = vperm.xlu1 %7751, %v8565_v10   ;;  %2184 = vperm.xlu0 %7750, %v8560_v7  }
  0xd5   : > { %v9098_v20 = vpop.permute.xlu2 %1963 }
  0xd6   : > { %14356 = vst [vmem:[#allocation69_spill] sm:$0xff] %v9098_v20  ;;  %v9100_v17 = vpop.permute.xlu1 %1913  ;;  %v9102_v13 = vpop.permute.xlu0 %1908  ;;  %v8304_v20 = vld [vmem:[%s8547_s30 + $0x18] sm:$0xff] }
  0xd7   : > { %14357 = vst [vmem:[#allocation70_spill] sm:$0xff] %v9100_v17 }
  0xd8   : > { %14358 = vst [vmem:[#allocation71_spill] sm:$0xff] %v9102_v13 }
  0xdb   : > { %2209 = vperm.xlu2 %7752, %v8610_v31  }
  0xdc   : > { %2204 = vperm.xlu1 %7751, %v8623_v35   ;;  %2199 = vperm.xlu0 %7750, %v8556_v6  }
  0xdd   : > { %v9107_v12 = vpop.permute.xlu2 %1978 }
  0xde   : > { %14359 = vst [vmem:[#allocation72_spill] sm:$0xff] %v9107_v12  ;;  %v9109_v22 = vpop.permute.xlu1 %1928  ;;  %v9111_v5 = vpop.permute.xlu0 %1923 }
  0xdf   : > { %14360 = vst [vmem:[#allocation73_spill] sm:$0xff] %v9109_v22 }
  0xe0   : > { %14361 = vst [vmem:[#allocation74_spill] sm:$0xff] %v9111_v5 }
  0xe3   : > { %2224 = vperm.xlu2 %7752, %v8644_v47  }
  0xe4   : > { %2219 = vperm.xlu1 %7751, %v8647_v48   ;;  %2214 = vperm.xlu0 %7750, %v8613_v32  }
  0xe5   : > { %v9116_v7 = vpop.permute.xlu2 %1993 }
  0xe6   : > { %14362 = vst [vmem:[#allocation75_spill] sm:$0xff] %v9116_v7  ;;  %v9118_v10 = vpop.permute.xlu1 %1943  ;;  %v9120_v31 = vpop.permute.xlu0 %1938 }
  0xe7   : > { %14363 = vst [vmem:[#allocation76_spill] sm:$0xff] %v9118_v10  ;;  %v8306_v10 = vld [vmem:[%s8547_s30 + $0x28] sm:$0xff] }
  0xe8   : > { %14364 = vst [vmem:[#allocation77_spill] sm:$0xff] %v9120_v31 }
  0xeb   : > { %2239 = vperm.xlu2 %7752, %v8659_v57  }
  0xec   : > { %2234 = vperm.xlu1 %7751, %v8673_v62   ;;  %2229 = vperm.xlu0 %7750, %v8652_v52  }
  0xed   : > { %v9125_v6 = vpop.permute.xlu2 %2008 }
  0xee   : > { %14365 = vst [vmem:[#allocation78_spill] sm:$0xff] %v9125_v6  ;;  %v9127_v30 = vpop.permute.xlu1 %1958  ;;  %v9129_v47 = vpop.permute.xlu0 %1953  ;;  %v14409_v6 = vld [vmem:[#allocation54_spill] sm:$0xff] }
  0xef   : > { %14366 = vst [vmem:[#allocation79_spill] sm:$0xff] %v9127_v30 }
  0xf0   : > { %14367 = vst [vmem:[#allocation80_spill] sm:$0xff] %v9129_v47 }
  0xf3   : > { %2254 = vperm.xlu2 %7752, %v8692_v19  }
  0xf4   : > { %2249 = vperm.xlu1 %7751, %v8695_v21   ;;  %2244 = vperm.xlu0 %7750, %v8667_v60  }
  0xf5   : > { %v9134_v32 = vpop.permute.xlu2 %2023 }
  0xf6   : > { %14368 = vst [vmem:[#allocation81_spill] sm:$0xff] %v9134_v32  ;;  %v9136_v48 = vpop.permute.xlu1 %1973  ;;  %v9138_v57 = vpop.permute.xlu0 %1968  ;;  %v8302_v32 = vld [vmem:[%s8547_s30 + $0x10] sm:$0xff] }
  0xf7   : > { %14369 = vst [vmem:[#allocation82_spill] sm:$0xff] %v9136_v48 }
  0xf8   : > { %14370 = vst [vmem:[#allocation83_spill] sm:$0xff] %v9138_v57 }
  0xfb   : > { %2269 = vperm.xlu2 %7752, %v8712_v38  }
  0xfc   : > { %2264 = vperm.xlu1 %7751, %v8721_v41   ;;  %2259 = vperm.xlu0 %7750, %v8700_v26  }
  0xfd   : > { %v9143_v52 = vpop.permute.xlu2 %2038 }
  0xfe   : > { %14371 = vst [vmem:[#allocation84_spill] sm:$0xff] %v9143_v52  ;;  %v9145_v27 = vpop.permute.xlu1 %1988  ;;  %v9147_v19 = vpop.permute.xlu0 %1983  ;;  %v574_v52 = vrot.slane %v8306_v10, 1  ;;  %v9308_v10 = vadd.s32 56, %v8539_v2 }
  0xff   : > { %14372 = vst [vmem:[#allocation85_spill] sm:$0xff] %v9145_v27  ;;  %v572_v27 = vrot.slane %v8304_v20, 1 }
 0x100   : > { %14373 = vst [vmem:[#allocation86_spill] sm:$0xff] %v9147_v19 }
 0x103   : > { %2284 = vperm.xlu2 %7752, %v8735_v55  }
 0x104   : > { %2279 = vperm.xlu1 %7751, %v8743_v63   ;;  %2274 = vperm.xlu0 %7750, %v8715_v39  }
 0x105   : > { %v9152_v60 = vpop.permute.xlu2 %2053 }
 0x106   : > { %14374 = vst [vmem:[#allocation87_spill] sm:$0xff] %v9152_v60  ;;  %v9154_v21 = vpop.permute.xlu1 %2003  ;;  %v9156_v38 = vpop.permute.xlu0 %1998 }
 0x107   : > { %14375 = vst [vmem:[#allocation88_spill] sm:$0xff] %v9154_v21  ;;  %v571_v21 = vrot.slane %v8302_v32, 1 }
 0x108   : > { %14376 = vst [vmem:[#allocation89_spill] sm:$0xff] %v9156_v38  ;;  %v8310_v38 = vld [vmem:[%s8547_s30 + $0x48] sm:$0xff] }
 0x109   : > { %v578_v7 = vrot.slane %v8310_v38, 1 }
 0x10b   : > { %2299 = vperm.xlu2 %7752, %v8760_v23  }
 0x10c   : > { %2294 = vperm.xlu1 %7751, %v8769_v29   ;;  %2289 = vperm.xlu0 %7750, %v8749_v11  }
 0x10d   : > { %v9161_v26 = vpop.permute.xlu2 %2068 }
 0x10e   : > { %14377 = vst [vmem:[#allocation90_spill] sm:$0xff] %v9161_v26  ;;  %v9163_v41 = vpop.permute.xlu1 %2018  ;;  %v9165_v55 = vpop.permute.xlu0 %2013  ;;  %v14405_v26 = vld [vmem:[#allocation49_spill] sm:$0xff] }
 0x10f   : > { %14378 = vst [vmem:[#allocation91_spill] sm:$0xff] %v9163_v41  ;;  %v8307_v41 = vld [vmem:[%s8547_s30 + $0x20] sm:$0xff] }
 0x110   : > { %14379 = vst [vmem:[#allocation92_spill] sm:$0xff] %v9165_v55  ;;  %v573_v24 = vrot.slane %v8307_v41, 1 }
 0x113   : > { %2314 = vperm.xlu2 %7752, %v8788_v54  }
 0x114   : > { %2309 = vperm.xlu1 %7751, %v8791_v59   ;;  %2304 = vperm.xlu0 %7750, %v8763_v25  }
 0x115   : > { %v9170_v39 = vpop.permute.xlu2 %2083 }
 0x116   : > { %14380 = vst [vmem:[#allocation93_spill] sm:$0xff] %v9170_v39  ;;  %v9172_v63 = vpop.permute.xlu1 %2033  ;;  %v9174_v23 = vpop.permute.xlu0 %2028 }
 0x117   : > { %14381 = vst [vmem:[#allocation94_spill] sm:$0xff] %v9172_v63  ;;  %v575_v63 = vrot.slane %v8623_v35, 1 }
 0x118   : > { %14382 = vst [vmem:[#allocation95_spill] sm:$0xff] %v9174_v23  ;;  %v8303_v23 = vld [vmem:[%s8547_s30 + $0x8] sm:$0xff] }
 0x119   : > { %v570_v19 = vrot.slane %v8303_v23, 1 }
 0x11b   : > { %2329 = vperm.xlu2 %7752, %v8806_v37   ;;  %v695_v32 = vsel %vm633_vm3, %v570_v19, %v571_v21 }
 0x11c   : > { %2324 = vperm.xlu1 %7751, %v8815_v45   ;;  %2319 = vperm.xlu0 %7750, %v8796_v9  }
 0x11d   : > { %v9179_v11 = vpop.permute.xlu2 %2098 }
 0x11e   : > { %v9181_v29 = vpop.permute.xlu1 %2048  ;;  %v9183_v54 = vpop.permute.xlu0 %2043 }
 0x11f   : > { %14383 = vst [vmem:[#allocation96_spill] sm:$0xff] %v9181_v29 }
 0x120   : > { %14384 = vst [vmem:[#allocation97_spill] sm:$0xff] %v9183_v54  ;;  %v14404_v54 = vld [vmem:[#allocation55_spill] sm:$0xff] }
 0x123   : > { %2344 = vperm.xlu2 %7752, %v8831_v15  }
 0x124   : > { %2339 = vperm.xlu1 %7751, %v8834_v34   ;;  %2334 = vperm.xlu0 %7750, %v8809_v42  }
 0x125   : > { %v9188_v25 = vpop.permute.xlu2 %2179 }
 0x126   : > { %v9190_v59 = vpop.permute.xlu1 %2063  ;;  %v9192_v37 = vpop.permute.xlu0 %2058 }
 0x127   : > { %14385 = vst [vmem:[#allocation98_spill] sm:$0xff] %v9190_v59 }
 0x128   : > { %14386 = vst [vmem:[#allocation99_spill] sm:$0xff] %v9192_v37 }
 0x12b   : > { %2359 = vperm.xlu2 %7752, %v8848_v16  }
 0x12c   : > { %2354 = vperm.xlu1 %7751, %v8855_v28   ;;  %2349 = vperm.xlu0 %7750, %v8839_v53   ;;  %v14391_v28 = vld [vmem:[#allocation33_spill] sm:$0xff]  ;;  %v14392_v53 = vld [vmem:[#allocation30_spill] sm:$0xff] }
 0x12d   : > { %v9197_v9 = vpop.permute.xlu2 %2194 }
 0x12e   : > { %v9199_v45 = vpop.permute.xlu1 %2078  ;;  %v9201_v15 = vpop.permute.xlu0 %2073 }
 0x12f   : > { %14387 = vst [vmem:[#allocation100_spill] sm:$0xff] %v9199_v45  ;;  %v9277_v45 = vld [vmem:[%s8547_s30] sm:$0xff] }
 0x130   : > { %14388 = vst [vmem:[#allocation101_spill] sm:$0xff] %v9201_v15  ;;  %v9288_v15 = vadd.s32 24, %v8539_v2 }
 0x132   : > { %v786_v55 = vand.u32 15, %v9288_v15 }
 0x133   : > { %2374 = vperm.xlu2 %7752, %v8872_v14  }
 0x134   : > { %2369 = vperm.xlu1 %7751, %v8875_v0   ;;  %2364 = vperm.xlu0 %7750, %v8851_v43   ;;  %v14393_v0 = vld [vmem:[#allocation35_spill] sm:$0xff]  ;;  %v14394_v43 = vld [vmem:[#allocation36_spill] sm:$0xff]  ;;  %vm1660_vm6 = vcmp.eq.s32.totalorder %v786_v55, 15 }
 0x135   : > { %v9206_v42 = vpop.permute.xlu2 %2209 }
 0x136   : > { %v9208_v34 = vpop.permute.xlu1 %2093  ;;  %v9210_v16 = vpop.permute.xlu0 %2088 }
 0x137   : > { %14389 = vst [vmem:[#allocation102_spill] sm:$0xff] %v9208_v34  ;;  %v14401_v34 = vld [vmem:[#allocation42_spill] sm:$0xff] }
 0x138   : > { %14390 = vst [vmem:[#allocation103_spill] sm:$0xff] %v9210_v16  ;;  %v14400_v16 = vld [vmem:[#allocation48_spill] sm:$0xff] }
 0x13b   : > { %2389 = vperm.xlu2 %7752, %v8891_v51  }
 0x13c   : > { %2384 = vperm.xlu1 %7751, %v14391_v28   ;;  %2379 = vperm.xlu0 %7750, %v14392_v53   ;;  %v14397_v28 = vld [vmem:[#allocation43_spill] sm:$0xff]  ;;  %v14398_v53 = vld [vmem:[#allocation37_spill] sm:$0xff] }
 0x13d   : > { %v9215_v56 = vpop.permute.xlu2 %2224 }
 0x13e   : > { %v9217_v8 = vpop.permute.xlu1 %2174  ;;  %v9219_v14 = vpop.permute.xlu0 %2103 }
 0x143   : > { %2404 = vperm.xlu2 %7752, %v14393_v0  }
 0x144   : > { %2399 = vperm.xlu1 %7751, %v14394_v43   ;;  %2394 = vperm.xlu0 %7750, %v14395_v44   ;;  %v14399_v44 = vld [vmem:[#allocation47_spill] sm:$0xff] }
 0x145   : > { %v9224_v1 = vpop.permute.xlu2 %2239 }
 0x146   : > { %v9226_v3 = vpop.permute.xlu1 %2189  ;;  %v9228_v51 = vpop.permute.xlu0 %2184 }
 0x14b   : > { %2419 = vperm.xlu2 %7752, %v14396_v58  }
 0x14c   : > { %2414 = vperm.xlu1 %7751, %v14397_v28   ;;  %2409 = vperm.xlu0 %7750, %v14398_v53   ;;  %v14403_v53 = vld [vmem:[#allocation53_spill] sm:$0xff] }
 0x14d   : > { %v9233_v39 = vpop.permute.xlu2 %2254 }
 0x14e   : > { %v9235_v0 = vpop.permute.xlu1 %2204  ;;  %v9237_v43 = vpop.permute.xlu0 %2199 }
 0x153   : > { %2434 = vperm.xlu2 %7752, %v14399_v44   ;;  %v9254_v44 = vadd.s32 8, %v8539_v2 }
 0x154   : > { %2429 = vperm.xlu1 %7751, %v14400_v16   ;;  %2424 = vperm.xlu0 %7750, %v14401_v34  }
 0x155   : > { %v9242_v59 = vpop.permute.xlu2 %2269  ;;  %14406 = vst [vmem:[#allocation30_spill] sm:$0xff] %v9254_v44 }
 0x156   : > { %14402 = vst [vmem:[#allocation33_spill] sm:$0xff] %v9242_v59  ;;  %v9244_v58 = vpop.permute.xlu1 %2219  ;;  %v9246_v28 = vpop.permute.xlu0 %2214  ;;  %v579_v59 = vrot.slane %v8312_v61, 1 }
 0x158   : > { %v687_v61 = vsel %vm633_vm3, %v578_v7, %v579_v59 }
 0x15b   : > { %2449 = vperm.xlu2 %7752, %v14403_v53   ;;  %v772_v53 = vand.u32 15, %v9254_v44 }
 0x15c   : > { %2444 = vperm.xlu1 %7751, %v14404_v54   ;;  %2439 = vperm.xlu0 %7750, %v14405_v26   ;;  %v14407_v54 = vld [vmem:[#allocation59_spill] sm:$0xff]  ;;  %v14408_v26 = vld [vmem:[#allocation60_spill] sm:$0xff] }
 0x15d   : > { %v9251_v29 = vpop.permute.xlu2 %2284  ;;  %vm9272_vm4 = vcmp.eq.s32.totalorder %v772_v53, 15  ;;  %v694_v53 = vsel %vm633_vm3, %v571_v21, %v572_v27 }
 0x15e   : > { %v9256_v16 = vpop.permute.xlu1 %2234  ;;  %v9258_v34 = vpop.permute.xlu0 %2229  ;;  %v1722_v37 = vsel %vm9272_vm4, 0.0, %v695_v32  ;;  %v693_v32 = vsel %vm633_vm3, %v572_v27, %v573_v24 }
 0x15f   : > { %v1724_v23 = vsel %vm1660_vm6, 0.0, %v693_v32 }
 0x163   : > { %2464 = vperm.xlu2 %7752, %v14407_v54   ;;  %v14076_v54 = vrot.slane %v9277_v45, 1 }
 0x164   : > { %2459 = vperm.xlu1 %7751, %v14408_v26   ;;  %2454 = vperm.xlu0 %7750, %v14409_v6   ;;  %v9281_v26 = vadd.s32 40, %v8539_v2 }
 0x165   : > { %v9268_v57 = vpop.permute.xlu2 %2299  ;;  %v696_v60 = vsel %vm633_vm3, %v14076_v54, %v570_v19  ;;  %v691_v19 = vsel %vm633_vm3, %v574_v52, %v575_v63 }
 0x166   : > { %14410 = vst [vmem:[#allocation35_spill] sm:$0xff] %v9268_v57  ;;  %v9283_v6 = vpop.permute.xlu1 %2249  ;;  %v9285_v20 = vpop.permute.xlu0 %2244  ;;  %v800_v5 = vand.u32 15, %v9281_v26 }
 0x168   : > { %vm1662_vm5 = vcmp.eq.s32.totalorder %v800_v5, 15  ;;  %v8309_v5 = vld [vmem:[%s8547_s30 + $0x38] sm:$0xff] }
 0x169   : > { %v576_v22 = vrot.slane %v8309_v5, 1  ;;  %v581_v5 = vrot.slane %v8673_v62, 1 }
 0x16b   : > { %2634 = vperm.xlu2 %7752, %v694_v53   ;;  %v8308_v53 = vld [vmem:[%s8547_s30 + $0x40] sm:$0xff] }
 0x16c   : > { %2629 = vperm.xlu1 %7751, %v1722_v37   ;;  %2624 = vperm.xlu0 %7750, %v696_v60   ;;  %v1726_v37 = vsel %vm1662_vm5, 0.0, %v691_v19  ;;  %v692_v60 = vsel %vm633_vm3, %v573_v24, %v574_v52  ;;  %v577_v54 = vrot.slane %v8308_v53, 1  ;;  %v9331_v52 = vadd.s32 88, %v8539_v2 }
 0x16d   : > { %v9303_v21 = vpop.permute.xlu2 %2314 }
 0x16e   : > { %14413 = vst [vmem:[#allocation36_spill] sm:$0xff] %v9303_v21  ;;  %v9310_v35 = vpop.permute.xlu1 %2264  ;;  %v9312_v41 = vpop.permute.xlu0 %2259  ;;  %v814_v21 = vand.u32 15, %v9308_v10  ;;  %v689_v55 = vsel %vm633_vm3, %v576_v22, %v577_v54  ;;  %v688_v38 = vsel %vm633_vm3, %v577_v54, %v578_v7 }
 0x16f   : > { %14417 = vst [vmem:[#allocation41_spill] sm:$0xff] %v9331_v52 }
 0x170   : > { %vm9326_vm7 = vcmp.eq.s32.totalorder %v814_v21, 15  ;;  %v690_v21 = vsel %vm633_vm3, %v575_v63, %v576_v22 }
 0x173   : > { %2649 = vperm.xlu2 %7752, %v1726_v37   ;;  %v9338_v37 = vadd.s32 72, %v8539_v2 }
 0x174   : > { %2644 = vperm.xlu1 %7751, %v692_v60   ;;  %2639 = vperm.xlu0 %7750, %v1724_v23   ;;  %v1728_v60 = vsel %vm9326_vm7, 0.0, %v689_v55  ;;  %v8311_v23 = vld [vmem:[%s8547_s30 + $0x58] sm:$0xff]  ;;  %v9362_v55 = vadd.s32 104, %v8539_v2 }
 0x175   : > { %v9322_v27 = vpop.permute.xlu2 %2329  ;;  %14419 = vst [vmem:[#allocation37_spill] sm:$0xff] %v9338_v37  ;;  %v580_v53 = vrot.slane %v8311_v23, 1  ;;  %v828_v13 = vand.u32 15, %v9338_v37 }
 0x176   : > { %14414 = vst [vmem:[#allocation32_spill] sm:$0xff] %v9322_v27  ;;  %v9333_v19 = vpop.permute.xlu1 %2279  ;;  %v9335_v32 = vpop.permute.xlu0 %2274  ;;  %v842_v27 = vand.u32 15, %v9331_v52  ;;  %v856_v37 = vand.u32 15, %v9362_v55 }
 0x177   : > { %14418 = vst [vmem:[#allocation43_spill] sm:$0xff] %v9335_v32  ;;  %v685_v22 = vsel %vm633_vm3, %v580_v53, %v581_v5  ;;  %vm1666_vm9 = vcmp.eq.s32.totalorder %v828_v13, 15  ;;  %v760_v13 = vadd.s32 504, %v8539_v2 }
 0x178   : > { %vm1668_vm8 = vcmp.eq.s32.totalorder %v842_v27, 15  ;;  %14423 = vst [vmem:[#allocation53_spill] sm:$0xff] %v9362_v55  ;;  %v8314_v27 = vld [vmem:[%s8547_s30 + $0x70] sm:$0xff]  ;;  %vm1670_vm10 = vcmp.eq.s32.totalorder %v856_v37, 15  ;;  %v14428_v55 = vrot.slane %v9277_v45, 1 }
 0x179   : > { %v1732_v24 = vsel %vm1668_vm8, 0.0, %v685_v22  ;;  %v583_v52 = vrot.slane %v8314_v27, 1  ;;  %v14080_v27 = vrot.slane %v9054_v33, 1 }
 0x17b   : > { %2664 = vperm.xlu2 %7752, %v688_v38   ;;  %v686_v38 = vsel %vm633_vm3, %v579_v59, %v580_v53 }
 0x17c   : > { %2659 = vperm.xlu1 %7751, %v1728_v60   ;;  %2654 = vperm.xlu0 %7750, %v690_v21   ;;  %v1730_v60 = vsel %vm1666_vm9, 0.0, %v687_v61  ;;  %v8313_v21 = vld [vmem:[%s8547_s30 + $0x68] sm:$0xff] }
 0x17d   : > { %v9351_v54 = vpop.permute.xlu2 %2344  ;;  %v582_v23 = vrot.slane %v8313_v21, 1 }
 0x17e   : > { %14420 = vst [vmem:[#allocation47_spill] sm:$0xff] %v9351_v54  ;;  %v9355_v63 = vpop.permute.xlu1 %2294  ;;  %v9357_v62 = vpop.permute.xlu0 %2289 }
 0x17f   : > { %14421 = vst [vmem:[#allocation48_spill] sm:$0xff] %v9355_v63  ;;  %v683_v59 = vsel %vm633_vm3, %v582_v23, %v583_v52  ;;  %v684_v61 = vsel %vm633_vm3, %v581_v5, %v582_v23 }
 0x180   : > { %14422 = vst [vmem:[#allocation42_spill] sm:$0xff] %v9357_v62  ;;  %v1734_v53 = vsel %vm1670_vm10, 0.0, %v683_v59 }
 0x183   : > { %2679 = vperm.xlu2 %7752, %v1732_v24   ;;  %v8315_v24 = vld [vmem:[%s8547_s30 + $0x1f8] sm:$0xff] }
 0x184   : > { %2674 = vperm.xlu1 %7751, %v686_v38   ;;  %2669 = vperm.xlu0 %7750, %v1730_v60   ;;  %v632_v38 = vrot.slane %v8315_v24, 1  ;;  %v1206_v60 = vand.u32 15, %v760_v13  ;;  %v9394_v13 = vadd.s32 120, %v8539_v2 }
 0x185   : > { %v9369_v7 = vpop.permute.xlu2 %2359 }
 0x186   : > { %14424 = vst [vmem:[#allocation55_spill] sm:$0xff] %v9369_v7  ;;  %v9372_v62 = vpop.permute.xlu1 %2309  ;;  %v9374_v22 = vpop.permute.xlu0 %2304  ;;  %v697_v37 = vsel %vm633_vm3, %v632_v38, %v14428_v55  ;;  %vm1720_vm11 = vcmp.eq.s32.totalorder %v1206_v60, 15  ;;  %v870_v55 = vand.u32 15, %v9394_v13  ;;  %v8318_v60 = vld [vmem:[%s8547_s30 + $0x88] sm:$0xff] }
 0x187   : > { %14425 = vst [vmem:[#allocation49_spill] sm:$0xff] %v9372_v62  ;;  %v1784_v59 = vsel %vm1720_vm11, 0.0, %v697_v37  ;;  %v586_v63 = vrot.slane %v8318_v60, 1 }
 0x188   : > { %14426 = vst [vmem:[#allocation59_spill] sm:$0xff] %v9374_v22  ;;  %vm1672_vm12 = vcmp.eq.s32.totalorder %v870_v55, 15 }
 0x189   : > { %14431 = vst [vmem:[#allocation105_spill] sm:$0xff] %v9394_v13 }
 0x18b   : > { %2484 = vperm.xlu2 %7752, %v9054_v33   ;;  %v9539_v33 = vld [vmem:[%s8547_s30 + $0xe8] sm:$0xff] }
 0x18c   : > { %2689 = vperm.xlu1 %7751, %v1734_v53   ;;  %2684 = vperm.xlu0 %7750, %v684_v61   ;;  %v634_v53 = vsel %vm633_vm3, %v14080_v27, %v632_v38  ;;  %v8316_v61 = vld [vmem:[%s8547_s30 + $0x78] sm:$0xff] }
 0x18d   : > { %v9382_v21 = vpop.permute.xlu2 %2374  ;;  %v584_v45 = vrot.slane %v8316_v61, 1  ;;  %v8319_v61 = vld [vmem:[%s8547_s30 + $0x90] sm:$0xff] }
 0x18e   : > { %14427 = vst [vmem:[#allocation60_spill] sm:$0xff] %v9382_v21  ;;  %v9389_v5 = vpop.permute.xlu1 %2324  ;;  %v9391_v23 = vpop.permute.xlu0 %2319  ;;  %v8317_v21 = vld [vmem:[%s8547_s30 + $0x80] sm:$0xff]  ;;  %v587_v60 = vrot.slane %v8319_v61, 1  ;;  %v9440_v61 = vadd.s32 168, %v8539_v2 }
 0x18f   : > { %14429 = vst [vmem:[#allocation54_spill] sm:$0xff] %v9389_v5  ;;  %v585_v62 = vrot.slane %v8317_v21, 1  ;;  %v9413_v21 = vadd.s32 136, %v8539_v2 }
 0x190   : > { %14430 = vst [vmem:[#allocation104_spill] sm:$0xff] %v9391_v23 }
 0x191   : > { %v681_v38 = vsel %vm633_vm3, %v584_v45, %v585_v62  ;;  %14435 = vst [vmem:[#allocation109_spill] sm:$0xff] %v9413_v21  ;;  %v884_v27 = vand.u32 15, %v9413_v21 }
 0x192   : > { %14442 = vst [vmem:[#allocation116_spill] sm:$0xff] %v9440_v61 }
 0x193   : > { %2939 = vperm.xlu2 %7752, %v1784_v59   ;;  %v680_v59 = vsel %vm633_vm3, %v585_v62, %v586_v63  ;;  %v679_v62 = vsel %vm633_vm3, %v586_v63, %v587_v60  ;;  %vm1674_vm13 = vcmp.eq.s32.totalorder %v884_v27, 15  ;;  %v9447_v27 = vld [vmem:[%s8547_s30 + $0xa8] sm:$0xff] }
 0x194   : > { %2934 = vperm.xlu1 %7751, %v634_v53   ;;  %2489 = vperm.xlu0 %7750, %v8315_v24   ;;  %v1736_v53 = vsel %vm1672_vm12, 0.0, %v681_v38  ;;  %v682_v24 = vsel %vm633_vm3, %v583_v52, %v584_v45  ;;  %v1738_v52 = vsel %vm1674_vm13, 0.0, %v679_v62  ;;  %v9432_v38 = vld [vmem:[%s8547_s30 + $0x98] sm:$0xff]  ;;  %v14085_v62 = vrot.slane %v9447_v27, 1 }
 0x195   : > { %v9404_v12 = vpop.permute.xlu2 %2389 }
 0x196   : > { %14432 = vst [vmem:[#allocation106_spill] sm:$0xff] %v9404_v12  ;;  %v9406_v37 = vpop.permute.xlu1 %2339  ;;  %v9408_v48 = vpop.permute.xlu0 %2334 }
 0x197   : > { %14433 = vst [vmem:[#allocation107_spill] sm:$0xff] %v9406_v37 }
 0x198   : > { %14434 = vst [vmem:[#allocation108_spill] sm:$0xff] %v9408_v48 }
 0x19b   : > { %2704 = vperm.xlu2 %7752, %v680_v59   ;;  %v14083_v59 = vrot.slane %v9432_v38, 1 }
 0x19c   : > { %2699 = vperm.xlu1 %7751, %v1736_v53   ;;  %2694 = vperm.xlu0 %7750, %v682_v24  }
 0x19d   : > { %v9421_v55 = vpop.permute.xlu2 %2404  ;;  %v678_v63 = vsel %vm633_vm3, %v587_v60, %v14083_v59 }
 0x19e   : > { %14436 = vst [vmem:[#allocation110_spill] sm:$0xff] %v9421_v55  ;;  %v9423_v12 = vpop.permute.xlu1 %2354  ;;  %v9425_v13 = vpop.permute.xlu0 %2349  ;;  %v9473_v55 = vadd.s32 200, %v8539_v2 }
 0x19f   : > { %14437 = vst [vmem:[#allocation111_spill] sm:$0xff] %v9423_v12 }
 0x1a0   : > { %14438 = vst [vmem:[#allocation112_spill] sm:$0xff] %v9425_v13  ;;  %v912_v13 = vand.u32 15, %v9440_v61  ;;  %v9465_v61 = vld [vmem:[%s8547_s30 + $0xb8] sm:$0xff] }
 0x1a1   : > { %14449 = vst [vmem:[#allocation123_spill] sm:$0xff] %v9473_v55 }
 0x1a2   : > { %vm1678_vm14 = vcmp.eq.s32.totalorder %v912_v13, 15 }
 0x1a4   : > { %2709 = vperm.xlu0 %7750, %v1738_v52   ;;  %v8322_v52 = vld [vmem:[%s8547_s30 + $0xb0] sm:$0xff] }
 0x1a5   : > { %v9429_v45 = vpop.permute.xlu2 %2419  ;;  %v591_v21 = vrot.slane %v8322_v52, 1 }
 0x1a6   : > { %14439 = vst [vmem:[#allocation113_spill] sm:$0xff] %v9429_v45  ;;  %v9435_v53 = vpop.permute.xlu1 %2369  ;;  %v9437_v24 = vpop.permute.xlu0 %2364 }
 0x1a7   : > { %14440 = vst [vmem:[#allocation114_spill] sm:$0xff] %v9435_v53  ;;  %v675_v60 = vsel %vm633_vm3, %v14085_v62, %v591_v21  ;;  %v8325_v62 = vld [vmem:[%s8547_s30 + $0xd0] sm:$0xff] }
 0x1a8   : > { %14441 = vst [vmem:[#allocation115_spill] sm:$0xff] %v9437_v24  ;;  %v1742_v59 = vsel %vm1678_vm14, 0.0, %v675_v60  ;;  %v9480_v60 = vld [vmem:[%s8547_s30 + $0xc8] sm:$0xff] }
 0x1ac   : > { %2714 = vperm.xlu0 %7750, %v678_v63   ;;  %v14086_v63 = vrot.slane %v9465_v61, 1 }
 0x1ad   : > { %v9452_v53 = vpop.permute.xlu2 %2434 }
 0x1ae   : > { %14443 = vst [vmem:[#allocation117_spill] sm:$0xff] %v9452_v53  ;;  %v9454_v12 = vpop.permute.xlu1 %2384  ;;  %v9456_v45 = vpop.permute.xlu0 %2379  ;;  %v674_v13 = vsel %vm633_vm3, %v591_v21, %v14086_v63 }
 0x1af   : > { %14444 = vst [vmem:[#allocation118_spill] sm:$0xff] %v9454_v12  ;;  %v940_v12 = vand.u32 15, %v9473_v55 }
 0x1b0   : > { %14445 = vst [vmem:[#allocation119_spill] sm:$0xff] %v9456_v45 }
 0x1b1   : > { %vm1682_vm15 = vcmp.eq.s32.totalorder %v940_v12, 15  ;;  %v14454_v12 = vld [vmem:[#allocation45_spill] sm:$0xff] }
 0x1b4   : > { %2729 = vperm.xlu0 %7750, %v1742_v59   ;;  %v14089_v59 = vrot.slane %v9480_v60, 1 }
 0x1b5   : > { %v9462_v52 = vpop.permute.xlu2 %2449 }
 0x1b6   : > { %14446 = vst [vmem:[#allocation120_spill] sm:$0xff] %v9462_v52  ;;  %v9468_v53 = vpop.permute.xlu1 %2399  ;;  %v9470_v48 = vpop.permute.xlu0 %2394  ;;  %v595_v52 = vrot.slane %v8325_v62, 1  ;;  %v9498_v62 = vld [vmem:[%s14453_s1 + $0x1] ss:$0 sm:$0xff] }
 0x1b7   : > { %14447 = vst [vmem:[#allocation121_spill] sm:$0xff] %v9468_v53  ;;  %v2495_v55 = vmul.f32 %v9498_v62, %v9228_v51  ;;  %v9521_v51 = vld [vmem:[%s14021_s2] ss:$0 sm:$0xff]  ;;  %v2498_v54 = vmul.f32 %v9498_v62, %v9237_v43 }
 0x1b8   : > { %14448 = vst [vmem:[#allocation122_spill] sm:$0xff] %v9470_v48  ;;  %v671_v21 = vsel %vm633_vm3, %v14089_v59, %v595_v52 }
 0x1b9   : > { %v1746_v63 = vsel %vm1682_vm15, 0.0, %v671_v21 }
 0x1bc   : > { %2734 = vperm.xlu0 %7750, %v674_v13   ;;  %v9503_v13 = vld [vmem:[%s14453_s1] ss:$0 sm:$0xff] }
 0x1bd   : > { %v9485_v53 = vpop.permute.xlu2 %2464  ;;  %v2109_v59 = vmul.f32 %v9503_v13, %v14454_v12 }
 0x1be   : > { %14450 = vst [vmem:[#allocation124_spill] sm:$0xff] %v9485_v53  ;;  %v9487_v48 = vpop.permute.xlu1 %2414  ;;  %v9489_v45 = vpop.permute.xlu0 %2409 }
 0x1bf   : > { %14451 = vst [vmem:[#allocation125_spill] sm:$0xff] %v9487_v48  ;;  %v9515_v48 = vld [vmem:[%s8547_s30 + $0xd8] sm:$0xff]  ;;  %v2559_v24 = vadd.f32 %v2495_v55, %v2109_v59 }
 0x1c0   : > { %14452 = vst [vmem:[#allocation126_spill] sm:$0xff] %v9489_v45  ;;  %v9510_v45 = vld [vmem:[%s14453_s1 + $0x2] ss:$0 sm:$0xff]  ;;  %v14091_v53 = vrot.slane %v9515_v48, 1 }
 0x1c2   : > { %v670_v55 = vsel %vm633_vm3, %v595_v52, %v14091_v53 }
 0x1c4   : > { %2749 = vperm.xlu0 %7750, %v1746_v63   ;;  %v9529_v63 = vadd.s32 232, %v8539_v2 }
 0x1c5   : > { %v2635_v21 = vpop.permute.xlu2 %2634 }
 0x1c6   : > { %v2945_v7 = vmul.f32 %v9510_v45, %v2635_v21  ;;  %v9524_v32 = vpop.permute.xlu1 %2429  ;;  %v9526_v30 = vpop.permute.xlu0 %2424  ;;  %14457 = vst [vmem:[#allocation128_spill] sm:$0xff] %v9529_v63  ;;  %v14094_v21 = vrot.slane %v9539_v33, 1  ;;  %v968_v47 = vand.u32 15, %v9529_v63 }
 0x1c7   : > { %14455 = vst [vmem:[#allocation45_spill] sm:$0xff] %v9524_v32  ;;  %v8328_v32 = vld [vmem:[%s8547_s30 + $0xf0] sm:$0xff] }
 0x1c8   : > { %14456 = vst [vmem:[#allocation127_spill] sm:$0xff] %v9526_v30  ;;  %v3009_v12 = vadd.f32 %v2945_v7, %v2559_v24  ;;  %v599_v30 = vrot.slane %v8328_v32, 1  ;;  %v14458_v7 = vld [vmem:[#allocation29_spill] sm:$0xff]  ;;  %vm1686_vm2 = vcmp.eq.s32.totalorder %v968_v47, 15 }
 0x1c9   : > { %v2112_v24 = vmul.f32 %v9503_v13, %v14458_v7 }
 0x1ca   : > { %v3077_v59 = vadd.f32 %v9521_v51, %v3009_v12  ;;  %v667_v32 = vsel %vm633_vm3, %v14094_v21, %v599_v30 }
 0x1cb   : > { %v2562_v31 = vadd.f32 %v2498_v54, %v2112_v24  ;;  %v14461_v24 = vld [vmem:[#allocation34_spill] sm:$0xff] }
 0x1cc   : > { %v3141_v43 = vmax.f32 %v3077_v59, 0.0  ;;  %2754 = vperm.xlu0 %7750, %v670_v55   ;;  %v1750_v59 = vsel %vm1686_vm2, 0.0, %v667_v32  ;;  %v2501_v55 = vmul.f32 %v9498_v62, %v9246_v28  ;;  %v730_v32 = vadd.s32 264, %v8539_v2 }
 0x1cd   : > { %v2650_v37 = vpop.permute.xlu2 %2649 }
 0x1ce   : > { %3206 = vst.msk [vmem:[#allocation2 + $0x10] sm:$0xff] %vm3203_vm1, %v3141_v43  ;;  %v2948_v52 = vmul.f32 %v9510_v45, %v2650_v37  ;;  %v9548_v12 = vpop.permute.xlu1 %2444  ;;  %v9550_v53 = vpop.permute.xlu0 %2439  ;;  %v2115_v37 = vmul.f32 %v9503_v13, %v14461_v24  ;;  %v9580_v24 = vld [vmem:[%s8547_s30 + $0x108] sm:$0xff] }
 0x1cf   : > { %14459 = vst [vmem:[#allocation29_spill] sm:$0xff] %v9548_v12  ;;  %v9562_v12 = vld [vmem:[%s8547_s30 + $0xf8] sm:$0xff] }
 0x1d0   : > { %14460 = vst [vmem:[#allocation129_spill] sm:$0xff] %v9550_v53  ;;  %v3012_v7 = vadd.f32 %v2948_v52, %v2562_v31  ;;  %v14095_v21 = vrot.slane %v9562_v12, 1  ;;  %v2565_v47 = vadd.f32 %v2501_v55, %v2115_v37  ;;  %v8331_v37 = vld [vmem:[%s8547_s30 + $0x110] sm:$0xff] }
 0x1d1   : > { %14462 = vst [vmem:[#allocation34_spill] sm:$0xff] %v9562_v12 }
 0x1d2   : > { %v3080_v54 = vadd.f32 %v9521_v51, %v3012_v7  ;;  %14465 = vst [vmem:[#allocation132_spill] sm:$0xff] %v9580_v24 }
 0x1d4   : > { %v3144_v43 = vmax.f32 %v3080_v54, 0.0  ;;  %2769 = vperm.xlu0 %7750, %v1750_v59   ;;  %v2504_v59 = vmul.f32 %v9498_v62, %v9258_v34  ;;  %v666_v54 = vsel %vm633_vm3, %v599_v30, %v14095_v21  ;;  %v2493_v34 = vmul.f32 %v9498_v62, %v9217_v8  ;;  %v14467_v30 = vld [vmem:[#allocation40_spill] sm:$0xff]  ;;  %v14468_v21 = vld [vmem:[#allocation46_spill] sm:$0xff] }
 0x1d5   : > { %v2665_v63 = vpop.permute.xlu2 %2664  ;;  %v14469_v8 = vrot.slane %v9580_v24, 1 }
 0x1d6   : > { %3209 = vst.msk [vmem:[#allocation2 + $0x28] sm:$0xff] %vm3203_vm1, %v3144_v43  ;;  %v2951_v31 = vmul.f32 %v9510_v45, %v2665_v63  ;;  %v9567_v28 = vpop.permute.xlu1 %2459  ;;  %v9569_v52 = vpop.permute.xlu0 %2454  ;;  %v603_v43 = vrot.slane %v8331_v37, 1  ;;  %v2107_v63 = vmul.f32 %v9503_v13, %v14468_v21 }
 0x1d7   : > { %14463 = vst [vmem:[#allocation130_spill] sm:$0xff] %v9567_v28 }
 0x1d8   : > { %14464 = vst [vmem:[#allocation131_spill] sm:$0xff] %v9569_v52  ;;  %v3015_v7 = vadd.f32 %v2951_v31, %v2565_v47  ;;  %v996_v52 = vand.u32 15, %v730_v32  ;;  %v2494_v47 = vmul.f32 %v9498_v62, %v9188_v25  ;;  %v14466_v31 = vld [vmem:[#allocation38_spill] sm:$0xff] }
 0x1d9   : > { %v2118_v28 = vmul.f32 %v9503_v13, %v14466_v31 }
 0x1da   : > { %v3083_v55 = vadd.f32 %v9521_v51, %v3015_v7  ;;  %v2108_v7 = vmul.f32 %v9503_v13, %v14467_v30  ;;  %vm9600_vm4 = vcmp.eq.s32.totalorder %v996_v52, 15  ;;  %v2557_v30 = vadd.f32 %v2493_v34, %v2107_v63 }
 0x1db   : > { %v2568_v37 = vadd.f32 %v2504_v59, %v2118_v28  ;;  %v2497_v52 = vmul.f32 %v9498_v62, %v9197_v9  ;;  %v9622_v9 = vld [vmem:[%s8547_s30 + $0x118] sm:$0xff] }
 0x1dc   : > { %v3147_v53 = vmax.f32 %v3083_v55, 0.0  ;;  %2774 = vperm.xlu0 %7750, %v666_v54   ;;  %v663_v55 = vsel %vm633_vm3, %v14469_v8, %v603_v43  ;;  %v2558_v31 = vadd.f32 %v2494_v47, %v2108_v7  ;;  %v2496_v47 = vmul.f32 %v9498_v62, %v9226_v3  ;;  %14474 = vst [vmem:[#allocation38_spill] sm:$0xff] %v9622_v9  ;;  %v14479_v3 = vld [vmem:[#allocation51_spill] sm:$0xff] }
 0x1dd   : > { %v2680_v5 = vpop.permute.xlu2 %2679  ;;  %v1754_v23 = vsel %vm9600_vm4, 0.0, %v663_v55  ;;  %v2114_v22 = vmul.f32 %v9503_v13, %v14479_v3  ;;  %v9653_v3 = vld [vmem:[%s8547_s30 + $0x130] sm:$0xff] }
 0x1de   : > { %3212 = vst.msk [vmem:[#allocation2 + $0x40] sm:$0xff] %vm3203_vm1, %v3147_v53  ;;  %v2954_v25 = vmul.f32 %v9510_v45, %v2680_v5  ;;  %v2630_v32 = vpop.permute.xlu1 %2629  ;;  %v2625_v50 = vpop.permute.xlu0 %2624 }
 0x1df   : > { %v2944_v21 = vmul.f32 %v9510_v45, %v2630_v32  ;;  %v2943_v28 = vmul.f32 %v9510_v45, %v2625_v50  ;;  %v14472_v50 = vld [vmem:[#allocation31_spill] sm:$0xff] }
 0x1e0   : > { %v3018_v53 = vadd.f32 %v2954_v25, %v2568_v37  ;;  %v2111_v7 = vmul.f32 %v9503_v13, %v14472_v50  ;;  %v14473_v25 = vld [vmem:[#allocation39_spill] sm:$0xff]  ;;  %v14477_v50 = vld [vmem:[#allocation17_spill] sm:$0xff] }
 0x1e1   : > { %v3008_v5 = vadd.f32 %v2944_v21, %v2558_v31  ;;  %v3007_v59 = vadd.f32 %v2943_v28, %v2557_v30  ;;  %v2110_v32 = vmul.f32 %v9503_v13, %v14473_v25  ;;  %v14475_v31 = vld [vmem:[#allocation14_spill] sm:$0xff]  ;;  %v14478_v30 = vld [vmem:[#allocation44_spill] sm:$0xff] }
 0x1e2   : > { %v3086_v49 = vadd.f32 %v9521_v51, %v3018_v53 }
 0x1e3   : > { %v3076_v63 = vadd.f32 %v9521_v51, %v3008_v5  ;;  %v3075_v34 = vadd.f32 %v9521_v51, %v3007_v59  ;;  %v2560_v53 = vadd.f32 %v2496_v47, %v2110_v32  ;;  %v14480_v32 = vrot.slane %v9622_v9, 1  ;;  %v14486_v9 = vld [vmem:[#allocation63_spill] sm:$0xff] }
 0x1e4   : > { %v3150_v37 = vmax.f32 %v3086_v49, 0.0  ;;  %2789 = vperm.xlu0 %7750, %v1754_v23   ;;  %v734_v49 = vadd.s32 296, %v8539_v2  ;;  %v2561_v23 = vadd.f32 %v2497_v52, %v2111_v7  ;;  %v2500_v52 = vmul.f32 %v9498_v62, %v9206_v42  ;;  %v14483_v42 = vld [vmem:[#allocation57_spill] sm:$0xff] }
 0x1e5   : > { %v3140_v8 = vmax.f32 %v3076_v63, 0.0  ;;  %v3139_v55 = vmax.f32 %v3075_v34, 0.0  ;;  %v9619_v54 = vpop.permute.xlu2 %2484  ;;  %v14476_v63 = vld [vmem:[#allocation15_spill] sm:$0xff] }
 0x1e6   : > { %3215 = vst.msk [vmem:[#allocation2 + $0x58] sm:$0xff] %vm3203_vm1, %v3150_v37  ;;  %v2645_v21 = vpop.permute.xlu1 %2644  ;;  %v2640_v28 = vpop.permute.xlu0 %2639  ;;  %v9635_v37 = vmul.f32 %v9503_v13, %v14478_v30  ;;  %v9649_v30 = vld [vmem:[%s8547_s30 + $0x128] sm:$0xff]  ;;  %v1024_v34 = vand.u32 15, %v734_v49  ;;  %v2503_v49 = vmul.f32 %v9498_v62, %v9215_v56 }
 0x1e7   : > { %3205 = vst.msk [vmem:[#allocation2 + $0x8] sm:$0xff] %vm3203_vm1, %v3140_v8  ;;  %v2947_v5 = vmul.f32 %v9510_v45, %v2645_v21  ;;  %v2946_v59 = vmul.f32 %v9510_v45, %v2640_v28  ;;  %v662_v8 = vsel %vm633_vm3, %v603_v43, %v14480_v32  ;;  %v14481_v21 = vld [vmem:[#allocation52_spill] sm:$0xff]  ;;  %v14487_v57 = vrot.slane %v9649_v30, 1 }
 0x1e8   : > { %3204 = vst.msk [vmem:[#allocation2] sm:$0xff] %vm3203_vm1, %v3139_v55  ;;  %v2113_v28 = vmul.f32 %v9503_v13, %v14481_v21  ;;  %v607_v55 = vrot.slane %v9653_v3, 1  ;;  %v14485_v21 = vld [vmem:[#allocation62_spill] sm:$0xff]  ;;  %v2119_v3 = vmul.f32 %v9503_v13, %v14486_v9  ;;  %vm9682_vm5 = vcmp.eq.s32.totalorder %v1024_v34, 15 }
 0x1e9   : > { %v3011_v47 = vadd.f32 %v2947_v5, %v2561_v23  ;;  %v3010_v7 = vadd.f32 %v2946_v59, %v2560_v53  ;;  %14482 = vst [vmem:[#allocation40_spill] sm:$0xff] %v9649_v30  ;;  %v2117_v23 = vmul.f32 %v9503_v13, %v14483_v42  ;;  %v2499_v53 = vmul.f32 %v9498_v62, %v9235_v0  ;;  %v14484_v59 = vld [vmem:[#allocation58_spill] sm:$0xff]  ;;  %v9751_v30 = vld [vmem:[%s8547_s30 + $0x150] sm:$0xff] }
 0x1ea   : > { %v2116_v32 = vmul.f32 %v9503_v13, %v14484_v59  ;;  %v2120_v25 = vmul.f32 %v9503_v13, %v14485_v21  ;;  %v2123_v0 = vmul.f32 %v9503_v13, %v9069_v46  ;;  %v2564_v42 = vadd.f32 %v2500_v52, %v2114_v22 }
 0x1eb   : > { %v3079_v43 = vadd.f32 %v9521_v51, %v3011_v47  ;;  %v3078_v5 = vadd.f32 %v9521_v51, %v3010_v7  ;;  %v2506_v59 = vmul.f32 %v9498_v62, %v9224_v1  ;;  %v2509_v21 = vmul.f32 %v9498_v62, %v9233_v39 }
 0x1ec   : > { %2794 = vperm.xlu0 %7750, %v662_v8   ;;  %v659_v56 = vsel %vm633_vm3, %v14487_v57, %v607_v55  ;;  %v2563_v22 = vadd.f32 %v2499_v53, %v2113_v28  ;;  %v2502_v52 = vmul.f32 %v9498_v62, %v9244_v58  ;;  %v9693_v8 = vmul.f32 %v9503_v13, %v9071_v18 }
 0x1ed   : > { %v3143_v47 = vmax.f32 %v3079_v43, 0.0  ;;  %v3142_v24 = vmax.f32 %v3078_v5, 0.0  ;;  %v9672_v7 = vpop.permute.xlu2 %2939  ;;  %v2567_v57 = vadd.f32 %v2503_v49, %v2117_v23  ;;  %v2505_v34 = vmul.f32 %v9498_v62, %v9256_v16  ;;  %v9705_v23 = vld [vmem:[%s8547_s30 + $0x138] sm:$0xff] }
 0x1ee   : > { %v2660_v17 = vpop.permute.xlu1 %2659  ;;  %v2655_v9 = vpop.permute.xlu0 %2654  ;;  %v14099_v28 = vand.u32 7, %v8539_v2  ;;  %v14098_v58 = vand.u32 7, %v9254_v44  ;;  %v2573_v18 = vadd.f32 %v2509_v21, %v2123_v0  ;;  %14490 = vst [vmem:[#allocation46_spill] sm:$0xff] %v9705_v23  ;;  %v14102_v16 = vrot.slane %v9705_v23, 1 }
 0x1ef   : > { %3208 = vst.msk [vmem:[#allocation2 + $0x20] sm:$0xff] %vm3203_vm1, %v3143_v47  ;;  %v2950_v39 = vmul.f32 %v9510_v45, %v2660_v17  ;;  %v2949_v1 = vmul.f32 %v9510_v45, %v2655_v9  ;;  %v1758_v17 = vsel %vm9682_vm5, 0.0, %v659_v56  ;;  %v3268_v5 = vld [vmem:[#allocation2] ss:$2 sm:$0xff]  ;;  %v3332_v47 = vld [vmem:[#allocation2 + $0x1] ss:$2 sm:$0xff]  ;;  %v9702_v9 = vadd.f32 %v2506_v59, %v2120_v25 }
 0x1f0   : > { %3207 = vst.msk [vmem:[#allocation2 + $0x18] sm:$0xff] %vm3203_vm1, %v3142_v24  ;;  %v9709_v24 = vadd.s32 152, %v8539_v2  ;;  %v2566_v49 = vadd.f32 %v2502_v52, %v2116_v32  ;;  %v9714_v46 = vadd.f32 %v2505_v34, %v2119_v3  ;;  %v9716_v25 = vmax.f32 %v3268_v5, %v3332_v47 }
 0x1f1   : > { %v3014_v53 = vadd.f32 %v2950_v39, %v2564_v42  ;;  %v3013_v43 = vadd.f32 %v2949_v1, %v2563_v22  ;;  %vm9720_vm6 = vcmp.eq.s32.totalorder %v14099_v28, 7  ;;  %v738_v32 = vadd.s32 328, %v8539_v2  ;;  %v9732_v39 = vld [vmem:[%s8547_s30 + $0xa0] sm:$0xff] }
 0x1f2   : > { %14491 = vst [vmem:[#allocation31_spill] sm:$0xff] %v9709_v24  ;;  %vm9727_vm7 = vcmp.eq.s32.totalorder %v14098_v58, 7  ;;  %v14107_v58 = vrot.slane %v9716_v25, 7  ;;  %v2508_v3 = vmul.f32 %v9498_v62, %v9283_v6  ;;  %v2170_v6 = vmul.f32 %v9503_v13, %v9219_v14 }
 0x1f3   : > { %v3082_v22 = vadd.f32 %v9521_v51, %v3014_v53  ;;  %v3081_v56 = vadd.f32 %v9521_v51, %v3013_v43  ;;  %v1052_v44 = vand.u32 15, %v738_v32  ;;  %v14507_v14 = vand.u32 7, %v14476_v63 }
 0x1f4   : > { %2809 = vperm.xlu0 %7750, %v1758_v17   ;;  %v658_v17 = vsel %vm633_vm3, %v607_v55, %v14102_v16 }
 0x1f5   : > { %v3146_v59 = vmax.f32 %v3082_v22, 0.0  ;;  %v3145_v21 = vmax.f32 %v3081_v56, 0.0  ;;  %v2705_v52 = vpop.permute.xlu2 %2704  ;;  %v898_v22 = vand.u32 15, %v9709_v24  ;;  %v9742_v56 = vld [vmem:[%s8547_s30 + $0x148] sm:$0xff]  ;;  %vm9805_vm10 = vcmp.eq.s32.totalorder %v1052_v44, 15 }
 0x1f6   : > { %v2675_v34 = vpop.permute.xlu1 %2674  ;;  %v2959_v53 = vmul.f32 %v9510_v45, %v2705_v52  ;;  %v2670_v43 = vpop.permute.xlu0 %2669  ;;  %v3272_v5 = vld [vmem:[#allocation2 + $0x20] ss:$2 sm:$0xff]  ;;  %v3336_v47 = vld [vmem:[#allocation2 + $0x21] ss:$2 sm:$0xff]  ;;  %v2169_v44 = vmul.f32 %v9503_v13, %v9179_v11  ;;  %vm9837_vm11 = vcmp.eq.s32.totalorder %v14507_v14, 7 }
 0x1f7   : > { %3211 = vst.msk [vmem:[#allocation2 + $0x38] sm:$0xff] %vm3203_vm1, %v3146_v59  ;;  %v2953_v28 = vmul.f32 %v9510_v45, %v2675_v34  ;;  %v2952_v52 = vmul.f32 %v9510_v45, %v2670_v43  ;;  %v3270_v42 = vld [vmem:[#allocation2 + $0x10] ss:$2 sm:$0xff]  ;;  %v3334_v1 = vld [vmem:[#allocation2 + $0x11] ss:$2 sm:$0xff]  ;;  %v9748_v23 = vmax.f32 %v3272_v5, %v3336_v47  ;;  %v14496_v59 = vand.u32 7, %v14476_v63 }
 0x1f8   : > { %3210 = vst.msk [vmem:[#allocation2 + $0x30] sm:$0xff] %vm3203_vm1, %v3145_v21  ;;  %v3023_v16 = vadd.f32 %v2959_v53, %v2573_v18  ;;  %v3396_v24 = vmax.f32 %v3270_v42, %v3334_v1  ;;  %v14106_v47 = vrot.slane %v9716_v25, 1  ;;  %v14499_v53 = vrot.slane %v9732_v39, 1 }
 0x1f9   : > { %vm9758_vm8 = vcmp.eq.s32.totalorder %v14496_v59, 0  ;;  %v3017_v43 = vadd.f32 %v2953_v28, %v2567_v57  ;;  %v3016_v5 = vadd.f32 %v2952_v52, %v2566_v49  ;;  %v3493_v12 = vrot.slane %v9748_v23, 1 }
 0x1fa   : > { %v3091_v55 = vadd.f32 %v9521_v51, %v3023_v16  ;;  %v7753_v18 = vpack.i.bf16 %v3396_v24, %v9716_v25  ;;  %v3428_v42 = vrot.slane %v3396_v24, 7  ;;  %v3492_v21 = vrot.slane %v3396_v24, 1 }
 0x1fb   : > { %v3085_v32 = vadd.f32 %v9521_v51, %v3017_v43  ;;  %v3084_v1 = vadd.f32 %v9521_v51, %v3016_v5  ;;  %v14500_v59 = vrot.slane %v9432_v38, 1  ;;  %v3429_v28 = vrot.slane %v9748_v23, 7 }
 0x1fc   : > { %v3155_v49 = vmax.f32 %v3091_v55, 0.0  ;;  %7754 = vrot.lane.b32.xlu1 %v7753_v18, %s8416_s28  ;;  %2814 = vperm.xlu0 %7750, %v658_v17   ;;  %v3552_v16 = vsel %vm633_vm3, %v3492_v21, %v3493_v12  ;;  %v3553_v38 = vsel %vm633_vm3, %v14106_v47, %v3492_v21  ;;  %v9788_v24 = vsel %vm504_vm0, %v14107_v58, %v3428_v42 }
 0x1fd   : > { %v677_v57 = vsel %vm633_vm3, %v14500_v59, %v14499_v53  ;;  %v3149_v52 = vmax.f32 %v3085_v32, 0.0  ;;  %v3148_v55 = vmax.f32 %v3084_v1, 0.0  ;;  %v4163_v17 = vsel %vm9720_vm6, 0.0, %v3553_v38 }
 0x1fe   : > { %v4164_v43 = vsel %vm9727_vm7, 0.0, %v3552_v16  ;;  %3220 = vst.msk [vmem:[#allocation2 + $0x80] sm:$0xff] %vm3203_vm1, %v3155_v49  ;;  %v2690_v5 = vpop.permute.xlu1 %2689  ;;  %v2685_v18 = vpop.permute.xlu0 %2684  ;;  %vm9795_vm9 = vcmp.eq.s32.totalorder %v898_v22, 15  ;;  %v14503_v59 = vrot.slane %v9751_v30, 1  ;;  %v14504_v32 = vrot.slane %v9742_v56, 1 }
 0x1ff   : > { %v7758_v53 = vpack.i.bf16 %v4164_v43, %v4163_v17  ;;  %3214 = vst.msk [vmem:[#allocation2 + $0x50] sm:$0xff] %vm3203_vm1, %v3149_v52  ;;  %v2956_v22 = vmul.f32 %v9510_v45, %v2690_v5  ;;  %v2955_v49 = vmul.f32 %v9510_v45, %v2685_v18  ;;  %v3274_v16 = vld [vmem:[#allocation2 + $0x30] ss:$2 sm:$0xff]  ;;  %v3338_v38 = vld [vmem:[#allocation2 + $0x31] ss:$2 sm:$0xff]  ;;  %v9818_v17 = vsel %vm504_vm0, %v3428_v42, %v3429_v28 }
 0x200   : > { %v655_v0 = vsel %vm633_vm3, %v14504_v32, %v14503_v59  ;;  %3213 = vst.msk [vmem:[#allocation2 + $0x48] sm:$0xff] %vm3203_vm1, %v3148_v55  ;;  %v9827_v43 = vmax.f32 %v3274_v16, %v3338_v38  ;;  %v1740_v18 = vsel %vm9795_vm9, 0.0, %v677_v57  ;;  %v14510_v55 = vand.u32 7, %v9288_v15  ;;  %v9879_v38 = vld [vmem:[%s8547_s30 + $0x158] sm:$0xff] }
 0x201   : > { %7759 = vrot.lane.b32.xlu2 %v7758_v53, %s8417_s29  ;;  %v3020_v5 = vadd.f32 %v2956_v22, %v9702_v9  ;;  %v3019_v42 = vadd.f32 %v2955_v49, %v9714_v46  ;;  %v1762_v11 = vsel %vm9805_vm10, 0.0, %v655_v0  ;;  %v2555_v63 = vmul.f32 %v9498_v62, %v9619_v54 }
 0x202   : > { %vm9843_vm12 = vcmp.eq.s32.totalorder %v14510_v55, 0  ;;  %v14513_v9 = vmov %v14510_v55  ;;  %v9856_v57 = vadd.s32 184, %v8539_v2  ;;  %v9859_v21 = vadd.f32 %v2508_v3, %v9693_v8 }
 0x203   : > { %vm9849_vm13 = vcmp.eq.s32.totalorder %v14513_v9, 7  ;;  %v9863_v32 = vmul.f32 %v9498_v62, %v9285_v20  ;;  %v3088_v15 = vadd.f32 %v9521_v51, %v3020_v5  ;;  %v3087_v0 = vadd.f32 %v9521_v51, %v3019_v42  ;;  %v9898_v20 = vld [vmem:[%s8547_s30 + $0x168] sm:$0xff] }
 0x204   : > { %2719 = vperm.xlu1 %7751, %v1740_v18   ;;  %2829 = vperm.xlu0 %7750, %v1762_v11   ;;  %v14516_v1 = vrot.slane %v9447_v27, 1  ;;  %v14517_v54 = vrot.slane %v9732_v39, 1  ;;  %v742_v8 = vadd.s32 360, %v8539_v2  ;;  %v3430_v3 = vrot.slane %v9827_v43, 7  ;;  %v9883_v27 = vld [vmem:[%s8547_s30 + $0xc0] sm:$0xff] }
 0x205   : > { %v3152_v49 = vmax.f32 %v3088_v15, 0.0  ;;  %v3151_v16 = vmax.f32 %v3087_v0, 0.0  ;;  %v14108_v5 = vrot.slane %v9879_v38, 1  ;;  %v2619_v42 = vadd.f32 %v2555_v63, %v2169_v44 }
 0x206   : > { %v676_v22 = vsel %vm633_vm3, %v14517_v54, %v14516_v1  ;;  %v2935_v18 = vpop.permute.xlu1 %2934  ;;  %v2490_v11 = vpop.permute.xlu0 %2489  ;;  %v3494_v14 = vrot.slane %v9827_v43, 1  ;;  %v926_v55 = vand.u32 15, %v9856_v57  ;;  %v3278_v9 = vld [vmem:[#allocation2 + $0x50] ss:$2 sm:$0xff]  ;;  %v3342_v15 = vld [vmem:[#allocation2 + $0x51] ss:$2 sm:$0xff]  ;;  %v9892_v0 = vsel %vm504_vm0, %v3429_v28, %v3430_v3 }
 0x207   : > { %3217 = vst.msk [vmem:[#allocation2 + $0x68] sm:$0xff] %vm3203_vm1, %v3152_v49  ;;  %v3005_v1 = vmul.f32 %v9510_v45, %v2935_v18  ;;  %v2556_v44 = vmul.f32 %v9498_v62, %v2490_v11  ;;  %v3276_v63 = vld [vmem:[#allocation2 + $0x40] ss:$2 sm:$0xff]  ;;  %v3340_v54 = vld [vmem:[#allocation2 + $0x41] ss:$2 sm:$0xff]  ;;  %v9901_v58 = vmax.f32 %v3278_v9, %v3342_v15  ;;  %v9907_v28 = vld [vmem:[%s8547_s30 + $0x170] sm:$0xff]  ;;  %v2571_v59 = vadd.f32 %v9863_v32, %v9635_v37 }
 0x208   : > { %3216 = vst.msk [vmem:[#allocation2 + $0x60] sm:$0xff] %vm3203_vm1, %v3151_v16  ;;  %v9904_v52 = vmax.f32 %v3276_v63, %v3340_v54  ;;  %v615_v49 = vrot.slane %v9907_v28, 1  ;;  %v1080_v18 = vand.u32 15, %v742_v8  ;;  %v4038_v11 = vsel %vm9843_vm12, 0.0, %v9892_v0  ;;  %v14557_v28 = vld [vmem:[#allocation16_spill] sm:$0xff] }
 0x209   : > { %2724 = vperm.xlu2 %7752, %v676_v22   ;;  %v14518_v39 = vand.u32 7, %v14475_v31  ;;  %v3006_v22 = vmul.f32 %v9510_v45, %v9672_v7  ;;  %v3069_v16 = vadd.f32 %v3005_v1, %v2619_v42  ;;  %v2620_v9 = vadd.f32 %v2556_v44, %v2170_v6 }
 0x20a   : > { %v14521_v15 = vrot.slane %v9751_v30, 1  ;;  %v3495_v7 = vrot.slane %v9904_v52, 1  ;;  %v3551_v6 = vsel %vm633_vm3, %v3493_v12, %v3494_v14  ;;  %v3431_v30 = vrot.slane %v9904_v52, 7 }
 0x20b   : > { %vm9915_vm14 = vcmp.eq.s32.totalorder %v14518_v39, 0  ;;  %v14522_v63 = vmov %v14518_v39  ;;  %v7763_v39 = vpack.i.bf16 %v9827_v43, %v9748_v23  ;;  %v3137_v42 = vadd.f32 %v9521_v51, %v3069_v16  ;;  %v14568_v16 = vld [vmem:[#allocation34_spill] sm:$0xff] }
 0x20c   : > { %v654_v8 = vsel %vm633_vm3, %v14521_v15, %v14108_v5  ;;  %vm9929_vm15 = vcmp.eq.s32.totalorder %v14522_v63, 7  ;;  %v3070_v1 = vadd.f32 %v3006_v22, %v2620_v9  ;;  %v14525_v31 = vrot.slane %v9883_v27, 1 }
 0x20d   : > { %v14526_v44 = vrot.slane %v9465_v61, 1  ;;  %v3432_v43 = vrot.slane %v9901_v58, 7  ;;  %7764 = vrot.lane.b32.xlu1 %v7763_v39, %s8416_s28  ;;  %2834 = vperm.xlu0 %7750, %v654_v8   ;;  %v3550_v12 = vsel %vm633_vm3, %v3494_v14, %v3495_v7  ;;  %vm9952_vm2 = vcmp.eq.s32.totalorder %v926_v55, 15 }
 0x20e   : > { %v14529_v22 = vrot.slane %v9898_v20, 1  ;;  %vm9962_vm4 = vcmp.eq.s32.totalorder %v1080_v18, 15  ;;  %v3201_v9 = vmax.f32 %v3137_v42, 0.0  ;;  %v3138_v8 = vadd.f32 %v9521_v51, %v3070_v1  ;;  %v2700_v63 = vpop.permute.xlu1 %2699  ;;  %v2695_v39 = vpop.permute.xlu0 %2694 }
 0x20f   : > { %v673_v15 = vsel %vm633_vm3, %v14526_v44, %v14525_v31  ;;  %v4165_v14 = vsel %vm9837_vm11, 0.0, %v3551_v6  ;;  %v4166_v55 = vsel %vm9849_vm13, 0.0, %v3550_v12  ;;  %v3496_v44 = vrot.slane %v9901_v58, 1  ;;  %v3280_v12 = vld [vmem:[#allocation2 + $0x60] ss:$2 sm:$0xff] }
 0x210   : > { %v651_v61 = vsel %vm633_vm3, %v14529_v22, %v615_v49  ;;  %v7768_v31 = vpack.i.bf16 %v4166_v55, %v4165_v14  ;;  %v9976_v18 = vsel %vm504_vm0, %v3431_v30, %v3432_v43  ;;  %v9980_v42 = vsel %vm504_vm0, %v3430_v3, %v3431_v30  ;;  %3266 = vst.msk [vmem:[#allocation2 + $0x1f0] sm:$0xff] %vm3203_vm1, %v3201_v9  ;;  %v3344_v22 = vld [vmem:[#allocation2 + $0x61] ss:$2 sm:$0xff] }
 0x211   : > { %v3202_v46 = vmax.f32 %v3138_v8, 0.0  ;;  %v2958_v6 = vmul.f32 %v9510_v45, %v2700_v63  ;;  %v2957_v1 = vmul.f32 %v9510_v45, %v2695_v39  ;;  %v14532_v14 = vld [vmem:[#allocation50_spill] sm:$0xff]  ;;  %v14533_v5 = vand.u32 7, %v9281_v26 }
 0x212   : > { %v2124_v55 = vmul.f32 %v9503_v13, %v14532_v14  ;;  %7769 = vrot.lane.b32.xlu2 %v7768_v31, %s8417_s29  ;;  %v10002_v30 = vmax.f32 %v3280_v12, %v3344_v22  ;;  %v1766_v63 = vsel %vm9962_vm4, 0.0, %v651_v61  ;;  %v2510_v26 = vmul.f32 %v9498_v62, %v9312_v41  ;;  %v10024_v61 = vld [vmem:[%s8547_s30 + $0x178] sm:$0xff] }
 0x213   : > { %vm9991_vm5 = vcmp.eq.s32.totalorder %v14533_v5, 0  ;;  %v14536_v37 = vmov %v14533_v5  ;;  %3267 = vst.msk [vmem:[#allocation2 + $0x1f8] sm:$0xff] %vm3203_vm1, %v3202_v46  ;;  %v3022_v9 = vadd.f32 %v2958_v6, %v9859_v21  ;;  %v3021_v8 = vadd.f32 %v2957_v1, %v2571_v59 }
 0x214   : > { %vm9997_vm6 = vcmp.eq.s32.totalorder %v14536_v37, 7  ;;  %v1744_v5 = vsel %vm9952_vm2, 0.0, %v673_v15  ;;  %v14539_v39 = vrot.slane %v9480_v60, 1  ;;  %v14540_v31 = vrot.slane %v9883_v27, 1 }
 0x215   : > { %v3497_v46 = vrot.slane %v10002_v30, 1  ;;  %v3549_v21 = vsel %vm633_vm3, %v3495_v7, %v3496_v44  ;;  %v3090_v15 = vadd.f32 %v9521_v51, %v3022_v9  ;;  %v3089_v23 = vadd.f32 %v9521_v51, %v3021_v8  ;;  %2739 = vperm.xlu1 %7751, %v1744_v5   ;;  %2849 = vperm.xlu0 %7750, %v1766_v63  }
 0x216   : > { %v672_v12 = vsel %vm633_vm3, %v14540_v31, %v14539_v39  ;;  %v14113_v41 = vrot.slane %v10024_v61, 1  ;;  %v10028_v60 = vadd.s32 248, %v8539_v2  ;;  %v10035_v7 = vadd.s32 216, %v8539_v2  ;;  %v2710_v9 = vpop.permute.xlu0 %2709 }
 0x217   : > { %v3548_v27 = vsel %vm633_vm3, %v3496_v44, %v3497_v46  ;;  %v3154_v6 = vmax.f32 %v3090_v15, 0.0  ;;  %v3153_v1 = vmax.f32 %v3089_v23, 0.0  ;;  %v4167_v22 = vsel %vm9929_vm15, 0.0, %v3549_v21 }
 0x218   : > { %v4168_v44 = vsel %vm9997_vm6, 0.0, %v3548_v27  ;;  %v14541_v14 = vand.u32 7, %v14477_v50  ;;  %v746_v5 = vadd.s32 392, %v8539_v2  ;;  %v3433_v63 = vrot.slane %v10002_v30, 7 }
 0x219   : > { %v7778_v8 = vpack.i.bf16 %v4168_v44, %v4167_v22  ;;  %v2574_v39 = vadd.f32 %v2510_v26, %v2124_v55  ;;  %v14544_v54 = vand.u32 7, %v8539_v2  ;;  %3219 = vst.msk [vmem:[#allocation2 + $0x78] sm:$0xff] %vm3203_vm1, %v3154_v6  ;;  %v2960_v32 = vmul.f32 %v9510_v45, %v2710_v9  ;;  %v8344_v26 = vld [vmem:[%s8547_s30 + $0xe0] sm:$0xff]  ;;  %v10091_v44 = vld [vmem:[%s8547_s30 + $0x188] sm:$0xff]  ;;  %v8346_v9 = vld [vmem:[%s8547_s30 + $0x190] sm:$0xff] }
 0x21a   : > { %vm10049_vm7 = vcmp.eq.s32.totalorder %v14541_v14, 0  ;;  %v14109_v21 = vand.u32 7, %v10028_v60  ;;  %v2511_v15 = vmul.f32 %v9498_v62, %v9310_v35  ;;  %3218 = vst.msk [vmem:[#allocation2 + $0x70] sm:$0xff] %vm3203_vm1, %v3153_v1  ;;  %2744 = vperm.xlu2 %7752, %v672_v12   ;;  %v650_v55 = vsel %vm633_vm3, %v615_v49, %v14113_v41  ;;  %v3330_v27 = vld [vmem:[#allocation2 + $0x1f0] ss:$2 sm:$0xff] }
 0x21b   : > { %vm10057_vm9 = vcmp.eq.s32.totalorder %v14544_v54, 0  ;;  %v597_v23 = vrot.slane %v8344_v26, 1  ;;  %v3394_v6 = vld [vmem:[#allocation2 + $0x1f1] ss:$2 sm:$0xff]  ;;  %v10080_v35 = vsel %vm504_vm0, %v3432_v43, %v3433_v63  ;;  %v3024_v12 = vadd.f32 %v2960_v32, %v2574_v39 }
 0x21c   : > { %v954_v1 = vand.u32 15, %v10035_v7  ;;  %v10083_v22 = vmax.f32 %v3330_v27, %v3394_v6  ;;  %v7773_v49 = vpack.i.bf16 %v9901_v58, %v9904_v52  ;;  %v14112_v14 = vrot.slane %v10091_v44, 1 }
 0x21d   : > { %v619_v54 = vrot.slane %v8346_v9, 1  ;;  %v1108_v43 = vand.u32 15, %v746_v5  ;;  %v3092_v39 = vadd.f32 %v9521_v51, %v3024_v12  ;;  %vm10100_vm10 = vcmp.eq.s32.totalorder %v14109_v21, 7  ;;  %2854 = vperm.xlu0 %7750, %v650_v55  }
 0x21e   : > { %v14110_v32 = vrot.slane %v10083_v22, 7  ;;  %v14111_v26 = vrot.slane %v10083_v22, 1  ;;  %v2125_v58 = vmul.f32 %v9503_v13, %v9081_v36  ;;  %v3608_v52 = vand.u32 7, %v9308_v10  ;;  %7774 = vrot.lane.b32.xlu1 %v7773_v49, %s8416_s28  ;;  %v2715_v55 = vpop.permute.xlu0 %2714 }
 0x21f   : > { %v14549_v5 = vrot.slane %v9515_v48, 1  ;;  %v3156_v12 = vmax.f32 %v3092_v39, 0.0  ;;  %vm10112_vm11 = vcmp.eq.s32.totalorder %v954_v1, 15  ;;  %v14552_v21 = vrot.slane %v9716_v25, 7 }
 0x220   : > { %v14553_v10 = vrot.slane %v9716_v25, 1  ;;  %v647_v1 = vsel %vm633_vm3, %v14112_v14, %v619_v54  ;;  %vm10136_vm13 = vcmp.eq.s32.totalorder %v1108_v43, 15  ;;  %v2575_v39 = vadd.f32 %v2511_v15, %v2125_v58 }
 0x221   : > { %v669_v6 = vsel %vm633_vm3, %v14549_v5, %v597_v23  ;;  %v10122_v36 = vsel %vm504_vm0, %v14110_v32, %v14552_v21  ;;  %3221 = vst.msk [vmem:[#allocation2 + $0x88] sm:$0xff] %vm3203_vm1, %v3156_v12  ;;  %v2961_v5 = vmul.f32 %v9510_v45, %v2715_v55  ;;  %v3346_v32 = vld [vmem:[#allocation2 + $0x71] ss:$2 sm:$0xff]  ;;  %v1770_v41 = vsel %vm10136_vm13, 0.0, %v647_v1 }
 0x222   : > { %v10130_v48 = vsel %vm633_vm3, %v14111_v26, %v14553_v10  ;;  %v4035_v25 = vsel %vm10057_vm9, 0.0, %v10122_v36  ;;  %v3282_v10 = vld [vmem:[#allocation2 + $0x70] ss:$2 sm:$0xff]  ;;  %7779 = vrot.lane.b32.xlu2 %v7778_v8, %s8417_s29  ;;  %v1748_v14 = vsel %vm10112_vm11, 0.0, %v669_v6  ;;  %v3615_v21 = vand.u32 7, %v14557_v28  ;;  %v14600_v36 = vld [vmem:[#allocation67_spill] sm:$0xff] }
 0x223   : > { %14554 = vst [vmem:[#allocation39_spill] sm:$0xff] %v10130_v48  ;;  %v3402_v43 = vmax.f32 %v3282_v10, %v3346_v32  ;;  %v3025_v26 = vadd.f32 %v2961_v5, %v2575_v39  ;;  %vm10154_vm15 = vcmp.eq.s32.totalorder %v3608_v52, 0  ;;  %v2514_v12 = vmul.f32 %v9498_v62, %v9333_v19  ;;  %v10164_v6 = vld [vmem:[%s8547_s30 + $0x198] sm:$0xff] }
 0x224   : > { %v2128_v32 = vmul.f32 %v9503_v13, %v9093_v4  ;;  %v14114_v9 = vrot.slane %v10164_v6, 1  ;;  %v14560_v19 = vrot.slane %v9539_v33, 1  ;;  %vm10182_vm2 = vcmp.eq.s32.totalorder %v3615_v21, 0 }
 0x225   : > { %v3434_v58 = vrot.slane %v3402_v43, 7  ;;  %v3093_v8 = vadd.f32 %v9521_v51, %v3025_v26  ;;  %2869 = vperm.xlu0 %7750, %v1770_v41   ;;  %v3498_v4 = vrot.slane %v3402_v43, 1  ;;  %v750_v33 = vadd.s32 424, %v8539_v2 }
 0x226   : > { %2759 = vperm.xlu1 %7751, %v1748_v14   ;;  %v668_v26 = vsel %vm633_vm3, %v597_v23, %v14560_v19  ;;  %v14563_v5 = vand.u32 7, %v14477_v50  ;;  %v2578_v10 = vadd.f32 %v2514_v12, %v2128_v32  ;;  %vm10197_vm6 = vcmp.eq.s32.totalorder %v3608_v52, 7 }
 0x227   : > { %v10171_v55 = vsel %vm504_vm0, %v3433_v63, %v3434_v58  ;;  %v3157_v1 = vmax.f32 %v3093_v8, 0.0  ;;  %v2730_v63 = vpop.permute.xlu0 %2729  ;;  %v646_v50 = vsel %vm633_vm3, %v619_v54, %v14114_v9  ;;  %v982_v12 = vand.u32 15, %v10028_v60 }
 0x228   : > { %v3284_v49 = vld [vmem:[#allocation2 + $0x80] ss:$2 sm:$0xff]  ;;  %v3348_v39 = vld [vmem:[#allocation2 + $0x81] ss:$2 sm:$0xff]  ;;  %vm10189_vm4 = vcmp.eq.s32.totalorder %v14563_v5, 7  ;;  %v2964_v8 = vmul.f32 %v9510_v45, %v2730_v63  ;;  %v3547_v52 = vsel %vm633_vm3, %v3497_v46, %v3498_v4  ;;  %v1136_v9 = vand.u32 15, %v750_v33 }
 0x229   : > { %3222 = vst.msk [vmem:[#allocation2 + $0x90] sm:$0xff] %vm3203_vm1, %v3157_v1  ;;  %v10195_v19 = vmax.f32 %v3284_v49, %v3348_v39  ;;  %v8348_v5 = vld [vmem:[%s8547_s30 + $0x100] sm:$0xff]  ;;  %v10215_v49 = vld [vmem:[%s8547_s30 + $0x1a8] sm:$0xff]  ;;  %v8350_v39 = vld [vmem:[%s8547_s30 + $0x1b0] sm:$0xff]  ;;  %vm1688_vm11 = vcmp.eq.s32.totalorder %v982_v12, 15  ;;  %vm10469_vm9 = vcmp.eq.s32.totalorder %v3615_v21, 7 }
 0x22a   : > { %2764 = vperm.xlu2 %7752, %v668_v26   ;;  %v601_v59 = vrot.slane %v8348_v5, 1  ;;  %v3028_v32 = vadd.f32 %v2964_v8, %v2578_v10  ;;  %v7783_v26 = vpack.i.bf16 %v3402_v43, %v10002_v30  ;;  %v14119_v54 = vrot.slane %v10215_v49, 1 }
 0x22b   : > { %v14121_v1 = vrot.slane %v10195_v19, 1  ;;  %v14115_v63 = vrot.slane %v10195_v19, 7  ;;  %v623_v5 = vrot.slane %v8350_v39, 1  ;;  %v2515_v10 = vmul.f32 %v9498_v62, %v9251_v29 }
 0x22c   : > { %v3096_v8 = vadd.f32 %v9521_v51, %v3028_v32  ;;  %v4169_v43 = vsel %vm10189_vm4, 0.0, %v3547_v52  ;;  %vm1710_vm13 = vcmp.eq.s32.totalorder %v1136_v9, 15  ;;  %v732_v53 = vadd.s32 280, %v8539_v2 }
 0x22d   : > { %v3546_v46 = vsel %vm633_vm3, %v3498_v4, %v14121_v1  ;;  %v10230_v30 = vsel %vm504_vm0, %v3434_v58, %v14115_v63  ;;  %2874 = vperm.xlu0 %7750, %v646_v50   ;;  %v2129_v4 = vmul.f32 %v9503_v13, %v9091_v40  ;;  %v14569_v63 = vrot.slane %v14568_v16, 1 }
 0x22e   : > { %7784 = vrot.lane.b32.xlu1 %v7783_v26, %s8416_s28  ;;  %v4170_v29 = vsel %vm10197_vm6, 0.0, %v3546_v46  ;;  %v3160_v32 = vmax.f32 %v3096_v8, 0.0  ;;  %v643_v41 = vsel %vm633_vm3, %v14119_v54, %v623_v5  ;;  %v14570_v8 = vld [vmem:[#allocation35_spill] sm:$0xff]  ;;  %v14571_v46 = vld [vmem:[#allocation70_spill] sm:$0xff]  ;;  %v736_v47 = vadd.s32 312, %v8539_v2 }
 0x22f   : > { %v7788_v39 = vpack.i.bf16 %v4170_v29, %v4169_v43  ;;  %v2735_v58 = vpop.permute.xlu0 %2734  ;;  %v665_v50 = vsel %vm633_vm3, %v14569_v63, %v601_v59  ;;  %v2579_v23 = vadd.f32 %v2515_v10, %v2129_v4  ;;  %v1774_v26 = vsel %vm1710_vm13, 0.0, %v643_v41  ;;  %v14572_v43 = vld [vmem:[#allocation132_spill] sm:$0xff] }
 0x230   : > { %3225 = vst.msk [vmem:[#allocation2 + $0xa8] sm:$0xff] %vm3203_vm1, %v3160_v32  ;;  %v2965_v40 = vmul.f32 %v9510_v45, %v2735_v58  ;;  %v1752_v16 = vsel %vm1688_vm11, 0.0, %v665_v50  ;;  %v2518_v12 = vmul.f32 %v9498_v62, %v14570_v8  ;;  %v2132_v9 = vmul.f32 %v9503_v13, %v14571_v46  ;;  %v10263_v32 = vld [vmem:[%s8547_s30 + $0x1b8] sm:$0xff]  ;;  %v14574_v46 = vld [vmem:[#allocation59_spill] sm:$0xff] }
 0x231   : > { %v14573_v29 = vrot.slane %v14572_v43, 1  ;;  %v754_v50 = vadd.s32 456, %v8539_v2  ;;  %v14575_v43 = vld [vmem:[#allocation65_spill] sm:$0xff]  ;;  %vm14126_vm13 = vcmask 523264   ;;  %v740_v37 = vadd.s32 344, %v8539_v2 }
 0x232   : > { %7789 = vrot.lane.b32.xlu2 %v7788_v39, %s8417_s29  ;;  %v3029_v52 = vadd.f32 %v2965_v40, %v2579_v23  ;;  %v14118_v39 = vrot.slane %v10263_v32, 1  ;;  %v2582_v41 = vadd.f32 %v2518_v12, %v2132_v9  ;;  %v2519_v12 = vmul.f32 %v9498_v62, %v14574_v46 }
 0x233   : > { %v664_v4 = vsel %vm633_vm3, %v601_v59, %v14573_v29  ;;  %v10274_v59 = vld [vmem:[%s8547_s30 + $0x1c8] sm:$0xff] }
 0x234   : > { %v3097_v63 = vadd.f32 %v9521_v51, %v3029_v52  ;;  %v642_v52 = vsel %vm633_vm3, %v623_v5, %v14118_v39  ;;  %v2133_v5 = vmul.f32 %v9503_v13, %v14575_v43  ;;  %v14584_v39 = vld [vmem:[#allocation47_spill] sm:$0xff] }
 0x235   : > { %2889 = vperm.xlu0 %7750, %v1774_v26   ;;  %v8353_v26 = vld [vmem:[%s8547_s30 + $0x1d0] sm:$0xff] }
 0x236   : > { %2779 = vperm.xlu1 %7751, %v1752_v16   ;;  %v3161_v10 = vmax.f32 %v3097_v63, 0.0  ;;  %v14117_v16 = vrot.slane %v10274_v59, 1  ;;  %v627_v8 = vrot.slane %v8353_v26, 1  ;;  %v1164_v63 = vand.u32 15, %v754_v50  ;;  %v14576_v26 = vld [vmem:[#allocation104_spill] sm:$0xff] }
 0x237   : > { %v2750_v58 = vpop.permute.xlu0 %2749  ;;  %v2583_v50 = vadd.f32 %v2519_v12, %v2133_v5  ;;  %v2522_v46 = vmul.f32 %v9498_v62, %v14576_v26  ;;  %v14577_v12 = vld [vmem:[#allocation66_spill] sm:$0xff]  ;;  %v14579_v26 = vld [vmem:[#allocation77_spill] sm:$0xff] }
 0x238   : > { %3226 = vst.msk [vmem:[#allocation2 + $0xb0] sm:$0xff] %vm3203_vm1, %v3161_v10  ;;  %v2968_v23 = vmul.f32 %v9510_v45, %v2750_v58  ;;  %v7561_v10 = vld [vmem:[%s14022_s3 + $0x28] sm:$0xff]  ;;  %v639_v58 = vsel %vm633_vm3, %v14117_v16, %v627_v8  ;;  %vm1714_vm4 = vcmp.eq.s32.totalorder %v1164_v63, 15  ;;  %v7559_v63 = vld [vmem:[%s14022_s3 + $0x18] sm:$0xff] }
 0x239   : > { %4635 = vmatpush.bf16.msra.mxu0 %v7561_v10  ;;  %v2136_v10 = vmul.f32 %v9503_v13, %v14577_v12 }
 0x23a   : > { %2784 = vperm.xlu2 %7752, %v664_v4   ;;  %v3032_v40 = vadd.f32 %v2968_v23, %v2582_v41  ;;  %v7560_v23 = vld [vmem:[%s14022_s3 + $0x20] sm:$0xff] }
 0x23c   : > { %v3100_v9 = vadd.f32 %v9521_v51, %v3032_v40 }
 0x23d   : > { %2894 = vperm.xlu0 %7750, %v642_v52   ;;  %v1778_v52 = vsel %vm1714_vm4, 0.0, %v639_v58  ;;  %4636 = vmatpush.bf16.msra.mxu0 %v7560_v23  ;;  %v7558_v58 = vld [vmem:[%s14022_s3 + $0x10] sm:$0xff]  ;;  %vm14125_vm4 = vcmask 785408  }
 0x23e   : > { %v3164_v29 = vmax.f32 %v3100_v9, 0.0 }
 0x23f   : > { %v2755_v4 = vpop.permute.xlu0 %2754 }
 0x240   : > { %3229 = vst.msk [vmem:[#allocation2 + $0xc8] sm:$0xff] %vm3203_vm1, %v3164_v29  ;;  %v2969_v41 = vmul.f32 %v9510_v45, %v2755_v4  ;;  %v2586_v29 = vadd.f32 %v2522_v46, %v2136_v10  ;;  %v2137_v46 = vmul.f32 %v9503_v13, %v14579_v26  ;;  %v10326_v10 = vld [vmem:[%s14453_s1 + $0x2] ss:$0 sm:$0xff]  ;;  %v10356_v26 = vld [vmem:[%s14453_s1] ss:$0 sm:$0xff] }
 0x241   : > { %4637 = vmatpush.bf16.msra.mxu0 %v7559_v63  ;;  %v7556_v13 = vld [vmem:[%s14022_s3] sm:$0xff] }
 0x242   : > { %v3033_v40 = vadd.f32 %v2969_v41, %v2583_v50  ;;  %v14578_v41 = vld [vmem:[#allocation54_spill] sm:$0xff] }
 0x243   : > { %v2523_v23 = vmul.f32 %v9498_v62, %v14578_v41  ;;  %v758_v62 = vadd.s32 488, %v8539_v2  ;;  %v10343_v41 = vld [vmem:[%s14453_s1 + $0x1] ss:$0 sm:$0xff] }
 0x244   : > { %v3101_v9 = vadd.f32 %v9521_v51, %v3033_v40 }
 0x245   : > { %2909 = vperm.xlu0 %7750, %v1778_v52   ;;  %4638 = vmatpush.bf16.msra.mxu0 %v7558_v58  ;;  %v10312_v52 = vld [vmem:[%s8547_s30 + $0x1d8] sm:$0xff] }
 0x246   : > { %v3165_v43 = vmax.f32 %v3101_v9, 0.0  ;;  %v14116_v63 = vrot.slane %v10312_v52, 1 }
 0x247   : > { %v2770_v5 = vpop.permute.xlu0 %2769 }
 0x248   : > { %3230 = vst.msk [vmem:[#allocation2 + $0xd0] sm:$0xff] %vm3203_vm1, %v3165_v43  ;;  %v2972_v4 = vmul.f32 %v9510_v45, %v2770_v5  ;;  %v7557_v45 = vld [vmem:[%s14022_s3 + $0x8] sm:$0xff] }
 0x249   : > { %4639 = vmatpush.bf16.msra.mxu0 %v7557_v45  ;;  %v10350_v45 = vld [vmem:[%s14021_s2] ss:$0 sm:$0xff] }
 0x24a   : > { %v3036_v50 = vadd.f32 %v2972_v4, %v2586_v29  ;;  %v638_v29 = vsel %vm633_vm3, %v627_v8, %v14116_v63  ;;  %v10337_v4 = vld [vmem:[%s8547_s30 + $0x1e8] sm:$0xff] }
 0x24b   : > { %v14120_v58 = vrot.slane %v10337_v4, 1 }
 0x24c   : > { %v3104_v40 = vadd.f32 %v9521_v51, %v3036_v50  ;;  %v2587_v51 = vadd.f32 %v2523_v23, %v2137_v46  ;;  %v1192_v50 = vand.u32 15, %v758_v62  ;;  %v14580_v23 = vld [vmem:[#allocation107_spill] sm:$0xff]  ;;  %v14581_v46 = vld [vmem:[#allocation80_spill] sm:$0xff] }
 0x24d   : > { %2469 = vperm.xlu0 %7750, %v10312_v52   ;;  %4640 = vmatpush.bf16.msra.mxu0 %v7556_v13 }
 0x24e   : > { %v3168_v9 = vmax.f32 %v3104_v40, 0.0  ;;  %v2526_v40 = vmul.f32 %v10343_v41, %v14580_v23  ;;  %vm1718_vm6 = vcmp.eq.s32.totalorder %v1192_v50, 15  ;;  %v14586_v50 = vld [vmem:[#allocation43_spill] sm:$0xff] }
 0x24f   : > { %v2775_v12 = vpop.permute.xlu0 %2774 }
 0x250   : > { %3233 = vst.msk [vmem:[#allocation2 + $0xe8] sm:$0xff] %vm3203_vm1, %v3168_v9  ;;  %v2973_v43 = vmul.f32 %v10326_v10, %v2775_v12  ;;  %v2140_v9 = vmul.f32 %v10356_v26, %v14581_v46 }
 0x252   : > { %v3037_v5 = vadd.f32 %v2973_v43, %v2587_v51  ;;  %v14582_v51 = vld [vmem:[#allocation64_spill] sm:$0xff] }
 0x253   : > { %v14583_v43 = vrot.slane %v14582_v51, 1  ;;  %v14585_v51 = vld [vmem:[#allocation79_spill] sm:$0xff] }
 0x254   : > { %v3105_v8 = vadd.f32 %v10350_v45, %v3037_v5  ;;  %v2590_v5 = vadd.f32 %v2526_v40, %v2140_v9  ;;  %v2141_v54 = vmul.f32 %v10356_v26, %v14585_v51  ;;  %v2513_v40 = vmul.f32 %v10343_v41, %v14586_v50 }
 0x255   : > { %2914 = vperm.xlu0 %7750, %v638_v29   ;;  %v635_v13 = vsel %vm633_vm3, %v14120_v58, %v14583_v43  ;;  %v14589_v58 = vld [vmem:[#allocation82_spill] sm:$0xff] }
 0x256   : > { %v3169_v12 = vmax.f32 %v3105_v8, 0.0  ;;  %v1782_v63 = vsel %vm1718_vm6, 0.0, %v635_v13  ;;  %v2527_v8 = vmul.f32 %v10343_v41, %v14584_v39 }
 0x257   : > { %v2790_v62 = vpop.permute.xlu0 %2789 }
 0x258   : > { %3234 = vst.msk [vmem:[#allocation2 + $0xf0] sm:$0xff] %vm3203_vm1, %v3169_v12  ;;  %v2976_v29 = vmul.f32 %v10326_v10, %v2790_v62  ;;  %v2591_v9 = vadd.f32 %v2527_v8, %v2141_v54  ;;  %v14587_v62 = vld [vmem:[#allocation56_spill] sm:$0xff]  ;;  %v2144_v54 = vmul.f32 %v10356_v26, %v14589_v58 }
 0x259   : > { %v2127_v13 = vmul.f32 %v10356_v26, %v14587_v62 }
 0x25a   : > { %v3040_v23 = vadd.f32 %v2976_v29, %v2590_v5 }
 0x25b   : > { %v7760_v16 = vpop.permute.xlu2 %7759  ;;  %v2577_v29 = vadd.f32 %v2513_v40, %v2127_v13  ;;  %v14590_v13 = vld [vmem:[#allocation115_spill] sm:$0xff] }
 0x25c   : > { %v3108_v46 = vadd.f32 %v10350_v45, %v3040_v23 }
 0x25d   : > { %2929 = vperm.xlu0 %7750, %v1782_v63   ;;  %v14588_v63 = vld [vmem:[#allocation55_spill] sm:$0xff] }
 0x25e   : > { %v3172_v33 = vmax.f32 %v3108_v46, 0.0  ;;  %v2530_v23 = vmul.f32 %v10343_v41, %v14588_v63 }
 0x25f   : > { %v2795_v43 = vpop.permute.xlu0 %2794 }
 0x260   : > { %3237 = vst.msk [vmem:[#allocation2 + $0x108] sm:$0xff] %vm3203_vm1, %v3172_v33  ;;  %v2977_v12 = vmul.f32 %v10326_v10, %v2795_v43  ;;  %v2594_v43 = vadd.f32 %v2530_v23, %v2144_v54  ;;  %v14592_v23 = vld [vmem:[#allocation30_spill] sm:$0xff] }
 0x262   : > { %v3041_v39 = vadd.f32 %v2977_v12, %v2591_v9 }
 0x263   : > { %v2725_v5 = vpop.permute.xlu2 %2724 }
 0x264   : > { %v3109_v46 = vadd.f32 %v10350_v45, %v3041_v39  ;;  %v2963_v51 = vmul.f32 %v10326_v10, %v2725_v5  ;;  %v2531_v39 = vmul.f32 %v10343_v41, %v14590_v13  ;;  %v14591_v5 = vld [vmem:[#allocation72_spill] sm:$0xff]  ;;  %v14597_v13 = vld [vmem:[#allocation71_spill] sm:$0xff] }
 0x266   : > { %v3173_v8 = vmax.f32 %v3109_v46, 0.0  ;;  %v3027_v33 = vadd.f32 %v2963_v51, %v2577_v29  ;;  %v2145_v29 = vmul.f32 %v10356_v26, %v14591_v5  ;;  %v14593_v46 = vand.u32 7, %v14592_v23 }
 0x267   : > { %v2810_v50 = vpop.permute.xlu0 %2809  ;;  %v2131_v5 = vmul.f32 %v10356_v26, %v14597_v13  ;;  %v7762_v23 = vunpack.i.h.bf16 %v7760_v16 }
 0x268   : > { %3238 = vst.msk [vmem:[#allocation2 + $0x110] sm:$0xff] %vm3203_vm1, %v3173_v8  ;;  %v3095_v9 = vadd.f32 %v10350_v45, %v3027_v33  ;;  %v2980_v40 = vmul.f32 %v10326_v10, %v2810_v50  ;;  %vm10398_vm11 = vcmp.eq.s32.totalorder %v14593_v46, 0  ;;  %v14596_v8 = vld [vmem:[#allocation48_spill] sm:$0xff]  ;;  %v2595_v50 = vadd.f32 %v2531_v39, %v2145_v29 }
 0x269   : > { %v2517_v33 = vmul.f32 %v10343_v41, %v14596_v8  ;;  %v7761_v46 = vunpack.i.l.bf16 %v7760_v16  ;;  %v14598_v8 = vld [vmem:[#allocation33_spill] sm:$0xff] }
 0x26a   : > { %v3159_v12 = vmax.f32 %v3095_v9, 0.0  ;;  %v3044_v62 = vadd.f32 %v2980_v40, %v2594_v43  ;;  %v2512_v39 = vmul.f32 %v10343_v41, %v14598_v8 }
 0x26c   : > { %v10390_v63 = vpop.permute.xlu2 %7769  ;;  %3224 = vst.msk [vmem:[#allocation2 + $0xa0] sm:$0xff] %vm3203_vm1, %v3159_v12  ;;  %v3112_v58 = vadd.f32 %v10350_v45, %v3044_v62 }
 0x26e   : > { %v3176_v54 = vmax.f32 %v3112_v58, 0.0  ;;  %v7755_v43 = vpop.permute.xlu1 %7754  ;;  %v4036_v58 = vsel %vm10398_vm11, 0.0, %v9788_v24  ;;  %v14599_v24 = vld [vmem:[#allocation119_spill] sm:$0xff] }
 0x26f   : > { %v2815_v9 = vpop.permute.xlu0 %2814  ;;  %v7757_v40 = vunpack.i.h.bf16 %v7755_v43  ;;  %v7756_v12 = vunpack.i.l.bf16 %v7755_v43  ;;  %v2534_v51 = vmul.f32 %v10343_v41, %v14599_v24 }
 0x270   : > { %3241 = vst.msk [vmem:[#allocation2 + $0x128] sm:$0xff] %vm3203_vm1, %v3176_v54  ;;  %v2981_v62 = vmul.f32 %v10326_v10, %v2815_v9  ;;  %v2581_v9 = vadd.f32 %v2517_v33, %v2131_v5 }
 0x271   : > { %v4451_v54 = vsel %vm3203_vm1, %v4035_v25, %v7756_v12  ;;  %v4452_v43 = vsel %vm3203_vm1, %v4036_v58, %v7757_v40  ;;  %v2126_v25 = vmul.f32 %v10356_v26, %v14600_v36  ;;  %v14601_v12 = vld [vmem:[#allocation75_spill] sm:$0xff] }
 0x272   : > { %v3045_v29 = vadd.f32 %v2981_v62, %v2595_v50  ;;  %v4484_v16 = vsel %vm14126_vm13, %v4451_v54, %v7761_v46  ;;  %v4485_v1 = vsel %vm14126_vm13, %v4452_v43, %v7762_v23  ;;  %v2148_v33 = vmul.f32 %v10356_v26, %v14601_v12  ;;  %v14604_v12 = vld [vmem:[#allocation18_spill] sm:$0xff] }
 0x273   : > { %v4516_v62 = vpack.c.bf16 %v4485_v1, %v4484_v16  ;;  %v2576_v23 = vadd.f32 %v2512_v39, %v2126_v25  ;;  %v3288_v21 = vld [vmem:[#allocation2 + $0xa0] ss:$2 sm:$0xff] }
 0x274   : > { %v2745_v13 = vpop.permute.xlu2 %2744  ;;  %v3113_v50 = vadd.f32 %v10350_v45, %v3045_v29  ;;  %v2598_v8 = vadd.f32 %v2534_v51, %v2148_v33  ;;  %v14122_v33 = vand.u32 7, %v14604_v12 }
 0x275   : > { %v2967_v31 = vmul.f32 %v10326_v10, %v2745_v13  ;;  %7290 = vmatmul.msk.bf16.vlgmr.msra.gmra.mxu0 %vm14125_vm4, %v4516_v62 }
 0x276   : > { %v3177_v40 = vmax.f32 %v3113_v50, 0.0  ;;  %v2720_v46 = vpop.permute.xlu1 %2719 }
 0x277   : > { %v3031_v5 = vadd.f32 %v2967_v31, %v2581_v9  ;;  %v2830_v58 = vpop.permute.xlu0 %2829  ;;  %v2962_v1 = vmul.f32 %v10326_v10, %v2720_v46  ;;  %v14602_v9 = vld [vmem:[#allocation118_spill] sm:$0xff]  ;;  %v14603_v31 = vld [vmem:[#allocation89_spill] sm:$0xff] }
 0x278   : > { %3242 = vst.msk [vmem:[#allocation2 + $0x130] sm:$0xff] %vm3203_vm1, %v3177_v40  ;;  %v2984_v54 = vmul.f32 %v10326_v10, %v2830_v58  ;;  %v2535_v50 = vmul.f32 %v10343_v41, %v14602_v9  ;;  %v2149_v62 = vmul.f32 %v10356_v26, %v14603_v31  ;;  %v14605_v40 = vld [vmem:[#allocation36_spill] sm:$0xff]  ;;  %v7772_v9 = vunpack.i.h.bf16 %v10390_v63 }
 0x279   : > { %v3099_v29 = vadd.f32 %v10350_v45, %v3031_v5  ;;  %v3026_v13 = vadd.f32 %v2962_v1, %v2576_v23  ;;  %v2521_v5 = vmul.f32 %v10343_v41, %v14605_v40 }
 0x27a   : > { %v3048_v16 = vadd.f32 %v2984_v54, %v2598_v8  ;;  %v2599_v58 = vadd.f32 %v2535_v50, %v2149_v62  ;;  %v14606_v54 = vld [vmem:[#allocation61_spill] sm:$0xff]  ;;  %v14609_v62 = vsel %vm9758_vm8, 0.0, %v9818_v17  ;;  %vm10482_vm8 = vcmp.eq.s32.totalorder %v14122_v33, 0  ;;  %v10498_v33 = vld [vmem:[%s8547_s30 + $0x120] sm:$0xff] }
 0x27b   : > { %v3163_v43 = vmax.f32 %v3099_v29, 0.0  ;;  %v3094_v39 = vadd.f32 %v10350_v45, %v3026_v13  ;;  %v14607_v13 = vld [vmem:[#allocation73_spill] sm:$0xff] }
 0x27c   : > { %v10434_v24 = vpop.permute.xlu2 %7779  ;;  %v3116_v51 = vadd.f32 %v10350_v45, %v3048_v16  ;;  %v2135_v16 = vmul.f32 %v10356_v26, %v14607_v13  ;;  %v14616_v13 = vld [vmem:[#allocation92_spill] sm:$0xff] }
 0x27d   : > { %3228 = vst.msk [vmem:[#allocation2 + $0xc0] sm:$0xff] %vm3203_vm1, %v3163_v43  ;;  %v3158_v36 = vmax.f32 %v3094_v39, 0.0  ;;  %v2130_v43 = vmul.f32 %v10356_v26, %v14606_v54  ;;  %v7771_v39 = vunpack.i.l.bf16 %v10390_v63 }
 0x27e   : > { %v3180_v25 = vmax.f32 %v3116_v51, 0.0  ;;  %v14608_v51 = vld [vmem:[#allocation42_spill] sm:$0xff] }
 0x27f   : > { %v7765_v23 = vpop.permute.xlu1 %7764  ;;  %v2835_v46 = vpop.permute.xlu0 %2834  ;;  %3223 = vst.msk [vmem:[#allocation2 + $0x98] sm:$0xff] %vm3203_vm1, %v3158_v36  ;;  %v2516_v50 = vmul.f32 %v10343_v41, %v14608_v51 }
 0x280   : > { %v7767_v8 = vunpack.i.h.bf16 %v7765_v23  ;;  %v7766_v29 = vunpack.i.l.bf16 %v7765_v23  ;;  %v2985_v1 = vmul.f32 %v10326_v10, %v2835_v46  ;;  %3245 = vst.msk [vmem:[#allocation2 + $0x148] sm:$0xff] %vm3203_vm1, %v3180_v25  ;;  %v14612_v25 = vld [vmem:[#allocation121_spill] sm:$0xff] }
 0x281   : > { %v2538_v23 = vmul.f32 %v10343_v41, %v14612_v25 }
 0x282   : > { %v3049_v31 = vadd.f32 %v2985_v1, %v2599_v58  ;;  %v4453_v36 = vsel %vm3203_vm1, %v14609_v62, %v7766_v29  ;;  %v4454_v40 = vsel %vm3203_vm1, %v4038_v11, %v7767_v8  ;;  %v2585_v58 = vadd.f32 %v2521_v5, %v2135_v16  ;;  %v3352_v8 = vld [vmem:[#allocation2 + $0xa1] ss:$2 sm:$0xff]  ;;  %v14615_v1 = vld [vmem:[#allocation20_spill] sm:$0xff]  ;;  %v14617_v5 = vld [vmem:[#allocation37_spill] sm:$0xff] }
 0x283   : > { %v4486_v17 = vsel %vm14126_vm13, %v4453_v36, %v7771_v39  ;;  %v4487_v46 = vsel %vm14126_vm13, %v4454_v40, %v7772_v9  ;;  %v2152_v9 = vmul.f32 %v10356_v26, %v14616_v13  ;;  %v3622_v16 = vand.u32 7, %v14617_v5  ;;  %v14618_v39 = vld [vmem:[#allocation68_spill] sm:$0xff] }
 0x284   : > { %v2765_v34 = vpop.permute.xlu2 %2764  ;;  %v3117_v0 = vadd.f32 %v10350_v45, %v3049_v31  ;;  %v4517_v28 = vpack.c.bf16 %v4487_v46, %v4486_v17  ;;  %v10492_v51 = vmul.f32 %v10356_v26, %v14618_v39  ;;  %v2580_v31 = vadd.f32 %v2516_v50, %v2130_v43 }
 0x285   : > { %v2971_v11 = vmul.f32 %v10326_v10, %v2765_v34  ;;  %v2602_v40 = vadd.f32 %v2538_v23, %v2152_v9  ;;  %v10495_v54 = vmax.f32 %v3288_v21, %v3352_v8  ;;  %v1010_v5 = vand.u32 15, %v732_v53  ;;  %v14624_v53 = vld [vmem:[#allocation110_spill] sm:$0xff] }
 0x286   : > { %v3181_v62 = vmax.f32 %v3117_v0, 0.0  ;;  %7291 = vmatmul.msk.bf16.gmra.mxu0 %vm14125_vm4, %v4517_v28  ;;  %v3286_v17 = vld [vmem:[#allocation2 + $0x90] ss:$2 sm:$0xff]  ;;  %v3350_v46 = vld [vmem:[#allocation2 + $0x91] ss:$2 sm:$0xff]  ;;  %v14619_v0 = vld [vmem:[#allocation91_spill] sm:$0xff]  ;;  %v2539_v8 = vmul.f32 %v10343_v41, %v14624_v53 }
 0x287   : > { %v3035_v36 = vadd.f32 %v2971_v11, %v2585_v58  ;;  %v2740_v25 = vpop.permute.xlu1 %2739  ;;  %v2850_v34 = vpop.permute.xlu0 %2849  ;;  %v3404_v23 = vmax.f32 %v3286_v17, %v3350_v46  ;;  %v2153_v11 = vmul.f32 %v10356_v26, %v14619_v0  ;;  %vm10507_vm12 = vcmp.eq.s32.totalorder %v3622_v16, 0 }
 0x288   : > { %3246 = vst.msk [vmem:[#allocation2 + $0x150] sm:$0xff] %vm3203_vm1, %v3181_v62  ;;  %v2966_v50 = vmul.f32 %v10326_v10, %v2740_v25  ;;  %v2988_v58 = vmul.f32 %v10326_v10, %v2850_v34  ;;  %vm10511_vm6 = vcmp.eq.s32.totalorder %v3622_v16, 7  ;;  %v14123_v17 = vrot.slane %v10495_v54, 1 }
 0x289   : > { %v3103_v43 = vadd.f32 %v10350_v45, %v3035_v36  ;;  %v7793_v36 = vpack.i.bf16 %v3404_v23, %v10195_v19  ;;  %v3500_v34 = vrot.slane %v3404_v23, 1  ;;  %v3436_v46 = vrot.slane %v3404_v23, 7 }
 0x28a   : > { %v3030_v39 = vadd.f32 %v2966_v50, %v2580_v31  ;;  %v3052_v62 = vadd.f32 %v2988_v58, %v2602_v40  ;;  %v3437_v0 = vrot.slane %v10495_v54, 7  ;;  %v14625_v31 = vrot.slane %v10498_v33, 1  ;;  %v14626_v40 = vld [vmem:[#allocation38_spill] sm:$0xff] }
 0x28b   : > { %v3167_v9 = vmax.f32 %v3103_v43, 0.0  ;;  %7794 = vrot.lane.b32.xlu1 %v7793_v36, %s8416_s28  ;;  %v14627_v43 = vrot.slane %v14626_v40, 1  ;;  %vm10532_vm11 = vcmp.eq.s32.totalorder %v1010_v5, 15  ;;  %v3544_v23 = vsel %vm633_vm3, %v3500_v34, %v14123_v17 }
 0x28c   : > { %v10518_v25 = vpop.permute.xlu2 %7789  ;;  %v3098_v16 = vadd.f32 %v10350_v45, %v3030_v39  ;;  %v3120_v13 = vadd.f32 %v10350_v45, %v3052_v62  ;;  %v14630_v53 = vrot.slane %v10195_v19, 1  ;;  %v14631_v39 = vrot.slane %v10195_v19, 7 }
 0x28d   : > { %3232 = vst.msk [vmem:[#allocation2 + $0xe0] sm:$0xff] %vm3203_vm1, %v3167_v9  ;;  %v661_v50 = vsel %vm633_vm3, %v14627_v43, %v14625_v31  ;;  %v10554_v5 = vsel %vm504_vm0, %v3436_v46, %v3437_v0  ;;  %v14632_v43 = vld [vmem:[#allocation108_spill] sm:$0xff] }
 0x28e   : > { %v3545_v9 = vsel %vm633_vm3, %v14630_v53, %v3500_v34  ;;  %v10548_v62 = vsel %vm504_vm0, %v14631_v39, %v3436_v46  ;;  %v3162_v36 = vmax.f32 %v3098_v16, 0.0  ;;  %v3184_v31 = vmax.f32 %v3120_v13, 0.0 }
 0x28f   : > { %v4171_v40 = vsel %vm10469_vm9, 0.0, %v3545_v9  ;;  %v4172_v34 = vsel %vm10511_vm6, 0.0, %v3544_v23  ;;  %v2525_v19 = vmul.f32 %v10343_v41, %v14632_v43  ;;  %v2855_v17 = vpop.permute.xlu0 %2854  ;;  %v2603_v46 = vadd.f32 %v2539_v8, %v2153_v11  ;;  %v14633_v23 = vld [vmem:[#allocation74_spill] sm:$0xff]  ;;  %v14634_v8 = vld [vmem:[#allocation49_spill] sm:$0xff] }
 0x290   : > { %v7775_v53 = vpop.permute.xlu1 %7774  ;;  %v7798_v39 = vpack.i.bf16 %v4172_v34, %v4171_v40  ;;  %3227 = vst.msk [vmem:[#allocation2 + $0xb8] sm:$0xff] %vm3203_vm1, %v3162_v36  ;;  %v2989_v16 = vmul.f32 %v10326_v10, %v2855_v17  ;;  %v2134_v9 = vmul.f32 %v10356_v26, %v14633_v23  ;;  %v7782_v40 = vunpack.i.h.bf16 %v10434_v24 }
 0x291   : > { %v7777_v63 = vunpack.i.h.bf16 %v7775_v53  ;;  %v7776_v21 = vunpack.i.l.bf16 %v7775_v53  ;;  %v7781_v34 = vunpack.i.l.bf16 %v10434_v24  ;;  %3249 = vst.msk [vmem:[#allocation2 + $0x168] sm:$0xff] %vm3203_vm1, %v3184_v31  ;;  %v1756_v11 = vsel %vm10532_vm11, 0.0, %v661_v50 }
 0x292   : > { %7799 = vrot.lane.b32.xlu2 %v7798_v39, %s8417_s29  ;;  %v2520_v36 = vmul.f32 %v10343_v41, %v14634_v8  ;;  %v3053_v43 = vadd.f32 %v2989_v16, %v2603_v46  ;;  %v14635_v17 = vsel %vm9915_vm14, 0.0, %v9980_v42  ;;  %v14636_v24 = vsel %vm9991_vm5, 0.0, %v9976_v18  ;;  %v14637_v39 = vld [vmem:[#allocation113_spill] sm:$0xff]  ;;  %v3292_v16 = vld [vmem:[#allocation2 + $0xc0] ss:$2 sm:$0xff] }
 0x293   : > { %v4455_v53 = vsel %vm3203_vm1, %v14635_v17, %v7776_v21  ;;  %v4456_v31 = vsel %vm3203_vm1, %v14636_v24, %v7777_v63  ;;  %v2542_v58 = vmul.f32 %v10343_v41, %v14637_v39  ;;  %v2589_v42 = vadd.f32 %v2525_v19, %v10492_v51  ;;  %2799 = vperm.xlu1 %7751, %v1756_v11   ;;  %v3356_v63 = vld [vmem:[#allocation2 + $0xc1] ss:$2 sm:$0xff]  ;;  %v14645_v11 = vld [vmem:[#allocation41_spill] sm:$0xff] }
 0x294   : > { %v2785_v50 = vpop.permute.xlu2 %2784  ;;  %v4488_v23 = vsel %vm14126_vm13, %v4455_v53, %v7781_v34  ;;  %v4489_v46 = vsel %vm14126_vm13, %v4456_v31, %v7782_v40  ;;  %v3121_v21 = vadd.f32 %v10350_v45, %v3053_v43  ;;  %v14638_v8 = vand.u32 7, %v14604_v12  ;;  %v14644_v51 = vld [vmem:[#allocation94_spill] sm:$0xff]  ;;  %v14646_v12 = vld [vmem:[#allocation40_spill] sm:$0xff] }
 0x295   : > { %v2975_v3 = vmul.f32 %v10326_v10, %v2785_v50  ;;  %v4518_v18 = vpack.c.bf16 %v4489_v46, %v4488_v23  ;;  %v14641_v40 = vand.u32 7, %v14615_v1  ;;  %v2156_v19 = vmul.f32 %v10356_v26, %v14644_v51 }
 0x296   : > { %vm10600_vm14 = vcmp.eq.s32.totalorder %v14638_v8, 7  ;;  %v3636_v43 = vand.u32 7, %v14645_v11  ;;  %v2584_v53 = vadd.f32 %v2520_v36, %v2134_v9  ;;  %v3185_v24 = vmax.f32 %v3121_v21, 0.0  ;;  %v10623_v11 = vld [vmem:[%s8547_s30 + $0x140] sm:$0xff] }
 0x297   : > { %vm10606_vm5 = vcmp.eq.s32.totalorder %v14641_v40, 0  ;;  %v3039_v31 = vadd.f32 %v2975_v3, %v2589_v42  ;;  %7292 = vmatmul.msk.bf16.gmra.mxu0 %vm14125_vm4, %v4518_v18  ;;  %v14647_v39 = vrot.slane %v14646_v12, 1  ;;  %v14648_v50 = vrot.slane %v10498_v33, 1  ;;  %v2870_v40 = vpop.permute.xlu0 %2869  ;;  %v3290_v13 = vld [vmem:[#allocation2 + $0xb0] ss:$2 sm:$0xff] }
 0x298   : > { %v2606_v46 = vadd.f32 %v2542_v58, %v2156_v19  ;;  %v2760_v8 = vpop.permute.xlu1 %2759  ;;  %v3354_v48 = vld [vmem:[#allocation2 + $0xb1] ss:$2 sm:$0xff]  ;;  %v10620_v51 = vmax.f32 %v3292_v16, %v3356_v63  ;;  %v609_v9 = vrot.slane %v10623_v11, 1  ;;  %v1038_v36 = vand.u32 15, %v736_v47  ;;  %3250 = vst.msk [vmem:[#allocation2 + $0x170] sm:$0xff] %vm3203_vm1, %v3185_v24  ;;  %v14654_v47 = vld [vmem:[#allocation127_spill] sm:$0xff] }
 0x299   : > { %v660_v23 = vsel %vm633_vm3, %v14648_v50, %v14647_v39  ;;  %v3107_v42 = vadd.f32 %v10350_v45, %v3039_v31  ;;  %v2970_v33 = vmul.f32 %v10326_v10, %v2760_v8  ;;  %v2992_v21 = vmul.f32 %v10326_v10, %v2870_v40  ;;  %v14649_v3 = vld [vmem:[#allocation84_spill] sm:$0xff]  ;;  %v14660_v63 = vld [vmem:[#allocation19_spill] sm:$0xff] }
 0x29a   : > { %v3406_v58 = vmax.f32 %v3290_v13, %v3354_v48  ;;  %v2157_v18 = vmul.f32 %v10356_v26, %v14649_v3  ;;  %vm10632_vm9 = vcmp.eq.s32.totalorder %v3636_v43, 0  ;;  %vm10636_vm6 = vcmp.eq.s32.totalorder %v3636_v43, 7  ;;  %2804 = vperm.xlu2 %7752, %v660_v23  }
 0x29b   : > { %v2543_v19 = vmul.f32 %v10343_v41, %v14654_v47  ;;  %v3171_v24 = vmax.f32 %v3107_v42, 0.0  ;;  %v3034_v31 = vadd.f32 %v2970_v33, %v2584_v53  ;;  %v3056_v12 = vadd.f32 %v2992_v21, %v2606_v46  ;;  %v14655_v53 = vld [vmem:[#allocation46_spill] sm:$0xff] }
 0x29c   : > { %v7803_v48 = vpack.i.bf16 %v3406_v58, %v10495_v54  ;;  %v3502_v13 = vrot.slane %v3406_v58, 1  ;;  %v3503_v39 = vrot.slane %v10620_v51, 1  ;;  %v3438_v50 = vrot.slane %v3406_v58, 7 }
 0x29d   : > { %v3439_v8 = vrot.slane %v10620_v51, 7  ;;  %3236 = vst.msk [vmem:[#allocation2 + $0x100] sm:$0xff] %vm3203_vm1, %v3171_v24  ;;  %v3102_v43 = vadd.f32 %v10350_v45, %v3034_v31  ;;  %v3124_v40 = vadd.f32 %v10350_v45, %v3056_v12  ;;  %v14656_v23 = vrot.slane %v14655_v53, 1 }
 0x29e   : > { %7804 = vrot.lane.b32.xlu1 %v7803_v48, %s8416_s28  ;;  %vm10655_vm11 = vcmp.eq.s32.totalorder %v1038_v36, 15  ;;  %v3542_v33 = vsel %vm633_vm3, %v3502_v13, %v3503_v39  ;;  %v14659_v21 = vrot.slane %v10495_v54, 1  ;;  %v10671_v3 = vsel %vm504_vm0, %v3437_v0, %v3438_v50 }
 0x29f   : > { %v657_v46 = vsel %vm633_vm3, %v14656_v23, %v609_v9  ;;  %v10677_v36 = vsel %vm504_vm0, %v3438_v50, %v3439_v8  ;;  %v3166_v47 = vmax.f32 %v3102_v43, 0.0  ;;  %v3188_v24 = vmax.f32 %v3124_v40, 0.0 }
 0x2a0   : > { %v3543_v58 = vsel %vm633_vm3, %v14659_v21, %v3502_v13  ;;  %v4174_v12 = vsel %vm10636_vm6, 0.0, %v3542_v33  ;;  %v7785_v48 = vpop.permute.xlu1 %7784  ;;  %v2875_v13 = vpop.permute.xlu0 %2874  ;;  %v4046_v0 = vsel %vm10632_vm9, 0.0, %v10671_v3  ;;  %v4047_v50 = vsel %vm10606_vm5, 0.0, %v10677_v36  ;;  %v14742_v36 = vld [vmem:[#allocation31_spill] sm:$0xff] }
 0x2a1   : > { %v4173_v31 = vsel %vm10600_vm14, 0.0, %v3543_v58  ;;  %v2607_v53 = vadd.f32 %v2543_v19, %v2157_v18  ;;  %3231 = vst.msk [vmem:[#allocation2 + $0xd8] sm:$0xff] %vm3203_vm1, %v3166_v47  ;;  %v7787_v43 = vunpack.i.h.bf16 %v7785_v48  ;;  %v7786_v17 = vunpack.i.l.bf16 %v7785_v48  ;;  %v14663_v48 = vld [vmem:[#allocation32_spill] sm:$0xff] }
 0x2a2   : > { %v7808_v54 = vpack.i.bf16 %v4174_v12, %v4173_v31  ;;  %v2993_v40 = vmul.f32 %v10326_v10, %v2875_v13  ;;  %v3657_v23 = vand.u32 7, %v14660_v63  ;;  %v7792_v33 = vunpack.i.h.bf16 %v10518_v25  ;;  %3253 = vst.msk [vmem:[#allocation2 + $0x188] sm:$0xff] %vm3203_vm1, %v3188_v24  ;;  %v3296_v12 = vld [vmem:[#allocation2 + $0xe0] ss:$2 sm:$0xff]  ;;  %v3360_v24 = vld [vmem:[#allocation2 + $0xe1] ss:$2 sm:$0xff] }
 0x2a3   : > { %v7791_v21 = vunpack.i.l.bf16 %v10518_v25  ;;  %v1760_v58 = vsel %vm10655_vm11, 0.0, %v657_v46  ;;  %v14661_v19 = vsel %vm10049_vm7, 0.0, %v10080_v35  ;;  %v14662_v31 = vsel %vm10154_vm15, 0.0, %v10171_v55  ;;  %v14664_v35 = vld [vmem:[#allocation129_spill] sm:$0xff] }
 0x2a4   : > { %7809 = vrot.lane.b32.xlu2 %v7808_v54, %s8417_s29  ;;  %v3057_v18 = vadd.f32 %v2993_v40, %v2607_v53  ;;  %v4457_v47 = vsel %vm3203_vm1, %v14661_v19, %v7786_v17  ;;  %v4458_v25 = vsel %vm3203_vm1, %v14662_v31, %v7787_v43  ;;  %v2524_v54 = vmul.f32 %v10343_v41, %v14663_v48  ;;  %v14667_v43 = vld [vmem:[#allocation76_spill] sm:$0xff]  ;;  %v14668_v40 = vld [vmem:[#allocation53_spill] sm:$0xff] }
 0x2a5   : > { %v4490_v46 = vsel %vm14126_vm13, %v4457_v47, %v7791_v21  ;;  %v4491_v42 = vsel %vm14126_vm13, %v4458_v25, %v7792_v33  ;;  %v2546_v13 = vmul.f32 %v10343_v41, %v14664_v35  ;;  %vm10718_vm7 = vcmp.eq.s32.totalorder %v3657_v23, 0 }
 0x2a6   : > { %v3125_v15 = vadd.f32 %v10350_v45, %v3057_v18  ;;  %2819 = vperm.xlu1 %7751, %v1760_v58   ;;  %v4519_v55 = vpack.c.bf16 %v4491_v42, %v4490_v46  ;;  %v2138_v17 = vmul.f32 %v10356_v26, %v14667_v43  ;;  %v3650_v33 = vand.u32 7, %v14668_v40  ;;  %v14672_v58 = vld [vmem:[#allocation87_spill] sm:$0xff]  ;;  %v8362_v40 = vld [vmem:[%s8547_s30 + $0x160] sm:$0xff] }
 0x2a7   : > { %v10725_v21 = vmax.f32 %v3296_v12, %v3360_v24  ;;  %v14669_v19 = vand.u32 7, %v14615_v1  ;;  %v2160_v47 = vmul.f32 %v10356_v26, %v14672_v58  ;;  %v14673_v25 = vrot.slane %v9742_v56, 1  ;;  %v14674_v24 = vld [vmem:[#allocation99_spill] sm:$0xff] }
 0x2a8   : > { %v3189_v31 = vmax.f32 %v3125_v15, 0.0  ;;  %7293 = vmatmul.msk.bf16.gmra.mxu0 %vm14125_vm4, %v4519_v55  ;;  %v2161_v1 = vmul.f32 %v10356_v26, %v14674_v24  ;;  %v2588_v48 = vadd.f32 %v2524_v54, %v2138_v17  ;;  %v2780_v46 = vpop.permute.xlu1 %2779  ;;  %v2890_v42 = vpop.permute.xlu0 %2889  ;;  %v3294_v35 = vld [vmem:[#allocation2 + $0xd0] ss:$2 sm:$0xff]  ;;  %v3358_v43 = vld [vmem:[#allocation2 + $0xd1] ss:$2 sm:$0xff]  ;;  %v1066_v15 = vand.u32 15, %v740_v37 }
 0x2a9   : > { %vm10729_vm15 = vcmp.eq.s32.totalorder %v14669_v19, 7  ;;  %v656_v12 = vsel %vm633_vm3, %v609_v9, %v14673_v25  ;;  %v613_v19 = vrot.slane %v8362_v40, 1  ;;  %v2610_v58 = vadd.f32 %v2546_v13, %v2160_v47  ;;  %v14679_v17 = vld [vmem:[#allocation29_spill] sm:$0xff] }
 0x2aa   : > { %3254 = vst.msk [vmem:[#allocation2 + $0x190] sm:$0xff] %vm3203_vm1, %v3189_v31  ;;  %v2974_v56 = vmul.f32 %v10326_v10, %v2780_v46  ;;  %v2996_v11 = vmul.f32 %v10326_v10, %v2890_v42  ;;  %v3408_v55 = vmax.f32 %v3294_v35, %v3358_v43  ;;  %vm10748_vm14 = vcmp.eq.s32.totalorder %v3650_v33, 0 }
 0x2ab   : > { %vm10752_vm6 = vcmp.eq.s32.totalorder %v3650_v33, 7  ;;  %v2547_v25 = vmul.f32 %v10343_v41, %v14679_v17  ;;  %v3505_v37 = vrot.slane %v10725_v21, 1  ;;  %v14680_v46 = vrot.slane %v9879_v38, 1 }
 0x2ac   : > { %2824 = vperm.xlu2 %7752, %v656_v12   ;;  %v3038_v13 = vadd.f32 %v2974_v56, %v2588_v48  ;;  %v3060_v47 = vadd.f32 %v2996_v11, %v2610_v58  ;;  %v7813_v31 = vpack.i.bf16 %v3408_v55, %v10620_v51  ;;  %v3504_v24 = vrot.slane %v3408_v55, 1 }
 0x2ad   : > { %v653_v42 = vsel %vm633_vm3, %v14680_v46, %v613_v19  ;;  %vm10764_vm11 = vcmp.eq.s32.totalorder %v1066_v15, 15  ;;  %v3440_v35 = vrot.slane %v3408_v55, 7  ;;  %v3441_v43 = vrot.slane %v10725_v21, 7  ;;  %v3364_v46 = vld [vmem:[#allocation2 + $0x101] ss:$2 sm:$0xff] }
 0x2ae   : > { %v3106_v12 = vadd.f32 %v10350_v45, %v3038_v13  ;;  %v3128_v48 = vadd.f32 %v10350_v45, %v3060_v47  ;;  %7814 = vrot.lane.b32.xlu1 %v7813_v31, %s8416_s28  ;;  %v3540_v38 = vsel %vm633_vm3, %v3504_v24, %v3505_v37  ;;  %v3541_v40 = vsel %vm633_vm3, %v3503_v39, %v3504_v24  ;;  %v3300_v24 = vld [vmem:[#allocation2 + $0x100] ss:$2 sm:$0xff] }
 0x2af   : > { %v4175_v15 = vsel %vm10729_vm15, 0.0, %v3541_v40  ;;  %v4176_v58 = vsel %vm10752_vm6, 0.0, %v3540_v38  ;;  %v10788_v56 = vsel %vm504_vm0, %v3439_v8, %v3440_v35  ;;  %v10792_v11 = vsel %vm504_vm0, %v3440_v35, %v3441_v43  ;;  %v14683_v35 = vld [vmem:[#allocation130_spill] sm:$0xff] }
 0x2b0   : > { %v3170_v55 = vmax.f32 %v3106_v12, 0.0  ;;  %v3192_v17 = vmax.f32 %v3128_v48, 0.0  ;;  %v7818_v13 = vpack.i.bf16 %v4176_v58, %v4175_v15  ;;  %v4048_v39 = vsel %vm10748_vm14, 0.0, %v10788_v56  ;;  %v2895_v18 = vpop.permute.xlu0 %2894  ;;  %v14685_v15 = vld [vmem:[#allocation101_spill] sm:$0xff] }
 0x2b1   : > { %v4049_v51 = vsel %vm10718_vm7, 0.0, %v10792_v11  ;;  %v2611_v54 = vadd.f32 %v2547_v25, %v2161_v1  ;;  %v2997_v8 = vmul.f32 %v10326_v10, %v2895_v18  ;;  %v1764_v47 = vsel %vm10764_vm11, 0.0, %v653_v42  ;;  %v14684_v25 = vld [vmem:[#allocation105_spill] sm:$0xff] }
 0x2b2   : > { %3235 = vst.msk [vmem:[#allocation2 + $0xf8] sm:$0xff] %vm3203_vm1, %v3170_v55  ;;  %v2550_v12 = vmul.f32 %v10343_v41, %v14683_v35  ;;  %v3664_v48 = vand.u32 7, %v14684_v25  ;;  %v10810_v38 = vmax.f32 %v3300_v24, %v3364_v46  ;;  %v744_v40 = vadd.s32 376, %v8539_v2  ;;  %v14763_v11 = vld [vmem:[#allocation81_spill] sm:$0xff] }
 0x2b3   : > { %3257 = vst.msk [vmem:[#allocation2 + $0x1a8] sm:$0xff] %vm3203_vm1, %v3192_v17  ;;  %v3061_v31 = vadd.f32 %v2997_v8, %v2611_v54  ;;  %v2164_v33 = vmul.f32 %v10356_v26, %v14685_v15  ;;  %v14686_v58 = vrot.slane %v9898_v20, 1  ;;  %v14687_v17 = vld [vmem:[#allocation21_spill] sm:$0xff]  ;;  %vm10823_vm15 = vcmp.eq.s32.totalorder %v3657_v23, 7 }
 0x2b4   : > { %7819 = vrot.lane.b32.xlu2 %v7818_v13, %s8417_s29  ;;  %v3671_v13 = vand.u32 7, %v14687_v17  ;;  %vm10829_vm6 = vcmp.eq.s32.totalorder %v3664_v48, 0  ;;  %vm10833_vm11 = vcmp.eq.s32.totalorder %v3664_v48, 7  ;;  %v3507_v63 = vrot.slane %v10810_v38, 1 }
 0x2b5   : > { %v3129_v1 = vadd.f32 %v10350_v45, %v3061_v31  ;;  %v652_v55 = vsel %vm633_vm3, %v613_v19, %v14686_v58  ;;  %v2614_v46 = vadd.f32 %v2550_v12, %v2164_v33  ;;  %v1094_v23 = vand.u32 15, %v744_v40  ;;  %v14765_v19 = vld [vmem:[#allocation116_spill] sm:$0xff] }
 0x2b6   : > { %2839 = vperm.xlu1 %7751, %v1764_v47   ;;  %v8363_v47 = vld [vmem:[%s8547_s30 + $0x180] sm:$0xff]  ;;  %vm10841_vm4 = vcmp.eq.s32.totalorder %v3671_v13, 0  ;;  %v14696_v48 = vrot.slane %v10024_v61, 1  ;;  %vm10987_vm9 = vcmp.eq.s32.totalorder %v3671_v13, 7  ;;  %vm14744_vm5 = vcmask 785408  }
 0x2b7   : > { %v3193_v42 = vmax.f32 %v3129_v1, 0.0  ;;  %v617_v31 = vrot.slane %v8363_v47, 1  ;;  %vm1704_vm13 = vcmp.eq.s32.totalorder %v1094_v23, 15  ;;  %v14697_v1 = vld [vmem:[#allocation124_spill] sm:$0xff]  ;;  %v14699_v23 = vrot.slane %v10091_v44, 1  ;;  %v14700_v44 = vld [vmem:[#allocation111_spill] sm:$0xff] }
 0x2b8   : > { %v2910_v18 = vpop.permute.xlu0 %2909  ;;  %vm14764_vm7 = vcmask 785408  }
 0x2b9   : > { %v3298_v54 = vld [vmem:[#allocation2 + $0xf0] ss:$2 sm:$0xff]  ;;  %v3362_v8 = vld [vmem:[#allocation2 + $0xf1] ss:$2 sm:$0xff]  ;;  %3258 = vst.msk [vmem:[#allocation2 + $0x1b0] sm:$0xff] %vm3203_vm1, %v3193_v42  ;;  %v3000_v20 = vmul.f32 %v10326_v10, %v2910_v18  ;;  %v649_v58 = vsel %vm633_vm3, %v14696_v48, %v617_v31 }
 0x2ba   : > { %v3410_v35 = vmax.f32 %v3298_v54, %v3362_v8 }
 0x2bb   : > { %v3064_v25 = vadd.f32 %v3000_v20, %v2614_v46 }
 0x2bc   : > { %2844 = vperm.xlu2 %7752, %v652_v55   ;;  %v7823_v12 = vpack.i.bf16 %v3410_v35, %v10725_v21  ;;  %v3506_v15 = vrot.slane %v3410_v35, 1  ;;  %v3442_v33 = vrot.slane %v3410_v35, 7  ;;  %v3443_v55 = vrot.slane %v10810_v38, 7 }
 0x2bd   : > { %v3132_v40 = vadd.f32 %v10350_v45, %v3064_v25  ;;  %v1768_v35 = vsel %vm1704_vm13, 0.0, %v649_v58  ;;  %v2551_v25 = vmul.f32 %v10343_v41, %v14697_v1  ;;  %vm14702_vm13 = vcmask 523264  }
 0x2be   : > { %7824 = vrot.lane.b32.xlu1 %v7823_v12, %s8416_s28  ;;  %v3538_v18 = vsel %vm633_vm3, %v3506_v15, %v3507_v63  ;;  %v3539_v54 = vsel %vm633_vm3, %v3505_v37, %v3506_v15  ;;  %v10862_v61 = vsel %vm504_vm0, %v3441_v43, %v3442_v33  ;;  %v10875_v21 = vsel %vm504_vm0, %v3442_v33, %v3443_v55  ;;  %v14698_v12 = vld [vmem:[#allocation100_spill] sm:$0xff] }
 0x2bf   : > { %v4177_v8 = vsel %vm10823_vm15, 0.0, %v3539_v54  ;;  %v4178_v47 = vsel %vm10833_vm11, 0.0, %v3538_v18  ;;  %v4050_v46 = vsel %vm10829_vm6, 0.0, %v10862_v61  ;;  %v3196_v37 = vmax.f32 %v3132_v40, 0.0  ;;  %vm14704_vm15 = vmmov %vm14702_vm13 }
 0x2c0   : > { %v7828_v20 = vpack.i.bf16 %v4178_v47, %v4177_v8  ;;  %v4051_v43 = vsel %vm10841_vm4, 0.0, %v10875_v21  ;;  %v10880_v24 = vpop.permute.xlu0 %2469  ;;  %v2165_v15 = vmul.f32 %v10356_v26, %v14698_v12  ;;  %v648_v33 = vsel %vm633_vm3, %v617_v31, %v14699_v23  ;;  %v10903_v31 = vld [vmem:[%s14023_s4] ss:$0 sm:$0xff]  ;;  %vm14708_vm11 = vmmov %vm14702_vm13 }
 0x2c1   : > { %3261 = vst.msk [vmem:[#allocation2 + $0x1c8] sm:$0xff] %vm3203_vm1, %v3196_v37  ;;  %v4929_v37 = vld [vmem:[%s14024_s5] sm:$0x1]  ;;  %v3706_v61 = vand.u32 7, %v14765_v19  ;;  %vm14795_vm4 = vcmask 785408  }
 0x2c2   : > { %v2615_v40 = vadd.f32 %v2551_v25, %v2165_v15  ;;  %7594 = vpush %v4929_v37  ;;  %v8370_v19 = vld [vmem:[%s8547_s30 + $0x1e0] sm:$0xff] }
 0x2c4   : > { %7829 = vrot.lane.b32.xlu2 %v7828_v20, %s8417_s29  ;;  %v2529_v20 = vmul.f32 %v10343_v41, %v14700_v44 }
 0x2c6   : > { %2859 = vperm.xlu1 %7751, %v1768_v35   ;;  %v14701_v35 = vld [vmem:[#allocation83_spill] sm:$0xff] }
 0x2c7   : > { %v2143_v1 = vmul.f32 %v10356_v26, %v14701_v35 }
 0x2c8   : > { %v2915_v48 = vpop.permute.xlu0 %2914 }
 0x2c9   : > { %v3001_v18 = vmul.f32 %v10326_v10, %v2915_v48  ;;  %v2593_v15 = vadd.f32 %v2529_v20, %v2143_v1 }
 0x2cb   : > { %v3065_v54 = vadd.f32 %v3001_v18, %v2615_v40 }
 0x2cc   : > { %2864 = vperm.xlu2 %7752, %v648_v33  }
 0x2cd   : > { %v3133_v58 = vadd.f32 %v10350_v45, %v3065_v54 }
 0x2cf   : > { %v3197_v8 = vmax.f32 %v3133_v58, 0.0 }
 0x2d1   : > { %3262 = vst.msk [vmem:[#allocation2 + $0x1d0] sm:$0xff] %vm3203_vm1, %v3197_v8 }
 0x2ec   : > { %v7800_v47 = vpop.permute.xlu2 %7799 }
 0x2f2   : > { %v4642_v12 = vpop.f32.mrf.mxu0 }
 0x2f3   : > { %v4643_v33 = vadd.f32 %v10903_v31, %v4642_v12  ;;  %s7595_s17 = spop %7594 }
 0x2f4   : > { %v2805_v25 = vpop.permute.xlu2 %2804 }
 0x2f5   : > { %v2979_v23 = vmul.f32 %v10326_v10, %v2805_v25  ;;  %v4722_v40 = vmax.f32 %v4643_v33, 0.0  ;;  %v14703_v25 = vld [vmem:[#allocation60_spill] sm:$0xff]  ;;  %v14705_v33 = vsel %vm10182_vm2, 0.0, %v10230_v30  ;;  %vm14712_vm2 = vcmask 785408  }
 0x2f6   : > { %v2533_v12 = vmul.f32 %v10343_v41, %v14703_v25 }
 0x2f7   : > { %v3043_v48 = vadd.f32 %v2979_v23, %v2593_v15  ;;  %4754 = vst.msk [vmem:[#allocation3] sm:$0xff] %vm14702_vm13, %v4722_v40  ;;  %v7802_v15 = vunpack.i.h.bf16 %v7800_v47  ;;  %v7801_v23 = vunpack.i.l.bf16 %v7800_v47  ;;  %v14706_v40 = vsel %vm10507_vm12, 0.0, %v10548_v62  ;;  %vm14709_vm13 = vmmov %vm14708_vm11 }
 0x2f8   : > { %vm14713_vm12 = vmmov %vm14708_vm11 }
 0x2f9   : > { %v3111_v18 = vadd.f32 %v10350_v45, %v3043_v48 }
 0x2fa   : > { %v4644_v8 = vpop.f32.mrf.mxu0 }
 0x2fb   : > { %v3175_v54 = vmax.f32 %v3111_v18, 0.0  ;;  %v4645_v37 = vadd.f32 %v10903_v31, %v4644_v8 }
 0x2fd   : > { %3240 = vst.msk [vmem:[#allocation2 + $0x120] sm:$0xff] %vm3203_vm1, %v3175_v54  ;;  %v4723_v44 = vmax.f32 %v4645_v37, 0.0  ;;  %v7795_v35 = vpop.permute.xlu1 %7794  ;;  %v14707_v54 = vld [vmem:[#allocation85_spill] sm:$0xff] }
 0x2fe   : > { %v7810_v58 = vpop.permute.xlu2 %7809  ;;  %v7797_v20 = vunpack.i.h.bf16 %v7795_v35  ;;  %v7796_v1 = vunpack.i.l.bf16 %v7795_v35  ;;  %v2147_v8 = vmul.f32 %v10356_v26, %v14707_v54 }
 0x2ff   : > { %4755 = vst.msk [vmem:[#allocation3 + $0x8] sm:$0xff] %vm14704_vm15, %v4723_v44  ;;  %v14710_v44 = vld [vmem:[#allocation112_spill] sm:$0xff]  ;;  %vm14715_vm15 = vmmov %vm14708_vm11 }
 0x300   : > { %v4459_v48 = vsel %vm3203_vm1, %v14705_v33, %v7796_v1  ;;  %v4460_v18 = vsel %vm3203_vm1, %v14706_v40, %v7797_v20  ;;  %v2528_v14 = vmul.f32 %v10343_v41, %v14710_v44  ;;  %v2597_v1 = vadd.f32 %v2533_v12, %v2147_v8  ;;  %v14711_v33 = vld [vmem:[#allocation69_spill] sm:$0xff] }
 0x301   : > { %v4492_v37 = vsel %vm14708_vm11, %v4459_v48, %v7801_v23  ;;  %v4493_v47 = vsel %vm14709_vm13, %v4460_v18, %v7802_v15  ;;  %v2142_v20 = vmul.f32 %v10356_v26, %v14711_v33  ;;  %vm14719_vm13 = vmmov %vm14708_vm11 }
 0x302   : > { %v4520_v25 = vpack.c.bf16 %v4493_v47, %v4492_v37 }
 0x303   : > { %v4647_v30 = vpop.f32.mrf.mxu0  ;;  %v2592_v15 = vadd.f32 %v2528_v14, %v2142_v20  ;;  %v7812_v20 = vunpack.i.h.bf16 %v7810_v58 }
 0x304   : > { %v4648_v62 = vadd.f32 %v10903_v31, %v4647_v30  ;;  %7294 = vmatmul.msk.bf16.gmra.mxu0 %vm14712_vm2, %v4520_v25 }
 0x305   : > { %v2800_v48 = vpop.permute.xlu1 %2799 }
 0x306   : > { %v2825_v35 = vpop.permute.xlu2 %2824  ;;  %v4724_v23 = vmax.f32 %v4648_v62, 0.0  ;;  %v2978_v18 = vmul.f32 %v10326_v10, %v2800_v48  ;;  %v14714_v62 = vld [vmem:[#allocation122_spill] sm:$0xff] }
 0x307   : > { %v2983_v28 = vmul.f32 %v10326_v10, %v2825_v35  ;;  %v2537_v33 = vmul.f32 %v10343_v41, %v14714_v62 }
 0x308   : > { %4756 = vst.msk [vmem:[#allocation3 + $0x10] sm:$0xff] %vm14713_vm12, %v4724_v23  ;;  %v3042_v12 = vadd.f32 %v2978_v18, %v2592_v15  ;;  %v14716_v23 = vsel %vm10482_vm8, 0.0, %v10554_v5  ;;  %v14717_v18 = vld [vmem:[#allocation78_spill] sm:$0xff]  ;;  %vm14721_vm8 = vmmov %vm14712_vm2 }
 0x309   : > { %v3047_v40 = vadd.f32 %v2983_v28, %v2597_v1  ;;  %vm14728_vm12 = vmmov %vm14708_vm11 }
 0x30a   : > { %v3110_v37 = vadd.f32 %v10350_v45, %v3042_v12  ;;  %v14718_v12 = vld [vmem:[#allocation114_spill] sm:$0xff] }
 0x30b   : > { %v3115_v54 = vadd.f32 %v10350_v45, %v3047_v40  ;;  %v4649_v44 = vpop.f32.mrf.mxu0  ;;  %v7811_v40 = vunpack.i.l.bf16 %v7810_v58  ;;  %v2532_v58 = vmul.f32 %v10343_v41, %v14718_v12  ;;  %v748_v41 = vadd.s32 408, %v8539_v2 }
 0x30c   : > { %v4650_v35 = vadd.f32 %v10903_v31, %v4649_v44  ;;  %v3174_v30 = vmax.f32 %v3110_v37, 0.0 }
 0x30d   : > { %v3179_v8 = vmax.f32 %v3115_v54, 0.0  ;;  %v2151_v54 = vmul.f32 %v10356_v26, %v14717_v18 }
 0x30e   : > { %v10941_v47 = vpop.permute.xlu2 %7819  ;;  %v4725_v25 = vmax.f32 %v4650_v35, 0.0  ;;  %3239 = vst.msk [vmem:[#allocation2 + $0x118] sm:$0xff] %vm3203_vm1, %v3174_v30  ;;  %v14720_v35 = vld [vmem:[#allocation86_spill] sm:$0xff] }
 0x30f   : > { %3244 = vst.msk [vmem:[#allocation2 + $0x140] sm:$0xff] %vm3203_vm1, %v3179_v8  ;;  %v2146_v16 = vmul.f32 %v10356_v26, %v14720_v35  ;;  %v2601_v30 = vadd.f32 %v2537_v33, %v2151_v54  ;;  %v14723_v54 = vld [vmem:[#allocation23_spill] sm:$0xff] }
 0x310   : > { %v7805_v14 = vpop.permute.xlu1 %7804  ;;  %4757 = vst.msk [vmem:[#allocation3 + $0x18] sm:$0xff] %vm14715_vm15, %v4725_v25  ;;  %v3304_v25 = vld [vmem:[#allocation2 + $0x120] ss:$2 sm:$0xff]  ;;  %v3685_v12 = vand.u32 7, %v14723_v54 }
 0x311   : > { %v7807_v1 = vunpack.i.h.bf16 %v7805_v14  ;;  %v7806_v28 = vunpack.i.l.bf16 %v7805_v14  ;;  %v3368_v14 = vld [vmem:[#allocation2 + $0x121] ss:$2 sm:$0xff]  ;;  %v2596_v62 = vadd.f32 %v2532_v58, %v2146_v16 }
 0x312   : > { %v10975_v18 = vmax.f32 %v3304_v25, %v3368_v14  ;;  %vm11004_vm15 = vcmp.eq.s32.totalorder %v3685_v12, 0  ;;  %v11011_v14 = vld [vmem:[%s14453_s1] ss:$0 sm:$0xff]  ;;  %vm11114_vm14 = vcmp.eq.s32.totalorder %v3685_v12, 7 }
 0x313   : > { %v4461_v48 = vsel %vm3203_vm1, %v14716_v23, %v7806_v28  ;;  %v4462_v15 = vsel %vm3203_vm1, %v4046_v0, %v7807_v1  ;;  %v14722_v1 = vld [vmem:[#allocation109_spill] sm:$0xff] }
 0x314   : > { %v4494_v8 = vsel %vm14708_vm11, %v4461_v48, %v7811_v40  ;;  %v4495_v29 = vsel %vm14719_vm13, %v4462_v15, %v7812_v20  ;;  %v4652_v5 = vpop.f32.mrf.mxu0  ;;  %v3678_v28 = vand.u32 7, %v14722_v1  ;;  %v3509_v13 = vrot.slane %v10975_v18, 1 }
 0x315   : > { %v4521_v44 = vpack.c.bf16 %v4495_v29, %v4494_v8  ;;  %v4653_v0 = vadd.f32 %v10903_v31, %v4652_v5  ;;  %v3302_v23 = vld [vmem:[#allocation2 + $0x110] ss:$2 sm:$0xff]  ;;  %v3366_v48 = vld [vmem:[#allocation2 + $0x111] ss:$2 sm:$0xff]  ;;  %v10980_v29 = vld [vmem:[%s8547_s30 + $0x1a0] sm:$0xff] }
 0x316   : > { %v2845_v37 = vpop.permute.xlu2 %2844  ;;  %v10973_v15 = vmax.f32 %v3302_v23, %v3366_v48  ;;  %vm10991_vm2 = vcmp.eq.s32.totalorder %v3678_v28, 7  ;;  %vm11046_vm13 = vcmp.eq.s32.totalorder %v3678_v28, 0  ;;  %v14739_v28 = vld [vmem:[#allocation106_spill] sm:$0xff] }
 0x317   : > { %v2987_v3 = vmul.f32 %v10326_v10, %v2845_v37  ;;  %7295 = vmatmul.msk.bf16.gmra.mxu0 %vm14721_vm8, %v4521_v44  ;;  %v4726_v26 = vmax.f32 %v4653_v0, 0.0  ;;  %v621_v37 = vrot.slane %v10980_v29, 1  ;;  %v1122_v44 = vand.u32 15, %v748_v41  ;;  %vm14738_vm8 = vmmov %vm14728_vm12 }
 0x318   : > { %v2820_v40 = vpop.permute.xlu1 %2819  ;;  %v7833_v5 = vpack.i.bf16 %v10973_v15, %v10810_v38  ;;  %v3508_v17 = vrot.slane %v10973_v15, 1  ;;  %v3444_v35 = vrot.slane %v10973_v15, 7  ;;  %v3445_v15 = vrot.slane %v10975_v18, 7  ;;  %v11090_v38 = vld [vmem:[%s14453_s1 + $0x2] ss:$0 sm:$0xff] }
 0x319   : > { %v3051_v20 = vadd.f32 %v2987_v3, %v2601_v30  ;;  %v2982_v33 = vmul.f32 %v10326_v10, %v2820_v40  ;;  %4758 = vst.msk [vmem:[#allocation3 + $0x20] sm:$0xff] %vm14728_vm12, %v4726_v26  ;;  %vm11031_vm11 = vcmp.eq.s32.totalorder %v1122_v44, 15  ;;  %v14794_v44 = vld [vmem:[#allocation97_spill] sm:$0xff] }
 0x31a   : > { %7834 = vrot.lane.b32.xlu1 %v7833_v5, %s8416_s28  ;;  %v3536_v23 = vsel %vm633_vm3, %v3508_v17, %v3509_v13  ;;  %v3537_v48 = vsel %vm633_vm3, %v3507_v63, %v3508_v17  ;;  %v11077_v34 = vsel %vm504_vm0, %v3443_v55, %v3444_v35 }
 0x31b   : > { %v3119_v8 = vadd.f32 %v10350_v45, %v3051_v20  ;;  %v3046_v58 = vadd.f32 %v2982_v33, %v2596_v62  ;;  %v14732_v62 = vrot.slane %v10164_v6, 1  ;;  %v11038_v6 = vld [vmem:[%s14453_s1 + $0x1] ss:$0 sm:$0xff]  ;;  %v14735_v33 = vld [vmem:[#allocation125_spill] sm:$0xff]  ;;  %v4180_v63 = vsel %vm10991_vm2, 0.0, %v3536_v23  ;;  %vm14741_vm2 = vmmov %vm14738_vm8 }
 0x31c   : > { %v4654_v0 = vpop.f32.mrf.mxu0  ;;  %v3372_v23 = vld [vmem:[#allocation2 + $0x141] ss:$2 sm:$0xff]  ;;  %vm14749_vm12 = vmmov %vm14741_vm2 }
 0x31d   : > { %v3183_v16 = vmax.f32 %v3119_v8, 0.0  ;;  %v3114_v30 = vadd.f32 %v10350_v45, %v3046_v58  ;;  %v14731_v45 = vld [vmem:[#allocation95_spill] sm:$0xff]  ;;  %v4655_v1 = vadd.f32 %v10903_v31, %v4654_v0  ;;  %v645_v20 = vsel %vm633_vm3, %v14732_v62, %v621_v37 }
 0x31e   : > { %v10997_v3 = vpop.permute.xlu2 %7829  ;;  %v2155_v41 = vmul.f32 %v11011_v14, %v14731_v45  ;;  %v2541_v8 = vmul.f32 %v11038_v6, %v14735_v33  ;;  %v7822_v45 = vunpack.i.h.bf16 %v10941_v47  ;;  %v1772_v10 = vsel %vm11031_vm11, 0.0, %v645_v20  ;;  %v3308_v20 = vld [vmem:[#allocation2 + $0x140] ss:$2 sm:$0xff] }
 0x31f   : > { %3248 = vst.msk [vmem:[#allocation2 + $0x160] sm:$0xff] %vm3203_vm1, %v3183_v16  ;;  %v3178_v40 = vmax.f32 %v3114_v30, 0.0  ;;  %v4727_v58 = vmax.f32 %v4655_v1, 0.0  ;;  %v4179_v16 = vsel %vm10987_vm9, 0.0, %v3537_v48  ;;  %v7821_v1 = vunpack.i.l.bf16 %v10941_v47  ;;  %vm14740_vm9 = vmmov %vm14738_vm8 }
 0x320   : > { %v7815_v5 = vpop.permute.xlu1 %7814  ;;  %v7838_v17 = vpack.i.bf16 %v4180_v63, %v4179_v16  ;;  %v2536_v62 = vmul.f32 %v11038_v6, %v14739_v28  ;;  %v2605_v48 = vadd.f32 %v2541_v8, %v2155_v41  ;;  %v4052_v41 = vsel %vm11046_vm13, 0.0, %v11077_v34  ;;  %v14743_v63 = vld [vmem:[#allocation88_spill] sm:$0xff] }
 0x321   : > { %3243 = vst.msk [vmem:[#allocation2 + $0x138] sm:$0xff] %vm3203_vm1, %v3178_v40  ;;  %v7817_v30 = vunpack.i.h.bf16 %v7815_v5  ;;  %v7816_v0 = vunpack.i.l.bf16 %v7815_v5  ;;  %v11085_v8 = vsel %vm504_vm0, %v3444_v35, %v3445_v15  ;;  %v11094_v5 = vmax.f32 %v3308_v20, %v3372_v23 }
 0x322   : > { %4759 = vst.msk [vmem:[#allocation3 + $0x28] sm:$0xff] %vm14738_vm8, %v4727_v58  ;;  %7839 = vrot.lane.b32.xlu2 %v7838_v17, %s8417_s29  ;;  %2879 = vperm.xlu1 %7751, %v1772_v10   ;;  %v4053_v16 = vsel %vm11004_vm15, 0.0, %v11085_v8  ;;  %v14745_v17 = vld [vmem:[#allocation22_spill] sm:$0xff]  ;;  %v14746_v28 = vrot.slane %v10215_v49, 1  ;;  %v2158_v34 = vmul.f32 %v11011_v14, %v14794_v44  ;;  %vm14803_vm15 = vmmov %vm14795_vm4 }
 0x323   : > { %v4463_v40 = vsel %vm3203_vm1, %v4047_v50, %v7816_v0  ;;  %v4464_v47 = vsel %vm3203_vm1, %v4048_v39, %v7817_v30  ;;  %v3692_v50 = vand.u32 7, %v14742_v36  ;;  %v2150_v30 = vmul.f32 %v11011_v14, %v14743_v63  ;;  %v8368_v36 = vld [vmem:[%s8547_s30 + $0x1c0] sm:$0xff] }
 0x324   : > { %v4496_v26 = vsel %vm14740_vm9, %v4463_v40, %v7821_v1  ;;  %v4497_v33 = vsel %vm14741_vm2, %v4464_v47, %v7822_v45  ;;  %v752_v0 = vadd.s32 440, %v8539_v2  ;;  %v3699_v45 = vand.u32 7, %v14745_v17  ;;  %v11121_v49 = vld [vmem:[%s14021_s2] ss:$0 sm:$0xff] }
 0x325   : > { %v4657_v56 = vpop.f32.mrf.mxu0  ;;  %v4522_v39 = vpack.c.bf16 %v4497_v33, %v4496_v26  ;;  %v644_v40 = vsel %vm633_vm3, %v621_v37, %v14746_v28  ;;  %v2600_v23 = vadd.f32 %v2536_v62, %v2150_v30  ;;  %v3511_v37 = vrot.slane %v11094_v5, 1 }
 0x326   : > { %v2865_v9 = vpop.permute.xlu2 %2864  ;;  %v4658_v58 = vadd.f32 %v10903_v31, %v4657_v56  ;;  %vm11126_vm11 = vcmp.eq.s32.totalorder %v3692_v50, 7  ;;  %vm11133_vm8 = vcmp.eq.s32.totalorder %v3699_v45, 0  ;;  %vm11137_vm9 = vcmp.eq.s32.totalorder %v3692_v50, 0  ;;  %v3312_v53 = vld [vmem:[#allocation2 + $0x160] ss:$2 sm:$0xff] }
 0x327   : > { %v2991_v55 = vmul.f32 %v11090_v38, %v2865_v9  ;;  %7296 = vmatmul.msk.bf16.gmra.mxu0 %vm14744_vm5, %v4522_v39  ;;  %v625_v9 = vrot.slane %v8368_v36, 1  ;;  %v1150_v39 = vand.u32 15, %v752_v0  ;;  %v14756_v50 = vrot.slane %v10263_v32, 1  ;;  %vm14759_vm5 = vmmov %vm14749_vm12 }
 0x328   : > { %v4728_v10 = vmax.f32 %v4658_v58, 0.0  ;;  %v2840_v35 = vpop.permute.xlu1 %2839  ;;  %v3306_v47 = vld [vmem:[#allocation2 + $0x130] ss:$2 sm:$0xff]  ;;  %v3370_v20 = vld [vmem:[#allocation2 + $0x131] ss:$2 sm:$0xff]  ;;  %vm11216_vm6 = vcmp.eq.s32.totalorder %v3699_v45, 7 }
 0x329   : > { %v3055_v1 = vadd.f32 %v2991_v55, %v2605_v48  ;;  %v2986_v26 = vmul.f32 %v11090_v38, %v2840_v35  ;;  %v3414_v33 = vmax.f32 %v3306_v47, %v3370_v20  ;;  %v641_v28 = vsel %vm633_vm3, %v14756_v50, %v625_v9  ;;  %v3376_v50 = vld [vmem:[#allocation2 + $0x161] ss:$2 sm:$0xff] }
 0x32a   : > { %4760 = vst.msk [vmem:[#allocation3 + $0x30] sm:$0xff] %vm14749_vm12, %v4728_v10  ;;  %2884 = vperm.xlu2 %7752, %v644_v40   ;;  %vm11162_vm2 = vcmp.eq.s32.totalorder %v1150_v39, 15  ;;  %vm14761_vm12 = vmmov %vm14759_vm5 }
 0x32b   : > { %v3123_v29 = vadd.f32 %v11121_v49, %v3055_v1  ;;  %v3050_v54 = vadd.f32 %v2986_v26, %v2600_v23  ;;  %v7843_v12 = vpack.i.bf16 %v3414_v33, %v10975_v18  ;;  %v3510_v56 = vrot.slane %v3414_v33, 1 }
 0x32c   : > { %v3446_v63 = vrot.slane %v3414_v33, 7  ;;  %v3447_v18 = vrot.slane %v11094_v5, 7  ;;  %v1776_v39 = vsel %vm11162_vm2, 0.0, %v641_v28 }
 0x32d   : > { %v3187_v58 = vmax.f32 %v3123_v29, 0.0  ;;  %v3118_v1 = vadd.f32 %v11121_v49, %v3050_v54  ;;  %v4659_v10 = vpop.f32.mrf.mxu0  ;;  %7844 = vrot.lane.b32.xlu1 %v7843_v12, %s8416_s28  ;;  %v3534_v0 = vsel %vm633_vm3, %v3510_v56, %v3511_v37  ;;  %v3535_v35 = vsel %vm633_vm3, %v3509_v13, %v3510_v56 }
 0x32e   : > { %v4660_v40 = vadd.f32 %v10903_v31, %v4659_v10  ;;  %v4181_v47 = vsel %vm11114_vm14, 0.0, %v3535_v35  ;;  %v4182_v20 = vsel %vm11126_vm11, 0.0, %v3534_v0  ;;  %v11168_v32 = vsel %vm504_vm0, %v3445_v15, %v3446_v63  ;;  %vm14760_vm14 = vmmov %vm14759_vm5  ;;  %v14762_v10 = vld [vmem:[#allocation126_spill] sm:$0xff] }
 0x32f   : > { %3252 = vst.msk [vmem:[#allocation2 + $0x180] sm:$0xff] %vm3203_vm1, %v3187_v58  ;;  %v3182_v23 = vmax.f32 %v3118_v1, 0.0  ;;  %v7848_v26 = vpack.i.bf16 %v4182_v20, %v4181_v47  ;;  %v4054_v48 = vsel %vm11137_vm9, 0.0, %v11168_v32  ;;  %v11175_v29 = vsel %vm504_vm0, %v3446_v63, %v3447_v18 }
 0x330   : > { %v4729_v33 = vmax.f32 %v4660_v40, 0.0  ;;  %v7825_v36 = vpop.permute.xlu1 %7824  ;;  %v4055_v12 = vsel %vm11133_vm8, 0.0, %v11175_v29  ;;  %v7832_v15 = vunpack.i.h.bf16 %v10997_v3  ;;  %v7831_v56 = vunpack.i.l.bf16 %v10997_v3 }
 0x331   : > { %3247 = vst.msk [vmem:[#allocation2 + $0x158] sm:$0xff] %vm3203_vm1, %v3182_v23  ;;  %v7827_v62 = vunpack.i.h.bf16 %v7825_v36  ;;  %v7826_v54 = vunpack.i.l.bf16 %v7825_v36  ;;  %v2540_v0 = vmul.f32 %v11038_v6, %v14762_v10  ;;  %v14767_v36 = vld [vmem:[#allocation24_spill] sm:$0xff]  ;;  %vm4088_vm11 = vcmp.eq.s32.totalorder %v3706_v61, 7 }
 0x332   : > { %4761 = vst.msk [vmem:[#allocation3 + $0x38] sm:$0xff] %vm14759_vm5, %v4729_v33  ;;  %7849 = vrot.lane.b32.xlu2 %v7848_v26, %s8417_s29  ;;  %v11210_v33 = vmax.f32 %v3312_v53, %v3376_v50  ;;  %vm11227_vm5 = vcmp.eq.s32.totalorder %v3706_v61, 0  ;;  %vm14814_vm8 = vcmask 785408  }
 0x333   : > { %v4465_v58 = vsel %vm3203_vm1, %v4049_v51, %v7826_v54  ;;  %v4466_v63 = vsel %vm3203_vm1, %v4050_v46, %v7827_v62  ;;  %v2154_v51 = vmul.f32 %v11011_v14, %v14763_v11  ;;  %v14766_v46 = vrot.slane %v10274_v59, 1 }
 0x334   : > { %v4498_v3 = vsel %vm14760_vm14, %v4465_v58, %v7831_v56  ;;  %v4499_v1 = vsel %vm14761_vm12, %v4466_v63, %v7832_v15  ;;  %v3713_v62 = vand.u32 7, %v14767_v36  ;;  %v3449_v45 = vrot.slane %v11210_v33, 7 }
 0x335   : > { %2899 = vperm.xlu1 %7751, %v1776_v39   ;;  %v4523_v35 = vpack.c.bf16 %v4499_v1, %v4498_v3  ;;  %v640_v40 = vsel %vm633_vm3, %v625_v9, %v14766_v46  ;;  %v2604_v23 = vadd.f32 %v2540_v0, %v2154_v51  ;;  %v3513_v39 = vrot.slane %v11210_v33, 1 }
 0x336   : > { %vm11223_vm2 = vcmp.eq.s32.totalorder %v3713_v62, 0  ;;  %v756_v0 = vadd.s32 472, %v8539_v2  ;;  %v3380_v46 = vld [vmem:[#allocation2 + $0x181] ss:$2 sm:$0xff]  ;;  %vm11266_vm12 = vcmp.eq.s32.totalorder %v3713_v62, 7 }
 0x337   : > { %7297 = vmatmul.msk.bf16.gmra.mxu0 %vm14764_vm7, %v4523_v35 }
 0x338   : > { %v2860_v28 = vpop.permute.xlu1 %2859  ;;  %v3310_v47 = vld [vmem:[#allocation2 + $0x150] ss:$2 sm:$0xff]  ;;  %v3374_v20 = vld [vmem:[#allocation2 + $0x151] ss:$2 sm:$0xff]  ;;  %v1178_v61 = vand.u32 15, %v756_v0 }
 0x339   : > { %v2990_v26 = vmul.f32 %v11090_v38, %v2860_v28  ;;  %v3416_v13 = vmax.f32 %v3310_v47, %v3374_v20  ;;  %v3316_v28 = vld [vmem:[#allocation2 + $0x180] ss:$2 sm:$0xff]  ;;  %v3720_v20 = vand.u32 7, %v9856_v57 }
 0x33a   : > { %2904 = vperm.xlu2 %7752, %v640_v40   ;;  %v14774_v40 = vld [vmem:[#allocation26_spill] sm:$0xff]  ;;  %vm1716_vm14 = vcmp.eq.s32.totalorder %v1178_v61, 15 }
 0x33b   : > { %v3054_v54 = vadd.f32 %v2990_v26, %v2604_v23  ;;  %v7853_v15 = vpack.i.bf16 %v3416_v13, %v11094_v5  ;;  %v3512_v56 = vrot.slane %v3416_v13, 1  ;;  %v3448_v63 = vrot.slane %v3416_v13, 7 }
 0x33c   : > { %v3727_v47 = vand.u32 7, %v14774_v40  ;;  %v11260_v23 = vmax.f32 %v3316_v28, %v3380_v46  ;;  %v14775_v26 = vrot.slane %v10312_v52, 1  ;;  %v14784_v46 = vrot.slane %v10337_v4, 1 }
 0x33d   : > { %v3122_v9 = vadd.f32 %v11121_v49, %v3054_v54  ;;  %7854 = vrot.lane.b32.xlu1 %v7853_v15, %s8416_s28  ;;  %v3532_v1 = vsel %vm633_vm3, %v3512_v56, %v3513_v39  ;;  %v3533_v10 = vsel %vm633_vm3, %v3511_v37, %v3512_v56  ;;  %v11243_v50 = vsel %vm504_vm0, %v3447_v18, %v3448_v63  ;;  %v14786_v15 = vld [vmem:[#allocation96_spill] sm:$0xff] }
 0x33e   : > { %v4183_v35 = vsel %vm11216_vm6, 0.0, %v3533_v10  ;;  %v4184_v53 = vsel %vm4088_vm11, 0.0, %v3532_v1  ;;  %v11247_v11 = vsel %vm504_vm0, %v3448_v63, %v3449_v45  ;;  %v4056_v37 = vsel %vm11227_vm5, 0.0, %v11243_v50  ;;  %v8371_v63 = vld [vmem:[%s8547_s30 + $0x1e8] sm:$0xff] }
 0x33f   : > { %v3186_v3 = vmax.f32 %v3122_v9, 0.0  ;;  %v7858_v5 = vpack.i.bf16 %v4184_v53, %v4183_v35  ;;  %v4057_v51 = vsel %vm11223_vm2, 0.0, %v11247_v11  ;;  %v629_v18 = vrot.slane %v8370_v19, 1 }
 0x340   : > { %vm11272_vm7 = vcmp.eq.s32.totalorder %v3727_v47, 0  ;;  %v3515_v52 = vrot.slane %v11260_v23, 1  ;;  %vm11277_vm6 = vcmp.eq.s32.totalorder %v3720_v20, 7  ;;  %vm11282_vm11 = vcmp.eq.s32.totalorder %v3720_v20, 0 }
 0x341   : > { %3251 = vst.msk [vmem:[#allocation2 + $0x178] sm:$0xff] %vm3203_vm1, %v3186_v3  ;;  %v637_v13 = vsel %vm633_vm3, %v14775_v26, %v629_v18  ;;  %v3451_v10 = vrot.slane %v11260_v23, 7  ;;  %v636_v20 = vsel %vm633_vm3, %v629_v18, %v14784_v46  ;;  %v14829_v11 = vand.u32 7, %v10028_v60 }
 0x342   : > { %7859 = vrot.lane.b32.xlu2 %v7858_v5, %s8417_s29  ;;  %v1780_v57 = vsel %vm1716_vm14, 0.0, %v637_v13  ;;  %vm14787_vm14 = vcmask 523264  }
 0x343   : > { %vm11546_vm2 = vcmp.eq.s32.totalorder %v14829_v11, 0 }
 0x345   : > { %2474 = vperm.xlu1 %7751, %v8370_v19  }
 0x348   : > { %v3314_v36 = vld [vmem:[#allocation2 + $0x170] ss:$2 sm:$0xff]  ;;  %v3378_v54 = vld [vmem:[#allocation2 + $0x171] ss:$2 sm:$0xff] }
 0x349   : > { %v3418_v59 = vmax.f32 %v3314_v36, %v3378_v54  ;;  %v14785_v36 = vld [vmem:[#allocation117_spill] sm:$0xff] }
 0x34a   : > { %2479 = vperm.xlu2 %7752, %v8371_v63   ;;  %v2545_v54 = vmul.f32 %v11038_v6, %v14785_v36 }
 0x34b   : > { %v3514_v62 = vrot.slane %v3418_v59, 1  ;;  %v3450_v3 = vrot.slane %v3418_v59, 7  ;;  %v7863_v26 = vpack.i.bf16 %v3418_v59, %v11210_v33 }
 0x34d   : > { %2919 = vperm.xlu1 %7751, %v1780_v57   ;;  %v3530_v0 = vsel %vm633_vm3, %v3514_v62, %v3515_v52  ;;  %v3531_v35 = vsel %vm633_vm3, %v3513_v39, %v3514_v62  ;;  %v11295_v53 = vsel %vm504_vm0, %v3449_v45, %v3450_v3  ;;  %v11301_v5 = vsel %vm504_vm0, %v3450_v3, %v3451_v10 }
 0x34e   : > { %v4185_v19 = vsel %vm11266_vm12, 0.0, %v3531_v35  ;;  %v4186_v61 = vsel %vm11277_vm6, 0.0, %v3530_v0  ;;  %v4058_v39 = vsel %vm11282_vm11, 0.0, %v11295_v53  ;;  %v4059_v45 = vsel %vm11272_vm7, 0.0, %v11301_v5  ;;  %vm14788_vm12 = vmmov %vm14787_vm14 }
 0x34f   : > { %v7868_v28 = vpack.i.bf16 %v4186_v61, %v4185_v19  ;;  %v2159_v57 = vmul.f32 %v11011_v14, %v14786_v15  ;;  %v14789_v15 = vld [vmem:[#allocation131_spill] sm:$0xff]  ;;  %vm14790_vm6 = vmmov %vm14788_vm12  ;;  %vm14832_vm11 = vcmask 785408  }
 0x350   : > { %vm14796_vm13 = vmmov %vm14790_vm6 }
 0x351   : > { %v2609_v62 = vadd.f32 %v2545_v54, %v2159_v57  ;;  %v2549_v57 = vmul.f32 %v11038_v6, %v14789_v15  ;;  %vm14817_vm5 = vmmov %vm14790_vm6 }
 0x352   : > { %2924 = vperm.xlu2 %7752, %v636_v20  }
 0x355   : > { %7864 = vrot.lane.b32.xlu1 %v7863_v26, %s8416_s28 }
 0x35a   : > { %7869 = vrot.lane.b32.xlu2 %v7868_v28, %s8417_s29 }
 0x37c   : > { %v7840_v13 = vpop.permute.xlu2 %7839 }
 0x37d   : > { %v7842_v36 = vunpack.i.h.bf16 %v7840_v13  ;;  %v7841_v54 = vunpack.i.l.bf16 %v7840_v13 }
 0x381   : > { %v4662_v56 = vpop.f32.mrf.mxu0 }
 0x382   : > { %v4663_v4 = vadd.f32 %v10903_v31, %v4662_v56 }
 0x384   : > { %v2885_v63 = vpop.permute.xlu2 %2884  ;;  %v4730_v3 = vmax.f32 %v4663_v4, 0.0 }
 0x385   : > { %v2995_v18 = vmul.f32 %v11090_v38, %v2885_v63 }
 0x386   : > { %4762 = vst.msk [vmem:[#allocation3 + $0x40] sm:$0xff] %vm14787_vm14, %v4730_v3  ;;  %vm14791_vm14 = vmmov %vm14790_vm6  ;;  %v14793_v3 = vld [vmem:[#allocation45_spill] sm:$0xff] }
 0x387   : > { %v3059_v33 = vadd.f32 %v2995_v18, %v2609_v62  ;;  %v14792_v62 = vld [vmem:[#allocation90_spill] sm:$0xff]  ;;  %v2544_v42 = vmul.f32 %v11038_v6, %v14793_v3 }
 0x388   : > { %v2163_v18 = vmul.f32 %v11011_v14, %v14792_v62 }
 0x389   : > { %v3127_v59 = vadd.f32 %v11121_v49, %v3059_v33  ;;  %v4664_v35 = vpop.f32.mrf.mxu0 }
 0x38a   : > { %v4665_v61 = vadd.f32 %v10903_v31, %v4664_v35 }
 0x38b   : > { %v3191_v0 = vmax.f32 %v3127_v59, 0.0 }
 0x38c   : > { %v7850_v19 = vpop.permute.xlu2 %7849  ;;  %v4731_v28 = vmax.f32 %v4665_v61, 0.0  ;;  %v7835_v46 = vpop.permute.xlu1 %7834 }
 0x38d   : > { %3256 = vst.msk [vmem:[#allocation2 + $0x1a0] sm:$0xff] %vm3203_vm1, %v3191_v0  ;;  %v7837_v20 = vunpack.i.h.bf16 %v7835_v46  ;;  %v7836_v26 = vunpack.i.l.bf16 %v7835_v46  ;;  %v2613_v0 = vadd.f32 %v2549_v57, %v2163_v18 }
 0x38e   : > { %4763 = vst.msk [vmem:[#allocation3 + $0x48] sm:$0xff] %vm14788_vm12, %v4731_v28  ;;  %v2608_v28 = vadd.f32 %v2544_v42, %v2158_v34  ;;  %v7852_v42 = vunpack.i.h.bf16 %v7850_v19  ;;  %vm14797_vm12 = vmmov %vm14790_vm6 }
 0x38f   : > { %v4467_v56 = vsel %vm3203_vm1, %v4051_v43, %v7836_v26  ;;  %v4468_v63 = vsel %vm3203_vm1, %v4052_v41, %v7837_v20 }
 0x390   : > { %v4500_v4 = vsel %vm14790_vm6, %v4467_v56, %v7841_v54  ;;  %v4501_v13 = vsel %vm14791_vm14, %v4468_v63, %v7842_v36  ;;  %vm14799_vm14 = vmmov %vm14790_vm6 }
 0x391   : > { %v4524_v21 = vpack.c.bf16 %v4501_v13, %v4500_v4 }
 0x393   : > { %7298 = vmatmul.msk.bf16.gmra.mxu0 %vm14795_vm4, %v4524_v21 }
 0x394   : > { %v4667_v33 = vpop.f32.mrf.mxu0  ;;  %v2905_v59 = vpop.permute.xlu2 %2904  ;;  %v3384_v8 = vld [vmem:[#allocation2 + $0x1a1] ss:$2 sm:$0xff] }
 0x395   : > { %v4668_v43 = vadd.f32 %v10903_v31, %v4667_v33  ;;  %v2999_v41 = vmul.f32 %v11090_v38, %v2905_v59  ;;  %v2880_v61 = vpop.permute.xlu1 %2879  ;;  %v7851_v33 = vunpack.i.l.bf16 %v7850_v19 }
 0x396   : > { %v2994_v20 = vmul.f32 %v11090_v38, %v2880_v61  ;;  %v14800_v61 = vld [vmem:[#allocation98_spill] sm:$0xff] }
 0x397   : > { %v4732_v35 = vmax.f32 %v4668_v43, 0.0  ;;  %v3063_v46 = vadd.f32 %v2999_v41, %v2613_v0  ;;  %v14798_v43 = vld [vmem:[#allocation120_spill] sm:$0xff]  ;;  %v2930_v0 = vpop.permute.xlu0 %2929 }
 0x398   : > { %v3058_v36 = vadd.f32 %v2994_v20, %v2608_v28  ;;  %v2548_v44 = vmul.f32 %v11038_v6, %v14798_v43  ;;  %v14801_v28 = vld [vmem:[#allocation25_spill] sm:$0xff] }
 0x399   : > { %4764 = vst.msk [vmem:[#allocation3 + $0x50] sm:$0xff] %vm14796_vm13, %v4732_v35  ;;  %v3131_v26 = vadd.f32 %v11121_v49, %v3063_v46  ;;  %v3320_v35 = vld [vmem:[#allocation2 + $0x1a0] ss:$2 sm:$0xff]  ;;  %vm14809_vm13 = vmmov %vm14790_vm6 }
 0x39a   : > { %v3126_v15 = vadd.f32 %v11121_v49, %v3058_v36  ;;  %v14802_v46 = vld [vmem:[#allocation102_spill] sm:$0xff] }
 0x39b   : > { %v3195_v54 = vmax.f32 %v3131_v26, 0.0  ;;  %v2168_v20 = vmul.f32 %v11011_v14, %v14802_v46 }
 0x39c   : > { %v4669_v56 = vpop.f32.mrf.mxu0  ;;  %v11358_v57 = vpop.permute.xlu2 %7859  ;;  %v3190_v4 = vmax.f32 %v3126_v15, 0.0 }
 0x39d   : > { %v4670_v63 = vadd.f32 %v10903_v31, %v4669_v56  ;;  %3260 = vst.msk [vmem:[#allocation2 + $0x1c0] sm:$0xff] %vm3203_vm1, %v3195_v54  ;;  %v14804_v54 = vld [vmem:[#allocation123_spill] sm:$0xff]  ;;  %v3004_v56 = vmul.f32 %v11090_v38, %v2930_v0 }
 0x39e   : > { %3255 = vst.msk [vmem:[#allocation2 + $0x198] sm:$0xff] %vm3203_vm1, %v3190_v4  ;;  %v3734_v15 = vand.u32 7, %v14804_v54  ;;  %v7356_v54 = vld [vmem:[%s14026_s7 + $0x60] sm:$0xf] }
 0x39f   : > { %v4733_v13 = vmax.f32 %v4670_v63, 0.0  ;;  %v7845_v62 = vpop.permute.xlu1 %7844 }
 0x3a0   : > { %v7847_v18 = vunpack.i.h.bf16 %v7845_v62  ;;  %v7846_v3 = vunpack.i.l.bf16 %v7845_v62  ;;  %v11388_v62 = vmax.f32 %v3320_v35, %v3384_v8  ;;  %vm11403_vm4 = vcmp.eq.s32.totalorder %v3734_v15, 7 }
 0x3a1   : > { %4765 = vst.msk [vmem:[#allocation3 + $0x58] sm:$0xff] %vm14797_vm12, %v4733_v13  ;;  %vm11415_vm12 = vcmp.eq.s32.totalorder %v3727_v47, 7 }
 0x3a2   : > { %v4469_v21 = vsel %vm3203_vm1, %v4053_v16, %v7846_v3  ;;  %v4470_v59 = vsel %vm3203_vm1, %v4054_v48, %v7847_v18  ;;  %v2162_v16 = vmul.f32 %v11011_v14, %v14800_v61  ;;  %v3741_v48 = vand.u32 7, %v14801_v28 }
 0x3a3   : > { %v4502_v34 = vsel %vm14790_vm6, %v4469_v21, %v7851_v33  ;;  %v4503_v19 = vsel %vm14799_vm14, %v4470_v59, %v7852_v42  ;;  %v3517_v35 = vrot.slane %v11388_v62, 1  ;;  %vm14812_vm14 = vmmov %vm14790_vm6 }
 0x3a4   : > { %v4672_v41 = vpop.f32.mrf.mxu0  ;;  %v4525_v25 = vpack.c.bf16 %v4503_v19, %v4502_v34  ;;  %v2480_v30 = vpop.permute.xlu2 %2479  ;;  %v2612_v36 = vadd.f32 %v2548_v44, %v2162_v16  ;;  %vm11397_vm9 = vcmp.eq.s32.totalorder %v3741_v48, 0  ;;  %v3388_v55 = vld [vmem:[#allocation2 + $0x1c1] ss:$2 sm:$0xff] }
 0x3a5   : > { %v4673_v32 = vadd.f32 %v10903_v31, %v4672_v41  ;;  %v2554_v26 = vmul.f32 %v11038_v6, %v2480_v30  ;;  %v3318_v4 = vld [vmem:[#allocation2 + $0x190] ss:$2 sm:$0xff]  ;;  %v3382_v13 = vld [vmem:[#allocation2 + $0x191] ss:$2 sm:$0xff]  ;;  %v3453_v30 = vrot.slane %v11388_v62, 7 }
 0x3a6   : > { %7299 = vmatmul.msk.bf16.gmra.mxu0 %vm14803_vm15, %v4525_v25  ;;  %v11391_v33 = vmax.f32 %v3318_v4, %v3382_v13  ;;  %vm14813_vm15 = vmmov %vm14790_vm6 }
 0x3a7   : > { %v2900_v63 = vpop.permute.xlu1 %2899  ;;  %v2618_v18 = vadd.f32 %v2554_v26, %v2168_v20  ;;  %v4734_v3 = vmax.f32 %v4673_v32, 0.0 }
 0x3a8   : > { %v2998_v42 = vmul.f32 %v11090_v38, %v2900_v63  ;;  %v7873_v43 = vpack.i.bf16 %v11391_v33, %v11260_v23  ;;  %v3516_v25 = vrot.slane %v11391_v33, 1  ;;  %v3452_v16 = vrot.slane %v11391_v33, 7  ;;  %v7576_v23 = vld [vmem:[%s14026_s7 + $0x6c] sm:$0xf0] }
 0x3a9   : > { %v3068_v21 = vadd.f32 %v3004_v56, %v2618_v18  ;;  %4766 = vst.msk [vmem:[#allocation3 + $0x60] sm:$0xff] %vm14809_vm13, %v4734_v3  ;;  %v7862_v18 = vunpack.i.h.bf16 %v11358_v57  ;;  %v7861_v3 = vunpack.i.l.bf16 %v11358_v57 }
 0x3aa   : > { %v3062_v59 = vadd.f32 %v2998_v42, %v2612_v36  ;;  %7874 = vrot.lane.b32.xlu0 %v7873_v43, %s8416_s28  ;;  %v3528_v20 = vsel %vm633_vm3, %v3516_v25, %v3517_v35  ;;  %v3529_v40 = vsel %vm633_vm3, %v3515_v52, %v3516_v25  ;;  %v11436_v56 = vsel %vm504_vm0, %v3452_v16, %v3453_v30  ;;  %v14815_v25 = vld [vmem:[#allocation27_spill] sm:$0xff] }
 0x3ab   : > { %v3136_v19 = vadd.f32 %v11121_v49, %v3068_v21  ;;  %v4188_v47 = vsel %vm11403_vm4, 0.0, %v3528_v20  ;;  %v4187_v13 = vsel %vm11415_vm12, 0.0, %v3529_v40  ;;  %v4061_v52 = vsel %vm11397_vm9, 0.0, %v11436_v56 }
 0x3ac   : > { %v3130_v0 = vadd.f32 %v11121_v49, %v3062_v59  ;;  %v4674_v41 = vpop.f32.mrf.mxu0  ;;  %v7878_v42 = vpack.i.bf16 %v4188_v47, %v4187_v13  ;;  %v2925_v17 = vpop.permute.xlu2 %2924  ;;  %v3755_v8 = vand.u32 7, %v14815_v25  ;;  %vm11473_vm4 = vcmp.eq.s32.totalorder %v3741_v48, 7 }
 0x3ad   : > { %v4675_v61 = vadd.f32 %v10903_v31, %v4674_v41  ;;  %v3200_v32 = vmax.f32 %v3136_v19, 0.0  ;;  %v3003_v47 = vmul.f32 %v11090_v38, %v2925_v17  ;;  %v2552_v48 = vmul.f32 %v11038_v6, %v10880_v24 }
 0x3ae   : > { %v3194_v46 = vmax.f32 %v3130_v0, 0.0  ;;  %7879 = vrot.lane.b32.xlu1 %v7878_v42, %s8417_s29  ;;  %v3324_v0 = vld [vmem:[#allocation2 + $0x1c0] ss:$2 sm:$0xff]  ;;  %vm11488_vm12 = vcmp.eq.s32.totalorder %v3755_v8, 0 }
 0x3af   : > { %v4735_v26 = vmax.f32 %v4675_v61, 0.0  ;;  %v7855_v36 = vpop.permute.xlu1 %7854  ;;  %3265 = vst.msk [vmem:[#allocation2 + $0x1e8] sm:$0xff] %vm3203_vm1, %v3200_v32  ;;  %v14816_v61 = vld [vmem:[#allocation103_spill] sm:$0xff] }
 0x3b0   : > { %v7857_v63 = vunpack.i.h.bf16 %v7855_v36  ;;  %v7856_v4 = vunpack.i.l.bf16 %v7855_v36  ;;  %3259 = vst.msk [vmem:[#allocation2 + $0x1b8] sm:$0xff] %vm3203_vm1, %v3194_v46  ;;  %v2167_v32 = vmul.f32 %v11011_v14, %v14816_v61 }
 0x3b1   : > { %4767 = vst.msk [vmem:[#allocation3 + $0x68] sm:$0xff] %vm14790_vm6, %v4735_v26  ;;  %vm14825_vm6 = vmmov %vm14817_vm5 }
 0x3b2   : > { %v4471_v21 = vsel %vm3203_vm1, %v4055_v12, %v7856_v4  ;;  %v4472_v59 = vsel %vm3203_vm1, %v4056_v37, %v7857_v63  ;;  %v3748_v12 = vand.u32 7, %v10035_v7  ;;  %v11464_v37 = vmax.f32 %v3324_v0, %v3388_v55 }
 0x3b3   : > { %v4504_v57 = vsel %vm14812_vm14, %v4471_v21, %v7861_v3  ;;  %v4505_v43 = vsel %vm14813_vm15, %v4472_v59, %v7862_v18  ;;  %vm14827_vm14 = vmmov %vm14817_vm5 }
 0x3b4   : > { %v4677_v34 = vpop.f32.mrf.mxu0  ;;  %v4526_v19 = vpack.c.bf16 %v4505_v43, %v4504_v57  ;;  %vm11480_vm13 = vcmp.eq.s32.totalorder %v3748_v12, 7  ;;  %v3519_v3 = vrot.slane %v11464_v37, 1  ;;  %v3455_v57 = vrot.slane %v11464_v37, 7  ;;  %vm14828_vm15 = vmmov %vm14817_vm5 }
 0x3b5   : > { %v4678_v29 = vadd.f32 %v10903_v31, %v4677_v34 }
 0x3b6   : > { %7300 = vmatmul.msk.bf16.gmra.mxu0 %vm14814_vm8, %v4526_v19 }
 0x3b7   : > { %v4736_v50 = vmax.f32 %v4678_v29, 0.0  ;;  %v2475_v41 = vpop.permute.xlu1 %2474  ;;  %v3322_v20 = vld [vmem:[#allocation2 + $0x1b0] ss:$2 sm:$0xff]  ;;  %v3386_v26 = vld [vmem:[#allocation2 + $0x1b1] ss:$2 sm:$0xff] }
 0x3b8   : > { %v2553_v46 = vmul.f32 %v11038_v6, %v2475_v41  ;;  %v3422_v36 = vmax.f32 %v3322_v20, %v3386_v26  ;;  %v14824_v6 = vld [vmem:[#allocation93_spill] sm:$0xff]  ;;  %v7870_v20 = vpop.permute.xlu2 %7869 }
 0x3b9   : > { %4768 = vst.msk [vmem:[#allocation3 + $0x70] sm:$0xff] %vm14817_vm5, %v4736_v50  ;;  %v2166_v0 = vmul.f32 %v11011_v14, %v14824_v6  ;;  %v14834_v6 = vrot.slane %v10083_v22, 7  ;;  %vm11573_vm5 = vcmp.eq.s32.totalorder %v3755_v8, 7 }
 0x3ba   : > { %v2617_v63 = vadd.f32 %v2553_v46, %v2167_v32  ;;  %v7883_v13 = vpack.i.bf16 %v3422_v36, %v11388_v62  ;;  %v3518_v18 = vrot.slane %v3422_v36, 1  ;;  %v3454_v42 = vrot.slane %v3422_v36, 7 }
 0x3bc   : > { %v3067_v21 = vadd.f32 %v3003_v47, %v2617_v63  ;;  %v4679_v59 = vpop.f32.mrf.mxu0  ;;  %7884 = vrot.lane.b32.xlu2 %v7883_v13, %s8416_s28  ;;  %v3526_v34 = vsel %vm633_vm3, %v3518_v18, %v3519_v3  ;;  %v3527_v19 = vsel %vm633_vm3, %v3517_v35, %v3518_v18  ;;  %v11507_v24 = vsel %vm504_vm0, %v3453_v30, %v3454_v42 }
 0x3bd   : > { %v4680_v43 = vadd.f32 %v10903_v31, %v4679_v59  ;;  %v4189_v55 = vsel %vm11473_vm4, 0.0, %v3527_v19  ;;  %v4190_v29 = vsel %vm11480_vm13, 0.0, %v3526_v34  ;;  %v11520_v35 = vsel %vm504_vm0, %v3454_v42, %v3455_v57 }
 0x3be   : > { %v3135_v31 = vadd.f32 %v11121_v49, %v3067_v21  ;;  %v7888_v50 = vpack.i.bf16 %v4190_v29, %v4189_v55  ;;  %v2616_v30 = vadd.f32 %v2552_v48, %v2166_v0  ;;  %v4063_v61 = vsel %vm11488_vm12, 0.0, %v11520_v35  ;;  %v14835_v0 = vld [vmem:[#allocation128_spill] sm:$0xff] }
 0x3bf   : > { %v4737_v17 = vmax.f32 %v4680_v43, 0.0  ;;  %v2920_v62 = vpop.permute.xlu1 %2919  ;;  %v7871_v63 = vunpack.i.l.bf16 %v7870_v20  ;;  %v7872_v13 = vunpack.i.h.bf16 %v7870_v20  ;;  %v14833_v34 = vrot.slane %v10083_v22, 1 }
 0x3c0   : > { %v3199_v41 = vmax.f32 %v3135_v31, 0.0  ;;  %v3002_v14 = vmul.f32 %v11090_v38, %v2920_v62  ;;  %7889 = vrot.lane.b32.xlu0 %v7888_v50, %s8417_s29  ;;  %v14826_v38 = vld [vmem:[#allocation28_spill] sm:$0xff]  ;;  %v3762_v31 = vand.u32 7, %v14835_v0  ;;  %v14836_v50 = vld [vmem:[#allocation39_spill] sm:$0xff] }
 0x3c1   : > { %4769 = vst.msk [vmem:[#allocation3 + $0x78] sm:$0xff] %vm14825_vm6, %v4737_v17  ;;  %v3769_v4 = vand.u32 7, %v14826_v38  ;;  %v11623_v38 = vld [vmem:[%s14024_s5 + $0x2] sm:$0x1] }
 0x3c2   : > { %3264 = vst.msk [vmem:[#allocation2 + $0x1e0] sm:$0xff] %vm3203_vm1, %v3199_v41  ;;  %v3066_v32 = vadd.f32 %v3002_v14, %v2616_v30  ;;  %v14837_v30 = vsel %vm10100_vm10, 0.0, %v14836_v50  ;;  %vm4096_vm13 = vcmp.eq.s32.totalorder %v3762_v31, 7 }
 0x3c3   : > { %vm4097_vm8 = vcmp.eq.s32.totalorder %v3769_v4, 7  ;;  %vm11577_vm4 = vcmp.eq.s32.totalorder %v3769_v4, 0  ;;  %v11633_v4 = vld [vmem:[%s14024_s5 + $0x3] sm:$0x1] }
 0x3c4   : > { %v3134_v46 = vadd.f32 %v11121_v49, %v3066_v32 }
 0x3c6   : > { %v3198_v36 = vmax.f32 %v3134_v46, 0.0 }
 0x3c7   : > { %v7865_v26 = vpop.permute.xlu1 %7864 }
 0x3c8   : > { %v7867_v40 = vunpack.i.h.bf16 %v7865_v26  ;;  %v7866_v47 = vunpack.i.l.bf16 %v7865_v26  ;;  %3263 = vst.msk [vmem:[#allocation2 + $0x1d8] sm:$0xff] %vm3203_vm1, %v3198_v36 }
 0x3c9   : > { %v3328_v21 = vld [vmem:[#allocation2 + $0x1e0] ss:$2 sm:$0xff]  ;;  %v3392_v59 = vld [vmem:[#allocation2 + $0x1e1] ss:$2 sm:$0xff] }
 0x3ca   : > { %v4473_v18 = vsel %vm3203_vm1, %v4057_v51, %v7866_v47  ;;  %v4474_v49 = vsel %vm3203_vm1, %v4058_v39, %v7867_v40  ;;  %v3425_v58 = vmax.f32 %v3328_v21, %v3392_v59  ;;  %v8372_v40 = vld [vmem:[%s14024_s5] sm:$0x1] }
 0x3cb   : > { %v4506_v42 = vsel %vm14827_vm14, %v4473_v18, %v7871_v63  ;;  %v4507_v48 = vsel %vm14828_vm15, %v4474_v49, %v7872_v13  ;;  %v11644_v13 = vld [vmem:[%s14024_s5 + $0x4] sm:$0x1]  ;;  %v11655_v18 = vld [vmem:[%s14024_s5 + $0x5] sm:$0x1]  ;;  %v11666_v49 = vld [vmem:[%s14024_s5 + $0x6] sm:$0x1] }
 0x3cc   : > { %v4527_v43 = vpack.c.bf16 %v4507_v48, %v4506_v42  ;;  %v7903_v1 = vpack.i.bf16 %v10083_v22, %v3425_v58  ;;  %v3521_v53 = vrot.slane %v3425_v58, 1  ;;  %v3457_v39 = vrot.slane %v3425_v58, 7  ;;  %v11677_v42 = vld [vmem:[%s14024_s5 + $0x7] sm:$0x1]  ;;  %v11686_v21 = vld [vmem:[%s14023_s4] ss:$0 sm:$0xff] }
 0x3cd   : > { %v4977_v51 = vld [vmem:[%s14025_s6] sm:$0x1] }
 0x3ce   : > { %7301 = vmatmul.msk.bf16.gmra.mxu0 %vm14832_vm11, %v4527_v43  ;;  %7904 = vrot.lane.b32.xlu0 %v7903_v1, %s8416_s28  ;;  %v3523_v19 = vsel %vm633_vm3, %v3521_v53, %v14833_v34  ;;  %v11561_v60 = vsel %vm504_vm0, %v3457_v39, %v14834_v6 }
 0x3cf   : > { %v4193_v55 = vsel %vm4097_vm8, 0.0, %v3523_v19  ;;  %v4066_v29 = vsel %vm11546_vm2, 0.0, %v11561_v60  ;;  %v3326_v17 = vld [vmem:[#allocation2 + $0x1d0] ss:$2 sm:$0xff]  ;;  %v3390_v62 = vld [vmem:[#allocation2 + $0x1d1] ss:$2 sm:$0xff]  ;;  %vm14847_vm8 = vmmov %vm14832_vm11 }
 0x3d0   : > { %v7908_v41 = vpack.i.bf16 %v14837_v30, %v4193_v55  ;;  %v3424_v14 = vmax.f32 %v3326_v17, %v3390_v62  ;;  %vm3966_vm11 = vcmp.eq.s32.totalorder %v3748_v12, 0 }
 0x3d2   : > { %v7893_v46 = vpack.i.bf16 %v3424_v14, %v11464_v37  ;;  %v3520_v20 = vrot.slane %v3424_v14, 1  ;;  %v3456_v27 = vrot.slane %v3424_v14, 7 }
 0x3d4   : > { %7894 = vrot.lane.b32.xlu1 %v7893_v46, %s8416_s28  ;;  %v3524_v25 = vsel %vm633_vm3, %v3520_v20, %v3521_v53  ;;  %v3525_v8 = vsel %vm633_vm3, %v3519_v3, %v3520_v20  ;;  %v11593_v26 = vsel %vm504_vm0, %v3456_v27, %v3457_v39  ;;  %v11599_v36 = vsel %vm504_vm0, %v3455_v57, %v3456_v27  ;;  %v11614_v57 = vld [vmem:[%s14024_s5 + $0x1] sm:$0x1]  ;;  %vm14842_vm3 = vmmov %vm14825_vm6 }
 0x3d5   : > { %v4191_v3 = vsel %vm11573_vm5, 0.0, %v3525_v8  ;;  %v4192_v47 = vsel %vm4096_vm13, 0.0, %v3524_v25  ;;  %v4065_v63 = vsel %vm11577_vm4, 0.0, %v11593_v26  ;;  %vm14843_vm10 = vmmov %vm14842_vm3  ;;  %vm3964_vm6 = vcmp.eq.s32.totalorder %v3734_v15, 0  ;;  %v5034_v26 = vld [vmem:[%s14025_s6 + $0x1] sm:$0x1] }
 0x3d6   : > { %4951 = vrot.lane.b32.xlu0 %v8372_v40, %s8418_s11  ;;  %v7898_v37 = vpack.i.bf16 %v4192_v47, %v4191_v3  ;;  %v3465_v39 = vsel %vm504_vm0, %v3451_v10, %v3452_v16  ;;  %v7357_v15 = vor.u32 %v7576_v23, %v7356_v54  ;;  %vm14844_vm0 = vmmov %vm14842_vm3  ;;  %v4062_v8 = vsel %vm3966_vm11, 0.0, %v11507_v24 }
 0x3d7   : > { %v4060_v62 = vsel %vm3964_vm6, 0.0, %v3465_v39  ;;  %vm14845_vm14 = vmmov %vm14844_vm0  ;;  %vm3968_vm6 = vcmp.eq.s32.totalorder %v3762_v31, 0 }
 0x3d8   : > { %7899 = vrot.lane.b32.xlu2 %v7898_v37, %s8417_s29  ;;  %vm14846_vm15 = vmmov %vm14844_vm0  ;;  %5559 = vmatpush.bf16.msrb.mxu0 %v7357_v15 }
 0x3d9   : > { %7583 = vmatpush.bf16.msra.mxu2 %v7357_v15  ;;  %7582 = vmatpush.bf16.msra.mxu1 %v7357_v15  ;;  %vm14848_vm7 = vmmov %vm14844_vm0 }
 0x3da   : > { %7584 = vmatpush.bf16.msra.mxu3 %v7357_v15  ;;  %vm14849_vm5 = vmmov %vm14844_vm0 }
 0x3db   : > { %vm14850_vm13 = vmmov %vm14844_vm0 }
 0x3dc   : > { %7909 = vrot.lane.b32.xlu1 %v7908_v41, %s8417_s29  ;;  %vm14853_vm9 = vmmov %vm14844_vm0 }
 0x3dd   : > { %vm14856_vm12 = vmmov %vm14844_vm0 }
 0x3de   : > { %5008 = vrot.lane.b32.xlu0 %v11614_v57, %s8418_s11  ;;  %vm14858_vm11 = vmmov %vm14844_vm0 }
 0x3df   : > { %vm14861_vm2 = vmmov %vm14844_vm0 }
 0x3e0   : > { %4938 = vrot.lane.b32.xlu2 %v8372_v40, %s8419_s18  ;;  %vm14871_vm4 = vmmov %vm14844_vm0 }
 0x3e4   : > { %4964 = vrot.lane.b32.xlu1 %v8372_v40, %s8420_s26 }
 0x3e6   : > { %5065 = vrot.lane.b32.xlu0 %v11623_v38, %s8418_s11 }
 0x3e8   : > { %4995 = vrot.lane.b32.xlu2 %v11614_v57, %s8419_s18 }
 0x3ec   : > { %5021 = vrot.lane.b32.xlu1 %v11614_v57, %s8420_s26 }
 0x3ee   : > { %5122 = vrot.lane.b32.xlu0 %v11633_v4, %s8418_s11 }
 0x3f0   : > { %5052 = vrot.lane.b32.xlu2 %v11623_v38, %s8419_s18 }
 0x3f4   : > { %5078 = vrot.lane.b32.xlu1 %v11623_v38, %s8420_s26 }
 0x3f6   : > { %5179 = vrot.lane.b32.xlu0 %v11644_v13, %s8418_s11 }
 0x3f8   : > { %5109 = vrot.lane.b32.xlu2 %v11633_v4, %s8419_s18 }
 0x3fc   : > { %5135 = vrot.lane.b32.xlu1 %v11633_v4, %s8420_s26 }
 0x3fe   : > { %5236 = vrot.lane.b32.xlu0 %v11655_v18, %s8418_s11 }
 0x400   : > { %5166 = vrot.lane.b32.xlu2 %v11644_v13, %s8419_s18 }
 0x404   : > { %5192 = vrot.lane.b32.xlu1 %v11644_v13, %s8420_s26 }
 0x406   : > { %5293 = vrot.lane.b32.xlu0 %v11666_v49, %s8418_s11 }
 0x408   : > { %5223 = vrot.lane.b32.xlu2 %v11655_v18, %s8419_s18 }
 0x40c   : > { %5249 = vrot.lane.b32.xlu1 %v11655_v18, %s8420_s26 }
 0x40e   : > { %5350 = vrot.lane.b32.xlu0 %v11677_v42, %s8418_s11 }
 0x410   : > { %v4682_v48 = vpop.f32.mrf.mxu0  ;;  %5280 = vrot.lane.b32.xlu2 %v11666_v49, %s8419_s18 }
 0x411   : > { %v4683_v59 = vadd.f32 %v11686_v21, %v4682_v48 }
 0x413   : > { %v4738_v43 = vmax.f32 %v4683_v59, 0.0 }
 0x414   : > { %5306 = vrot.lane.b32.xlu1 %v11666_v49, %s8420_s26 }
 0x415   : > { %4770 = vst.msk [vmem:[#allocation3 + $0x80] sm:$0xff] %vm14842_vm3, %v4738_v43  ;;  %vm14851_vm3 = vmmov %vm14844_vm0 }
 0x416   : > { %v7885_v5 = vpop.permute.xlu2 %7884 }
 0x417   : > { %v7886_v20 = vunpack.i.l.bf16 %v7885_v5 }
 0x418   : > { %v4684_v58 = vpop.f32.mrf.mxu0  ;;  %5337 = vrot.lane.b32.xlu2 %v11677_v42, %s8419_s18 }
 0x419   : > { %v4685_v11 = vadd.f32 %v11686_v21, %v4684_v58  ;;  %v4477_v37 = vsel %vm3203_vm1, %v4061_v52, %v7886_v20 }
 0x41b   : > { %v4739_v1 = vmax.f32 %v4685_v11, 0.0 }
 0x41c   : > { %5363 = vrot.lane.b32.xlu1 %v11677_v42, %s8420_s26  ;;  %v7875_v53 = vpop.permute.xlu0 %7874 }
 0x41d   : > { %4771 = vst.msk [vmem:[#allocation3 + $0x88] sm:$0xff] %vm14843_vm10, %v4739_v1  ;;  %v7877_v34 = vunpack.i.h.bf16 %v7875_v53  ;;  %v7876_v19 = vunpack.i.l.bf16 %v7875_v53  ;;  %vm14852_vm10 = vmmov %vm14847_vm8 }
 0x41f   : > { %v4476_v2 = vsel %vm3203_vm1, %v4060_v62, %v7877_v34  ;;  %v4475_v10 = vsel %vm3203_vm1, %v4059_v45, %v7876_v19  ;;  %v7887_v45 = vunpack.i.h.bf16 %v7885_v5 }
 0x420   : > { %v7880_v17 = vpop.permute.xlu1 %7879 }
 0x421   : > { %v7882_v50 = vunpack.i.h.bf16 %v7880_v17  ;;  %v7881_v30 = vunpack.i.l.bf16 %v7880_v17  ;;  %v4478_v48 = vsel %vm3203_vm1, %v4062_v8, %v7887_v45  ;;  %v5091_v8 = vld [vmem:[%s14025_s6 + $0x2] sm:$0x1] }
 0x423   : > { %v4687_v6 = vpop.f32.mrf.mxu0  ;;  %v4508_v33 = vsel %vm14844_vm0, %v4475_v10, %v7881_v30  ;;  %v4509_v16 = vsel %vm14845_vm14, %v4476_v2, %v7882_v50  ;;  %vm14854_vm14 = vmmov %vm14844_vm0 }
 0x424   : > { %v4688_v55 = vadd.f32 %v11686_v21, %v4687_v6  ;;  %v4528_v14 = vpack.c.bf16 %v4509_v16, %v4508_v33 }
 0x426   : > { %v4740_v41 = vmax.f32 %v4688_v55, 0.0  ;;  %7302 = vmatmul.msk.bf16.gmra.mxu0 %vm14847_vm8, %v4528_v14  ;;  %v4064_v55 = vsel %vm3968_vm6, 0.0, %v11599_v36  ;;  %vm14886_vm6 = vmmov %vm14844_vm0 }
 0x428   : > { %4772 = vst.msk [vmem:[#allocation3 + $0x90] sm:$0xff] %vm14846_vm15, %v4740_v41  ;;  %vm14855_vm15 = vmmov %vm14844_vm0 }
 0x42b   : > { %v4689_v22 = vpop.f32.mrf.mxu0 }
 0x42c   : > { %v4690_v9 = vadd.f32 %v11686_v21, %v4689_v22 }
 0x42e   : > { %v4741_v46 = vmax.f32 %v4690_v9, 0.0 }
 0x430   : > { %4773 = vst.msk [vmem:[#allocation3 + $0x98] sm:$0xff] %vm14848_vm7, %v4741_v46  ;;  %vm14857_vm7 = vmmov %vm14844_vm0 }
 0x432   : > { %v7890_v27 = vpop.permute.xlu0 %7889  ;;  %v7900_v7 = vpop.permute.xlu2 %7899 }
 0x433   : > { %v4692_v25 = vpop.f32.mrf.mxu0  ;;  %v7892_v40 = vunpack.i.h.bf16 %v7890_v27  ;;  %v7891_v3 = vunpack.i.l.bf16 %v7890_v27  ;;  %v7902_v19 = vunpack.i.h.bf16 %v7900_v7  ;;  %v7901_v6 = vunpack.i.l.bf16 %v7900_v7  ;;  %v7572_v27 = vld [vmem:[%s14026_s7 + $0x4c] sm:$0xf0] }
 0x434   : > { %v4693_v47 = vadd.f32 %v11686_v21, %v4692_v25  ;;  %v7568_v7 = vld [vmem:[%s14026_s7 + $0x2c] sm:$0xf0] }
 0x435   : > { %v4511_v12 = vsel %vm14849_vm5, %v4478_v48, %v7892_v40  ;;  %v4510_v59 = vsel %vm14850_vm13, %v4477_v37, %v7891_v3  ;;  %v7324_v48 = vld [vmem:[%s14026_s7 + $0x20] sm:$0xf]  ;;  %vm14872_vm5 = vmmov %vm14844_vm0 }
 0x436   : > { %v4742_v43 = vmax.f32 %v4693_v47, 0.0  ;;  %v4529_v58 = vpack.c.bf16 %v4511_v12, %v4510_v59  ;;  %v5148_v47 = vld [vmem:[%s14025_s6 + $0x3] sm:$0x1]  ;;  %vm14876_vm13 = vmmov %vm14844_vm0 }
 0x437   : > { %v7308_v59 = vld [vmem:[%s14026_s7] sm:$0xf] }
 0x438   : > { %4774 = vst.msk [vmem:[#allocation3 + $0xa0] sm:$0xff] %vm14851_vm3, %v4742_v43  ;;  %7303 = vmatmul.msk.bf16.gmra.mxu0 %vm14852_vm10, %v4529_v58  ;;  %v7564_v43 = vld [vmem:[%s14026_s7 + $0xc] sm:$0xf0]  ;;  %vm14881_vm3 = vmmov %vm14844_vm0 }
 0x439   : > { %vm14883_vm10 = vmmov %vm14844_vm0 }
 0x43a   : > { %v4939_v11 = vpop.permute.xlu2 %4938 }
 0x43b   : > { %v4694_v24 = vpop.f32.mrf.mxu0  ;;  %7596 = vpush %v4939_v11  ;;  %v4787_v11 = vld [vmem:[#allocation3] ss:$8 sm:$0xf0] }
 0x43c   : > { %v4695_v44 = vadd.f32 %v11686_v21, %v4694_v24  ;;  %v7309_v24 = vor.u32 %v7564_v43, %v7308_v59 }
 0x43e   : > { %v4743_v56 = vmax.f32 %v4695_v44, 0.0 }
 0x440   : > { %4775 = vst.msk [vmem:[#allocation3 + $0xa8] sm:$0xff] %vm14853_vm9, %v4743_v56  ;;  %v7905_v52 = vpop.permute.xlu0 %7904  ;;  %v4803_v56 = vld [vmem:[#allocation3 + $0x1] ss:$8 sm:$0xf0]  ;;  %vm14885_vm9 = vmmov %vm14844_vm0 }
 0x441   : > { %v7907_v36 = vunpack.i.h.bf16 %v7905_v52  ;;  %v7906_v2 = vunpack.i.l.bf16 %v7905_v52  ;;  %v11809_v52 = vld [vmem:[#allocation3 + $0x2] ss:$8 sm:$0xf0] }
 0x442   : > { %v4996_v23 = vpop.permute.xlu2 %4995 }
 0x443   : > { %v4482_v15 = vsel %vm3203_vm1, %v4066_v29, %v7907_v36  ;;  %v4481_v33 = vsel %vm3203_vm1, %v4065_v63, %v7906_v2  ;;  %v4874_v36 = vld [vmem:[#allocation3 + $0x5] ss:$8 sm:$0xf] }
 0x446   : > { %v7895_v1 = vpop.permute.xlu1 %7894 }
 0x447   : > { %v7897_v53 = vunpack.i.h.bf16 %v7895_v1  ;;  %v7896_v39 = vunpack.i.l.bf16 %v7895_v1  ;;  %v4839_v1 = vld [vmem:[#allocation3 + $0x3] ss:$8 sm:$0xf0] }
 0x448   : > { %v4952_v34 = vpop.permute.xlu0 %4951 }
 0x449   : > { %7598 = vpush %v4952_v34  ;;  %v4479_v62 = vsel %vm3203_vm1, %v4063_v61, %v7896_v39  ;;  %v4480_v50 = vsel %vm3203_vm1, %v4064_v55, %v7897_v53  ;;  %vm14859_vm1 = vmmov %vm14847_vm8  ;;  %v4786_v53 = vld [vmem:[#allocation3] ss:$8 sm:$0xf]  ;;  %v4802_v39 = vld [vmem:[#allocation3 + $0x1] ss:$8 sm:$0xf] }
 0x44a   : > { %v4512_v31 = vsel %vm14844_vm0, %v4479_v62, %v7901_v6  ;;  %v4513_v30 = vsel %vm14854_vm14, %v4480_v50, %v7902_v19  ;;  %v5053_v60 = vpop.permute.xlu2 %5052  ;;  %v4822_v34 = vld [vmem:[#allocation3 + $0x2] ss:$8 sm:$0xf]  ;;  %v4838_v19 = vld [vmem:[#allocation3 + $0x3] ss:$8 sm:$0xf]  ;;  %v4788_v2 = vor.u32 %v4787_v11, %v4786_v53  ;;  %vm14887_vm14 = vmmov %vm14844_vm0 }
 0x44b   : > { %v4697_v17 = vpop.f32.mrf.mxu0  ;;  %v4530_v54 = vpack.c.bf16 %v4513_v30, %v4512_v31  ;;  %v4791_v6 = vld [vmem:[#allocation3 + $0x40] ss:$8 sm:$0xf0]  ;;  %v4807_v55 = vld [vmem:[#allocation3 + $0x41] ss:$8 sm:$0xf0] }
 0x44c   : > { %v4698_v0 = vadd.f32 %v11686_v21, %v4697_v17  ;;  %v11812_v17 = vld [vmem:[#allocation3 + $0x4] ss:$8 sm:$0xf0]  ;;  %v11814_v62 = vld [vmem:[#allocation3 + $0x5] ss:$8 sm:$0xf0] }
 0x44d   : > { %7304 = vmatmul.msk.bf16.gmra.mxu0 %vm14847_vm8, %v4530_v54  ;;  %v4790_v50 = vld [vmem:[#allocation3 + $0x40] ss:$8 sm:$0xf]  ;;  %v4826_v31 = vld [vmem:[#allocation3 + $0x42] ss:$8 sm:$0xf]  ;;  %vm14889_vm8 = vmmov %vm14844_vm0 }
 0x44e   : > { %v4744_v41 = vmax.f32 %v4698_v0, 0.0  ;;  %v7910_v28 = vpop.permute.xlu1 %7909  ;;  %v4806_v0 = vld [vmem:[#allocation3 + $0x41] ss:$8 sm:$0xf] }
 0x44f   : > { %v7912_v35 = vunpack.i.h.bf16 %v7910_v28  ;;  %v7911_v61 = vunpack.i.l.bf16 %v7910_v28  ;;  %v4827_v30 = vld [vmem:[#allocation3 + $0x42] ss:$8 sm:$0xf0]  ;;  %v4842_v54 = vld [vmem:[#allocation3 + $0x43] ss:$8 sm:$0xf]  ;;  %v4804_v28 = vor.u32 %v4803_v56, %v4802_v39 }
 0x450   : > { %4776 = vst.msk [vmem:[#allocation3 + $0xb0] sm:$0xff] %vm14855_vm15, %v4744_v41  ;;  %v5009_v10 = vpop.permute.xlu0 %5008  ;;  %v4843_v41 = vld [vmem:[#allocation3 + $0x43] ss:$8 sm:$0xf0]  ;;  %vm14888_vm15 = vmmov %vm14844_vm0 }
 0x451   : > { %v4514_v14 = vsel %vm14856_vm12, %v4481_v33, %v7911_v61  ;;  %v4515_v22 = vsel %vm14857_vm7, %v4482_v15, %v7912_v35  ;;  %v4824_v35 = vor.u32 %v11809_v52, %v4822_v34  ;;  %v4840_v61 = vor.u32 %v4839_v1, %v4838_v19  ;;  %v5262_v33 = vld [vmem:[%s14025_s6 + $0x5] sm:$0x1]  ;;  %v4830_v34 = vld [vmem:[#allocation3 + $0x82] ss:$8 sm:$0xf]  ;;  %vm14890_vm12 = vmmov %vm14844_vm0 }
 0x452   : > { %v4531_v5 = vpack.c.bf16 %v4515_v22, %v4514_v14  ;;  %v5110_v45 = vpop.permute.xlu2 %5109  ;;  %v11822_v14 = vld [vmem:[#allocation3 + $0x7] ss:$8 sm:$0xf0]  ;;  %v4792_v22 = vor.u32 %v4791_v6, %v4790_v50  ;;  %v4846_v19 = vld [vmem:[#allocation3 + $0x83] ss:$8 sm:$0xf]  ;;  %vm14897_vm7 = vmmov %vm14844_vm0 }
 0x453   : > { %v4699_v16 = vpop.f32.mrf.mxu0  ;;  %v11836_v59 = vmax.f32 %v4824_v35, %v4840_v61 }
 0x454   : > { %v4700_v9 = vadd.f32 %v11686_v21, %v4699_v16  ;;  %v11820_v16 = vld [vmem:[#allocation3 + $0x6] ss:$8 sm:$0xf0] }
 0x456   : > { %v4745_v46 = vmax.f32 %v4700_v9, 0.0  ;;  %v4965_v29 = vpop.permute.xlu1 %4964  ;;  %v4808_v9 = vor.u32 %v4807_v55, %v4806_v0 }
 0x457   : > { %7600 = vpush %v4965_v29  ;;  %v4894_v29 = vld [vmem:[#allocation3 + $0x6] ss:$8 sm:$0xf] }
 0x458   : > { %4777 = vst.msk [vmem:[#allocation3 + $0xb8] sm:$0xff] %vm14858_vm11, %v4745_v46  ;;  %v5066_v32 = vpop.permute.xlu0 %5065  ;;  %v4844_v46 = vor.u32 %v4843_v41, %v4842_v54  ;;  %vm14899_vm11 = vmmov %vm14844_vm0 }
 0x459   : > { %7602 = vpush %v4977_v51 }
 0x45a   : > { %7604 = vpush %v11614_v57  ;;  %v7340_v57 = vld [vmem:[%s14026_s7 + $0x40] sm:$0xf] }
 0x45b   : > { %7606 = vpush %v4996_v23  ;;  %v7341_v25 = vor.u32 %v7572_v27, %v7340_v57  ;;  %v4863_v23 = vld [vmem:[#allocation3 + $0x44] ss:$8 sm:$0xf0] }
 0x45c   : > { %7608 = vpush %v5009_v10  ;;  %v4879_v10 = vld [vmem:[#allocation3 + $0x45] ss:$8 sm:$0xf0] }
 0x45d   : > { %7305 = vmatmul.msk.bf16.gmra.mxu0 %vm14859_vm1, %v4531_v5  ;;  %7586 = vmatpush.bf16.msra.mxu2 %v7341_v25  ;;  %v4828_v5 = vor.u32 %v4827_v30, %v4826_v31  ;;  %vm14902_vm1 = vmmov %vm14844_vm0 }
 0x45e   : > { %v5022_v63 = vpop.permute.xlu1 %5021  ;;  %5560 = vmatpush.bf16.msrb.mxu0 %v7341_v25  ;;  %7585 = vmatpush.bf16.msra.mxu1 %v7341_v25 }
 0x45f   : > { %7610 = vpush %v5022_v63  ;;  %7587 = vmatpush.bf16.msra.mxu3 %v7341_v25  ;;  %v4910_v63 = vld [vmem:[#allocation3 + $0x7] ss:$8 sm:$0xf]  ;;  %v4899_v25 = vld [vmem:[#allocation3 + $0x46] ss:$8 sm:$0xf0]  ;;  %v11838_v43 = vmax.f32 %v4828_v5, %v4844_v46 }
 0x460   : > { %7612 = vpush %v5034_v26  ;;  %v5123_v20 = vpop.permute.xlu0 %5122  ;;  %v4878_v26 = vld [vmem:[#allocation3 + $0x45] ss:$8 sm:$0xf]  ;;  %v4831_v56 = vld [vmem:[#allocation3 + $0x82] ss:$8 sm:$0xf0] }
 0x461   : > { %7614 = vpush %v11623_v38  ;;  %v5167_v38 = vpop.permute.xlu2 %5166  ;;  %v4880_v27 = vor.u32 %v4879_v10, %v4878_v26  ;;  %v4867_v0 = vld [vmem:[#allocation3 + $0x84] ss:$8 sm:$0xf0]  ;;  %v4883_v31 = vld [vmem:[#allocation3 + $0x85] ss:$8 sm:$0xf0]  ;;  %v4832_v61 = vor.u32 %v4831_v56, %v4830_v34 }
 0x462   : > { %7616 = vpush %v5053_v60 }
 0x463   : > { %7618 = vpush %v5066_v32  ;;  %v4862_v32 = vld [vmem:[#allocation3 + $0x44] ss:$8 sm:$0xf] }
 0x464   : > { %v4864_v57 = vor.u32 %v4863_v23, %v4862_v32 }
 0x466   : > { %v5079_v40 = vpop.permute.xlu1 %5078  ;;  %v11849_v39 = vmax.f32 %v4864_v57, %v4880_v27 }
 0x467   : > { %7620 = vpush %v5079_v40  ;;  %v11826_v40 = vmax.f32 %v4788_v2, %v4804_v28 }
 0x468   : > { %7622 = vpush %v5091_v8  ;;  %v5180_v3 = vpop.permute.xlu0 %5179  ;;  %v4915_v8 = vld [vmem:[#allocation3 + $0x47] ss:$8 sm:$0xf0] }
 0x469   : > { %7624 = vpush %v11633_v4  ;;  %v7325_v4 = vor.u32 %v7568_v7, %v7324_v48  ;;  %v5224_v12 = vpop.permute.xlu2 %5223  ;;  %v4896_v48 = vor.u32 %v11820_v16, %v4894_v29  ;;  %v11834_v7 = vmax.f32 %v4792_v22, %v4808_v9  ;;  %v4918_v29 = vld [vmem:[#allocation3 + $0x87] ss:$8 sm:$0xf] }
 0x46a   : > { %7626 = vpush %v5110_v45 }
 0x46b   : > { %7628 = vpush %v5123_v20  ;;  %5561 = vmatpush.bf16.msrb.mxu0 %v7325_v4  ;;  %7589 = vmatpush.bf16.msra.mxu2 %v7325_v4  ;;  %v4876_v20 = vor.u32 %v11814_v62, %v4874_v36  ;;  %v5319_v62 = vld [vmem:[%s14025_s6 + $0x6] sm:$0x1]  ;;  %v4882_v36 = vld [vmem:[#allocation3 + $0x85] ss:$8 sm:$0xf] }
 0x46c   : > { %7588 = vmatpush.bf16.msra.mxu1 %v7325_v4  ;;  %7590 = vmatpush.bf16.msra.mxu3 %v7325_v4  ;;  %s7597_s29 = spop %7596  ;;  %v4795_v4 = vld [vmem:[#allocation3 + $0x80] ss:$8 sm:$0xf0]  ;;  %v4884_v46 = vor.u32 %v4883_v31, %v4882_v36 }
 0x46e   : > { %v5136_v37 = vpop.permute.xlu1 %5135 }
 0x46f   : > { %7630 = vpush %v5136_v37  ;;  %5562 = vmatpush.bf16.msrb.mxu0 %v7309_v24  ;;  %7592 = vmatpush.bf16.msra.mxu2 %v7309_v24  ;;  %v11830_v37 = vstv %s7597_s29 }
 0x470   : > { %7632 = vpush %v5148_v47  ;;  %v5237_v58 = vpop.permute.xlu0 %5236  ;;  %7591 = vmatpush.bf16.msra.mxu1 %v7309_v24  ;;  %7593 = vmatpush.bf16.msra.mxu3 %v7309_v24  ;;  %v4914_v47 = vld [vmem:[#allocation3 + $0x47] ss:$8 sm:$0xf]  ;;  %v4943_v52 = vmul.f32 %v11830_v37, %v11836_v59  ;;  %v4944_v1 = vmul.f32 %v11830_v37, %v11838_v43 }
 0x471   : > { %7634 = vpush %v11644_v13  ;;  %v5205_v13 = vld [vmem:[%s14025_s6 + $0x4] sm:$0x1]  ;;  %v5281_v15 = vpop.permute.xlu2 %5280 }
 0x472   : > { %7636 = vpush %v5167_v38  ;;  %v11828_v38 = vstv %s7595_s17 }
 0x473   : > { %7638 = vpush %v5180_v3  ;;  %v4898_v3 = vld [vmem:[#allocation3 + $0x46] ss:$8 sm:$0xf]  ;;  %v4934_v50 = vmul.f32 %v11828_v38, %v11826_v40  ;;  %v4935_v30 = vmul.f32 %v11828_v38, %v11834_v7 }
 0x474   : > { %v4900_v24 = vor.u32 %v4899_v25, %v4898_v3 }
 0x475   : > { %v4947_v16 = vadd.f32 %v4943_v52, %v4934_v50 }
 0x476   : > { %v5193_v44 = vpop.permute.xlu1 %5192 }
 0x477   : > { %7640 = vpush %v5193_v44  ;;  %v4794_v44 = vld [vmem:[#allocation3 + $0x80] ss:$8 sm:$0xf] }
 0x478   : > { %7642 = vpush %v5205_v13  ;;  %v5294_v60 = vpop.permute.xlu0 %5293  ;;  %v4916_v13 = vor.u32 %v4915_v8, %v4914_v47  ;;  %v4796_v6 = vor.u32 %v4795_v4, %v4794_v44 }
 0x479   : > { %7644 = vpush %v11655_v18  ;;  %v4858_v18 = vld [vmem:[#allocation3 + $0x4] ss:$8 sm:$0xf]  ;;  %v5338_v2 = vpop.permute.xlu2 %5337 }
 0x47a   : > { %7646 = vpush %v5224_v12  ;;  %v4860_v45 = vor.u32 %v11812_v17, %v4858_v18  ;;  %s7599_s27 = spop %7598  ;;  %v4811_v12 = vld [vmem:[#allocation3 + $0x81] ss:$8 sm:$0xf0]  ;;  %v4847_v17 = vld [vmem:[#allocation3 + $0x83] ss:$8 sm:$0xf0]  ;;  %v11864_v35 = vmax.f32 %v4900_v24, %v4916_v13 }
 0x47b   : > { %7648 = vpush %v5237_v58  ;;  %v4912_v58 = vor.u32 %v11822_v14, %v4910_v63  ;;  %v11841_v11 = vstv %s7599_s27  ;;  %v4866_v18 = vld [vmem:[#allocation3 + $0x84] ss:$8 sm:$0xf]  ;;  %v4848_v10 = vor.u32 %v4847_v17, %v4846_v19  ;;  %v4948_v14 = vadd.f32 %v4944_v1, %v4935_v30  ;;  %v5376_v24 = vld [vmem:[%s14025_s6 + $0x7] sm:$0x1] }
 0x47c   : > { %v11847_v53 = vmax.f32 %v4860_v45, %v4876_v20  ;;  %v4957_v54 = vmul.f32 %v11841_v11, %v11849_v39  ;;  %v4868_v5 = vor.u32 %v4867_v0, %v4866_v18 }
 0x47d   : > { %v11862_v28 = vmax.f32 %v4896_v48, %v4912_v58  ;;  %v11879_v25 = vmax.f32 %v4832_v61, %v4848_v10 }
 0x47e   : > { %v5250_v51 = vpop.permute.xlu1 %5249  ;;  %v4956_v41 = vmul.f32 %v11841_v11, %v11847_v53  ;;  %v4961_v26 = vadd.f32 %v4957_v54, %v4948_v14  ;;  %v11898_v52 = vmax.f32 %v4868_v5, %v4884_v46 }
 0x47f   : > { %7650 = vpush %v5250_v51 }
 0x480   : > { %7652 = vpush %v5262_v33  ;;  %v4919_v33 = vld [vmem:[#allocation3 + $0x87] ss:$8 sm:$0xf0]  ;;  %v5351_v22 = vpop.permute.xlu0 %5350  ;;  %v4960_v32 = vadd.f32 %v4956_v41, %v4947_v16 }
 0x481   : > { %7654 = vpush %v11666_v49  ;;  %v4810_v49 = vld [vmem:[#allocation3 + $0x81] ss:$8 sm:$0xf]  ;;  %v4920_v57 = vor.u32 %v4919_v33, %v4918_v29 }
 0x482   : > { %7656 = vpush %v5281_v15  ;;  %v4812_v55 = vor.u32 %v4811_v12, %v4810_v49  ;;  %v4903_v15 = vld [vmem:[#allocation3 + $0x86] ss:$8 sm:$0xf0] }
 0x483   : > { %7658 = vpush %v5294_v60  ;;  %v4902_v60 = vld [vmem:[#allocation3 + $0x86] ss:$8 sm:$0xf] }
 0x484   : > { %v11866_v9 = vmax.f32 %v4796_v6, %v4812_v55  ;;  %v4904_v20 = vor.u32 %v4903_v15, %v4902_v60 }
 0x486   : > { %v5307_v23 = vpop.permute.xlu1 %5306  ;;  %v11900_v1 = vmax.f32 %v4904_v20, %v4920_v57 }
 0x487   : > { %7660 = vpush %v5307_v23 }
 0x488   : > { %7662 = vpush %v5319_v62  ;;  %s7601_s11 = spop %7600 }
 0x489   : > { %7664 = vpush %v11677_v42  ;;  %v11869_v51 = vstv %s7601_s11 }
 0x48a   : > { %s7603_s18 = spop %7602  ;;  %7666 = vpush %v5338_v2  ;;  %v4969_v63 = vmul.f32 %v11869_v51, %v11862_v28  ;;  %v4970_v45 = vmul.f32 %v11869_v51, %v11864_v35 }
 0x48b   : > { %s7605_s26 = spop %7604  ;;  %7668 = vpush %v5351_v22  ;;  %v11875_v27 = vstv %s7603_s18 }
 0x48c   : > { %v11877_v42 = vstv %s7605_s26  ;;  %s7607_s12 = spop %7606  ;;  %v4973_v8 = vadd.f32 %v4969_v63, %v4960_v32  ;;  %v4974_v3 = vadd.f32 %v4970_v45, %v4961_v26 }
 0x48d   : > { %v4991_v47 = vmul.f32 %v11877_v42, %v11826_v40  ;;  %s7609_s17 = spop %7608  ;;  %v4992_v48 = vmul.f32 %v11877_v42, %v11834_v7  ;;  %v4993_v4 = vmul.f32 %v11877_v42, %v11866_v9  ;;  %v11887_v12 = vstv %s7607_s12 }
 0x48e   : > { %v11889_v58 = vstv %s7609_s17  ;;  %v4982_v13 = vadd.f32 %v11875_v27, %v4973_v8  ;;  %v4983_v44 = vadd.f32 %v11875_v27, %v4974_v3  ;;  %v5000_v49 = vmul.f32 %v11887_v12, %v11836_v59  ;;  %v5364_v56 = vpop.permute.xlu1 %5363 }
 0x48f   : > { %v5001_v34 = vmul.f32 %v11887_v12, %v11838_v43  ;;  %v5002_v19 = vmul.f32 %v11887_v12, %v11879_v25  ;;  %7670 = vpush %v5364_v56  ;;  %v5013_v17 = vmul.f32 %v11889_v58, %v11847_v53  ;;  %v5014_v62 = vmul.f32 %v11889_v58, %v11849_v39 }
 0x490   : > { %v11906_v6 = vpack.c.bf16 %v4983_v44, %v4982_v13  ;;  %v5004_v55 = vadd.f32 %v5000_v49, %v4991_v47  ;;  %s7611_s29 = spop %7610  ;;  %7672 = vpush %v5376_v24  ;;  %v5015_v31 = vmul.f32 %v11889_v58, %v11898_v52 }
 0x491   : > { %v5005_v50 = vadd.f32 %v5001_v34, %v4992_v48  ;;  %v5006_v0 = vadd.f32 %v5002_v19, %v4993_v4  ;;  %v11914_v30 = vstv %s7611_s29  ;;  %s7613_s27 = spop %7612 }
 0x492   : > { %14860 = vst [vmem:[#allocation14_spill] sm:$0xff] %v11906_v6  ;;  %v5017_v41 = vadd.f32 %v5013_v17, %v5004_v55  ;;  %v5026_v54 = vmul.f32 %v11914_v30, %v11862_v28  ;;  %v5027_v23 = vmul.f32 %v11914_v30, %v11864_v35  ;;  %v5028_v18 = vmul.f32 %v11914_v30, %v11900_v1  ;;  %s7615_s30 = spop %7614 }
 0x493   : > { %7370 = vmatmul.msk.bf16.vlgmr.msrb.gmra.mxu0 %vm14861_vm2, %v11906_v6  ;;  %v5018_v36 = vadd.f32 %v5014_v62, %v5005_v50  ;;  %v5019_v2 = vadd.f32 %v5015_v31, %v5006_v0  ;;  %v11924_v61 = vstv %s7613_s27  ;;  %v11926_v10 = vstv %s7615_s30  ;;  %s7617_s28 = spop %7616  ;;  %vm14908_vm2 = vmmov %vm14844_vm0 }
 0x494   : > { %v5030_v15 = vadd.f32 %v5026_v54, %v5017_v41  ;;  %v5048_v33 = vmul.f32 %v11926_v10, %v11826_v40  ;;  %v5049_v16 = vmul.f32 %v11926_v10, %v11834_v7  ;;  %v5050_v14 = vmul.f32 %v11926_v10, %v11866_v9  ;;  %s7619_s11 = spop %7618 }
 0x495   : > { %v5031_v22 = vadd.f32 %v5027_v23, %v5018_v36  ;;  %v5032_v5 = vadd.f32 %v5028_v18, %v5019_v2  ;;  %v11934_v46 = vstv %s7617_s28  ;;  %v11936_v60 = vstv %s7619_s11 }
 0x496   : > { %v5039_v29 = vadd.f32 %v11924_v61, %v5030_v15  ;;  %v5057_v32 = vmul.f32 %v11934_v46, %v11836_v59  ;;  %v5058_v26 = vmul.f32 %v11934_v46, %v11838_v43  ;;  %v5059_v63 = vmul.f32 %v11934_v46, %v11879_v25 }
 0x497   : > { %v5040_v45 = vadd.f32 %v11924_v61, %v5031_v22  ;;  %v11947_v20 = vadd.f32 %v11924_v61, %v5032_v5  ;;  %v5070_v57 = vmul.f32 %v11936_v60, %v11847_v53  ;;  %v5071_v8 = vmul.f32 %v11936_v60, %v11849_v39 }
 0x498   : > { %v5061_v3 = vadd.f32 %v5057_v32, %v5048_v33  ;;  %v5062_v47 = vadd.f32 %v5058_v26, %v5049_v16  ;;  %v5063_v48 = vadd.f32 %v5059_v63, %v5050_v14  ;;  %v5072_v4 = vmul.f32 %v11936_v60, %v11898_v52  ;;  %s7621_s18 = spop %7620 }
 0x499   : > { %v11955_v24 = vpack.c.bf16 %v5040_v45, %v5039_v29  ;;  %v11957_v13 = vstv %s7621_s18  ;;  %s7623_s26 = spop %7622 }
 0x49a   : > { %v5074_v44 = vadd.f32 %v5070_v57, %v5061_v3  ;;  %v5075_v49 = vadd.f32 %v5071_v8, %v5062_v47  ;;  %v5076_v56 = vadd.f32 %v5072_v4, %v5063_v48  ;;  %v5083_v34 = vmul.f32 %v11957_v13, %v11862_v28  ;;  %s7625_s12 = spop %7624 }
 0x49b   : > { %14862 = vst [vmem:[#allocation15_spill] sm:$0xff] %v11955_v24  ;;  %v5084_v19 = vmul.f32 %v11957_v13, %v11864_v35  ;;  %v5085_v55 = vmul.f32 %v11957_v13, %v11900_v1  ;;  %v11965_v17 = vstv %s7623_s26  ;;  %v11967_v62 = vstv %s7625_s12  ;;  %s7627_s17 = spop %7626 }
 0x49c   : > { %v5087_v50 = vadd.f32 %v5083_v34, %v5074_v44  ;;  %v5105_v0 = vmul.f32 %v11967_v62, %v11826_v40  ;;  %v5106_v31 = vmul.f32 %v11967_v62, %v11834_v7  ;;  %s7629_s20 = spop %7628  ;;  %v11973_v23 = vstv %s7627_s17 }
 0x49d   : > { %v5088_v41 = vadd.f32 %v5084_v19, %v5075_v49  ;;  %v5089_v54 = vadd.f32 %v5085_v55, %v5076_v56  ;;  %v11975_v18 = vstv %s7629_s20  ;;  %v5114_v2 = vmul.f32 %v11973_v23, %v11836_v59 }
 0x49e   : > { %v5096_v36 = vadd.f32 %v11965_v17, %v5087_v50  ;;  %v5115_v15 = vmul.f32 %v11973_v23, %v11838_v43  ;;  %v5127_v5 = vmul.f32 %v11975_v18, %v11847_v53  ;;  %v5128_v32 = vmul.f32 %v11975_v18, %v11849_v39 }
 0x49f   : > { %v5097_v33 = vadd.f32 %v11965_v17, %v5088_v41  ;;  %v11984_v16 = vadd.f32 %v11965_v17, %v5089_v54  ;;  %v5118_v14 = vadd.f32 %v5114_v2, %v5105_v0 }
 0x4a0   : > { %v5119_v22 = vadd.f32 %v5115_v15, %v5106_v31  ;;  %s7631_s21 = spop %7630 }
 0x4a1   : > { %14863 = vst [vmem:[#allocation17_spill] sm:$0xff] %v11984_v16  ;;  %v11988_v29 = vpack.c.bf16 %v5097_v33, %v5096_v36  ;;  %v11992_v26 = vstv %s7631_s21  ;;  %s7633_s29 = spop %7632  ;;  %v5131_v63 = vadd.f32 %v5127_v5, %v5118_v14 }
 0x4a2   : > { %v5140_v45 = vmul.f32 %v11992_v26, %v11862_v28  ;;  %s7635_s27 = spop %7634  ;;  %v5132_v57 = vadd.f32 %v5128_v32, %v5119_v22  ;;  %v5141_v8 = vmul.f32 %v11992_v26, %v11864_v35  ;;  %v11998_v3 = vstv %s7633_s29 }
 0x4a3   : > { %14864 = vst [vmem:[#allocation44_spill] sm:$0xff] %v11988_v29  ;;  %v12000_v47 = vstv %s7635_s27  ;;  %s7637_s30 = spop %7636  ;;  %v4702_v49 = vpop.f32.mrf.mxu0 }
 0x4a4   : > { %14865 = vst [vmem:[#allocation51_spill] sm:$0xff] %v12000_v47  ;;  %v5144_v48 = vadd.f32 %v5140_v45, %v5131_v63  ;;  %v5162_v4 = vmul.f32 %v12000_v47, %v11826_v40  ;;  %v5163_v44 = vmul.f32 %v12000_v47, %v11834_v7  ;;  %s7639_s28 = spop %7638  ;;  %v5145_v56 = vadd.f32 %v5141_v8, %v5132_v57 }
 0x4a5   : > { %v12006_v34 = vstv %s7637_s30  ;;  %v12008_v19 = vstv %s7639_s28  ;;  %v4703_v33 = vadd.f32 %v11686_v21, %v4702_v49 }
 0x4a6   : > { %14866 = vst [vmem:[#allocation52_spill] sm:$0xff] %v12006_v34  ;;  %v5153_v55 = vadd.f32 %v11998_v3, %v5144_v48  ;;  %v5171_v50 = vmul.f32 %v12006_v34, %v11836_v59  ;;  %v5172_v0 = vmul.f32 %v12006_v34, %v11838_v43  ;;  %v5154_v31 = vadd.f32 %v11998_v3, %v5145_v56 }
 0x4a7   : > { %14867 = vst [vmem:[#allocation57_spill] sm:$0xff] %v12008_v19  ;;  %v5184_v36 = vmul.f32 %v12008_v19, %v11847_v53  ;;  %v5185_v15 = vmul.f32 %v12008_v19, %v11849_v39  ;;  %v4746_v63 = vmax.f32 %v4703_v33, 0.0 }
 0x4a8   : > { %v5175_v41 = vadd.f32 %v5171_v50, %v5162_v4  ;;  %v5176_v54 = vadd.f32 %v5172_v0, %v5163_v44  ;;  %s7641_s11 = spop %7640  ;;  %v12018_v2 = vpack.c.bf16 %v5154_v31, %v5153_v55 }
 0x4a9   : > { %v12023_v14 = vstv %s7641_s11  ;;  %s7643_s18 = spop %7642  ;;  %4778 = vst.msk [vmem:[#allocation3 + $0xc0] sm:$0xff] %vm14872_vm5, %v4746_v63  ;;  %vm14910_vm5 = vmmov %vm14844_vm0 }
 0x4aa   : > { %14868 = vst [vmem:[#allocation58_spill] sm:$0xff] %v12018_v2  ;;  %v5188_v22 = vadd.f32 %v5184_v36, %v5175_v41  ;;  %v5197_v5 = vmul.f32 %v12023_v14, %v11862_v28  ;;  %s7645_s26 = spop %7644  ;;  %v5189_v32 = vadd.f32 %v5185_v15, %v5176_v54  ;;  %v5198_v45 = vmul.f32 %v12023_v14, %v11864_v35 }
 0x4ab   : > { %14869 = vst [vmem:[#allocation62_spill] sm:$0xff] %v12023_v14  ;;  %v12029_v57 = vstv %s7643_s18  ;;  %s7647_s12 = spop %7646  ;;  %7376 = vmatmul.msk.bf16.vlgmr.msra.gmra.mxu2 %vm14871_vm4, %v12018_v2  ;;  %v12033_v48 = vstv %s7645_s26  ;;  %v4704_v44 = vpop.f32.mrf.mxu0  ;;  %vm14909_vm4 = vmmov %vm14844_vm0 }
 0x4ac   : > { %14870 = vst [vmem:[#allocation63_spill] sm:$0xff] %v12029_v57  ;;  %v5201_v8 = vadd.f32 %v5197_v5, %v5188_v22  ;;  %v12035_v4 = vstv %s7647_s12  ;;  %s7649_s17 = spop %7648  ;;  %v5202_v49 = vadd.f32 %v5198_v45, %v5189_v32  ;;  %v5219_v56 = vmul.f32 %v12033_v48, %v11826_v40 }
 0x4ad   : > { %v5220_v55 = vmul.f32 %v12033_v48, %v11834_v7  ;;  %v5228_v0 = vmul.f32 %v12035_v4, %v11836_v59  ;;  %v5229_v31 = vmul.f32 %v12035_v4, %v11838_v43  ;;  %v12048_v54 = vstv %s7649_s17 }
 0x4ae   : > { %v5210_v50 = vadd.f32 %v12029_v57, %v5201_v8  ;;  %v5211_v41 = vadd.f32 %v12029_v57, %v5202_v49  ;;  %v5241_v33 = vmul.f32 %v12048_v54, %v11847_v53  ;;  %v5242_v5 = vmul.f32 %v12048_v54, %v11849_v39 }
 0x4af   : > { %v5232_v36 = vadd.f32 %v5228_v0, %v5219_v56  ;;  %v5233_v15 = vadd.f32 %v5229_v31, %v5220_v55  ;;  %v4705_v32 = vadd.f32 %v11686_v21, %v4704_v44 }
 0x4b0   : > { %s7651_s20 = spop %7650  ;;  %v12052_v22 = vpack.c.bf16 %v5211_v41, %v5210_v50 }
 0x4b1   : > { %s7653_s21 = spop %7652  ;;  %v5245_v63 = vadd.f32 %v5241_v33, %v5232_v36  ;;  %v12057_v45 = vstv %s7651_s20  ;;  %v5246_v8 = vadd.f32 %v5242_v5, %v5233_v15  ;;  %v4747_v49 = vmax.f32 %v4705_v32, 0.0 }
 0x4b2   : > { %14873 = vst [vmem:[#allocation50_spill] sm:$0xff] %v12052_v22  ;;  %s7655_s29 = spop %7654  ;;  %v5254_v56 = vmul.f32 %v12057_v45, %v11862_v28  ;;  %v5255_v55 = vmul.f32 %v12057_v45, %v11864_v35  ;;  %v12063_v50 = vstv %s7653_s21 }
 0x4b3   : > { %s7657_s27 = spop %7656  ;;  %v12065_v0 = vstv %s7655_s29  ;;  %4779 = vst.msk [vmem:[#allocation3 + $0xc8] sm:$0xff] %vm14876_vm13, %v4747_v49  ;;  %vm14912_vm13 = vmmov %vm14844_vm0 }
 0x4b4   : > { %14874 = vst [vmem:[#allocation16_spill] sm:$0xff] %v12065_v0  ;;  %v12067_v31 = vstv %s7657_s27  ;;  %s7659_s30 = spop %7658  ;;  %v5258_v44 = vadd.f32 %v5254_v56, %v5245_v63  ;;  %v5259_v41 = vadd.f32 %v5255_v55, %v5246_v8  ;;  %v5276_v36 = vmul.f32 %v12065_v0, %v11826_v40 }
 0x4b5   : > { %14875 = vst [vmem:[#allocation34_spill] sm:$0xff] %v12067_v31  ;;  %v5277_v15 = vmul.f32 %v12065_v0, %v11834_v7  ;;  %v4707_v33 = vpop.f32.mrf.mxu0  ;;  %v5285_v5 = vmul.f32 %v12067_v31, %v11836_v59  ;;  %v5286_v32 = vmul.f32 %v12067_v31, %v11838_v43  ;;  %v12080_v49 = vstv %s7659_s30 }
 0x4b6   : > { %v5267_v2 = vadd.f32 %v12063_v50, %v5258_v44  ;;  %v5268_v6 = vadd.f32 %v12063_v50, %v5259_v41  ;;  %14877 = vst [vmem:[#allocation35_spill] sm:$0xff] %v12080_v49  ;;  %v5298_v55 = vmul.f32 %v12080_v49, %v11847_v53  ;;  %v5299_v29 = vmul.f32 %v12080_v49, %v11849_v39 }
 0x4b7   : > { %v5289_v63 = vadd.f32 %v5285_v5, %v5276_v36  ;;  %v5290_v8 = vadd.f32 %v5286_v32, %v5277_v15  ;;  %v4708_v57 = vadd.f32 %v11686_v21, %v4707_v33 }
 0x4b8   : > { %s7661_s28 = spop %7660  ;;  %v12082_v56 = vpack.c.bf16 %v5268_v6, %v5267_v2 }
 0x4b9   : > { %s7663_s11 = spop %7662  ;;  %v12089_v14 = vstv %s7661_s28  ;;  %v5302_v44 = vadd.f32 %v5298_v55, %v5289_v63  ;;  %v5303_v41 = vadd.f32 %v5299_v29, %v5290_v8  ;;  %v4748_v2 = vmax.f32 %v4708_v57, 0.0 }
 0x4ba   : > { %14878 = vst [vmem:[#allocation70_spill] sm:$0xff] %v12082_v56  ;;  %s7665_s18 = spop %7664  ;;  %v5311_v36 = vmul.f32 %v12089_v14, %v11862_v28  ;;  %v5312_v6 = vmul.f32 %v12089_v14, %v11864_v35  ;;  %v12095_v15 = vstv %s7663_s11 }
 0x4bb   : > { %14879 = vst [vmem:[#allocation132_spill] sm:$0xff] %v12089_v14  ;;  %s7667_s26 = spop %7666  ;;  %v12097_v5 = vstv %s7665_s18 }
 0x4bc   : > { %14880 = vst [vmem:[#allocation59_spill] sm:$0xff] %v12095_v15  ;;  %v12099_v32 = vstv %s7667_s26  ;;  %s7669_s12 = spop %7668  ;;  %v5315_v33 = vadd.f32 %v5311_v36, %v5302_v44  ;;  %v5316_v56 = vadd.f32 %v5312_v6, %v5303_v41  ;;  %v5333_v29 = vmul.f32 %v12097_v5, %v11826_v40 }
 0x4bd   : > { %v5334_v63 = vmul.f32 %v12097_v5, %v11834_v7  ;;  %4780 = vst.msk [vmem:[#allocation3 + $0xd0] sm:$0xff] %vm14881_vm3, %v4748_v2  ;;  %v5342_v57 = vmul.f32 %v12099_v32, %v11836_v59  ;;  %v5343_v8 = vmul.f32 %v12099_v32, %v11838_v43  ;;  %v12112_v44 = vstv %s7669_s12  ;;  %v4709_v41 = vpop.f32.mrf.mxu0  ;;  %vm14914_vm3 = vmmov %vm14844_vm0  ;;  %s13250_s12 = sand.u32 1, %s8405_s14  }
 0x4be   : > { %v5324_v55 = vadd.f32 %v12095_v15, %v5315_v33  ;;  %v5325_v14 = vadd.f32 %v12095_v15, %v5316_v56  ;;  %v5355_v7 = vmul.f32 %v12112_v44, %v11847_v53  ;;  %v5356_v59 = vmul.f32 %v12112_v44, %v11849_v39  ;;  %s7078_s29 = scalar_lea.sflag [#allocation5], %s13250_s12 }
 0x4bf   : > { %v5346_v36 = vadd.f32 %v5342_v57, %v5333_v29  ;;  %v5347_v40 = vadd.f32 %v5343_v8, %v5334_v63  ;;  %v4710_v43 = vadd.f32 %v11686_v21, %v4709_v41 }
 0x4c0   : > { %s7671_s17 = spop %7670  ;;  %v12114_v6 = vpack.c.bf16 %v5325_v14, %v5324_v55 }
 0x4c1   : > { %s7673_s20 = spop %7672  ;;  %v12121_v2 = vstv %s7671_s17  ;;  %v5359_v56 = vadd.f32 %v5355_v7, %v5346_v36  ;;  %v5360_v33 = vadd.f32 %v5356_v59, %v5347_v40  ;;  %v4749_v63 = vmax.f32 %v4710_v43, 0.0  ;;  %v7574_v59 = vld [vmem:[%s14026_s7 + $0x64] sm:$0xf]  ;;  %v7358_v43 = vld [vmem:[%s14026_s7 + $0x70] sm:$0xf0]  ;;  %s7262_s17 = sshll.u32 %s13250_s12, 9 }
 0x4c2   : > { %14882 = vst [vmem:[#allocation65_spill] sm:$0xff] %v12114_v6  ;;  %v5368_v29 = vmul.f32 %v12121_v2, %v11862_v28  ;;  %v5369_v14 = vmul.f32 %v12121_v2, %v11864_v35  ;;  %v12127_v57 = vstv %s7673_s20  ;;  %v8374_v28 = vld [vmem:[%s14023_s4] ss:$0 sm:$0xff]  ;;  %s13293_s20 = scalar_lea.vmem [#allocation4], %s7262_s17  ;;  %s13410_s21 = scalar_lea.vmem [#allocation6], %s7262_s17 }
 0x4c3   : > { %4781 = vst.msk [vmem:[#allocation3 + $0xd8] sm:$0xff] %vm14883_vm10, %v4749_v63  ;;  %vm14916_vm10 = vmmov %vm14844_vm0 }
 0x4c4   : > { %v5372_v53 = vadd.f32 %v5368_v29, %v5359_v56  ;;  %v5373_v8 = vadd.f32 %v5369_v14, %v5360_v33  ;;  %v7361_v33 = vor.u32 %v7574_v59, %v7358_v43 }
 0x4c6   : > { %v5381_v39 = vadd.f32 %v12127_v57, %v5372_v53  ;;  %v5382_v21 = vadd.f32 %v12127_v57, %v5373_v8  ;;  %5648 = vmatpush.bf16.msrb.mxu2 %v7361_v33  ;;  %v7364_v53 = vld [vmem:[%s14026_s7 + $0x68] sm:$0xf]  ;;  %v7577_v8 = vld [vmem:[%s14026_s7 + $0x74] sm:$0xf0]  ;;  %v4945_v33 = vmul.f32 %v11830_v37, %v11879_v25 }
 0x4c8   : > { %v12132_v55 = vpack.c.bf16 %v5382_v21, %v5381_v39  ;;  %v7570_v39 = vld [vmem:[%s14026_s7 + $0x44] sm:$0xf] }
 0x4ca   : > { %14884 = vst [vmem:[#allocation104_spill] sm:$0xff] %v12132_v55  ;;  %v4712_v41 = vpop.f32.mrf.mxu0  ;;  %v4870_v55 = vld [vmem:[#allocation3 + $0xc4] ss:$8 sm:$0xf] }
 0x4cb   : > { %v4713_v36 = vadd.f32 %v8374_v28, %v4712_v41  ;;  %v7365_v41 = vor.u32 %v7577_v8, %v7364_v53  ;;  %v5221_v53 = vmul.f32 %v12033_v48, %v11866_v9  ;;  %v5230_v8 = vmul.f32 %v12035_v4, %v11879_v25  ;;  %v4886_v15 = vld [vmem:[#allocation3 + $0xc5] ss:$8 sm:$0xf]  ;;  %v4922_v22 = vld [vmem:[#allocation3 + $0xc7] ss:$8 sm:$0xf] }
 0x4cd   : > { %v4750_v35 = vmax.f32 %v4713_v36, 0.0  ;;  %v7342_v36 = vld [vmem:[%s14026_s7 + $0x50] sm:$0xf0]  ;;  %5737 = vmatpush.bf16.msrb.mxu3 %v7365_v41 }
 0x4ce   : > { %v7345_v59 = vor.u32 %v7570_v39, %v7342_v36  ;;  %v4798_v36 = vld [vmem:[#allocation3 + $0xc0] ss:$8 sm:$0xf] }
 0x4cf   : > { %4782 = vst.msk [vmem:[#allocation3 + $0xe0] sm:$0xff] %vm14885_vm9, %v4750_v35  ;;  %v7575_v35 = vld [vmem:[%s14026_s7 + $0x6c] sm:$0xf]  ;;  %vm14917_vm9 = vmmov %vm14844_vm0 }
 0x4d0   : > { %5649 = vmatpush.bf16.msrb.mxu2 %v7345_v59  ;;  %v4834_v59 = vld [vmem:[#allocation3 + $0xc2] ss:$8 sm:$0xf] }
 0x4d2   : > { %v4714_v40 = vpop.f32.mrf.mxu0 }
 0x4d3   : > { %v4715_v7 = vadd.f32 %v8374_v28, %v4714_v40  ;;  %v7366_v40 = vld [vmem:[%s14026_s7 + $0x78] sm:$0xf0] }
 0x4d4   : > { %v7369_v43 = vor.u32 %v7575_v35, %v7366_v40  ;;  %v4814_v35 = vld [vmem:[#allocation3 + $0xc1] ss:$8 sm:$0xf] }
 0x4d5   : > { %v4751_v56 = vmax.f32 %v4715_v7, 0.0 }
 0x4d6   : > { %5826 = vmatpush.bf16.msrb.mxu1 %v7369_v43  ;;  %v4850_v43 = vld [vmem:[#allocation3 + $0xc3] ss:$8 sm:$0xf] }
 0x4d7   : > { %4783 = vst.msk [vmem:[#allocation3 + $0xe8] sm:$0xff] %vm14886_vm6, %v4751_v56  ;;  %vm14919_vm6 = vmmov %vm14844_vm0 }
 0x4da   : > { %v4717_v29 = vpop.f32.mrf.mxu0 }
 0x4db   : > { %v4718_v14 = vadd.f32 %v8374_v28, %v4717_v29  ;;  %v5107_v29 = vmul.f32 %v11967_v62, %v11866_v9 }
 0x4dd   : > { %v4752_v63 = vmax.f32 %v4718_v14, 0.0  ;;  %v5116_v14 = vmul.f32 %v11973_v23, %v11879_v25 }
 0x4df   : > { %4784 = vst.msk [vmem:[#allocation3 + $0xf0] sm:$0xff] %vm14844_vm0, %v4752_v63  ;;  %v4958_v63 = vmul.f32 %v11841_v11, %v11898_v52  ;;  %v5120_v41 = vadd.f32 %v5116_v14, %v5107_v29 }
 0x4e2   : > { %v4719_v21 = vpop.f32.mrf.mxu0 }
 0x4e3   : > { %v4720_v7 = vadd.f32 %v8374_v28, %v4719_v21  ;;  %v4936_v28 = vmul.f32 %v11828_v38, %v11866_v9  ;;  %v4971_v21 = vmul.f32 %v11869_v51, %v11900_v1 }
 0x4e5   : > { %v4753_v56 = vmax.f32 %v4720_v7, 0.0  ;;  %v4949_v39 = vadd.f32 %v4945_v33, %v4936_v28  ;;  %v5129_v7 = vmul.f32 %v11975_v18, %v11898_v52  ;;  %v4906_v28 = vld [vmem:[#allocation3 + $0xc6] ss:$8 sm:$0xf] }
 0x4e7   : > { %4785 = vst.msk [vmem:[#allocation3 + $0xf8] sm:$0xff] %vm14887_vm14, %v4753_v56  ;;  %v4962_v40 = vadd.f32 %v4958_v63, %v4949_v39  ;;  %v5234_v56 = vadd.f32 %v5230_v8, %v5221_v53  ;;  %v5133_v33 = vadd.f32 %v5129_v7, %v5120_v41  ;;  %v5142_v63 = vmul.f32 %v11992_v26, %v11900_v1  ;;  %vm14920_vm14 = vmmov %vm14844_vm0 }
 0x4e8   : > { %v5243_v39 = vmul.f32 %v12048_v54, %v11898_v52 }
 0x4e9   : > { %v12183_v19 = vadd.f32 %v4971_v21, %v4962_v40  ;;  %v5256_v21 = vmul.f32 %v12057_v45, %v11900_v1 }
 0x4ee   : > { %v4799_v49 = vld [vmem:[#allocation3 + $0xc0] ss:$8 sm:$0xf0]  ;;  %v4815_v6 = vld [vmem:[#allocation3 + $0xc1] ss:$8 sm:$0xf0] }
 0x4ef   : > { %v4800_v24 = vor.u32 %v4799_v49, %v4798_v36  ;;  %v4816_v29 = vor.u32 %v4815_v6, %v4814_v35  ;;  %v4835_v14 = vld [vmem:[#allocation3 + $0xc2] ss:$8 sm:$0xf0]  ;;  %v4851_v31 = vld [vmem:[#allocation3 + $0xc3] ss:$8 sm:$0xf0]  ;;  %v5247_v35 = vadd.f32 %v5243_v39, %v5234_v56 }
 0x4f0   : > { %v4836_v53 = vor.u32 %v4835_v14, %v4834_v59  ;;  %v4852_v8 = vor.u32 %v4851_v31, %v4850_v43  ;;  %v4871_v0 = vld [vmem:[#allocation3 + $0xc4] ss:$8 sm:$0xf0]  ;;  %v4887_v16 = vld [vmem:[#allocation3 + $0xc5] ss:$8 sm:$0xf0] }
 0x4f1   : > { %v12191_v41 = vmax.f32 %v4800_v24, %v4816_v29  ;;  %v4872_v40 = vor.u32 %v4871_v0, %v4870_v55  ;;  %v4888_v49 = vor.u32 %v4887_v16, %v4886_v15  ;;  %v4907_v6 = vld [vmem:[#allocation3 + $0xc6] ss:$8 sm:$0xf0]  ;;  %v4923_v36 = vld [vmem:[#allocation3 + $0xc7] ss:$8 sm:$0xf0]  ;;  %v5260_v29 = vadd.f32 %v5256_v21, %v5247_v35 }
 0x4f2   : > { %v12193_v7 = vmax.f32 %v4836_v53, %v4852_v8  ;;  %v4908_v34 = vor.u32 %v4907_v6, %v4906_v28  ;;  %v4924_v47 = vor.u32 %v4923_v36, %v4922_v22  ;;  %v7348_v31 = vld [vmem:[%s14026_s7 + $0x48] sm:$0xf]  ;;  %v7573_v59 = vld [vmem:[%s14026_s7 + $0x54] sm:$0xf0]  ;;  %v5146_v28 = vadd.f32 %v5142_v63, %v5133_v33 }
 0x4f3   : > { %v12201_v43 = vmax.f32 %v4872_v40, %v4888_v49  ;;  %v4937_v24 = vmul.f32 %v11828_v38, %v12191_v41  ;;  %v5108_v16 = vmul.f32 %v11967_v62, %v12191_v41  ;;  %v5222_v0 = vmul.f32 %v12033_v48, %v12191_v41 }
 0x4f4   : > { %v12209_v22 = vmax.f32 %v4908_v34, %v4924_v47  ;;  %v4946_v15 = vmul.f32 %v11830_v37, %v12193_v7  ;;  %v5117_v55 = vmul.f32 %v11973_v23, %v12193_v7  ;;  %v5231_v56 = vmul.f32 %v12035_v4, %v12193_v7 }
 0x4f5   : > { %v4959_v38 = vmul.f32 %v11841_v11, %v12201_v43  ;;  %v7349_v62 = vor.u32 %v7573_v59, %v7348_v31  ;;  %v5130_v47 = vmul.f32 %v11975_v18, %v12201_v43  ;;  %v5244_v37 = vmul.f32 %v12048_v54, %v12201_v43  ;;  %v7326_v54 = vld [vmem:[%s14026_s7 + $0x30] sm:$0xf0] }
 0x4f6   : > { %v4950_v14 = vadd.f32 %v4946_v15, %v4937_v24  ;;  %v5121_v39 = vadd.f32 %v5117_v55, %v5108_v16  ;;  %v4972_v23 = vmul.f32 %v11869_v51, %v12209_v22  ;;  %v5235_v34 = vadd.f32 %v5231_v56, %v5222_v0  ;;  %v7566_v51 = vld [vmem:[%s14026_s7 + $0x24] sm:$0xf] }
 0x4f7   : > { %5738 = vmatpush.bf16.msrb.mxu3 %v7349_v62  ;;  %v4994_v48 = vmul.f32 %v11877_v42, %v12191_v41  ;;  %v5003_v11 = vmul.f32 %v11887_v12, %v12193_v7  ;;  %v5143_v63 = vmul.f32 %v11992_v26, %v12209_v22  ;;  %v5257_v18 = vmul.f32 %v12057_v45, %v12209_v22  ;;  %v7571_v42 = vld [vmem:[%s14026_s7 + $0x4c] sm:$0xf]  ;;  %v7350_v26 = vld [vmem:[%s14026_s7 + $0x58] sm:$0xf0] }
 0x4f8   : > { %v4963_v4 = vadd.f32 %v4959_v38, %v4950_v14  ;;  %v5134_v33 = vadd.f32 %v5130_v47, %v5121_v39  ;;  %v5248_v12 = vadd.f32 %v5244_v37, %v5235_v34  ;;  %v7329_v53 = vor.u32 %v7566_v51, %v7326_v54  ;;  %v7310_v37 = vld [vmem:[%s14026_s7 + $0x10] sm:$0xf0] }
 0x4f9   : > { %v5007_v8 = vadd.f32 %v5003_v11, %v4994_v48  ;;  %v5016_v45 = vmul.f32 %v11889_v58, %v12201_v43  ;;  %v5335_v21 = vmul.f32 %v12097_v5, %v11866_v9  ;;  %v7353_v6 = vor.u32 %v7571_v42, %v7350_v26  ;;  %v14892_v26 = vld [vmem:[#allocation52_spill] sm:$0xff] }
 0x4fa   : > { %v4976_v40 = vadd.f32 %v4972_v23, %v4963_v4  ;;  %v5147_v49 = vadd.f32 %v5143_v63, %v5134_v33  ;;  %v5344_v36 = vmul.f32 %v12099_v32, %v11879_v25  ;;  %v5261_v35 = vadd.f32 %v5257_v18, %v5248_v12  ;;  %5650 = vmatpush.bf16.msrb.mxu2 %v7329_v53  ;;  %v14891_v12 = vld [vmem:[#allocation51_spill] sm:$0xff] }
 0x4fb   : > { %v5020_v31 = vadd.f32 %v5016_v45, %v5007_v8  ;;  %v5029_v59 = vmul.f32 %v11914_v30, %v12209_v22  ;;  %v4984_v24 = vadd.f32 %v11875_v27, %v12183_v19  ;;  %v5155_v58 = vadd.f32 %v11998_v3, %v5146_v28  ;;  %5827 = vmatpush.bf16.msrb.mxu1 %v7353_v6  ;;  %v14893_v45 = vld [vmem:[#allocation17_spill] sm:$0xff] }
 0x4fc   : > { %v4985_v16 = vadd.f32 %v11875_v27, %v4976_v40  ;;  %v5156_v0 = vadd.f32 %v11998_v3, %v5147_v49  ;;  %v5269_v15 = vadd.f32 %v12063_v50, %v5260_v29  ;;  %v5270_v55 = vadd.f32 %v12063_v50, %v5261_v35  ;;  %v7332_v29 = vld [vmem:[%s14026_s7 + $0x28] sm:$0xf]  ;;  %v14894_v40 = vld [vmem:[#allocation16_spill] sm:$0xff] }
 0x4fd   : > { %v5033_v56 = vadd.f32 %v5029_v59, %v5020_v31  ;;  %v5348_v30 = vadd.f32 %v5344_v36, %v5335_v21  ;;  %v5051_v27 = vmul.f32 %v11926_v10, %v12191_v41  ;;  %v5357_v3 = vmul.f32 %v12112_v44, %v11898_v52 }
 0x4fe   : > { %v12260_v38 = vpack.c.bf16 %v4985_v16, %v4984_v24  ;;  %v12262_v62 = vpack.c.bf16 %v5156_v0, %v5155_v58  ;;  %v12264_v14 = vpack.c.bf16 %v5270_v55, %v5269_v15  ;;  %v5060_v50 = vmul.f32 %v11934_v46, %v12193_v7  ;;  %v7569_v46 = vld [vmem:[%s14026_s7 + $0x34] sm:$0xf0]  ;;  %v14896_v58 = vld [vmem:[#allocation15_spill] sm:$0xff]  ;;  %v14898_v16 = vld [vmem:[#allocation50_spill] sm:$0xff] }
 0x4ff   : > { %v5042_v19 = vadd.f32 %v11924_v61, %v5033_v56  ;;  %v5073_v28 = vmul.f32 %v11936_v60, %v12201_v43  ;;  %v5370_v61 = vmul.f32 %v12121_v2, %v11900_v1  ;;  %v7562_v60 = vld [vmem:[%s14026_s7 + $0x4] sm:$0xf]  ;;  %v5086_v39 = vmul.f32 %v11957_v13, %v12209_v22  ;;  %v14903_v55 = vld [vmem:[#allocation35_spill] sm:$0xff] }
 0x500   : > { %7371 = vmatmul.msk.bf16.vlgmr.msra.gmra.mxu1 %vm14888_vm15, %v12260_v38  ;;  %7377 = vmatmul.msk.bf16.gmra.mxu2 %vm14889_vm8, %v12262_v62  ;;  %v5336_v47 = vmul.f32 %v12097_v5, %v12191_v41  ;;  %v5064_v23 = vadd.f32 %v5060_v50, %v5051_v27  ;;  %v5345_v34 = vmul.f32 %v12099_v32, %v12193_v7  ;;  %vm14921_vm15 = vmmov %vm14844_vm0 }
 0x501   : > { %7381 = vmatmul.msk.bf16.vlgmr.msra.gmra.mxu3 %vm14890_vm12, %v12264_v14  ;;  %v12284_v10 = vpack.c.bf16 %v5042_v19, %v11947_v20  ;;  %v7333_v20 = vor.u32 %v7569_v46, %v7332_v29  ;;  %v5361_v48 = vadd.f32 %v5357_v3, %v5348_v30  ;;  %v7313_v11 = vor.u32 %v7562_v60, %v7310_v37  ;;  %v14905_v60 = vld [vmem:[#allocation132_spill] sm:$0xff]  ;;  %vm14922_vm8 = vmmov %vm14844_vm0 }
 0x502   : > { %v5077_v4 = vadd.f32 %v5073_v28, %v5064_v23  ;;  %v5349_v33 = vadd.f32 %v5345_v34, %v5336_v47  ;;  %v5358_v13 = vmul.f32 %v12112_v44, %v12201_v43  ;;  %v5371_v51 = vmul.f32 %v12121_v2, %v12209_v22  ;;  %v14895_v2 = vld [vmem:[#allocation34_spill] sm:$0xff]  ;;  %v7316_v34 = vld [vmem:[%s14026_s7 + $0x8] sm:$0xf]  ;;  %vm14923_vm12 = vmmov %vm14844_vm0 }
 0x503   : > { %5739 = vmatpush.bf16.msrb.mxu3 %v7333_v20  ;;  %v5374_v63 = vadd.f32 %v5370_v61, %v5361_v48  ;;  %5651 = vmatpush.bf16.msrb.mxu2 %v7313_v11  ;;  %v5165_v53 = vmul.f32 %v14891_v12, %v12191_v41  ;;  %v5174_v8 = vmul.f32 %v14892_v26, %v12193_v7  ;;  %v14904_v28 = vld [vmem:[#allocation62_spill] sm:$0xff]  ;;  %v7565_v48 = vld [vmem:[%s14026_s7 + $0x14] sm:$0xf0] }
 0x504   : > { %v5090_v5 = vadd.f32 %v5086_v39, %v5077_v4  ;;  %v5362_v18 = vadd.f32 %v5358_v13, %v5349_v33  ;;  %v5279_v49 = vmul.f32 %v14894_v40, %v12191_v41  ;;  %v5164_v36 = vmul.f32 %v14891_v12, %v11866_v9  ;;  %v7567_v41 = vld [vmem:[%s14026_s7 + $0x2c] sm:$0xf]  ;;  %v14911_v12 = vld [vmem:[#allocation44_spill] sm:$0xff] }
 0x505   : > { %v5383_v32 = vadd.f32 %v12127_v57, %v5374_v63  ;;  %v5173_v35 = vmul.f32 %v14892_v26, %v11879_v25  ;;  %v5178_v31 = vadd.f32 %v5174_v8, %v5165_v53  ;;  %v5278_v59 = vmul.f32 %v14894_v40, %v11866_v9  ;;  %v14900_v9 = vld [vmem:[#allocation57_spill] sm:$0xff]  ;;  %v14906_v33 = vld [vmem:[#allocation63_spill] sm:$0xff]  ;;  %v14913_v53 = vld [vmem:[#allocation70_spill] sm:$0xff] }
 0x506   : > { %v5099_v54 = vadd.f32 %v11965_v17, %v5090_v5  ;;  %v5375_v42 = vadd.f32 %v5371_v51, %v5362_v18  ;;  %v5288_v17 = vmul.f32 %v14895_v2, %v12193_v7  ;;  %v7334_v7 = vld [vmem:[%s14026_s7 + $0x38] sm:$0xf0]  ;;  %v5187_v0 = vmul.f32 %v14900_v9, %v12201_v43  ;;  %v14907_v13 = vld [vmem:[#allocation59_spill] sm:$0xff]  ;;  %v14915_v26 = vld [vmem:[#allocation104_spill] sm:$0xff] }
 0x507   : > { %v7337_v15 = vor.u32 %v7567_v41, %v7334_v7  ;;  %v5301_v56 = vmul.f32 %v14903_v55, %v12201_v43  ;;  %v5177_v30 = vadd.f32 %v5173_v35, %v5164_v36  ;;  %v5186_v50 = vmul.f32 %v14900_v9, %v11898_v52  ;;  %v14918_v8 = vld [vmem:[#allocation14_spill] sm:$0xff] }
 0x508   : > { %v12315_v44 = vpack.c.bf16 %v5099_v54, %v14893_v45  ;;  %v5384_v21 = vadd.f32 %v12127_v57, %v5375_v42  ;;  %v5287_v57 = vmul.f32 %v14895_v2, %v11879_v25  ;;  %v5292_v24 = vadd.f32 %v5288_v17, %v5279_v49  ;;  %v14901_v25 = vld [vmem:[#allocation65_spill] sm:$0xff]  ;;  %v7563_v54 = vld [vmem:[%s14026_s7 + $0xc] sm:$0xf]  ;;  %v14938_v7 = vld [vmem:[#allocation58_spill] sm:$0xff] }
 0x509   : > { %v5191_v19 = vadd.f32 %v5187_v0, %v5178_v31  ;;  %5828 = vmatpush.bf16.msrb.mxu1 %v7337_v15  ;;  %v5199_v61 = vmul.f32 %v14904_v28, %v11900_v1  ;;  %v5200_v29 = vmul.f32 %v14904_v28, %v12209_v22  ;;  %v5300_v46 = vmul.f32 %v14903_v55, %v11898_v52  ;;  %v7318_v42 = vld [vmem:[%s14026_s7 + $0x18] sm:$0xf0] }
 0x50a   : > { %v12322_v6 = vpack.c.bf16 %v5384_v21, %v5383_v32  ;;  %v5291_v27 = vadd.f32 %v5287_v57, %v5278_v59  ;;  %v5305_v3 = vadd.f32 %v5301_v56, %v5292_v24  ;;  %v5313_v43 = vmul.f32 %v14905_v60, %v11900_v1 }
 0x50b   : > { %v5314_v39 = vmul.f32 %v14905_v60, %v12209_v22  ;;  %v5190_v47 = vadd.f32 %v5186_v50, %v5177_v30  ;;  %v5204_v20 = vadd.f32 %v5200_v29, %v5191_v19  ;;  %v7317_v52 = vor.u32 %v7565_v48, %v7316_v34  ;;  %v5417_v50 = vld [vmem:[%s14027_s8] sm:$0xf] }
 0x50c   : > { %v5304_v37 = vadd.f32 %v5300_v46, %v5291_v27  ;;  %v7321_v32 = vor.u32 %v7563_v54, %v7318_v42  ;;  %v12497_v29 = vperm.slane %v5417_v50, 0  ;;  %v12503_v46 = vperm.slane %v5417_v50, 1 }
 0x50d   : > { %v5318_v23 = vadd.f32 %v5314_v39, %v5305_v3  ;;  %v5203_v11 = vadd.f32 %v5199_v61, %v5190_v47  ;;  %v5213_v1 = vadd.f32 %v14906_v33, %v5204_v20  ;;  %5740 = vmatpush.bf16.msrb.mxu3 %v7317_v52 }
 0x50e   : > { %v5317_v4 = vadd.f32 %v5313_v43, %v5304_v37  ;;  %5829 = vmatpush.bf16.msrb.mxu1 %v7321_v32 }
 0x50f   : > { %v5327_v22 = vadd.f32 %v14907_v13, %v5318_v23  ;;  %v5212_v63 = vadd.f32 %v14906_v33, %v5203_v11  ;;  %v12531_v33 = vperm.slane %v5417_v50, 3 }
 0x510   : > { %7372 = vmatmul.msk.bf16.gmra.mxu1 %vm14897_vm7, %v14896_v58  ;;  %7378 = vmatmul.msk.bf16.gmra.mxu2 %vm14899_vm11, %v14898_v16  ;;  %v5326_v5 = vadd.f32 %v14907_v13, %v5317_v4  ;;  %vm14924_vm7 = vmmov %vm14844_vm0  ;;  %v5564_v61 = vpop.f32.mrf.mxu0 }
 0x511   : > { %7382 = vmatmul.msk.bf16.gmra.mxu3 %vm14902_vm1, %v14901_v25  ;;  %v12370_v18 = vpack.c.bf16 %v5213_v1, %v5212_v63  ;;  %vm14925_vm11 = vmmov %vm14844_vm0  ;;  %v12508_v43 = vadd.f32 %v5564_v61, %v12497_v29  ;;  %v12537_v1 = vperm.slane %v5417_v50, 2 }
 0x512   : > { %v12372_v51 = vpack.c.bf16 %v5327_v22, %v5326_v5  ;;  %vm14926_vm1 = vmmov %vm14844_vm0 }
 0x518   : > { %v5566_v23 = vpop.f32.mrf.mxu0 }
 0x519   : > { %v12520_v48 = vadd.f32 %v5566_v23, %v12497_v29 }
 0x520   : > { %7373 = vmatmul.msk.bf16.gmra.mxu1 %vm14908_vm2, %v12284_v10  ;;  %7379 = vmatmul.msk.bf16.gmra.mxu2 %vm14909_vm4, %v12370_v18  ;;  %vm14927_vm2 = vmmov %vm14844_vm0 }
 0x521   : > { %7383 = vmatmul.msk.bf16.gmra.mxu3 %vm14910_vm5, %v12372_v51  ;;  %vm14928_vm4 = vmmov %vm14844_vm0 }
 0x522   : > { %vm14929_vm5 = vmmov %vm14844_vm0 }
 0x52e   : > { %v12414_v45 = vpop.f32.mrf.mxu2 }
 0x530   : > { %7374 = vmatmul.msk.bf16.gmra.mxu1 %vm14912_vm13, %v14911_v12  ;;  %7380 = vmatmul.msk.bf16.gmra.mxu2 %vm14914_vm3, %v14913_v53  ;;  %vm14930_vm13 = vmmov %vm14844_vm0 }
 0x531   : > { %7384 = vmatmul.msk.bf16.gmra.mxu3 %vm14916_vm10, %v14915_v26  ;;  %vm14931_vm3 = vmmov %vm14844_vm0 }
 0x532   : > { %vm14933_vm10 = vmmov %vm14844_vm0 }
 0x536   : > { %v12418_v21 = vpop.f32.mrf.mxu2 }
 0x540   : > { %7375 = vmatmul.msk.bf16.gmra.mxu1 %vm14917_vm9, %v12315_v44  ;;  %7386 = vmatmul.msk.bf16.vlgmr.msrb.gmra.mxu2 %vm14919_vm6, %v14918_v8  ;;  %vm14934_vm9 = vmmov %vm14844_vm0 }
 0x541   : > { %7385 = vmatmul.msk.bf16.gmra.mxu3 %vm14844_vm0, %v12322_v6  ;;  %vm14935_vm6 = vmmov %vm14844_vm0 }
 0x550   : > { %7387 = vmatmul.msk.bf16.gmra.mxu2 %vm14920_vm14, %v12260_v38  ;;  %7418 = vmatmul.msk.bf16.vlgmr.msrb.gmra.mxu1 %vm14921_vm15, %v14918_v8  ;;  %vm14939_vm14 = vmmov %vm14844_vm0 }
 0x551   : > { %7402 = vmatmul.msk.bf16.vlgmr.msrb.gmra.mxu3 %vm14922_vm8, %v14918_v8  ;;  %vm14940_vm15 = vmmov %vm14844_vm0 }
 0x552   : > { %vm14943_vm8 = vmmov %vm14844_vm0 }
 0x560   : > { %7388 = vmatmul.msk.bf16.gmra.mxu2 %vm14923_vm12, %v14896_v58  ;;  %7419 = vmatmul.msk.bf16.gmra.mxu1 %vm14924_vm7, %v12260_v38  ;;  %vm14944_vm12 = vmmov %vm14844_vm0 }
 0x561   : > { %7403 = vmatmul.msk.bf16.gmra.mxu3 %vm14925_vm11, %v12260_v38  ;;  %vm14945_vm7 = vmmov %vm14844_vm0 }
 0x562   : > { %vm14948_vm11 = vmmov %vm14844_vm0 }
 0x570   : > { %7389 = vmatmul.msk.bf16.gmra.mxu2 %vm14926_vm1, %v12284_v10  ;;  %7420 = vmatmul.msk.bf16.gmra.mxu1 %vm14927_vm2, %v14896_v58  ;;  %vm14949_vm1 = vmmov %vm14844_vm0 }
 0x571   : > { %7404 = vmatmul.msk.bf16.gmra.mxu3 %vm14928_vm4, %v14896_v58  ;;  %vm14950_vm2 = vmmov %vm14844_vm0 }
 0x572   : > { %vm14953_vm4 = vmmov %vm14844_vm0 }
 0x57d   : > { %v12420_v40 = vpop.f32.mrf.mxu1 }
 0x57e   : > { %v12541_v22 = vadd.f32 %v12420_v40, %v12497_v29 }
 0x580   : > { %7390 = vmatmul.msk.bf16.gmra.mxu2 %vm14929_vm5, %v14911_v12  ;;  %7421 = vmatmul.msk.bf16.gmra.mxu1 %vm14930_vm13, %v12284_v10  ;;  %vm14954_vm5 = vmmov %vm14844_vm0 }
 0x581   : > { %7405 = vmatmul.msk.bf16.gmra.mxu3 %vm14931_vm3, %v12284_v10  ;;  %vm14955_vm13 = vmmov %vm14844_vm0 }
 0x582   : > { %vm14956_vm3 = vmmov %vm14844_vm0 }
 0x583   : > { %v12428_v38 = vpop.f32.mrf.mxu2 }
 0x584   : > { %v12430_v49 = vpop.f32.mrf.mxu3 }
 0x585   : > { %v12432_v2 = vpop.f32.mrf.mxu1 }
 0x586   : > { %v12558_v40 = vadd.f32 %v12432_v2, %v12497_v29 }
 0x58b   : > { %v12434_v17 = vpop.f32.mrf.mxu2 }
 0x58c   : > { %v12436_v36 = vpop.f32.mrf.mxu3 }
 0x58d   : > { %14932 = vst [vmem:[#allocation66_spill] sm:$0xff] %v12436_v36  ;;  %v12438_v35 = vpop.f32.mrf.mxu1 }
 0x590   : > { %7391 = vmatmul.msk.bf16.gmra.mxu2 %vm14933_vm10, %v12315_v44  ;;  %7422 = vmatmul.msk.bf16.gmra.mxu1 %vm14934_vm9, %v14911_v12  ;;  %vm14957_vm10 = vmmov %vm14844_vm0 }
 0x591   : > { %7406 = vmatmul.msk.bf16.gmra.mxu3 %vm14935_vm6, %v14911_v12  ;;  %vm14958_vm9 = vmmov %vm14844_vm0 }
 0x592   : > { %vm14959_vm6 = vmmov %vm14844_vm0 }
 0x593   : > { %v12446_v10 = vpop.f32.mrf.mxu2 }
 0x594   : > { %v12448_v31 = vpop.f32.mrf.mxu3 }
 0x595   : > { %14936 = vst [vmem:[#allocation54_spill] sm:$0xff] %v12448_v31  ;;  %v12450_v59 = vpop.f32.mrf.mxu1 }
 0x59b   : > { %v12452_v57 = vpop.f32.mrf.mxu2 }
 0x59c   : > { %v12454_v24 = vpop.f32.mrf.mxu3 }
 0x59d   : > { %14937 = vst [vmem:[#allocation77_spill] sm:$0xff] %v12454_v24  ;;  %v12456_v41 = vpop.f32.mrf.mxu1 }
 0x5a0   : > { %7392 = vmatmul.msk.bf16.gmra.mxu2 %vm14844_vm0, %v14938_v7  ;;  %7423 = vmatmul.msk.bf16.gmra.mxu1 %vm14939_vm14, %v12315_v44  ;;  %vm14960_vm14 = vmmov %vm14844_vm0 }
 0x5a1   : > { %7407 = vmatmul.msk.bf16.gmra.mxu3 %vm14940_vm15, %v12315_v44  ;;  %vm14961_vm15 = vmmov %vm14844_vm0 }
 0x5a3   : > { %v12464_v58 = vpop.f32.mrf.mxu2 }
 0x5a4   : > { %v12466_v9 = vpop.f32.mrf.mxu3 }
 0x5a5   : > { %14941 = vst [vmem:[#allocation107_spill] sm:$0xff] %v12466_v9  ;;  %v12468_v0 = vpop.f32.mrf.mxu1 }
 0x5ab   : > { %v12470_v15 = vpop.f32.mrf.mxu2 }
 0x5ac   : > { %v12472_v55 = vpop.f32.mrf.mxu3 }
 0x5ad   : > { %14942 = vst [vmem:[#allocation80_spill] sm:$0xff] %v12472_v55  ;;  %v12474_v56 = vpop.f32.mrf.mxu1 }
 0x5b0   : > { %7393 = vmatmul.msk.bf16.gmra.mxu2 %vm14943_vm8, %v12262_v62  ;;  %7424 = vmatmul.msk.bf16.gmra.mxu1 %vm14944_vm12, %v14938_v7  ;;  %vm14962_vm8 = vmmov %vm14844_vm0 }
 0x5b1   : > { %7408 = vmatmul.msk.bf16.gmra.mxu3 %vm14945_vm7, %v14938_v7  ;;  %vm14963_vm12 = vmmov %vm14844_vm0 }
 0x5b2   : > { %vm14968_vm7 = vmmov %vm14844_vm0 }
 0x5b3   : > { %v12482_v44 = vpop.f32.mrf.mxu2 }
 0x5b4   : > { %v12484_v30 = vpop.f32.mrf.mxu3 }
 0x5b5   : > { %14946 = vst [vmem:[#allocation64_spill] sm:$0xff] %v12484_v30  ;;  %v12486_v19 = vpop.f32.mrf.mxu1 }
 0x5bb   : > { %v12488_v27 = vpop.f32.mrf.mxu2 }
 0x5bc   : > { %v12490_v3 = vpop.f32.mrf.mxu3 }
 0x5bd   : > { %14947 = vst [vmem:[#allocation47_spill] sm:$0xff] %v12490_v3  ;;  %v12495_v28 = vpop.f32.mrf.mxu1 }
 0x5c0   : > { %7394 = vmatmul.msk.bf16.gmra.mxu2 %vm14948_vm11, %v14898_v16  ;;  %7425 = vmatmul.msk.bf16.gmra.mxu1 %vm14949_vm1, %v12262_v62  ;;  %vm14969_vm11 = vmmov %vm14844_vm0 }
 0x5c1   : > { %7409 = vmatmul.msk.bf16.gmra.mxu3 %vm14950_vm2, %v12262_v62  ;;  %vm14970_vm1 = vmmov %vm14844_vm0 }
 0x5c2   : > { %vm14976_vm2 = vmmov %vm14844_vm0 }
 0x5c3   : > { %v5653_v60 = vpop.f32.mrf.mxu2 }
 0x5c4   : > { %v12510_v39 = vpop.f32.mrf.mxu3  ;;  %v12513_v47 = vadd.f32 %v5653_v60, %v12503_v46 }
 0x5c5   : > { %14951 = vst [vmem:[#allocation79_spill] sm:$0xff] %v12510_v39  ;;  %v12515_v20 = vpop.f32.mrf.mxu1 }
 0x5c6   : > { %v5911_v37 = vmax.f32 %v12508_v43, %v12513_v47 }
 0x5c8   : > { %5912 = vmax.xlane.f32.xlu2 %v5911_v37 }
 0x5cb   : > { %v5655_v34 = vpop.f32.mrf.mxu2 }
 0x5cc   : > { %v12522_v62 = vpop.f32.mrf.mxu3  ;;  %v12525_v11 = vadd.f32 %v5655_v34, %v12503_v46 }
 0x5cd   : > { %14952 = vst [vmem:[#allocation43_spill] sm:$0xff] %v12522_v62  ;;  %v5831_v52 = vpop.f32.mrf.mxu1 }
 0x5ce   : > { %v5914_v4 = vmax.f32 %v12520_v48, %v12525_v11  ;;  %v12547_v54 = vadd.f32 %v5831_v52, %v12531_v33  ;;  %v12581_v52 = vadd.f32 %v12438_v35, %v12497_v29 }
 0x5d0   : > { %5915 = vmax.xlane.f32.xlu0 %v5914_v4  ;;  %7395 = vmatmul.msk.bf16.gmra.mxu2 %vm14953_vm4, %v12370_v18  ;;  %vm14977_vm4 = vmmov %vm14844_vm0 }
 0x5d1   : > { %7410 = vmatmul.msk.bf16.gmra.mxu3 %vm14954_vm5, %v14898_v16  ;;  %7426 = vmatmul.msk.bf16.gmra.mxu1 %vm14955_vm13, %v14898_v16  ;;  %vm14978_vm5 = vmmov %vm14844_vm0 }
 0x5d2   : > { %vm14984_vm13 = vmmov %vm14844_vm0 }
 0x5d3   : > { %v5658_v13 = vpop.f32.mrf.mxu2 }
 0x5d4   : > { %v12544_v63 = vadd.f32 %v5658_v13, %v12503_v46  ;;  %v5742_v5 = vpop.f32.mrf.mxu3 }
 0x5d5   : > { %v12550_v42 = vadd.f32 %v5742_v5, %v12537_v1  ;;  %v5833_v32 = vpop.f32.mrf.mxu1 }
 0x5d6   : > { %v5917_v16 = vmax.f32 %v12541_v22, %v12544_v63  ;;  %v12564_v61 = vadd.f32 %v5833_v32, %v12531_v33 }
 0x5d7   : > { %v6423_v12 = vmax.f32 %v12550_v42, %v12547_v54 }
 0x5d8   : > { %5918 = vmax.xlane.f32.xlu1 %v5917_v16 }
 0x5d9   : > { %6424 = vmax.xlane.f32.xlu2 %v6423_v12 }
 0x5db   : > { %v5660_v8 = vpop.f32.mrf.mxu2 }
 0x5dc   : > { %v12561_v7 = vadd.f32 %v5660_v8, %v12503_v46  ;;  %v5744_v50 = vpop.f32.mrf.mxu3  ;;  %v12598_v8 = vadd.f32 %v12450_v59, %v12497_v29 }
 0x5dd   : > { %v12567_v60 = vadd.f32 %v5744_v50, %v12537_v1  ;;  %v5836_v37 = vpop.f32.mrf.mxu1 }
 0x5de   : > { %v5920_v23 = vmax.f32 %v12558_v40, %v12561_v7  ;;  %v12587_v5 = vadd.f32 %v5836_v37, %v12531_v33 }
 0x5df   : > { %v6426_v34 = vmax.f32 %v12567_v60, %v12564_v61 }
 0x5e0   : > { %7396 = vmatmul.msk.bf16.gmra.mxu2 %vm14956_vm3, %v14913_v53  ;;  %vm14985_vm3 = vmmov %vm14844_vm0 }
 0x5e1   : > { %7411 = vmatmul.msk.bf16.gmra.mxu3 %vm14957_vm10, %v12370_v18  ;;  %7427 = vmatmul.msk.bf16.gmra.mxu1 %vm14958_vm9, %v12370_v18  ;;  %vm14986_vm10 = vmmov %vm14844_vm0 }
 0x5e2   : > { %6427 = vmax.xlane.f32.xlu0 %v6426_v34  ;;  %5921 = vmax.xlane.f32.xlu2 %v5920_v23  ;;  %vm14994_vm9 = vmmov %vm14844_vm0 }
 0x5e3   : > { %v5663_v2 = vpop.f32.mrf.mxu2 }
 0x5e4   : > { %v12584_v4 = vadd.f32 %v5663_v2, %v12503_v46  ;;  %v5747_v13 = vpop.f32.mrf.mxu3 }
 0x5e5   : > { %v12590_v32 = vadd.f32 %v5747_v13, %v12537_v1  ;;  %v5838_v16 = vpop.f32.mrf.mxu1 }
 0x5e6   : > { %v5923_v18 = vmax.f32 %v12581_v52, %v12584_v4  ;;  %v12604_v23 = vadd.f32 %v5838_v16, %v12531_v33  ;;  %v12621_v16 = vadd.f32 %v12456_v41, %v12497_v29 }
 0x5e7   : > { %v6429_v12 = vmax.f32 %v12590_v32, %v12587_v5 }
 0x5e9   : > { %6430 = vmax.xlane.f32.xlu1 %v6429_v12 }
 0x5ea   : > { %5924 = vmax.xlane.f32.xlu2 %v5923_v18 }
 0x5eb   : > { %v5665_v35 = vpop.f32.mrf.mxu2 }
 0x5ec   : > { %v12601_v50 = vadd.f32 %v5665_v35, %v12503_v46  ;;  %v5749_v37 = vpop.f32.mrf.mxu3 }
 0x5ed   : > { %v12607_v34 = vadd.f32 %v5749_v37, %v12537_v1  ;;  %v5841_v2 = vpop.f32.mrf.mxu1 }
 0x5ee   : > { %v5926_v13 = vmax.f32 %v12598_v8, %v12601_v50  ;;  %v12627_v37 = vadd.f32 %v5841_v2, %v12531_v33 }
 0x5ef   : > { %v6432_v18 = vmax.f32 %v12607_v34, %v12604_v23 }
 0x5f0   : > { %7397 = vmatmul.msk.bf16.gmra.mxu2 %vm14959_vm6, %v12264_v14  ;;  %5927 = vmax.xlane.f32.xlu0 %v5926_v13  ;;  %vm14995_vm6 = vmmov %vm14844_vm0 }
 0x5f1   : > { %7412 = vmatmul.msk.bf16.gmra.mxu3 %vm14844_vm0, %v14913_v53  ;;  %7428 = vmatmul.msk.bf16.gmra.mxu1 %vm14960_vm14, %v14913_v53 }
 0x5f2   : > { %6433 = vmax.xlane.f32.xlu2 %v6432_v18 }
 0x5f3   : > { %v5668_v59 = vpop.f32.mrf.mxu2 }
 0x5f4   : > { %v12624_v12 = vadd.f32 %v5668_v59, %v12503_v46  ;;  %v5752_v35 = vpop.f32.mrf.mxu3  ;;  %v12638_v59 = vadd.f32 %v12468_v0, %v12497_v29 }
 0x5f5   : > { %v12630_v13 = vadd.f32 %v5752_v35, %v12537_v1  ;;  %v5843_v62 = vpop.f32.mrf.mxu1 }
 0x5f6   : > { %v5929_v53 = vmax.f32 %v12621_v16, %v12624_v12  ;;  %v12644_v35 = vadd.f32 %v5843_v62, %v12531_v33 }
 0x5f7   : > { %v6435_v18 = vmax.f32 %v12630_v13, %v12627_v37 }
 0x5f8   : > { %5930 = vmax.xlane.f32.xlu1 %v5929_v53 }
 0x5f9   : > { %6436 = vmax.xlane.f32.xlu0 %v6435_v18 }
 0x5fb   : > { %v5670_v41 = vpop.f32.mrf.mxu2 }
 0x5fc   : > { %v12641_v2 = vadd.f32 %v5670_v41, %v12503_v46  ;;  %v5754_v39 = vpop.f32.mrf.mxu3 }
 0x5fd   : > { %v12647_v3 = vadd.f32 %v5754_v39, %v12537_v1  ;;  %v5846_v30 = vpop.f32.mrf.mxu1  ;;  %v12661_v39 = vadd.f32 %v12474_v56, %v12497_v29 }
 0x5fe   : > { %v5932_v53 = vmax.f32 %v12638_v59, %v12641_v2  ;;  %v12667_v55 = vadd.f32 %v5846_v30, %v12531_v33 }
 0x5ff   : > { %v6438_v18 = vmax.f32 %v12647_v3, %v12644_v35 }
 0x600   : > { %7398 = vmatmul.msk.bf16.gmra.mxu2 %vm14961_vm15, %v14901_v25  ;;  %5933 = vmax.xlane.f32.xlu2 %v5932_v53 }
 0x601   : > { %7413 = vmatmul.msk.bf16.gmra.mxu3 %vm14962_vm8, %v12264_v14  ;;  %7429 = vmatmul.msk.bf16.gmra.mxu1 %vm14963_vm12, %v12264_v14 }
 0x602   : > { %6439 = vmax.xlane.f32.xlu1 %v6438_v18 }
 0x603   : > { %v5673_v0 = vpop.f32.mrf.mxu2 }
 0x604   : > { %v12664_v62 = vadd.f32 %v5673_v0, %v12503_v46  ;;  %v5757_v41 = vpop.f32.mrf.mxu3  ;;  %v12678_v0 = vadd.f32 %v12486_v19, %v12497_v29 }
 0x605   : > { %v12670_v53 = vadd.f32 %v5757_v41, %v12537_v1  ;;  %v5848_v9 = vpop.f32.mrf.mxu1 }
 0x606   : > { %v5935_v14 = vmax.f32 %v12661_v39, %v12664_v62  ;;  %14964 = vst [vmem:[#allocation56_spill] sm:$0xff] %v12678_v0  ;;  %v12684_v41 = vadd.f32 %v5848_v9, %v12531_v33  ;;  %v12701_v9 = vadd.f32 %v12495_v28, %v12497_v29 }
 0x607   : > { %v6441_v18 = vmax.f32 %v12670_v53, %v12667_v55 }
 0x608   : > { %5936 = vmax.xlane.f32.xlu0 %v5935_v14  ;;  %14966 = vst [vmem:[#allocation82_spill] sm:$0xff] %v12684_v41 }
 0x609   : > { %6442 = vmax.xlane.f32.xlu2 %v6441_v18 }
 0x60b   : > { %v5675_v56 = vpop.f32.mrf.mxu2 }
 0x60c   : > { %v12681_v30 = vadd.f32 %v5675_v56, %v12503_v46  ;;  %v5759_v24 = vpop.f32.mrf.mxu3 }
 0x60d   : > { %v12687_v31 = vadd.f32 %v5759_v24, %v12537_v1  ;;  %v5851_v36 = vpop.f32.mrf.mxu1 }
 0x60e   : > { %14965 = vst [vmem:[#allocation55_spill] sm:$0xff] %v12681_v30  ;;  %v5938_v14 = vmax.f32 %v12678_v0, %v12681_v30 }
 0x60f   : > { %14967 = vst [vmem:[#allocation115_spill] sm:$0xff] %v12687_v31  ;;  %v6444_v18 = vmax.f32 %v12687_v31, %v12684_v41  ;;  %v12707_v41 = vadd.f32 %v5851_v36, %v12531_v33 }
 0x610   : > { %7399 = vmatmul.msk.bf16.gmra.mxu2 %vm14968_vm7, %v12372_v51  ;;  %5939 = vmax.xlane.f32.xlu1 %v5938_v14 }
 0x611   : > { %7414 = vmatmul.msk.bf16.gmra.mxu3 %vm14969_vm11, %v14901_v25  ;;  %7430 = vmatmul.msk.bf16.gmra.mxu1 %vm14970_vm1, %v14901_v25 }
 0x612   : > { %6445 = vmax.xlane.f32.xlu0 %v6444_v18 }
 0x613   : > { %v5678_v24 = vpop.f32.mrf.mxu2 }
 0x614   : > { %v12704_v19 = vadd.f32 %v5678_v24, %v12503_v46  ;;  %v5762_v56 = vpop.f32.mrf.mxu3  ;;  %v12718_v24 = vadd.f32 %v12515_v20, %v12497_v29  ;;  %v12741_v20 = vadd.f32 %v12414_v45, %v12497_v29 }
 0x615   : > { %v12710_v14 = vadd.f32 %v5762_v56, %v12537_v1  ;;  %v5853_v31 = vpop.f32.mrf.mxu1 }
 0x616   : > { %14971 = vst [vmem:[#allocation72_spill] sm:$0xff] %v12704_v19  ;;  %v5941_v25 = vmax.f32 %v12701_v9, %v12704_v19  ;;  %v12724_v56 = vadd.f32 %v5853_v31, %v12531_v33 }
 0x617   : > { %v6447_v18 = vmax.f32 %v12710_v14, %v12707_v41  ;;  %14972 = vst [vmem:[#allocation30_spill] sm:$0xff] %v12718_v24 }
 0x618   : > { %5942 = vmax.xlane.f32.xlu2 %v5941_v25  ;;  %14974 = vst [vmem:[#allocation71_spill] sm:$0xff] %v12724_v56 }
 0x619   : > { %6448 = vmax.xlane.f32.xlu1 %v6447_v18 }
 0x61b   : > { %v5680_v28 = vpop.f32.mrf.mxu2 }
 0x61c   : > { %v12721_v36 = vadd.f32 %v5680_v28, %v12503_v46  ;;  %v5764_v30 = vpop.f32.mrf.mxu3 }
 0x61d   : > { %v12727_v0 = vadd.f32 %v5764_v30, %v12537_v1  ;;  %v5856_v19 = vpop.f32.mrf.mxu1 }
 0x61e   : > { %14973 = vst [vmem:[#allocation48_spill] sm:$0xff] %v12721_v36  ;;  %v5944_v25 = vmax.f32 %v12718_v24, %v12721_v36 }
 0x61f   : > { %14975 = vst [vmem:[#allocation33_spill] sm:$0xff] %v12727_v0  ;;  %v6450_v18 = vmax.f32 %v12727_v0, %v12724_v56  ;;  %v12747_v56 = vadd.f32 %v5856_v19, %v12531_v33 }
 0x620   : > { %7400 = vmatmul.msk.bf16.gmra.mxu2 %vm14976_vm2, %v14915_v26  ;;  %5945 = vmax.xlane.f32.xlu0 %v5944_v25 }
 0x621   : > { %7415 = vmatmul.msk.bf16.gmra.mxu3 %vm14977_vm4, %v12372_v51  ;;  %7431 = vmatmul.msk.bf16.gmra.mxu1 %vm14978_vm5, %v12372_v51 }
 0x622   : > { %6451 = vmax.xlane.f32.xlu2 %v6450_v18 }
 0x623   : > { %v5683_v31 = vpop.f32.mrf.mxu2 }
 0x624   : > { %v12744_v30 = vadd.f32 %v5683_v31, %v12503_v46  ;;  %v5767_v28 = vpop.f32.mrf.mxu3  ;;  %v12758_v31 = vadd.f32 %v12418_v21, %v12497_v29 }
 0x625   : > { %v12750_v25 = vadd.f32 %v5767_v28, %v12537_v1  ;;  %v5858_v0 = vpop.f32.mrf.mxu1 }
 0x626   : > { %14979 = vst [vmem:[#allocation119_spill] sm:$0xff] %v12744_v30  ;;  %v5947_v51 = vmax.f32 %v12741_v20, %v12744_v30  ;;  %v12764_v28 = vadd.f32 %v5858_v0, %v12531_v33  ;;  %v12781_v0 = vadd.f32 %v12428_v38, %v12497_v29 }
 0x627   : > { %v6453_v18 = vmax.f32 %v12750_v25, %v12747_v56  ;;  %14980 = vst [vmem:[#allocation67_spill] sm:$0xff] %v12758_v31 }
 0x628   : > { %5948 = vmax.xlane.f32.xlu1 %v5947_v51  ;;  %14982 = vst [vmem:[#allocation118_spill] sm:$0xff] %v12764_v28 }
 0x629   : > { %6454 = vmax.xlane.f32.xlu0 %v6453_v18 }
 0x62b   : > { %v5685_v45 = vpop.f32.mrf.mxu2 }
 0x62c   : > { %v12761_v19 = vadd.f32 %v5685_v45, %v12503_v46  ;;  %v5769_v36 = vpop.f32.mrf.mxu3 }
 0x62d   : > { %v12767_v24 = vadd.f32 %v5769_v36, %v12537_v1  ;;  %v5861_v30 = vpop.f32.mrf.mxu1 }
 0x62e   : > { %14981 = vst [vmem:[#allocation75_spill] sm:$0xff] %v12761_v19  ;;  %v5950_v51 = vmax.f32 %v12758_v31, %v12761_v19 }
 0x62f   : > { %14983 = vst [vmem:[#allocation89_spill] sm:$0xff] %v12767_v24  ;;  %v6456_v18 = vmax.f32 %v12767_v24, %v12764_v28  ;;  %v12787_v28 = vadd.f32 %v5861_v30, %v12531_v33 }
 0x630   : > { %7401 = vmatmul.msk.bf16.gmra.mxu2 %vm14984_vm13, %v12322_v6  ;;  %5951 = vmax.xlane.f32.xlu2 %v5950_v51 }
 0x631   : > { %7416 = vmatmul.msk.bf16.gmra.mxu3 %vm14985_vm3, %v14915_v26  ;;  %7432 = vmatmul.msk.bf16.gmra.mxu1 %vm14986_vm10, %v14915_v26  ;;  %14988 = vst [vmem:[#allocation36_spill] sm:$0xff] %v12787_v28 }
 0x632   : > { %6457 = vmax.xlane.f32.xlu1 %v6456_v18 }
 0x633   : > { %v5688_v21 = vpop.f32.mrf.mxu2 }
 0x634   : > { %v12784_v36 = vadd.f32 %v5688_v21, %v12503_v46  ;;  %v5772_v45 = vpop.f32.mrf.mxu3  ;;  %v12798_v21 = vadd.f32 %v12434_v17, %v12497_v29 }
 0x635   : > { %v12790_v51 = vadd.f32 %v5772_v45, %v12537_v1  ;;  %v5863_v24 = vpop.f32.mrf.mxu1 }
 0x636   : > { %14987 = vst [vmem:[#allocation18_spill] sm:$0xff] %v12784_v36  ;;  %v5953_v26 = vmax.f32 %v12781_v0, %v12784_v36 }
 0x637   : > { %14989 = vst [vmem:[#allocation61_spill] sm:$0xff] %v12790_v51  ;;  %v6459_v18 = vmax.f32 %v12790_v51, %v12787_v28  ;;  %v12810_v28 = vadd.f32 %v5863_v24, %v12531_v33 }
 0x638   : > { %5954 = vmax.xlane.f32.xlu0 %v5953_v26  ;;  %14990 = vst [vmem:[#allocation73_spill] sm:$0xff] %v12798_v21 }
 0x639   : > { %6460 = vmax.xlane.f32.xlu2 %v6459_v18  ;;  %14992 = vst [vmem:[#allocation121_spill] sm:$0xff] %v12810_v28 }
 0x63b   : > { %v5913_v38 = vpop.xlane.xlu2 %5912  ;;  %v5690_v19 = vpop.f32.mrf.mxu2 }
 0x63c   : > { %v12801_v30 = vsub.f32 %v12508_v43, %v5913_v38  ;;  %v12804_v45 = vsub.f32 %v12513_v47, %v5913_v38  ;;  %v12807_v31 = vadd.f32 %v5690_v19, %v12503_v46  ;;  %v5774_v36 = vpop.f32.mrf.mxu3 }
 0x63d   : > { %v12813_v26 = vadd.f32 %v5774_v36, %v12537_v1  ;;  %v5866_v51 = vpop.f32.mrf.mxu1  ;;  %v12827_v36 = vadd.f32 %v12446_v10, %v12497_v29 }
 0x63e   : > { %14991 = vst [vmem:[#allocation42_spill] sm:$0xff] %v12807_v31  ;;  %v6071_v18 = vmul.f32 1.442695, %v12801_v30  ;;  %v6073_v17 = vmul.f32 1.442695, %v12804_v45  ;;  %v5956_v43 = vmax.f32 %v12798_v21, %v12807_v31  ;;  %v12852_v21 = vadd.f32 %v12452_v57, %v12497_v29 }
 0x63f   : > { %14993 = vst [vmem:[#allocation20_spill] sm:$0xff] %v12813_v26  ;;  %v6462_v47 = vmax.f32 %v12813_v26, %v12810_v28  ;;  %v12839_v28 = vadd.f32 %v5866_v51, %v12531_v33 }
 0x640   : > { %7918 = vpow2.f32 %v6071_v18  ;;  %5957 = vmax.xlane.f32.xlu1 %v5956_v43  ;;  %14996 = vst [vmem:[#allocation92_spill] sm:$0xff] %v12827_v36 }
 0x641   : > { %7920 = vpow2.f32 %v6073_v17  ;;  %7417 = vmatmul.msk.bf16.gmra.mxu3 %vm14994_vm9, %v12322_v6  ;;  %7433 = vmatmul.msk.bf16.gmra.mxu1 %vm14995_vm6, %v12322_v6  ;;  %14999 = vst [vmem:[#allocation91_spill] sm:$0xff] %v12839_v28 }
 0x642   : > { %6463 = vmax.xlane.f32.xlu0 %v6462_v47  ;;  %15000 = vst [vmem:[#allocation110_spill] sm:$0xff] %v12852_v21 }
 0x643   : > { %v5916_v24 = vpop.xlane.xlu0 %5915  ;;  %v5693_v19 = vpop.f32.mrf.mxu2 }
 0x644   : > { %v12830_v38 = vsub.f32 %v12520_v48, %v5916_v24  ;;  %v12833_v18 = vsub.f32 %v12525_v11, %v5916_v24  ;;  %v12836_v17 = vadd.f32 %v5693_v19, %v12503_v46  ;;  %v5777_v43 = vpop.f32.mrf.mxu3 }
 0x645   : > { %v12842_v6 = vadd.f32 %v5777_v43, %v12537_v1  ;;  %v5868_v19 = vpop.f32.mrf.mxu1 }
 0x646   : > { %14997 = vst [vmem:[#allocation37_spill] sm:$0xff] %v12833_v18  ;;  %v7919_v47 = vpop.eup %7918  ;;  %v6075_v10 = vmul.f32 1.442695, %v12830_v38  ;;  %v6077_v26 = vmul.f32 1.442695, %v12833_v18  ;;  %v5959_v48 = vmax.f32 %v12827_v36, %v12836_v17 }
 0x647   : > { %14998 = vst [vmem:[#allocation68_spill] sm:$0xff] %v12836_v17  ;;  %v7921_v11 = vpop.eup %7920  ;;  %v6465_v24 = vmax.f32 %v12842_v6, %v12839_v28 }
 0x648   : > { %7922 = vpow2.f32 %v6075_v10  ;;  %5960 = vmax.xlane.f32.xlu2 %v5959_v48  ;;  %v6199_v51 = vadd.f32 %v7921_v11, %v7919_v47 }
 0x649   : > { %7924 = vpow2.f32 %v6077_v26  ;;  %6466 = vmax.xlane.f32.xlu1 %v6465_v24  ;;  %v12864_v26 = vadd.f32 %v5868_v19, %v12531_v33 }
 0x64a   : > { %6200 = vadd.xlane.f32.xlu0 %v6199_v51 }
 0x64b   : > { %v5695_v43 = vpop.f32.mrf.mxu2  ;;  %v5919_v31 = vpop.xlane.xlu1 %5918  ;;  %15002 = vst [vmem:[#allocation108_spill] sm:$0xff] %v12864_v26 }
 0x64c   : > { %v12855_v18 = vadd.f32 %v5695_v43, %v12503_v46  ;;  %v5779_v17 = vpop.f32.mrf.mxu3  ;;  %v6425_v36 = vpop.xlane.xlu2 %6424  ;;  %v12858_v28 = vsub.f32 %v12541_v22, %v5919_v31  ;;  %v12861_v10 = vsub.f32 %v12544_v63, %v5919_v31 }
 0x64d   : > { %v12867_v47 = vadd.f32 %v5779_v17, %v12537_v1  ;;  %v12872_v11 = vsub.f32 %v12550_v42, %v6425_v36  ;;  %v12878_v31 = vsub.f32 %v12547_v54, %v6425_v36 }
 0x64e   : > { %15001 = vst [vmem:[#allocation38_spill] sm:$0xff] %v12855_v18  ;;  %v7923_v48 = vpop.eup %7922  ;;  %v5962_v57 = vmax.f32 %v12852_v21, %v12855_v18  ;;  %v6079_v24 = vmul.f32 1.442695, %v12858_v28  ;;  %v6081_v19 = vmul.f32 1.442695, %v12861_v10  ;;  %v5871_v43 = vpop.f32.mrf.mxu1  ;;  %v12885_v21 = vadd.f32 %v12464_v58, %v12497_v29 }
 0x64f   : > { %v7925_v22 = vpop.eup %7924  ;;  %v6468_v63 = vmax.f32 %v12867_v47, %v12864_v26  ;;  %v6583_v51 = vmul.f32 1.442695, %v12872_v11  ;;  %v6585_v42 = vmul.f32 1.442695, %v12878_v31 }
 0x650   : > { %v6202_v17 = vadd.f32 %v7925_v22, %v7923_v48  ;;  %7926 = vpow2.f32 %v6079_v24  ;;  %15003 = vst [vmem:[#allocation74_spill] sm:$0xff] %v12885_v21  ;;  %v12891_v48 = vadd.f32 %v5871_v43, %v12531_v33 }
 0x651   : > { %6469 = vmax.xlane.f32.xlu2 %v6468_v63  ;;  %7928 = vpow2.f32 %v6081_v19 }
 0x652   : > { %5963 = vmax.xlane.f32.xlu0 %v5962_v57  ;;  %6203 = vadd.xlane.f32.xlu1 %v6202_v17  ;;  %15005 = vst [vmem:[#allocation113_spill] sm:$0xff] %v12891_v48  ;;  %7930 = vpow2.f32 %v6583_v51 }
 0x653   : > { %v5698_v18 = vpop.f32.mrf.mxu2  ;;  %7932 = vpow2.f32 %v6585_v42 }
 0x654   : > { %v12888_v54 = vadd.f32 %v5698_v18, %v12503_v46  ;;  %v5782_v36 = vpop.f32.mrf.mxu3 }
 0x655   : > { %v12894_v24 = vadd.f32 %v5782_v36, %v12537_v1  ;;  %v6428_v57 = vpop.xlane.xlu0 %6427  ;;  %v5922_v22 = vpop.xlane.xlu2 %5921 }
 0x656   : > { %15004 = vst [vmem:[#allocation49_spill] sm:$0xff] %v12888_v54  ;;  %v5965_v63 = vmax.f32 %v12885_v21, %v12888_v54  ;;  %v12899_v19 = vsub.f32 %v12558_v40, %v5922_v22  ;;  %v7927_v58 = vpop.eup %7926  ;;  %v12904_v17 = vsub.f32 %v12561_v7, %v5922_v22  ;;  %v12907_v43 = vsub.f32 %v12567_v60, %v6428_v57 }
 0x657   : > { %v6471_v18 = vmax.f32 %v12894_v24, %v12891_v48  ;;  %v7929_v51 = vpop.eup %7928  ;;  %v12911_v26 = vsub.f32 %v12564_v61, %v6428_v57  ;;  %v12921_v57 = vadd.f32 %v12470_v15, %v12497_v29 }
 0x658   : > { %v6083_v36 = vmul.f32 1.442695, %v12899_v19  ;;  %v6085_v40 = vmul.f32 1.442695, %v12904_v17  ;;  %v6205_v42 = vadd.f32 %v7929_v51, %v7927_v58  ;;  %v7931_v21 = vpop.eup %7930  ;;  %v6587_v48 = vmul.f32 1.442695, %v12907_v43 }
 0x659   : > { %15006 = vst [vmem:[#allocation94_spill] sm:$0xff] %v12911_v26  ;;  %v7933_v60 = vpop.eup %7932  ;;  %v6589_v22 = vmul.f32 1.442695, %v12911_v26 }
 0x65a   : > { %6472 = vmax.xlane.f32.xlu0 %v6471_v18  ;;  %5966 = vmax.xlane.f32.xlu1 %v5965_v63  ;;  %7934 = vpow2.f32 %v6083_v36  ;;  %v6711_v51 = vadd.f32 %v7933_v60, %v7931_v21 }
 0x65b   : > { %v5700_v54 = vpop.f32.mrf.mxu2  ;;  %6206 = vadd.xlane.f32.xlu2 %v6205_v42  ;;  %7936 = vpow2.f32 %v6085_v40  ;;  %v5873_v42 = vpop.f32.mrf.mxu1 }
 0x65c   : > { %v12916_v7 = vadd.f32 %v5700_v54, %v12503_v46  ;;  %v6431_v18 = vpop.xlane.xlu1 %6430  ;;  %7938 = vpow2.f32 %v6587_v48  ;;  %v5784_v36 = vpop.f32.mrf.mxu3 }
 0x65d   : > { %v5925_v61 = vpop.xlane.xlu2 %5924  ;;  %7940 = vpow2.f32 %v6589_v22  ;;  %v12933_v15 = vsub.f32 %v12590_v32, %v6431_v18 }
 0x65e   : > { %15007 = vst [vmem:[#allocation41_spill] sm:$0xff] %v12916_v7  ;;  %v12924_v63 = vsub.f32 %v12581_v52, %v5925_v61  ;;  %v12927_v58 = vsub.f32 %v12584_v4, %v5925_v61  ;;  %v5968_v54 = vmax.f32 %v12921_v57, %v12916_v7  ;;  %v12937_v61 = vsub.f32 %v12587_v5, %v6431_v18 }
 0x65f   : > { %15009 = vst [vmem:[#allocation84_spill] sm:$0xff] %v12933_v15  ;;  %v12940_v7 = vadd.f32 %v5784_v36, %v12537_v1  ;;  %v6591_v32 = vmul.f32 1.442695, %v12933_v15  ;;  %v12952_v36 = vadd.f32 %v12482_v44, %v12497_v29 }
 0x660   : > { %15008 = vst [vmem:[#allocation40_spill] sm:$0xff] %v12924_v63  ;;  %v7935_v40 = vpop.eup %7934  ;;  %v6087_v26 = vmul.f32 1.442695, %v12924_v63  ;;  %v6089_v4 = vmul.f32 1.442695, %v12927_v58  ;;  %v12943_v63 = vadd.f32 %v5873_v42, %v12531_v33 }
 0x661   : > { %v7937_v52 = vpop.eup %7936  ;;  %15010 = vst [vmem:[#allocation127_spill] sm:$0xff] %v12937_v61  ;;  %v6593_v18 = vmul.f32 1.442695, %v12937_v61 }
 0x662   : > { %6712 = vadd.xlane.f32.xlu1 %v6711_v51  ;;  %v6208_v21 = vadd.f32 %v7937_v52, %v7935_v40  ;;  %v7939_v22 = vpop.eup %7938  ;;  %7942 = vpow2.f32 %v6087_v26 }
 0x663   : > { %v5703_v48 = vpop.f32.mrf.mxu2  ;;  %5969 = vmax.xlane.f32.xlu2 %v5968_v54  ;;  %v5928_v60 = vpop.xlane.xlu0 %5927  ;;  %7944 = vpow2.f32 %v6089_v4  ;;  %v6474_v54 = vmax.f32 %v12940_v7, %v12943_v63 }
 0x664   : > { %6209 = vadd.xlane.f32.xlu0 %v6208_v21  ;;  %v12947_v51 = vadd.f32 %v5703_v48, %v12503_v46  ;;  %v7941_v5 = vpop.eup %7940  ;;  %v12957_v40 = vsub.f32 %v12598_v8, %v5928_v60  ;;  %v12960_v26 = vsub.f32 %v12601_v50, %v5928_v60  ;;  %7946 = vpow2.f32 %v6591_v32  ;;  %v5787_v52 = vpop.f32.mrf.mxu3 }
 0x665   : > { %v6714_v4 = vadd.f32 %v7941_v5, %v7939_v22  ;;  %7948 = vpow2.f32 %v6593_v18  ;;  %v6434_v48 = vpop.xlane.xlu2 %6433  ;;  %v5876_v21 = vpop.f32.mrf.mxu1  ;;  %v12967_v50 = vadd.f32 %v5787_v52, %v12537_v1 }
 0x666   : > { %15011 = vst [vmem:[#allocation46_spill] sm:$0xff] %v12960_v26  ;;  %v5971_v42 = vmax.f32 %v12952_v36, %v12947_v51  ;;  %v6091_v61 = vmul.f32 1.442695, %v12957_v40  ;;  %v6093_v8 = vmul.f32 1.442695, %v12960_v26  ;;  %v12970_v60 = vsub.f32 %v12607_v34, %v6434_v48 }
 0x667   : > { %v12973_v32 = vsub.f32 %v12604_v23, %v6434_v48  ;;  %v12976_v18 = vadd.f32 %v5876_v21, %v12531_v33 }
 0x668   : > { %v7943_v44 = vpop.eup %7942  ;;  %15012 = vst [vmem:[#allocation19_spill] sm:$0xff] %v12970_v60  ;;  %7950 = vpow2.f32 %v6091_v61  ;;  %v6595_v34 = vmul.f32 1.442695, %v12970_v60  ;;  %v12993_v60 = vadd.f32 %v12488_v27, %v12497_v29 }
 0x669   : > { %v7945_v15 = vpop.eup %7944  ;;  %15013 = vst [vmem:[#allocation32_spill] sm:$0xff] %v12973_v32  ;;  %7952 = vpow2.f32 %v6093_v8  ;;  %v6477_v52 = vmax.f32 %v12967_v50, %v12976_v18  ;;  %v6597_v23 = vmul.f32 1.442695, %v12973_v32 }
 0x66a   : > { %6475 = vmax.xlane.f32.xlu1 %v6474_v54  ;;  %v7947_v5 = vpop.eup %7946  ;;  %v6211_v54 = vadd.f32 %v7945_v15, %v7943_v44  ;;  %7954 = vpow2.f32 %v6595_v34 }
 0x66b   : > { %6715 = vadd.xlane.f32.xlu2 %v6714_v4  ;;  %v5931_v22 = vpop.xlane.xlu1 %5930  ;;  %v7949_v4 = vpop.eup %7948  ;;  %7956 = vpow2.f32 %v6597_v23 }
 0x66c   : > { %5972 = vmax.xlane.f32.xlu0 %v5971_v42  ;;  %v5705_v26 = vpop.f32.mrf.mxu2  ;;  %v12982_v42 = vsub.f32 %v12621_v16, %v5931_v22  ;;  %v12986_v48 = vsub.f32 %v12624_v12, %v5931_v22  ;;  %v5789_v15 = vpop.f32.mrf.mxu3  ;;  %v6717_v44 = vadd.f32 %v7949_v4, %v7947_v5 }
 0x66d   : > { %v12989_v61 = vadd.f32 %v5705_v26, %v12503_v46  ;;  %v6437_v21 = vpop.xlane.xlu0 %6436  ;;  %v5878_v16 = vpop.f32.mrf.mxu1  ;;  %v13000_v22 = vadd.f32 %v5789_v15, %v12537_v1 }
 0x66e   : > { %15014 = vst [vmem:[#allocation129_spill] sm:$0xff] %v12982_v42  ;;  %v7951_v8 = vpop.eup %7950  ;;  %v6097_v12 = vmul.f32 1.442695, %v12986_v48  ;;  %v13003_v5 = vsub.f32 %v12630_v13, %v6437_v21  ;;  %v13006_v27 = vsub.f32 %v12627_v37, %v6437_v21  ;;  %v13009_v4 = vadd.f32 %v5878_v16, %v12531_v33 }
 0x66f   : > { %15015 = vst [vmem:[#allocation76_spill] sm:$0xff] %v12986_v48  ;;  %v7953_v32 = vpop.eup %7952  ;;  %v5974_v26 = vmax.f32 %v12993_v60, %v12989_v61 }
 0x670   : > { %15016 = vst [vmem:[#allocation53_spill] sm:$0xff] %v13003_v5  ;;  %v6480_v15 = vmax.f32 %v13000_v22, %v13009_v4  ;;  %v6599_v48 = vmul.f32 1.442695, %v13003_v5  ;;  %v6601_v37 = vmul.f32 1.442695, %v13006_v27 }
 0x671   : > { %15017 = vst [vmem:[#allocation87_spill] sm:$0xff] %v13006_v27 }
 0x672   : > { %6212 = vadd.xlane.f32.xlu1 %v6211_v54  ;;  %v6095_v54 = vmul.f32 1.442695, %v12982_v42 }
 0x673   : > { %6478 = vmax.xlane.f32.xlu2 %v6477_v52  ;;  %v6214_v52 = vadd.f32 %v7953_v32, %v7951_v8  ;;  %v5934_v23 = vpop.xlane.xlu2 %5933 }
 0x674   : > { %6718 = vadd.xlane.f32.xlu0 %v6717_v44  ;;  %7958 = vpow2.f32 %v6095_v54  ;;  %v5708_v34 = vpop.f32.mrf.mxu2  ;;  %v7955_v44 = vpop.eup %7954  ;;  %v13019_v54 = vsub.f32 %v12638_v59, %v5934_v23  ;;  %v13022_v32 = vsub.f32 %v12641_v2, %v5934_v23 }
 0x675   : > { %7960 = vpow2.f32 %v6097_v12  ;;  %v7957_v13 = vpop.eup %7956  ;;  %v13016_v21 = vadd.f32 %v5708_v34, %v12503_v46  ;;  %v5792_v16 = vpop.f32.mrf.mxu3 }
 0x676   : > { %15018 = vst [vmem:[#allocation99_spill] sm:$0xff] %v13019_v54  ;;  %v6440_v8 = vpop.xlane.xlu1 %6439  ;;  %7962 = vpow2.f32 %v6599_v48  ;;  %v6720_v27 = vadd.f32 %v7957_v13, %v7955_v44  ;;  %v6099_v59 = vmul.f32 1.442695, %v13019_v54  ;;  %v6101_v2 = vmul.f32 1.442695, %v13022_v32  ;;  %v15030_v54 = vld [vmem:[#allocation56_spill] sm:$0xff] }
 0x677   : > { %15019 = vst [vmem:[#allocation29_spill] sm:$0xff] %v13022_v32  ;;  %7964 = vpow2.f32 %v6601_v37  ;;  %v13036_v23 = vsub.f32 %v12644_v35, %v6440_v8 }
 0x678   : > { %7966 = vpow2.f32 %v6099_v59 }
 0x679   : > { %15021 = vst [vmem:[#allocation105_spill] sm:$0xff] %v13036_v23  ;;  %7968 = vpow2.f32 %v6101_v2  ;;  %v6605_v35 = vmul.f32 1.442695, %v13036_v23 }
 0x67a   : > { %5975 = vmax.xlane.f32.xlu1 %v5974_v26  ;;  %v7959_v12 = vpop.eup %7958  ;;  %v13026_v26 = vadd.f32 %v12430_v49, %v12497_v29  ;;  %v13039_v49 = vadd.f32 %v5792_v16, %v12537_v1 }
 0x67b   : > { %6215 = vadd.xlane.f32.xlu2 %v6214_v52  ;;  %v5881_v52 = vpop.f32.mrf.mxu1  ;;  %v7961_v5 = vpop.eup %7960 }
 0x67c   : > { %6481 = vmax.xlane.f32.xlu0 %v6480_v15  ;;  %v5977_v34 = vmax.f32 %v13026_v26, %v13016_v21  ;;  %v13032_v15 = vsub.f32 %v12647_v3, %v6440_v8  ;;  %v6217_v48 = vadd.f32 %v7961_v5, %v7959_v12  ;;  %v5710_v44 = vpop.f32.mrf.mxu2  ;;  %v5937_v13 = vpop.xlane.xlu0 %5936  ;;  %v13042_v42 = vadd.f32 %v5881_v52, %v12531_v33 }
 0x67d   : > { %v7963_v37 = vpop.eup %7962  ;;  %v13049_v8 = vadd.f32 %v5710_v44, %v12503_v46  ;;  %v5794_v5 = vpop.f32.mrf.mxu3  ;;  %v13052_v12 = vsub.f32 %v12661_v39, %v5937_v13  ;;  %v13055_v52 = vsub.f32 %v12664_v62, %v5937_v13 }
 0x67e   : > { %15020 = vst [vmem:[#allocation130_spill] sm:$0xff] %v13032_v15  ;;  %v6603_v3 = vmul.f32 1.442695, %v13032_v15  ;;  %v6483_v16 = vmax.f32 %v13039_v49, %v13042_v42  ;;  %v6443_v23 = vpop.xlane.xlu2 %6442  ;;  %v13066_v13 = vadd.f32 %v5794_v5, %v12537_v1 }
 0x67f   : > { %15022 = vst [vmem:[#allocation101_spill] sm:$0xff] %v13049_v8  ;;  %v6103_v39 = vmul.f32 1.442695, %v13052_v12  ;;  %v6105_v62 = vmul.f32 1.442695, %v13055_v52 }
 0x680   : > { %15023 = vst [vmem:[#allocation21_spill] sm:$0xff] %v13052_v12  ;;  %7970 = vpow2.f32 %v6603_v3  ;;  %v13069_v3 = vsub.f32 %v12670_v53, %v6443_v23 }
 0x681   : > { %15024 = vst [vmem:[#allocation124_spill] sm:$0xff] %v13055_v52  ;;  %7972 = vpow2.f32 %v6605_v35 }
 0x682   : > { %6721 = vadd.xlane.f32.xlu1 %v6720_v27  ;;  %v7965_v27 = vpop.eup %7964  ;;  %15026 = vst [vmem:[#allocation100_spill] sm:$0xff] %v13066_v13  ;;  %7974 = vpow2.f32 %v6103_v39  ;;  %v6607_v53 = vmul.f32 1.442695, %v13069_v3 }
 0x683   : > { %5978 = vmax.xlane.f32.xlu2 %v5977_v34  ;;  %v15025_v34 = vld [vmem:[#allocation66_spill] sm:$0xff]  ;;  %v5883_v2 = vpop.f32.mrf.mxu1  ;;  %v7967_v15 = vpop.eup %7966  ;;  %15027 = vst [vmem:[#allocation111_spill] sm:$0xff] %v13069_v3  ;;  %7976 = vpow2.f32 %v6105_v62 }
 0x684   : > { %6218 = vadd.xlane.f32.xlu0 %v6217_v48  ;;  %v13059_v59 = vadd.f32 %v15025_v34, %v12497_v29  ;;  %v6723_v48 = vadd.f32 %v7965_v27, %v7963_v37  ;;  %v7969_v32 = vpop.eup %7968  ;;  %v13072_v37 = vsub.f32 %v12667_v55, %v6443_v23  ;;  %v5940_v27 = vpop.xlane.xlu1 %5939  ;;  %7978 = vpow2.f32 %v6607_v53 }
 0x685   : > { %v6220_v34 = vadd.f32 %v7969_v32, %v7967_v15  ;;  %v5713_v52 = vpop.f32.mrf.mxu2  ;;  %v6446_v12 = vpop.xlane.xlu0 %6445  ;;  %v13081_v55 = vsub.f32 %v15030_v54, %v5940_v27 }
 0x686   : > { %v5980_v44 = vmax.f32 %v13059_v59, %v13049_v8  ;;  %15028 = vst [vmem:[#allocation83_spill] sm:$0xff] %v13072_v37  ;;  %v7971_v35 = vpop.eup %7970  ;;  %v6609_v23 = vmul.f32 1.442695, %v13072_v37  ;;  %v13088_v15 = vadd.f32 %v5713_v52, %v12503_v46 }
 0x687   : > { %15031 = vst [vmem:[#allocation85_spill] sm:$0xff] %v13081_v55  ;;  %v6107_v54 = vmul.f32 1.442695, %v13081_v55 }
 0x688   : > { %15034 = vst [vmem:[#allocation69_spill] sm:$0xff] %v13088_v15  ;;  %7980 = vpow2.f32 %v6609_v23 }
 0x689   : > { %7982 = vpow2.f32 %v6107_v54 }
 0x68a   : > { %6484 = vmax.xlane.f32.xlu1 %v6483_v16  ;;  %v13075_v16 = vadd.f32 %v5883_v2, %v12531_v33  ;;  %v15032_v2 = vld [vmem:[#allocation55_spill] sm:$0xff] }
 0x68b   : > { %6724 = vadd.xlane.f32.xlu2 %v6723_v48  ;;  %v7973_v48 = vpop.eup %7972  ;;  %v13085_v8 = vsub.f32 %v15032_v2, %v5940_v27  ;;  %v5886_v32 = vpop.f32.mrf.mxu1 }
 0x68c   : > { %5981 = vmax.xlane.f32.xlu0 %v5980_v44  ;;  %15029 = vst [vmem:[#allocation60_spill] sm:$0xff] %v13075_v16  ;;  %v6486_v5 = vmax.f32 %v13066_v13, %v13075_v16  ;;  %v5797_v44 = vpop.f32.mrf.mxu3  ;;  %v6726_v39 = vadd.f32 %v7973_v48, %v7971_v35  ;;  %v7975_v62 = vpop.eup %7974  ;;  %v15035_v16 = vld [vmem:[#allocation54_spill] sm:$0xff]  ;;  %v15038_v35 = vld [vmem:[#allocation115_spill] sm:$0xff] }
 0x68d   : > { %15033 = vst [vmem:[#allocation112_spill] sm:$0xff] %v13085_v8  ;;  %v13092_v3 = vadd.f32 %v15035_v16, %v12497_v29  ;;  %v6109_v27 = vmul.f32 1.442695, %v13085_v8  ;;  %v5943_v2 = vpop.xlane.xlu2 %5942  ;;  %v13102_v48 = vsub.f32 %v15038_v35, %v6446_v12  ;;  %v15040_v16 = vld [vmem:[#allocation82_spill] sm:$0xff]  ;;  %v6449_v53 = vpop.xlane.xlu1 %6448 }
 0x68e   : > { %v13105_v37 = vsub.f32 %v15040_v16, %v6446_v12  ;;  %v5715_v8 = vpop.f32.mrf.mxu2  ;;  %v13118_v54 = vsub.f32 %v12701_v9, %v5943_v2 }
 0x68f   : > { %15036 = vst [vmem:[#allocation122_spill] sm:$0xff] %v13092_v3  ;;  %v5983_v52 = vmax.f32 %v13092_v3, %v13088_v15  ;;  %7984 = vpow2.f32 %v6109_v27  ;;  %v6611_v35 = vmul.f32 1.442695, %v13102_v48 }
 0x690   : > { %15039 = vst [vmem:[#allocation114_spill] sm:$0xff] %v13102_v48  ;;  %v6613_v16 = vmul.f32 1.442695, %v13105_v37  ;;  %v6111_v9 = vmul.f32 1.442695, %v13118_v54 }
 0x691   : > { %15041 = vst [vmem:[#allocation86_spill] sm:$0xff] %v13105_v37  ;;  %7986 = vpow2.f32 %v6611_v35 }
 0x692   : > { %6221 = vadd.xlane.f32.xlu1 %v6220_v34  ;;  %v7977_v34 = vpop.eup %7976  ;;  %15044 = vst [vmem:[#allocation95_spill] sm:$0xff] %v13118_v54  ;;  %7988 = vpow2.f32 %v6613_v16 }
 0x693   : > { %6487 = vmax.xlane.f32.xlu2 %v6486_v5  ;;  %v13099_v5 = vadd.f32 %v5797_v44, %v12537_v1  ;;  %v5946_v55 = vpop.xlane.xlu0 %5945  ;;  %v6223_v23 = vadd.f32 %v7977_v34, %v7975_v62  ;;  %v7979_v15 = vpop.eup %7978  ;;  %v15045_v62 = vld [vmem:[#allocation72_spill] sm:$0xff]  ;;  %7990 = vpow2.f32 %v6111_v9 }
 0x694   : > { %6727 = vadd.xlane.f32.xlu0 %v6726_v39  ;;  %v13108_v39 = vadd.f32 %v5886_v32, %v12531_v33  ;;  %v5799_v3 = vpop.f32.mrf.mxu3  ;;  %v7981_v12 = vpop.eup %7980  ;;  %v13115_v32 = vadd.f32 %v5715_v8, %v12503_v46  ;;  %v13121_v34 = vsub.f32 %v15045_v62, %v5943_v2  ;;  %v13135_v62 = vsub.f32 %v12707_v41, %v6449_v53 }
 0x695   : > { %15037 = vst [vmem:[#allocation78_spill] sm:$0xff] %v13099_v5  ;;  %v5888_v13 = vpop.f32.mrf.mxu1  ;;  %v7983_v27 = vpop.eup %7982 }
 0x696   : > { %15042 = vst [vmem:[#allocation109_spill] sm:$0xff] %v13108_v39  ;;  %v6489_v44 = vmax.f32 %v13099_v5, %v13108_v39  ;;  %v7985_v39 = vpop.eup %7984  ;;  %v6452_v37 = vpop.xlane.xlu2 %6451  ;;  %v6113_v2 = vmul.f32 1.442695, %v13121_v34  ;;  %v13143_v54 = vadd.f32 %v5888_v13, %v12531_v33  ;;  %v6617_v41 = vmul.f32 1.442695, %v13135_v62  ;;  %v15056_v13 = vld [vmem:[#allocation48_spill] sm:$0xff] }
 0x697   : > { %15043 = vst [vmem:[#allocation23_spill] sm:$0xff] %v13115_v32  ;;  %v5718_v16 = vpop.f32.mrf.mxu2  ;;  %v13156_v9 = vsub.f32 %v15056_v13, %v5946_v55 }
 0x698   : > { %15046 = vst [vmem:[#allocation125_spill] sm:$0xff] %v13121_v34  ;;  %7992 = vpow2.f32 %v6113_v2 }
 0x699   : > { %15050 = vst [vmem:[#allocation88_spill] sm:$0xff] %v13135_v62 }
 0x69a   : > { %5984 = vmax.xlane.f32.xlu1 %v5983_v52  ;;  %v15047_v52 = vld [vmem:[#allocation77_spill] sm:$0xff]  ;;  %15052 = vst [vmem:[#allocation126_spill] sm:$0xff] %v13143_v54 }
 0x69b   : > { %6224 = vadd.xlane.f32.xlu2 %v6223_v23  ;;  %v13125_v48 = vadd.f32 %v15047_v52, %v12497_v29  ;;  %v6729_v23 = vadd.f32 %v7981_v12, %v7979_v15  ;;  %v5949_v5 = vpop.xlane.xlu1 %5948  ;;  %v13140_v15 = vadd.f32 %v5799_v3, %v12537_v1  ;;  %v6226_v12 = vadd.f32 %v7985_v39, %v7983_v27  ;;  %v7987_v52 = vpop.eup %7986  ;;  %v15054_v27 = vld [vmem:[#allocation30_spill] sm:$0xff] }
 0x69c   : > { %6490 = vmax.xlane.f32.xlu0 %v6489_v44  ;;  %v13131_v44 = vsub.f32 %v12710_v14, %v6449_v53  ;;  %v13137_v35 = vpop.xlane.xlu0 %6454  ;;  %v7989_v34 = vpop.eup %7988  ;;  %v13150_v39 = vadd.f32 %v5718_v16, %v12503_v46  ;;  %15057 = vst [vmem:[#allocation24_spill] sm:$0xff] %v13156_v9 }
 0x69d   : > { %15048 = vst [vmem:[#allocation106_spill] sm:$0xff] %v13125_v48  ;;  %v5986_v8 = vmax.f32 %v13125_v48, %v13115_v32  ;;  %v6492_v3 = vmax.f32 %v13140_v15, %v13143_v54  ;;  %v5891_v53 = vpop.f32.mrf.mxu1  ;;  %v6732_v62 = vadd.f32 %v7989_v34, %v7987_v52  ;;  %v6117_v32 = vmul.f32 1.442695, %v13156_v9  ;;  %v15062_v52 = vld [vmem:[#allocation71_spill] sm:$0xff] }
 0x69e   : > { %15049 = vst [vmem:[#allocation31_spill] sm:$0xff] %v13131_v44  ;;  %v6615_v14 = vmul.f32 1.442695, %v13131_v44 }
 0x69f   : > { %15051 = vst [vmem:[#allocation22_spill] sm:$0xff] %v13140_v15  ;;  %v7991_v15 = vpop.eup %7990 }
 0x6a0   : > { %15053 = vst [vmem:[#allocation81_spill] sm:$0xff] %v13150_v39  ;;  %7994 = vpow2.f32 %v6615_v14  ;;  %v7993_v13 = vpop.eup %7992  ;;  %v15060_v14 = vld [vmem:[#allocation33_spill] sm:$0xff] }
 0x6a1   : > { %7996 = vpow2.f32 %v6617_v41  ;;  %v13176_v34 = vsub.f32 %v15060_v14, %v6452_v37  ;;  %v13179_v41 = vsub.f32 %v15062_v52, %v6452_v37  ;;  %v15066_v52 = vld [vmem:[#allocation119_spill] sm:$0xff] }
 0x6a2   : > { %6730 = vadd.xlane.f32.xlu1 %v6729_v23  ;;  %v5802_v23 = vpop.f32.mrf.mxu3 }
 0x6a3   : > { %5987 = vmax.xlane.f32.xlu2 %v5986_v8  ;;  %v13153_v8 = vsub.f32 %v15054_v27, %v5946_v55  ;;  %v13158_v44 = vpop.xlane.xlu2 %5951  ;;  %15061 = vst [vmem:[#allocation117_spill] sm:$0xff] %v13176_v34  ;;  %v6619_v14 = vmul.f32 1.442695, %v13176_v34  ;;  %v6621_v37 = vmul.f32 1.442695, %v13179_v41 }
 0x6a4   : > { %6227 = vadd.xlane.f32.xlu0 %v6226_v12  ;;  %v15058_v12 = vld [vmem:[#allocation107_spill] sm:$0xff]  ;;  %15063 = vst [vmem:[#allocation96_spill] sm:$0xff] %v13179_v41 }
 0x6a5   : > { %15055 = vst [vmem:[#allocation116_spill] sm:$0xff] %v13153_v8  ;;  %v13162_v2 = vadd.f32 %v15058_v12, %v12497_v29  ;;  %v13164_v54 = vpop.xlane.xlu1 %6457  ;;  %v6115_v55 = vmul.f32 1.442695, %v13153_v8  ;;  %v13173_v12 = vadd.f32 %v5802_v23, %v12537_v1  ;;  %v6229_v8 = vadd.f32 %v7993_v13, %v7991_v15  ;;  %v5893_v9 = vpop.f32.mrf.mxu1 }
 0x6a6   : > { %v7995_v48 = vpop.eup %7994 }
 0x6a7   : > { %15059 = vst [vmem:[#allocation26_spill] sm:$0xff] %v13162_v2  ;;  %v5989_v27 = vmax.f32 %v13162_v2, %v13150_v39  ;;  %v13182_v39 = vadd.f32 %v5891_v53, %v12531_v33  ;;  %7998 = vpow2.f32 %v6115_v55  ;;  %v7997_v2 = vpop.eup %7996  ;;  %v13192_v53 = vsub.f32 %v15066_v52, %v5949_v5 }
 0x6a8   : > { %8000 = vpow2.f32 %v6117_v32  ;;  %v6735_v13 = vadd.f32 %v7997_v2, %v7995_v48  ;;  %v13216_v2 = vsub.f32 %v12750_v25, %v13137_v35 }
 0x6a9   : > { %15064 = vst [vmem:[#allocation131_spill] sm:$0xff] %v13182_v39  ;;  %v6495_v23 = vmax.f32 %v13173_v12, %v13182_v39  ;;  %8002 = vpow2.f32 %v6619_v14  ;;  %v6121_v41 = vmul.f32 1.442695, %v13192_v53 }
 0x6aa   : > { %6493 = vmax.xlane.f32.xlu1 %v6492_v3  ;;  %v5720_v3 = vpop.f32.mrf.mxu2  ;;  %15067 = vst [vmem:[#allocation45_spill] sm:$0xff] %v13192_v53  ;;  %8004 = vpow2.f32 %v6621_v37 }
 0x6ab   : > { %v13166_v16 = vpop.xlane.xlu0 %5954  ;;  %6733 = vadd.xlane.f32.xlu2 %v6732_v62  ;;  %v5804_v62 = vpop.f32.mrf.mxu3  ;;  %v13199_v32 = vadd.f32 %v5720_v3, %v12503_v46  ;;  %15072 = vst [vmem:[#allocation25_spill] sm:$0xff] %v13216_v2 }
 0x6ac   : > { %5990 = vmax.xlane.f32.xlu0 %v5989_v27  ;;  %v13188_v27 = vsub.f32 %v12741_v20, %v5949_v5  ;;  %v13194_v55 = vpop.xlane.xlu2 %6460  ;;  %v15069_v20 = vld [vmem:[#allocation80_spill] sm:$0xff]  ;;  %v13212_v48 = vadd.f32 %v5804_v62, %v12537_v1 }
 0x6ad   : > { %15068 = vst [vmem:[#allocation97_spill] sm:$0xff] %v13199_v32  ;;  %v7999_v39 = vpop.eup %7998 }
 0x6ae   : > { %15065 = vst [vmem:[#allocation90_spill] sm:$0xff] %v13188_v27  ;;  %v6119_v5 = vmul.f32 1.442695, %v13188_v27  ;;  %v8001_v52 = vpop.eup %8000  ;;  %v6623_v27 = vmul.f32 1.442695, %v13216_v2 }
 0x6af   : > { %15071 = vst [vmem:[#allocation98_spill] sm:$0xff] %v13212_v48  ;;  %v8003_v62 = vpop.eup %8002 }
 0x6b0   : > { %8006 = vpow2.f32 %v6119_v5  ;;  %v8005_v5 = vpop.eup %8004 }
 0x6b1   : > { %8008 = vpow2.f32 %v6121_v41  ;;  %v5896_v41 = vpop.f32.mrf.mxu1 }
 0x6b2   : > { %6230 = vadd.xlane.f32.xlu1 %v6229_v8  ;;  %v13205_v8 = vadd.f32 %v15069_v20, %v12497_v29  ;;  %v5723_v14 = vpop.f32.mrf.mxu2  ;;  %v6232_v20 = vadd.f32 %v8001_v52, %v7999_v39  ;;  %v15077_v52 = vld [vmem:[#allocation75_spill] sm:$0xff] }
 0x6b3   : > { %v13196_v15 = vpop.xlane.xlu1 %5957  ;;  %6496 = vmax.xlane.f32.xlu2 %v6495_v23  ;;  %v13220_v23 = vsub.f32 %v12747_v56, %v13137_v35  ;;  %v5807_v37 = vpop.f32.mrf.mxu3  ;;  %v15075_v56 = vld [vmem:[#allocation67_spill] sm:$0xff] }
 0x6b4   : > { %15070 = vst [vmem:[#allocation120_spill] sm:$0xff] %v13205_v8  ;;  %6736 = vadd.xlane.f32.xlu0 %v6735_v13  ;;  %v5992_v3 = vmax.f32 %v13205_v8, %v13199_v32  ;;  %v13223_v13 = vadd.f32 %v5893_v9, %v12531_v33  ;;  %v13232_v35 = vsub.f32 %v15075_v56, %v13158_v44  ;;  %v15080_v56 = vld [vmem:[#allocation64_spill] sm:$0xff] }
 0x6b5   : > { %v13201_v34 = vpop.xlane.xlu0 %6463  ;;  %15073 = vst [vmem:[#allocation102_spill] sm:$0xff] %v13220_v23  ;;  %v6625_v39 = vmul.f32 1.442695, %v13220_v23  ;;  %v6738_v23 = vadd.f32 %v8005_v5, %v8003_v62  ;;  %v13265_v62 = vadd.f32 %v5807_v37, %v12537_v1 }
 0x6b6   : > { %15074 = vst [vmem:[#allocation123_spill] sm:$0xff] %v13223_v13  ;;  %v6498_v25 = vmax.f32 %v13212_v48, %v13223_v13  ;;  %v13242_v13 = vadd.f32 %v5723_v14, %v12503_v46  ;;  %v8007_v2 = vpop.eup %8006  ;;  %v6123_v48 = vmul.f32 1.442695, %v13232_v35 }
 0x6b7   : > { %15076 = vst [vmem:[#allocation27_spill] sm:$0xff] %v13232_v35 }
 0x6b8   : > { %15079 = vst [vmem:[#allocation93_spill] sm:$0xff] %v13242_v13 }
 0x6ba   : > { %5993 = vmax.xlane.f32.xlu1 %v5992_v3  ;;  %v13239_v3 = vsub.f32 %v15077_v52, %v13158_v44  ;;  %v8009_v44 = vpop.eup %8008  ;;  %v5725_v35 = vpop.f32.mrf.mxu2 }
 0x6bb   : > { %v13225_v53 = vpop.xlane.xlu2 %5960  ;;  %6233 = vadd.xlane.f32.xlu2 %v6232_v20  ;;  %v13246_v20 = vadd.f32 %v15080_v56, %v12497_v29  ;;  %v5809_v5 = vpop.f32.mrf.mxu3 }
 0x6bc   : > { %v13234_v9 = vpop.xlane.xlu1 %6466  ;;  %15078 = vst [vmem:[#allocation103_spill] sm:$0xff] %v13239_v3  ;;  %6499 = vmax.xlane.f32.xlu0 %v6498_v25  ;;  %v6125_v52 = vmul.f32 1.442695, %v13239_v3 }
 0x6bd   : > { %v6201_v32 = vpop.xlane.xlu0 %6200  ;;  %15081 = vst [vmem:[#allocation28_spill] sm:$0xff] %v13246_v20  ;;  %v5995_v14 = vmax.f32 %v13246_v20, %v13242_v13 }
 0x6be   : > { %8010 = vlog2.f32 %v6201_v32  ;;  %v15082_v32 = vld [vmem:[#allocation89_spill] sm:$0xff] }
 0x6bf   : > { %8012 = vpow2.f32 %v6623_v27  ;;  %v13257_v25 = vsub.f32 %v15082_v32, %v13164_v54  ;;  %v15084_v27 = vld [vmem:[#allocation118_spill] sm:$0xff] }
 0x6c0   : > { %8014 = vpow2.f32 %v6625_v39  ;;  %v13261_v56 = vsub.f32 %v15084_v27, %v13164_v54  ;;  %v6235_v39 = vadd.f32 %v8009_v44, %v8007_v2  ;;  %v13272_v27 = vadd.f32 %v5896_v41, %v12531_v33  ;;  %v5898_v2 = vpop.f32.mrf.mxu1 }
 0x6c1   : > { %15083 = vst [vmem:[#allocation128_spill] sm:$0xff] %v13257_v25  ;;  %8016 = vpow2.f32 %v6123_v48  ;;  %v6627_v20 = vmul.f32 1.442695, %v13257_v25  ;;  %v13278_v44 = vsub.f32 %v12781_v0, %v13166_v16  ;;  %v15093_v25 = vld [vmem:[#allocation61_spill] sm:$0xff] }
 0x6c2   : > { %6739 = vadd.xlane.f32.xlu1 %v6738_v23  ;;  %15085 = vst [vmem:[#allocation39_spill] sm:$0xff] %v13261_v56  ;;  %8018 = vpow2.f32 %v6125_v52  ;;  %v6629_v37 = vmul.f32 1.442695, %v13261_v56  ;;  %v6501_v41 = vmax.f32 %v13265_v62, %v13272_v27 }
 0x6c3   : > { %5996 = vmax.xlane.f32.xlu2 %v5995_v14  ;;  %15086 = vst [vmem:[#allocation51_spill] sm:$0xff] %v13272_v27  ;;  %v13285_v14 = vadd.f32 %v5725_v35, %v12503_v46  ;;  %v13307_v27 = vsub.f32 %v15093_v25, %v13194_v55 }
 0x6c4   : > { %v8011_v8 = vpop.eup %8010  ;;  %v13267_v3 = vpop.xlane.xlu2 %6469  ;;  %6236 = vadd.xlane.f32.xlu0 %v6235_v39  ;;  %15087 = vst [vmem:[#allocation52_spill] sm:$0xff] %v13278_v44  ;;  %v15089_v39 = vld [vmem:[#allocation18_spill] sm:$0xff] }
 0x6c5   : > { %v6296_v32 = vmul.f32 0.6931472, %v8011_v8  ;;  %v13269_v13 = vpop.xlane.xlu0 %5963  ;;  %v6204_v23 = vpop.xlane.xlu1 %6203  ;;  %15088 = vst [vmem:[#allocation17_spill] sm:$0xff] %v13285_v14 }
 0x6c6   : > { %v8013_v54 = vpop.eup %8012  ;;  %8020 = vlog2.f32 %v6204_v23  ;;  %v13289_v23 = vsub.f32 %v15089_v39, %v13166_v16  ;;  %v6127_v16 = vmul.f32 1.442695, %v13278_v44  ;;  %15094 = vst [vmem:[#allocation15_spill] sm:$0xff] %v13307_v27 }
 0x6c7   : > { %v8015_v48 = vpop.eup %8014  ;;  %v6359_v8 = vsub.f32 %v12801_v30, %v6296_v32  ;;  %v6360_v52 = vsub.f32 %v12804_v45, %v6296_v32  ;;  %v15091_v30 = vld [vmem:[#allocation47_spill] sm:$0xff]  ;;  %8022 = vpow2.f32 %v6627_v20 }
 0x6c8   : > { %15090 = vst [vmem:[#allocation16_spill] sm:$0xff] %v13289_v23  ;;  %v8017_v0 = vpop.eup %8016  ;;  %v13298_v45 = vadd.f32 %v15091_v30, %v12497_v29  ;;  %v6741_v35 = vadd.f32 %v8015_v48, %v8013_v54  ;;  %8024 = vpow2.f32 %v6629_v37  ;;  %v13312_v54 = vadd.f32 %v5809_v5, %v12537_v1  ;;  %v5812_v48 = vpop.f32.mrf.mxu3  ;;  %v15095_v37 = vld [vmem:[#allocation36_spill] sm:$0xff] }
 0x6c9   : > { %6935 = vst [vmem:[%s13293_s20] sm:$0xff] %v6359_v8  ;;  %v8019_v32 = vpop.eup %8018  ;;  %v6129_v8 = vmul.f32 1.442695, %v13289_v23  ;;  %8026 = vpow2.f32 %v6127_v16  ;;  %v13323_v5 = vadd.f32 %v5898_v2, %v12531_v33 }
 0x6ca   : > { %15092 = vst [vmem:[#allocation34_spill] sm:$0xff] %v13298_v45  ;;  %6502 = vmax.xlane.f32.xlu1 %v6501_v41  ;;  %v5998_v56 = vmax.f32 %v13298_v45, %v13285_v14  ;;  %v6631_v14 = vmul.f32 1.442695, %v13307_v27 }
 0x6cb   : > { %6936 = vst [vmem:[%s13293_s20 + $0x8] sm:$0xff] %v6360_v52  ;;  %6742 = vadd.xlane.f32.xlu2 %v6741_v35  ;;  %v13316_v52 = vsub.f32 %v15095_v37, %v13194_v55  ;;  %v15097_v35 = vld [vmem:[#allocation37_spill] sm:$0xff]  ;;  %v5901_v55 = vpop.f32.mrf.mxu1  ;;  %v5728_v37 = vpop.f32.mrf.mxu2 }
 0x6cc   : > { %v8021_v39 = vpop.eup %8020  ;;  %5999 = vmax.xlane.f32.xlu0 %v5998_v56  ;;  %v6238_v56 = vadd.f32 %v8019_v32, %v8017_v0  ;;  %v15100_v0 = vld [vmem:[#allocation42_spill] sm:$0xff] }
 0x6cd   : > { %v6298_v30 = vmul.f32 0.6931472, %v8021_v39  ;;  %v13309_v20 = vpop.xlane.xlu1 %5966  ;;  %15096 = vst [vmem:[#allocation50_spill] sm:$0xff] %v13316_v52  ;;  %v13320_v23 = vpop.xlane.xlu0 %6472  ;;  %v6633_v2 = vmul.f32 1.442695, %v13316_v52  ;;  %v13337_v32 = vsub.f32 %v15100_v0, %v13196_v15  ;;  %v13357_v0 = vadd.f32 %v5812_v48, %v12537_v1 }
 0x6ce   : > { %v6207_v39 = vpop.xlane.xlu2 %6206  ;;  %v8023_v44 = vpop.eup %8022  ;;  %v13370_v48 = vsub.f32 %v12842_v6, %v13234_v9 }
 0x6cf   : > { %v6361_v41 = vsub.f32 %v12830_v38, %v6298_v30  ;;  %v6362_v25 = vsub.f32 %v15097_v35, %v6298_v30  ;;  %8028 = vlog2.f32 %v6207_v39  ;;  %v8025_v16 = vpop.eup %8024  ;;  %v15098_v38 = vld [vmem:[#allocation73_spill] sm:$0xff]  ;;  %v6504_v30 = vmax.f32 %v13312_v54, %v13323_v5  ;;  %15101 = vst [vmem:[#allocation65_spill] sm:$0xff] %v13337_v32 }
 0x6d0   : > { %8030 = vpow2.f32 %v6129_v8  ;;  %v13328_v45 = vsub.f32 %v15098_v38, %v13196_v15  ;;  %v13340_v8 = vadd.f32 %v5728_v37, %v12503_v46  ;;  %v6744_v35 = vadd.f32 %v8025_v16, %v8023_v44  ;;  %v8027_v39 = vpop.eup %8026  ;;  %v15104_v15 = vld [vmem:[#allocation20_spill] sm:$0xff] }
 0x6d1   : > { %6937 = vst [vmem:[%s13293_s20 + $0x10] sm:$0xff] %v6361_v41  ;;  %8032 = vpow2.f32 %v6631_v14  ;;  %v13349_v37 = vsub.f32 %v15104_v15, %v13201_v34  ;;  %v6133_v44 = vmul.f32 1.442695, %v13337_v32  ;;  %v13366_v32 = vadd.f32 %v5901_v55, %v12531_v33 }
 0x6d2   : > { %15099 = vst [vmem:[#allocation57_spill] sm:$0xff] %v13328_v45  ;;  %6239 = vadd.xlane.f32.xlu1 %v6238_v56  ;;  %v6131_v41 = vmul.f32 1.442695, %v13328_v45 }
 0x6d3   : > { %6938 = vst [vmem:[%s13293_s20 + $0x18] sm:$0xff] %v6362_v25  ;;  %6505 = vmax.xlane.f32.xlu2 %v6504_v30  ;;  %v15103_v25 = vld [vmem:[#allocation79_spill] sm:$0xff]  ;;  %v5903_v45 = vpop.f32.mrf.mxu1 }
 0x6d4   : > { %15102 = vst [vmem:[#allocation35_spill] sm:$0xff] %v13340_v8  ;;  %v13345_v56 = vadd.f32 %v15103_v25, %v12497_v29  ;;  %6745 = vadd.xlane.f32.xlu0 %v6744_v35  ;;  %v15106_v35 = vld [vmem:[#allocation121_spill] sm:$0xff] }
 0x6d5   : > { %v6713_v38 = vpop.xlane.xlu1 %6712  ;;  %v8029_v27 = vpop.eup %8028  ;;  %15105 = vst [vmem:[#allocation62_spill] sm:$0xff] %v13349_v37 }
 0x6d6   : > { %8034 = vlog2.f32 %v6713_v38  ;;  %v8031_v52 = vpop.eup %8030  ;;  %v6300_v16 = vmul.f32 0.6931472, %v8029_v27  ;;  %v13352_v14 = vpop.xlane.xlu2 %5969  ;;  %v6001_v30 = vmax.f32 %v13345_v56, %v13340_v8  ;;  %v13361_v38 = vsub.f32 %v15106_v35, %v13201_v34  ;;  %15108 = vst [vmem:[#allocation63_spill] sm:$0xff] %v13366_v32 }
 0x6d7   : > { %8036 = vpow2.f32 %v6633_v2  ;;  %v5814_v2 = vpop.f32.mrf.mxu3  ;;  %v6210_v27 = vpop.xlane.xlu0 %6209  ;;  %v6241_v34 = vadd.f32 %v8031_v52, %v8027_v39  ;;  %v6507_v8 = vmax.f32 %v13357_v0, %v13366_v32  ;;  %v15111_v39 = vld [vmem:[#allocation92_spill] sm:$0xff] }
 0x6d8   : > { %15107 = vst [vmem:[#allocation132_spill] sm:$0xff] %v13361_v38  ;;  %8038 = vpow2.f32 %v6131_v41  ;;  %v6363_v25 = vsub.f32 %v12858_v28, %v6300_v16  ;;  %v6364_v15 = vsub.f32 %v12861_v10, %v6300_v16  ;;  %v8033_v35 = vpop.eup %8032  ;;  %v6635_v41 = vmul.f32 1.442695, %v13349_v37  ;;  %v5730_v28 = vpop.f32.mrf.mxu2  ;;  %v15109_v10 = vld [vmem:[#allocation91_spill] sm:$0xff] }
 0x6d9   : > { %8040 = vlog2.f32 %v6210_v27  ;;  %v13375_v16 = vsub.f32 %v15109_v10, %v13234_v9  ;;  %v6637_v52 = vmul.f32 1.442695, %v13361_v38  ;;  %v13389_v9 = vadd.f32 %v5730_v28, %v12503_v46  ;;  %v15113_v46 = vld [vmem:[#allocation43_spill] sm:$0xff] }
 0x6da   : > { %6002 = vmax.xlane.f32.xlu1 %v6001_v30  ;;  %8042 = vpow2.f32 %v6133_v44  ;;  %6939 = vst [vmem:[%s13293_s20 + $0x20] sm:$0xff] %v6363_v25  ;;  %v13384_v30 = vsub.f32 %v15111_v39, %v13225_v53  ;;  %v15112_v25 = vld [vmem:[#allocation68_spill] sm:$0xff]  ;;  %v13401_v28 = vadd.f32 %v15113_v46, %v12497_v29  ;;  %v15119_v46 = vld [vmem:[#allocation38_spill] sm:$0xff] }
 0x6db   : > { %15110 = vst [vmem:[#allocation59_spill] sm:$0xff] %v13375_v16  ;;  %6242 = vadd.xlane.f32.xlu2 %v6241_v34  ;;  %v13393_v10 = vsub.f32 %v15112_v25, %v13225_v53  ;;  %8044 = vpow2.f32 %v6635_v41  ;;  %v6641_v38 = vmul.f32 1.442695, %v13375_v16  ;;  %v13406_v41 = vsub.f32 %v12867_v47, %v13267_v3 }
 0x6dc   : > { %v8035_v55 = vpop.eup %8034  ;;  %6940 = vst [vmem:[%s13293_s20 + $0x28] sm:$0xff] %v6364_v15  ;;  %v6639_v15 = vmul.f32 1.442695, %v13370_v48  ;;  %6508 = vmax.xlane.f32.xlu0 %v6507_v8  ;;  %v6135_v8 = vmul.f32 1.442695, %v13384_v30  ;;  %v6004_v29 = vmax.f32 %v13401_v28, %v13389_v9 }
 0x6dd   : > { %v8037_v6 = vpop.eup %8036  ;;  %v6808_v44 = vmul.f32 0.6931472, %v8035_v55  ;;  %v13386_v27 = vpop.xlane.xlu1 %6475  ;;  %15114 = vst [vmem:[#allocation44_spill] sm:$0xff] %v13406_v41 }
 0x6de   : > { %v8039_v34 = vpop.eup %8038  ;;  %v6716_v37 = vpop.xlane.xlu2 %6715  ;;  %v6747_v53 = vadd.f32 %v8037_v6, %v8033_v35 }
 0x6df   : > { %v6871_v39 = vsub.f32 %v12872_v11, %v6808_v44  ;;  %v6872_v55 = vsub.f32 %v12878_v31, %v6808_v44  ;;  %v8041_v32 = vpop.eup %8040  ;;  %8046 = vlog2.f32 %v6716_v37  ;;  %v13413_v11 = vpop.xlane.xlu0 %5972  ;;  %v6137_v31 = vmul.f32 1.442695, %v13393_v10  ;;  %v15117_v44 = vld [vmem:[#allocation110_spill] sm:$0xff] }
 0x6e0   : > { %v8043_v25 = vpop.eup %8042  ;;  %8048 = vpow2.f32 %v6637_v52  ;;  %v6302_v16 = vmul.f32 0.6931472, %v8041_v32  ;;  %v5817_v47 = vpop.f32.mrf.mxu3  ;;  %v15115_v32 = vld [vmem:[#allocation108_spill] sm:$0xff]  ;;  %v13426_v52 = vadd.f32 %v5814_v2, %v12537_v1  ;;  %v13439_v2 = vadd.f32 %v5903_v45, %v12531_v33 }
 0x6e1   : > { %6943 = vst [vmem:[%s13410_s21] sm:$0xff] %v6871_v39  ;;  %8050 = vpow2.f32 %v6639_v15  ;;  %v13421_v37 = vsub.f32 %v15115_v32, %v13267_v3  ;;  %v13430_v15 = vsub.f32 %v15117_v44, %v13269_v13  ;;  %v6244_v39 = vadd.f32 %v8043_v25, %v8039_v34 }
 0x6e2   : > { %6944 = vst [vmem:[%s13410_s21 + $0x8] sm:$0xff] %v6872_v55  ;;  %6748 = vadd.xlane.f32.xlu1 %v6747_v53  ;;  %8052 = vpow2.f32 %v6641_v38  ;;  %v6365_v35 = vsub.f32 %v12899_v19, %v6302_v16  ;;  %v6366_v6 = vsub.f32 %v12904_v17, %v6302_v16  ;;  %v8045_v38 = vpop.eup %8044  ;;  %v5906_v55 = vpop.f32.mrf.mxu1  ;;  %v6643_v3 = vmul.f32 1.442695, %v13406_v41 }
 0x6e3   : > { %15116 = vst [vmem:[#allocation70_spill] sm:$0xff] %v13421_v37  ;;  %6005 = vmax.xlane.f32.xlu2 %v6004_v29  ;;  %8054 = vpow2.f32 %v6135_v8  ;;  %v13435_v19 = vsub.f32 %v15119_v46, %v13269_v13  ;;  %v13443_v53 = vsub.f32 %v12894_v24, %v13320_v23  ;;  %v6645_v25 = vmul.f32 1.442695, %v13421_v37  ;;  %v15121_v8 = vld [vmem:[#allocation74_spill] sm:$0xff]  ;;  %v15123_v37 = vld [vmem:[#allocation49_spill] sm:$0xff] }
 0x6e4   : > { %15118 = vst [vmem:[#allocation104_spill] sm:$0xff] %v13430_v15  ;;  %8056 = vpow2.f32 %v6137_v31  ;;  %6245 = vadd.xlane.f32.xlu0 %v6244_v39  ;;  %v13449_v13 = vsub.f32 %v15121_v8, %v13309_v20  ;;  %v6510_v45 = vmax.f32 %v13426_v52, %v13439_v2  ;;  %v6139_v31 = vmul.f32 1.442695, %v13430_v15  ;;  %v15122_v39 = vld [vmem:[#allocation94_spill] sm:$0xff] }
 0x6e5   : > { %15120 = vst [vmem:[#allocation14_spill] sm:$0xff] %v13435_v19  ;;  %v6213_v17 = vpop.xlane.xlu1 %6212  ;;  %v8047_v16 = vpop.eup %8046  ;;  %v6647_v8 = vmul.f32 1.442695, %v13443_v53  ;;  %v13462_v41 = vsub.f32 %v15123_v37, %v13309_v20  ;;  %v13476_v37 = vadd.f32 %v5906_v55, %v12531_v33  ;;  %v13490_v55 = vsub.f32 %v12940_v7, %v13386_v27 }
 0x6e6   : > { %6941 = vst [vmem:[%s13293_s20 + $0x30] sm:$0xff] %v6365_v35  ;;  %v8049_v34 = vpop.eup %8048  ;;  %v6810_v29 = vmul.f32 0.6931472, %v8047_v16  ;;  %v13451_v32 = vpop.xlane.xlu2 %6478  ;;  %8058 = vlog2.f32 %v6213_v17 }
 0x6e7   : > { %6942 = vst [vmem:[%s13293_s20 + $0x38] sm:$0xff] %v6366_v6  ;;  %v8051_v35 = vpop.eup %8050  ;;  %8060 = vpow2.f32 %v6643_v3  ;;  %v6141_v6 = vmul.f32 1.442695, %v13435_v19  ;;  %v6719_v16 = vpop.xlane.xlu0 %6718  ;;  %v6750_v15 = vadd.f32 %v8049_v34, %v8045_v38  ;;  %v6143_v3 = vmul.f32 1.442695, %v13449_v13 }
 0x6e8   : > { %v8053_v24 = vpop.eup %8052  ;;  %v6873_v44 = vsub.f32 %v12907_v43, %v6810_v29  ;;  %v6874_v46 = vsub.f32 %v15122_v39, %v6810_v29  ;;  %8062 = vlog2.f32 %v6719_v16  ;;  %v15124_v43 = vld [vmem:[#allocation113_spill] sm:$0xff]  ;;  %v13472_v39 = vsub.f32 %v12921_v57, %v13352_v14  ;;  %v5819_v38 = vpop.f32.mrf.mxu3 }
 0x6e9   : > { %v8055_v17 = vpop.eup %8054  ;;  %8064 = vpow2.f32 %v6645_v25  ;;  %v13468_v29 = vsub.f32 %v15124_v43, %v13320_v23  ;;  %v6753_v20 = vadd.f32 %v8053_v24, %v8051_v35  ;;  %v6145_v23 = vmul.f32 1.442695, %v13462_v41  ;;  %v15125_v57 = vld [vmem:[#allocation41_spill] sm:$0xff]  ;;  %v15126_v43 = vld [vmem:[#allocation40_spill] sm:$0xff] }
 0x6ea   : > { %6511 = vmax.xlane.f32.xlu1 %v6510_v45  ;;  %6945 = vst [vmem:[%s13410_s21 + $0x10] sm:$0xff] %v6873_v44  ;;  %v8057_v19 = vpop.eup %8056  ;;  %8066 = vpow2.f32 %v6139_v31  ;;  %v13481_v45 = vadd.f32 %v5817_v47, %v12537_v1  ;;  %v13486_v31 = vsub.f32 %v15125_v57, %v13352_v14  ;;  %v5908_v35 = vpop.f32.mrf.mxu1  ;;  %v6147_v14 = vmul.f32 1.442695, %v13472_v39 }
 0x6eb   : > { %6946 = vst [vmem:[%s13410_s21 + $0x18] sm:$0xff] %v6874_v46  ;;  %6751 = vadd.xlane.f32.xlu2 %v6750_v15  ;;  %8068 = vpow2.f32 %v6141_v6  ;;  %v6247_v44 = vadd.f32 %v8057_v19, %v8055_v17  ;;  %v13493_v46 = vadd.f32 %v5819_v38, %v12537_v1  ;;  %v6649_v16 = vmul.f32 1.442695, %v13468_v29 }
 0x6ec   : > { %v8059_v25 = vpop.eup %8058  ;;  %8070 = vpow2.f32 %v6647_v8  ;;  %6754 = vadd.xlane.f32.xlu0 %v6753_v20  ;;  %v6513_v1 = vmax.f32 %v13481_v45, %v13476_v37  ;;  %v13506_v38 = vadd.f32 %v5908_v35, %v12531_v33  ;;  %v6149_v57 = vmul.f32 1.442695, %v13486_v31 }
 0x6ed   : > { %v13478_v34 = vpop.xlane.xlu1 %5975  ;;  %v8061_v15 = vpop.eup %8060  ;;  %8072 = vpow2.f32 %v6143_v3  ;;  %v6304_v24 = vmul.f32 0.6931472, %v8059_v25  ;;  %v13499_v3 = vsub.f32 %v12943_v63, %v13386_v27  ;;  %v13511_v27 = vsub.f32 %v12952_v36, %v13413_v11 }
 0x6ee   : > { %v6216_v6 = vpop.xlane.xlu2 %6215  ;;  %v8063_v47 = vpop.eup %8062  ;;  %v13523_v35 = vsub.f32 %v12947_v51, %v13413_v11 }
 0x6ef   : > { %8074 = vlog2.f32 %v6216_v6  ;;  %v8065_v8 = vpop.eup %8064  ;;  %v6812_v7 = vmul.f32 0.6931472, %v8063_v47  ;;  %v6367_v20 = vsub.f32 %v15126_v43, %v6304_v24  ;;  %v6368_v19 = vsub.f32 %v12927_v58, %v6304_v24  ;;  %v6482_v17 = vpop.xlane.xlu0 %6481  ;;  %v15127_v24 = vld [vmem:[#allocation84_spill] sm:$0xff]  ;;  %v15128_v47 = vld [vmem:[#allocation127_spill] sm:$0xff] }
 0x6f0   : > { %v8067_v25 = vpop.eup %8066  ;;  %8076 = vpow2.f32 %v6145_v23  ;;  %v6651_v58 = vmul.f32 1.442695, %v13490_v55  ;;  %v6516_v23 = vmax.f32 %v13493_v46, %v13506_v38  ;;  %v6151_v51 = vmul.f32 1.442695, %v13511_v27 }
 0x6f1   : > { %v8069_v63 = vpop.eup %8068  ;;  %v6875_v6 = vsub.f32 %v15127_v24, %v6812_v7  ;;  %v6876_v43 = vsub.f32 %v15128_v47, %v6812_v7  ;;  %7434 = vst [vmem:[%s13293_s20 + $0x40] sm:$0xff] %v6367_v20  ;;  %8078 = vpow2.f32 %v6649_v16  ;;  %v13529_v7 = vsub.f32 %v12967_v50, %v13451_v32 }
 0x6f2   : > { %6248 = vadd.xlane.f32.xlu1 %v6247_v44  ;;  %v13517_v33 = vpop.eup %8070  ;;  %7435 = vst [vmem:[%s13293_s20 + $0x48] sm:$0xff] %v6368_v19  ;;  %8080 = vpow2.f32 %v6147_v14  ;;  %v6653_v44 = vmul.f32 1.442695, %v13499_v3  ;;  %v13534_v16 = vsub.f32 %v12976_v18, %v13451_v32  ;;  %v13540_v14 = vsub.f32 %v12993_v60, %v13478_v34 }
 0x6f3   : > { %6514 = vmax.xlane.f32.xlu2 %v6513_v1  ;;  %v8073_v36 = vpop.eup %8072  ;;  %6947 = vst [vmem:[%s13410_s21 + $0x20] sm:$0xff] %v6875_v6  ;;  %8082 = vpow2.f32 %v6149_v57  ;;  %v6153_v1 = vmul.f32 1.442695, %v13523_v35  ;;  %v6756_v57 = vadd.f32 %v8065_v8, %v8061_v15  ;;  %v6655_v18 = vmul.f32 1.442695, %v13529_v7  ;;  %v15129_v6 = vld [vmem:[#allocation46_spill] sm:$0xff] }
 0x6f4   : > { %6948 = vst [vmem:[%s13410_s21 + $0x28] sm:$0xff] %v6876_v43  ;;  %6517 = vmax.xlane.f32.xlu0 %v6516_v23  ;;  %8084 = vpow2.f32 %v6651_v58  ;;  %v6657_v60 = vmul.f32 1.442695, %v13534_v16  ;;  %v13549_v23 = vsub.f32 %v12989_v61, %v13478_v34  ;;  %v6155_v8 = vmul.f32 1.442695, %v13540_v14 }
 0x6f5   : > { %v6722_v20 = vpop.xlane.xlu1 %6721  ;;  %v8075_v24 = vpop.eup %8074 }
 0x6f6   : > { %v6306_v11 = vmul.f32 0.6931472, %v8075_v24  ;;  %v5979_v50 = vpop.xlane.xlu2 %5978  ;;  %v8077_v19 = vpop.eup %8076  ;;  %8086 = vlog2.f32 %v6722_v20  ;;  %v6250_v20 = vadd.f32 %v8069_v63, %v8067_v25  ;;  %v13558_v24 = vsub.f32 %v13009_v4, %v6482_v17 }
 0x6f7   : > { %8088 = vpow2.f32 %v6653_v44  ;;  %v6219_v47 = vpop.xlane.xlu0 %6218  ;;  %v8079_v43 = vpop.eup %8078  ;;  %v6253_v61 = vadd.f32 %v8077_v19, %v8073_v36  ;;  %v6157_v63 = vmul.f32 1.442695, %v13549_v23 }
 0x6f8   : > { %v6369_v32 = vsub.f32 %v12957_v40, %v6306_v11  ;;  %v6370_v58 = vsub.f32 %v15129_v6, %v6306_v11  ;;  %8090 = vlog2.f32 %v6219_v47  ;;  %v8081_v15 = vpop.eup %8080  ;;  %v13555_v40 = vsub.f32 %v13000_v22, %v6482_v17  ;;  %v15131_v47 = vld [vmem:[#allocation32_spill] sm:$0xff] }
 0x6f9   : > { %8092 = vpow2.f32 %v6151_v51  ;;  %v8083_v44 = vpop.eup %8082  ;;  %v13562_v51 = vsub.f32 %v13026_v26, %v5979_v50  ;;  %v13565_v22 = vsub.f32 %v13016_v21, %v5979_v50  ;;  %v6661_v19 = vmul.f32 1.442695, %v13558_v24  ;;  %v15130_v26 = vld [vmem:[#allocation19_spill] sm:$0xff] }
 0x6fa   : > { %6757 = vadd.xlane.f32.xlu1 %v6756_v57  ;;  %7436 = vst [vmem:[%s13293_s20 + $0x50] sm:$0xff] %v6369_v32  ;;  %8094 = vpow2.f32 %v6153_v1  ;;  %v8085_v34 = vpop.eup %8084  ;;  %v6659_v36 = vmul.f32 1.442695, %v13555_v40 }
 0x6fb   : > { %7437 = vst [vmem:[%s13293_s20 + $0x58] sm:$0xff] %v6370_v58  ;;  %6251 = vadd.xlane.f32.xlu2 %v6250_v20  ;;  %8096 = vpow2.f32 %v6655_v18  ;;  %v6256_v18 = vadd.f32 %v8083_v44, %v8081_v15  ;;  %v6161_v44 = vmul.f32 1.442695, %v13565_v22 }
 0x6fc   : > { %v8087_v25 = vpop.eup %8086  ;;  %8098 = vpow2.f32 %v6657_v60  ;;  %6254 = vadd.xlane.f32.xlu0 %v6253_v61  ;;  %v6759_v61 = vadd.f32 %v8079_v43, %v13517_v33 }
 0x6fd   : > { %v6485_v11 = vpop.xlane.xlu1 %6484  ;;  %v8089_v1 = vpop.eup %8088  ;;  %8100 = vpow2.f32 %v6155_v8  ;;  %v6814_v4 = vmul.f32 0.6931472, %v8087_v25  ;;  %v6159_v8 = vmul.f32 1.442695, %v13562_v51  ;;  %v15132_v25 = vld [vmem:[#allocation129_spill] sm:$0xff] }
 0x6fe   : > { %v6725_v17 = vpop.xlane.xlu2 %6724  ;;  %v8091_v57 = vpop.eup %8090  ;;  %v13572_v21 = vsub.f32 %v13039_v49, %v6485_v11  ;;  %v13581_v49 = vsub.f32 %v13042_v42, %v6485_v11  ;;  %v6762_v33 = vadd.f32 %v8089_v1, %v8085_v34 }
 0x6ff   : > { %8102 = vlog2.f32 %v6725_v17  ;;  %v8093_v32 = vpop.eup %8092  ;;  %v6308_v6 = vmul.f32 0.6931472, %v8091_v57  ;;  %v6877_v58 = vsub.f32 %v15130_v26, %v6814_v4  ;;  %v6878_v60 = vsub.f32 %v15131_v47, %v6814_v4  ;;  %v5982_v20 = vpop.xlane.xlu0 %5981  ;;  %v15133_v57 = vld [vmem:[#allocation76_spill] sm:$0xff] }
 0x700   : > { %v8095_v50 = vpop.eup %8094  ;;  %8104 = vpow2.f32 %v6157_v63  ;;  %v13585_v63 = vsub.f32 %v13059_v59, %v5982_v20  ;;  %v6665_v59 = vmul.f32 1.442695, %v13581_v49 }
 0x701   : > { %v8097_v15 = vpop.eup %8096  ;;  %v6371_v17 = vsub.f32 %v15132_v25, %v6308_v6  ;;  %v6372_v4 = vsub.f32 %v15133_v57, %v6308_v6  ;;  %6949 = vst [vmem:[%s13410_s21 + $0x30] sm:$0xff] %v6877_v58  ;;  %8106 = vpow2.f32 %v6659_v36  ;;  %v6663_v6 = vmul.f32 1.442695, %v13572_v21 }
 0x702   : > { %6257 = vadd.xlane.f32.xlu1 %v6256_v18  ;;  %v8099_v26 = vpop.eup %8098  ;;  %6950 = vst [vmem:[%s13410_s21 + $0x38] sm:$0xff] %v6878_v60  ;;  %8108 = vpow2.f32 %v6661_v19  ;;  %v15135_v18 = vld [vmem:[#allocation101_spill] sm:$0xff]  ;;  %v6163_v1 = vmul.f32 1.442695, %v13585_v63  ;;  %v15137_v19 = vld [vmem:[#allocation100_spill] sm:$0xff] }
 0x703   : > { %15134 = vst [vmem:[#allocation58_spill] sm:$0xff] %v13585_v63  ;;  %6760 = vadd.xlane.f32.xlu2 %v6759_v61  ;;  %v8101_v43 = vpop.eup %8100  ;;  %v13589_v47 = vsub.f32 %v15135_v18, %v5982_v20  ;;  %8110 = vpow2.f32 %v6159_v8  ;;  %v6765_v36 = vadd.f32 %v8099_v26, %v8097_v15  ;;  %v15138_v20 = vld [vmem:[#allocation60_spill] sm:$0xff]  ;;  %v15139_v8 = vld [vmem:[#allocation53_spill] sm:$0xff]  ;;  %v6259_v18 = vadd.f32 %v8095_v50, %v8093_v32 }
 0x704   : > { %7438 = vst [vmem:[%s13293_s20 + $0x60] sm:$0xff] %v6371_v17  ;;  %6763 = vadd.xlane.f32.xlu0 %v6762_v33  ;;  %8112 = vpow2.f32 %v6161_v44  ;;  %v15140_v44 = vld [vmem:[#allocation87_spill] sm:$0xff]  ;;  %v15143_v32 = vld [vmem:[#allocation69_spill] sm:$0xff] }
 0x705   : > { %15136 = vst [vmem:[#allocation66_spill] sm:$0xff] %v13589_v47  ;;  %v6222_v58 = vpop.xlane.xlu1 %6221  ;;  %v8103_v25 = vpop.eup %8102 }
 0x706   : > { %7439 = vst [vmem:[%s13293_s20 + $0x68] sm:$0xff] %v6372_v4  ;;  %v6816_v42 = vmul.f32 0.6931472, %v8103_v25  ;;  %v6488_v11 = vpop.xlane.xlu2 %6487  ;;  %v8105_v34 = vpop.eup %8104  ;;  %8114 = vlog2.f32 %v6222_v58  ;;  %v6165_v4 = vmul.f32 1.442695, %v13589_v47  ;;  %v15148_v47 = vld [vmem:[#allocation109_spill] sm:$0xff] }
 0x707   : > { %v13596_v60 = vsub.f32 %v15137_v19, %v6488_v11  ;;  %v13599_v61 = vsub.f32 %v15138_v20, %v6488_v11  ;;  %8116 = vpow2.f32 %v6663_v6  ;;  %v6728_v15 = vpop.xlane.xlu0 %6727  ;;  %v8107_v26 = vpop.eup %8106 }
 0x708   : > { %v6879_v17 = vsub.f32 %v15139_v8, %v6816_v42  ;;  %v6880_v57 = vsub.f32 %v15140_v44, %v6816_v42  ;;  %8118 = vlog2.f32 %v6728_v15  ;;  %v8109_v25 = vpop.eup %8108  ;;  %v6262_v42 = vadd.f32 %v8105_v34, %v8101_v43  ;;  %v15141_v8 = vld [vmem:[#allocation122_spill] sm:$0xff] }
 0x709   : > { %v6667_v33 = vmul.f32 1.442695, %v13596_v60  ;;  %8120 = vpow2.f32 %v6665_v59  ;;  %v6669_v58 = vmul.f32 1.442695, %v13599_v61  ;;  %v8111_v11 = vpop.eup %8110 }
 0x70a   : > { %6766 = vadd.xlane.f32.xlu1 %v6765_v36  ;;  %7442 = vst [vmem:[%s13410_s21 + $0x40] sm:$0xff] %v6879_v17  ;;  %8122 = vpow2.f32 %v6163_v1  ;;  %v8113_v19 = vpop.eup %8112 }
 0x70b   : > { %7443 = vst [vmem:[%s13410_s21 + $0x48] sm:$0xff] %v6880_v57  ;;  %6260 = vadd.xlane.f32.xlu2 %v6259_v18  ;;  %8124 = vpow2.f32 %v6165_v4  ;;  %v6265_v1 = vadd.f32 %v8113_v19, %v8111_v11  ;;  %v15149_v19 = vld [vmem:[#allocation130_spill] sm:$0xff] }
 0x70c   : > { %v8115_v20 = vpop.eup %8114  ;;  %8126 = vpow2.f32 %v6667_v33  ;;  %6263 = vadd.xlane.f32.xlu0 %v6262_v42  ;;  %v15145_v33 = vld [vmem:[#allocation99_spill] sm:$0xff]  ;;  %v15146_v42 = vld [vmem:[#allocation29_spill] sm:$0xff] }
 0x70d   : > { %v5985_v6 = vpop.xlane.xlu1 %5984  ;;  %v8117_v59 = vpop.eup %8116  ;;  %8128 = vpow2.f32 %v6669_v58  ;;  %v6310_v36 = vmul.f32 0.6931472, %v8115_v20  ;;  %v15147_v58 = vld [vmem:[#allocation78_spill] sm:$0xff] }
 0x70e   : > { %v13609_v44 = vsub.f32 %v15141_v8, %v5985_v6  ;;  %v13612_v50 = vsub.f32 %v15143_v32, %v5985_v6  ;;  %v6225_v17 = vpop.xlane.xlu2 %6224  ;;  %v8119_v57 = vpop.eup %8118 }
 0x70f   : > { %8130 = vlog2.f32 %v6225_v17  ;;  %v8121_v4 = vpop.eup %8120  ;;  %v6818_v15 = vmul.f32 0.6931472, %v8119_v57  ;;  %v6373_v18 = vsub.f32 %v15145_v33, %v6310_v36  ;;  %v6374_v6 = vsub.f32 %v15146_v42, %v6310_v36  ;;  %v6491_v8 = vpop.xlane.xlu0 %6490 }
 0x710   : > { %15142 = vst [vmem:[#allocation56_spill] sm:$0xff] %v13609_v44  ;;  %v6167_v43 = vmul.f32 1.442695, %v13609_v44  ;;  %v6169_v34 = vmul.f32 1.442695, %v13612_v50  ;;  %v8123_v32 = vpop.eup %8122  ;;  %v13619_v20 = vsub.f32 %v15147_v58, %v6491_v8  ;;  %v13622_v17 = vsub.f32 %v15148_v47, %v6491_v8  ;;  %v15150_v44 = vld [vmem:[#allocation105_spill] sm:$0xff] }
 0x711   : > { %15144 = vst [vmem:[#allocation55_spill] sm:$0xff] %v13612_v50  ;;  %v6768_v50 = vadd.f32 %v8109_v25, %v8107_v26  ;;  %v8125_v11 = vpop.eup %8124  ;;  %v6881_v57 = vsub.f32 %v15149_v19, %v6818_v15  ;;  %v6882_v33 = vsub.f32 %v15150_v44, %v6818_v15  ;;  %v6771_v58 = vadd.f32 %v8121_v4, %v8117_v59  ;;  %v15151_v15 = vld [vmem:[#allocation106_spill] sm:$0xff]  ;;  %v15155_v19 = vld [vmem:[#allocation124_spill] sm:$0xff] }
 0x712   : > { %8132 = vpow2.f32 %v6167_v43  ;;  %6266 = vadd.xlane.f32.xlu1 %v6265_v1  ;;  %7440 = vst [vmem:[%s13293_s20 + $0x70] sm:$0xff] %v6373_v18  ;;  %v8127_v36 = vpop.eup %8126  ;;  %v6671_v42 = vmul.f32 1.442695, %v13619_v20  ;;  %v6673_v47 = vmul.f32 1.442695, %v13622_v17  ;;  %v15152_v18 = vld [vmem:[#allocation23_spill] sm:$0xff] }
 0x713   : > { %8134 = vpow2.f32 %v6169_v34  ;;  %7441 = vst [vmem:[%s13293_s20 + $0x78] sm:$0xff] %v6374_v6  ;;  %6769 = vadd.xlane.f32.xlu2 %v6768_v50  ;;  %v8129_v63 = vpop.eup %8128  ;;  %v15154_v6 = vld [vmem:[#allocation21_spill] sm:$0xff] }
 0x714   : > { %7444 = vst [vmem:[%s13410_s21 + $0x50] sm:$0xff] %v6881_v57  ;;  %6772 = vadd.xlane.f32.xlu0 %v6771_v58  ;;  %8136 = vpow2.f32 %v6671_v42  ;;  %v6774_v59 = vadd.f32 %v8129_v63, %v8127_v36  ;;  %v6268_v42 = vadd.f32 %v8125_v11, %v8123_v32  ;;  %v15158_v32 = vld [vmem:[#allocation126_spill] sm:$0xff] }
 0x715   : > { %v6731_v43 = vpop.xlane.xlu1 %6730  ;;  %v8131_v26 = vpop.eup %8130  ;;  %7445 = vst [vmem:[%s13410_s21 + $0x58] sm:$0xff] %v6882_v33 }
 0x716   : > { %v6312_v25 = vmul.f32 0.6931472, %v8131_v26  ;;  %v5988_v1 = vpop.xlane.xlu2 %5987  ;;  %8138 = vlog2.f32 %v6731_v43 }
 0x717   : > { %v13633_v34 = vsub.f32 %v15151_v15, %v5988_v1  ;;  %v13636_v50 = vsub.f32 %v15152_v18, %v5988_v1  ;;  %8140 = vpow2.f32 %v6673_v47  ;;  %v6228_v33 = vpop.xlane.xlu0 %6227 }
 0x718   : > { %v8133_v44 = vpop.eup %8132  ;;  %v6375_v8 = vsub.f32 %v15154_v6, %v6312_v25  ;;  %v6376_v57 = vsub.f32 %v15155_v19, %v6312_v25  ;;  %8142 = vlog2.f32 %v6228_v33  ;;  %v15156_v25 = vld [vmem:[#allocation22_spill] sm:$0xff]  ;;  %v15160_v19 = vld [vmem:[#allocation111_spill] sm:$0xff] }
 0x719   : > { %15153 = vst [vmem:[#allocation54_spill] sm:$0xff] %v13636_v50  ;;  %v8135_v4 = vpop.eup %8134  ;;  %v6171_v58 = vmul.f32 1.442695, %v13633_v34  ;;  %v6173_v26 = vmul.f32 1.442695, %v13636_v50  ;;  %v15161_v33 = vld [vmem:[#allocation83_spill] sm:$0xff] }
 0x71a   : > { %6775 = vadd.xlane.f32.xlu1 %v6774_v59  ;;  %v6271_v15 = vadd.f32 %v8135_v4, %v8133_v44  ;;  %7450 = vst [vmem:[%s13293_s20 + $0x80] sm:$0xff] %v6375_v8  ;;  %v8137_v63 = vpop.eup %8136 }
 0x71b   : > { %7451 = vst [vmem:[%s13293_s20 + $0x88] sm:$0xff] %v6376_v57  ;;  %8144 = vpow2.f32 %v6171_v58  ;;  %6269 = vadd.xlane.f32.xlu2 %v6268_v42 }
 0x71c   : > { %8146 = vpow2.f32 %v6173_v26  ;;  %v8139_v43 = vpop.eup %8138  ;;  %6272 = vadd.xlane.f32.xlu0 %v6271_v15  ;;  %v15162_v15 = vld [vmem:[#allocation26_spill] sm:$0xff] }
 0x71d   : > { %v6494_v36 = vpop.xlane.xlu1 %6493  ;;  %v8141_v1 = vpop.eup %8140  ;;  %v6820_v18 = vmul.f32 0.6931472, %v8139_v43  ;;  %v15163_v43 = vld [vmem:[#allocation81_spill] sm:$0xff] }
 0x71e   : > { %v13645_v47 = vsub.f32 %v15156_v25, %v6494_v36  ;;  %v13648_v11 = vsub.f32 %v15158_v32, %v6494_v36  ;;  %v6734_v6 = vpop.xlane.xlu2 %6733  ;;  %v8143_v59 = vpop.eup %8142  ;;  %v6777_v32 = vadd.f32 %v8141_v1, %v8137_v63 }
 0x71f   : > { %8148 = vlog2.f32 %v6734_v6  ;;  %v6314_v8 = vmul.f32 0.6931472, %v8143_v59  ;;  %v6883_v57 = vsub.f32 %v15160_v19, %v6820_v18  ;;  %v6884_v42 = vsub.f32 %v15161_v33, %v6820_v18  ;;  %v5991_v58 = vpop.xlane.xlu0 %5990  ;;  %v15165_v59 = vld [vmem:[#allocation112_spill] sm:$0xff] }
 0x720   : > { %15157 = vst [vmem:[#allocation115_spill] sm:$0xff] %v13645_v47  ;;  %v6675_v44 = vmul.f32 1.442695, %v13645_v47  ;;  %v6677_v4 = vmul.f32 1.442695, %v13648_v11  ;;  %v13655_v36 = vsub.f32 %v15162_v15, %v5991_v58  ;;  %v13658_v25 = vsub.f32 %v15163_v43, %v5991_v58  ;;  %v15164_v47 = vld [vmem:[#allocation85_spill] sm:$0xff] }
 0x721   : > { %15159 = vst [vmem:[#allocation82_spill] sm:$0xff] %v13648_v11  ;;  %v8145_v26 = vpop.eup %8144  ;;  %v6377_v11 = vsub.f32 %v15164_v47, %v6314_v8  ;;  %v6378_v50 = vsub.f32 %v15165_v59, %v6314_v8 }
 0x722   : > { %8150 = vpow2.f32 %v6675_v44  ;;  %v8147_v6 = vpop.eup %8146  ;;  %7446 = vst [vmem:[%s13410_s21 + $0x60] sm:$0xff] %v6883_v57  ;;  %v6175_v18 = vmul.f32 1.442695, %v13655_v36  ;;  %v6177_v19 = vmul.f32 1.442695, %v13658_v25 }
 0x723   : > { %8152 = vpow2.f32 %v6677_v4  ;;  %7447 = vst [vmem:[%s13410_s21 + $0x68] sm:$0xff] %v6884_v42  ;;  %6778 = vadd.xlane.f32.xlu2 %v6777_v32  ;;  %v6274_v33 = vadd.f32 %v8147_v6, %v8145_v26  ;;  %v15166_v4 = vld [vmem:[#allocation131_spill] sm:$0xff]  ;;  %v15169_v26 = vld [vmem:[#allocation86_spill] sm:$0xff] }
 0x724   : > { %7452 = vst [vmem:[%s13293_s20 + $0x90] sm:$0xff] %v6377_v11  ;;  %8154 = vpow2.f32 %v6175_v18  ;;  %v15168_v11 = vld [vmem:[#allocation114_spill] sm:$0xff] }
 0x725   : > { %v6231_v58 = vpop.xlane.xlu1 %6230  ;;  %v8149_v15 = vpop.eup %8148  ;;  %7453 = vst [vmem:[%s13293_s20 + $0x98] sm:$0xff] %v6378_v50  ;;  %6275 = vadd.xlane.f32.xlu1 %v6274_v33  ;;  %8156 = vpow2.f32 %v6177_v19 }
 0x726   : > { %v6822_v63 = vmul.f32 0.6931472, %v8149_v15  ;;  %v6497_v47 = vpop.xlane.xlu2 %6496  ;;  %8158 = vlog2.f32 %v6231_v58  ;;  %v15170_v15 = vld [vmem:[#allocation120_spill] sm:$0xff] }
 0x727   : > { %v13669_v44 = vsub.f32 %v13173_v12, %v6497_v47  ;;  %v13672_v8 = vsub.f32 %v15166_v4, %v6497_v47  ;;  %v6737_v43 = vpop.xlane.xlu0 %6736 }
 0x728   : > { %v8151_v1 = vpop.eup %8150  ;;  %v6885_v42 = vsub.f32 %v15168_v11, %v6822_v63  ;;  %v6886_v50 = vsub.f32 %v15169_v26, %v6822_v63  ;;  %8160 = vlog2.f32 %v6737_v43  ;;  %v15172_v63 = vld [vmem:[#allocation97_spill] sm:$0xff] }
 0x729   : > { %15167 = vst [vmem:[#allocation72_spill] sm:$0xff] %v13672_v8  ;;  %v8153_v57 = vpop.eup %8152  ;;  %v6679_v32 = vmul.f32 1.442695, %v13669_v44  ;;  %v6681_v6 = vmul.f32 1.442695, %v13672_v8 }
 0x72a   : > { %v6780_v59 = vadd.f32 %v8153_v57, %v8151_v1  ;;  %7448 = vst [vmem:[%s13410_s21 + $0x70] sm:$0xff] %v6885_v42  ;;  %v8155_v18 = vpop.eup %8154 }
 0x72b   : > { %7449 = vst [vmem:[%s13410_s21 + $0x78] sm:$0xff] %v6886_v50  ;;  %8162 = vpow2.f32 %v6679_v32  ;;  %v8157_v12 = vpop.eup %8156  ;;  %v15174_v50 = vld [vmem:[#allocation95_spill] sm:$0xff] }
 0x72c   : > { %6781 = vadd.xlane.f32.xlu0 %v6780_v59  ;;  %8164 = vpow2.f32 %v6681_v6  ;;  %v8159_v33 = vpop.eup %8158  ;;  %v6277_v58 = vadd.f32 %v8157_v12, %v8155_v18  ;;  %v15175_v6 = vld [vmem:[#allocation125_spill] sm:$0xff] }
 0x72d   : > { %v5994_v19 = vpop.xlane.xlu1 %5993  ;;  %v6316_v11 = vmul.f32 0.6931472, %v8159_v33 }
 0x72e   : > { %v13681_v47 = vsub.f32 %v15170_v15, %v5994_v19  ;;  %v13684_v4 = vsub.f32 %v15172_v63, %v5994_v19  ;;  %v6234_v26 = vpop.xlane.xlu2 %6233  ;;  %v8161_v43 = vpop.eup %8160  ;;  %6278 = vadd.xlane.f32.xlu2 %v6277_v58  ;;  %v15176_v19 = vld [vmem:[#allocation98_spill] sm:$0xff]  ;;  %v15177_v15 = vld [vmem:[#allocation123_spill] sm:$0xff] }
 0x72f   : > { %8166 = vlog2.f32 %v6234_v26  ;;  %v6824_v42 = vmul.f32 0.6931472, %v8161_v43  ;;  %v6379_v32 = vsub.f32 %v15174_v50, %v6316_v11  ;;  %v6380_v59 = vsub.f32 %v15175_v6, %v6316_v11  ;;  %v6500_v18 = vpop.xlane.xlu0 %6499  ;;  %v15179_v26 = vld [vmem:[#allocation31_spill] sm:$0xff] }
 0x730   : > { %15171 = vst [vmem:[#allocation77_spill] sm:$0xff] %v13681_v47  ;;  %v6179_v1 = vmul.f32 1.442695, %v13681_v47  ;;  %v6181_v57 = vmul.f32 1.442695, %v13684_v4  ;;  %v13691_v33 = vsub.f32 %v15176_v19, %v6500_v18  ;;  %v13694_v58 = vsub.f32 %v15177_v15, %v6500_v18 }
 0x731   : > { %15173 = vst [vmem:[#allocation30_spill] sm:$0xff] %v13684_v4  ;;  %v8163_v12 = vpop.eup %8162  ;;  %v6887_v47 = vsub.f32 %v15179_v26, %v6824_v42  ;;  %v15180_v4 = vld [vmem:[#allocation88_spill] sm:$0xff] }
 0x732   : > { %15178 = vst [vmem:[#allocation48_spill] sm:$0xff] %v13694_v58  ;;  %8168 = vpow2.f32 %v6179_v1  ;;  %v8165_v63 = vpop.eup %8164  ;;  %v6888_v43 = vsub.f32 %v15180_v4, %v6824_v42  ;;  %v6683_v11 = vmul.f32 1.442695, %v13691_v33  ;;  %v6685_v50 = vmul.f32 1.442695, %v13694_v58  ;;  %v15181_v42 = vld [vmem:[#allocation28_spill] sm:$0xff] }
 0x733   : > { %7454 = vst [vmem:[%s13293_s20 + $0xa0] sm:$0xff] %v6379_v32  ;;  %8170 = vpow2.f32 %v6181_v57  ;;  %v6783_v6 = vadd.f32 %v8165_v63, %v8163_v12  ;;  %v15183_v32 = vld [vmem:[#allocation93_spill] sm:$0xff]  ;;  %v15186_v63 = vld [vmem:[#allocation24_spill] sm:$0xff] }
 0x734   : > { %7455 = vst [vmem:[%s13293_s20 + $0xa8] sm:$0xff] %v6380_v59  ;;  %8172 = vpow2.f32 %v6683_v11 }
 0x735   : > { %7458 = vst [vmem:[%s13410_s21 + $0x80] sm:$0xff] %v6887_v47  ;;  %v6740_v19 = vpop.xlane.xlu1 %6739  ;;  %v8167_v8 = vpop.eup %8166  ;;  %6784 = vadd.xlane.f32.xlu1 %v6783_v6  ;;  %8174 = vpow2.f32 %v6685_v50  ;;  %v15185_v47 = vld [vmem:[#allocation116_spill] sm:$0xff] }
 0x736   : > { %7459 = vst [vmem:[%s13410_s21 + $0x88] sm:$0xff] %v6888_v43  ;;  %v6318_v1 = vmul.f32 0.6931472, %v8167_v8  ;;  %v5997_v18 = vpop.xlane.xlu2 %5996  ;;  %8176 = vlog2.f32 %v6740_v19 }
 0x737   : > { %v13705_v57 = vsub.f32 %v15181_v42, %v5997_v18  ;;  %v13708_v59 = vsub.f32 %v15183_v32, %v5997_v18  ;;  %v6237_v43 = vpop.xlane.xlu0 %6236 }
 0x738   : > { %v8169_v4 = vpop.eup %8168  ;;  %v6381_v15 = vsub.f32 %v15185_v47, %v6318_v1  ;;  %v6382_v26 = vsub.f32 %v15186_v63, %v6318_v1  ;;  %8178 = vlog2.f32 %v6237_v43  ;;  %v15188_v1 = vld [vmem:[#allocation51_spill] sm:$0xff] }
 0x739   : > { %15182 = vst [vmem:[#allocation107_spill] sm:$0xff] %v13705_v57  ;;  %v8171_v12 = vpop.eup %8170  ;;  %v6183_v11 = vmul.f32 1.442695, %v13705_v57  ;;  %v6185_v8 = vmul.f32 1.442695, %v13708_v59 }
 0x73a   : > { %15184 = vst [vmem:[#allocation33_spill] sm:$0xff] %v13708_v59  ;;  %v6280_v50 = vadd.f32 %v8171_v12, %v8169_v4  ;;  %v8173_v6 = vpop.eup %8172 }
 0x73b   : > { %7456 = vst [vmem:[%s13293_s20 + $0xb0] sm:$0xff] %v6381_v15  ;;  %8180 = vpow2.f32 %v6183_v11  ;;  %v8175_v18 = vpop.eup %8174 }
 0x73c   : > { %7457 = vst [vmem:[%s13293_s20 + $0xb8] sm:$0xff] %v6382_v26  ;;  %6281 = vadd.xlane.f32.xlu0 %v6280_v50  ;;  %8182 = vpow2.f32 %v6185_v8  ;;  %v8177_v42 = vpop.eup %8176  ;;  %v6786_v32 = vadd.f32 %v8175_v18, %v8173_v6  ;;  %v15190_v26 = vld [vmem:[#allocation117_spill] sm:$0xff]  ;;  %v15191_v8 = vld [vmem:[#allocation96_spill] sm:$0xff]  ;;  %v15192_v18 = vld [vmem:[#allocation34_spill] sm:$0xff] }
 0x73d   : > { %v6503_v19 = vpop.xlane.xlu1 %6502  ;;  %v6826_v57 = vmul.f32 0.6931472, %v8177_v42  ;;  %v15193_v42 = vld [vmem:[#allocation17_spill] sm:$0xff] }
 0x73e   : > { %v13717_v47 = vsub.f32 %v13265_v62, %v6503_v19  ;;  %v13720_v63 = vsub.f32 %v15188_v1, %v6503_v19  ;;  %v6743_v59 = vpop.xlane.xlu2 %6742  ;;  %v8179_v43 = vpop.eup %8178  ;;  %6787 = vadd.xlane.f32.xlu2 %v6786_v32  ;;  %v15194_v1 = vld [vmem:[#allocation90_spill] sm:$0xff] }
 0x73f   : > { %8184 = vlog2.f32 %v6743_v59  ;;  %v6320_v15 = vmul.f32 0.6931472, %v8179_v43  ;;  %v6889_v11 = vsub.f32 %v15190_v26, %v6826_v57  ;;  %v6890_v62 = vsub.f32 %v15191_v8, %v6826_v57  ;;  %v6000_v50 = vpop.xlane.xlu0 %5999 }
 0x740   : > { %15187 = vst [vmem:[#allocation71_spill] sm:$0xff] %v13717_v47  ;;  %v6687_v4 = vmul.f32 1.442695, %v13717_v47  ;;  %v6689_v12 = vmul.f32 1.442695, %v13720_v63  ;;  %v13727_v19 = vsub.f32 %v15192_v18, %v6000_v50  ;;  %v13730_v32 = vsub.f32 %v15193_v42, %v6000_v50 }
 0x741   : > { %15189 = vst [vmem:[#allocation119_spill] sm:$0xff] %v13720_v63  ;;  %v8181_v6 = vpop.eup %8180  ;;  %v6383_v47 = vsub.f32 %v15194_v1, %v6320_v15  ;;  %v15195_v63 = vld [vmem:[#allocation45_spill] sm:$0xff] }
 0x742   : > { %8186 = vpow2.f32 %v6687_v4  ;;  %v8183_v59 = vpop.eup %8182  ;;  %v6384_v43 = vsub.f32 %v15195_v63, %v6320_v15  ;;  %7460 = vst [vmem:[%s13410_s21 + $0x90] sm:$0xff] %v6889_v11  ;;  %v6187_v57 = vmul.f32 1.442695, %v13727_v19  ;;  %v6189_v26 = vmul.f32 1.442695, %v13730_v32 }
 0x743   : > { %8188 = vpow2.f32 %v6689_v12  ;;  %7461 = vst [vmem:[%s13410_s21 + $0x98] sm:$0xff] %v6890_v62  ;;  %v6283_v8 = vadd.f32 %v8183_v59, %v8181_v6  ;;  %v15197_v6 = vld [vmem:[#allocation102_spill] sm:$0xff] }
 0x744   : > { %7466 = vst [vmem:[%s13293_s20 + $0xc0] sm:$0xff] %v6383_v47  ;;  %8190 = vpow2.f32 %v6187_v57  ;;  %v15196_v47 = vld [vmem:[#allocation25_spill] sm:$0xff] }
 0x745   : > { %v6240_v18 = vpop.xlane.xlu1 %6239  ;;  %v8185_v58 = vpop.eup %8184  ;;  %7467 = vst [vmem:[%s13293_s20 + $0xc8] sm:$0xff] %v6384_v43  ;;  %6284 = vadd.xlane.f32.xlu1 %v6283_v8  ;;  %8192 = vpow2.f32 %v6189_v26 }
 0x746   : > { %v6828_v4 = vmul.f32 0.6931472, %v8185_v58  ;;  %v6506_v50 = vpop.xlane.xlu2 %6505  ;;  %8194 = vlog2.f32 %v6240_v18 }
 0x747   : > { %v13741_v12 = vsub.f32 %v13312_v54, %v6506_v50  ;;  %v13744_v15 = vsub.f32 %v13323_v5, %v6506_v50  ;;  %v6746_v59 = vpop.xlane.xlu0 %6745 }
 0x748   : > { %v8187_v63 = vpop.eup %8186  ;;  %v6891_v62 = vsub.f32 %v15196_v47, %v6828_v4  ;;  %v6892_v42 = vsub.f32 %v15197_v6, %v6828_v4  ;;  %8196 = vlog2.f32 %v6746_v59  ;;  %v15199_v4 = vld [vmem:[#allocation35_spill] sm:$0xff] }
 0x749   : > { %v8189_v11 = vpop.eup %8188  ;;  %v6691_v1 = vmul.f32 1.442695, %v13741_v12  ;;  %v6693_v58 = vmul.f32 1.442695, %v13744_v15 }
 0x74a   : > { %v6789_v43 = vadd.f32 %v8189_v11, %v8187_v63  ;;  %7462 = vst [vmem:[%s13410_s21 + $0xa0] sm:$0xff] %v6891_v62  ;;  %v8191_v57 = vpop.eup %8190 }
 0x74b   : > { %7463 = vst [vmem:[%s13410_s21 + $0xa8] sm:$0xff] %v6892_v42  ;;  %8198 = vpow2.f32 %v6691_v1  ;;  %v8193_v54 = vpop.eup %8192  ;;  %v15201_v42 = vld [vmem:[#allocation27_spill] sm:$0xff] }
 0x74c   : > { %6790 = vadd.xlane.f32.xlu0 %v6789_v43  ;;  %8200 = vpow2.f32 %v6693_v58  ;;  %v8195_v26 = vpop.eup %8194  ;;  %v6286_v8 = vadd.f32 %v8193_v54, %v8191_v57  ;;  %v15202_v58 = vld [vmem:[#allocation103_spill] sm:$0xff] }
 0x74d   : > { %v6003_v5 = vpop.xlane.xlu1 %6002  ;;  %v6322_v47 = vmul.f32 0.6931472, %v8195_v26 }
 0x74e   : > { %v13753_v18 = vsub.f32 %v13345_v56, %v6003_v5  ;;  %v13756_v50 = vsub.f32 %v15199_v4, %v6003_v5  ;;  %v6243_v6 = vpop.xlane.xlu2 %6242  ;;  %v8197_v59 = vpop.eup %8196  ;;  %6287 = vadd.xlane.f32.xlu2 %v6286_v8  ;;  %v15203_v5 = vld [vmem:[#allocation63_spill] sm:$0xff]  ;;  %v15204_v4 = vld [vmem:[#allocation128_spill] sm:$0xff] }
 0x74f   : > { %8202 = vlog2.f32 %v6243_v6  ;;  %v6830_v62 = vmul.f32 0.6931472, %v8197_v59  ;;  %v6385_v1 = vsub.f32 %v15201_v42, %v6322_v47  ;;  %v6386_v56 = vsub.f32 %v15202_v58, %v6322_v47  ;;  %v6509_v43 = vpop.xlane.xlu0 %6508 }
 0x750   : > { %15198 = vst [vmem:[#allocation80_spill] sm:$0xff] %v13753_v18  ;;  %v6191_v63 = vmul.f32 1.442695, %v13753_v18  ;;  %v6193_v11 = vmul.f32 1.442695, %v13756_v50  ;;  %v13763_v54 = vsub.f32 %v13357_v0, %v6509_v43  ;;  %v13766_v26 = vsub.f32 %v15203_v5, %v6509_v43  ;;  %v15207_v5 = vld [vmem:[#allocation16_spill] sm:$0xff] }
 0x751   : > { %15200 = vst [vmem:[#allocation67_spill] sm:$0xff] %v13756_v50  ;;  %v8199_v57 = vpop.eup %8198  ;;  %v6893_v6 = vsub.f32 %v15204_v4, %v6830_v62  ;;  %v15205_v50 = vld [vmem:[#allocation39_spill] sm:$0xff] }
 0x752   : > { %8204 = vpow2.f32 %v6191_v63  ;;  %v8201_v8 = vpop.eup %8200  ;;  %v6894_v59 = vsub.f32 %v15205_v50, %v6830_v62  ;;  %7468 = vst [vmem:[%s13293_s20 + $0xd0] sm:$0xff] %v6385_v1  ;;  %v6695_v47 = vmul.f32 1.442695, %v13763_v54  ;;  %v6697_v42 = vmul.f32 1.442695, %v13766_v26 }
 0x753   : > { %8206 = vpow2.f32 %v6193_v11  ;;  %7469 = vst [vmem:[%s13293_s20 + $0xd8] sm:$0xff] %v6386_v56  ;;  %v6792_v58 = vadd.f32 %v8201_v8, %v8199_v57  ;;  %v15206_v56 = vld [vmem:[#allocation52_spill] sm:$0xff] }
 0x754   : > { %7464 = vst [vmem:[%s13410_s21 + $0xb0] sm:$0xff] %v6893_v6  ;;  %8208 = vpow2.f32 %v6695_v47 }
 0x755   : > { %v6749_v0 = vpop.xlane.xlu1 %6748  ;;  %v8203_v18 = vpop.eup %8202  ;;  %7465 = vst [vmem:[%s13410_s21 + $0xb8] sm:$0xff] %v6894_v59  ;;  %6793 = vadd.xlane.f32.xlu1 %v6792_v58  ;;  %8210 = vpow2.f32 %v6697_v42 }
 0x756   : > { %v6324_v63 = vmul.f32 0.6931472, %v8203_v18  ;;  %v6006_v43 = vpop.xlane.xlu2 %6005  ;;  %8212 = vlog2.f32 %v6749_v0 }
 0x757   : > { %v13777_v11 = vsub.f32 %v13401_v28, %v6006_v43  ;;  %v13780_v62 = vsub.f32 %v13389_v9, %v6006_v43  ;;  %v6246_v4 = vpop.xlane.xlu0 %6245 }
 0x758   : > { %v8205_v50 = vpop.eup %8204  ;;  %v6387_v57 = vsub.f32 %v15206_v56, %v6324_v63  ;;  %v6388_v8 = vsub.f32 %v15207_v5, %v6324_v63  ;;  %8214 = vlog2.f32 %v6246_v4 }
 0x759   : > { %v8207_v1 = vpop.eup %8206  ;;  %v6195_v6 = vmul.f32 1.442695, %v13777_v11  ;;  %v6197_v18 = vmul.f32 1.442695, %v13780_v62 }
 0x75a   : > { %v6289_v59 = vadd.f32 %v8207_v1, %v8205_v50  ;;  %7470 = vst [vmem:[%s13293_s20 + $0xe0] sm:$0xff] %v6387_v57  ;;  %v8209_v47 = vpop.eup %8208 }
 0x75b   : > { %7471 = vst [vmem:[%s13293_s20 + $0xe8] sm:$0xff] %v6388_v8  ;;  %8216 = vpow2.f32 %v6195_v6  ;;  %v8211_v9 = vpop.eup %8210  ;;  %v15208_v8 = vld [vmem:[#allocation15_spill] sm:$0xff] }
 0x75c   : > { %6290 = vadd.xlane.f32.xlu0 %v6289_v59  ;;  %8218 = vpow2.f32 %v6197_v18  ;;  %v8213_v42 = vpop.eup %8212  ;;  %v6795_v58 = vadd.f32 %v8211_v9, %v8209_v47  ;;  %v15210_v47 = vld [vmem:[#allocation57_spill] sm:$0xff] }
 0x75d   : > { %v6512_v28 = vpop.xlane.xlu1 %6511  ;;  %v6832_v43 = vmul.f32 0.6931472, %v8213_v42 }
 0x75e   : > { %v13789_v0 = vsub.f32 %v13426_v52, %v6512_v28  ;;  %v13792_v63 = vsub.f32 %v13439_v2, %v6512_v28  ;;  %v6752_v56 = vpop.xlane.xlu2 %6751  ;;  %v8215_v50 = vpop.eup %8214  ;;  %6796 = vadd.xlane.f32.xlu2 %v6795_v58  ;;  %v15209_v52 = vld [vmem:[#allocation50_spill] sm:$0xff]  ;;  %v15211_v28 = vld [vmem:[#allocation65_spill] sm:$0xff] }
 0x75f   : > { %8220 = vlog2.f32 %v6752_v56  ;;  %v6326_v5 = vmul.f32 0.6931472, %v8215_v50  ;;  %v6895_v4 = vsub.f32 %v15208_v8, %v6832_v43  ;;  %v6896_v6 = vsub.f32 %v15209_v52, %v6832_v43  ;;  %v6755_v2 = vpop.xlane.xlu0 %6754 }
 0x760   : > { %v6699_v1 = vmul.f32 1.442695, %v13789_v0  ;;  %v6701_v57 = vmul.f32 1.442695, %v13792_v63  ;;  %8222 = vlog2.f32 %v6755_v2 }
 0x761   : > { %v8217_v18 = vpop.eup %8216  ;;  %v6389_v9 = vsub.f32 %v15210_v47, %v6326_v5  ;;  %v6390_v42 = vsub.f32 %v15211_v28, %v6326_v5  ;;  %7474 = vst [vmem:[%s13410_s21 + $0xc0] sm:$0xff] %v6895_v4 }
 0x762   : > { %v8219_v59 = vpop.eup %8218  ;;  %8224 = vpow2.f32 %v6699_v1  ;;  %7475 = vst [vmem:[%s13410_s21 + $0xc8] sm:$0xff] %v6896_v6  ;;  %v15213_v6 = vld [vmem:[#allocation132_spill] sm:$0xff] }
 0x763   : > { %8226 = vpow2.f32 %v6701_v57  ;;  %v6292_v58 = vadd.f32 %v8219_v59, %v8217_v18  ;;  %7472 = vst [vmem:[%s13293_s20 + $0xf0] sm:$0xff] %v6389_v9  ;;  %v15212_v57 = vld [vmem:[#allocation62_spill] sm:$0xff] }
 0x764   : > { %7473 = vst [vmem:[%s13293_s20 + $0xf8] sm:$0xff] %v6390_v42 }
 0x765   : > { %v6249_v56 = vpop.xlane.xlu1 %6248  ;;  %v8221_v50 = vpop.eup %8220  ;;  %6293 = vadd.xlane.f32.xlu1 %v6292_v58 }
 0x766   : > { %8228 = vlog2.f32 %v6249_v56  ;;  %v6834_v43 = vmul.f32 0.6931472, %v8221_v50  ;;  %v6515_v8 = vpop.xlane.xlu2 %6514  ;;  %v8223_v52 = vpop.eup %8222  ;;  %v15214_v56 = vld [vmem:[#allocation59_spill] sm:$0xff] }
 0x767   : > { %v13805_v2 = vsub.f32 %v13481_v45, %v6515_v8  ;;  %v13808_v5 = vsub.f32 %v13476_v37, %v6515_v8  ;;  %v6836_v59 = vmul.f32 0.6931472, %v8223_v52  ;;  %v6518_v47 = vpop.xlane.xlu0 %6517 }
 0x768   : > { %v8225_v1 = vpop.eup %8224  ;;  %v6897_v4 = vsub.f32 %v15212_v57, %v6834_v43  ;;  %v6898_v18 = vsub.f32 %v15213_v6, %v6834_v43  ;;  %v13815_v45 = vsub.f32 %v13493_v46, %v6518_v47  ;;  %v13818_v37 = vsub.f32 %v13506_v38, %v6518_v47 }
 0x769   : > { %v8227_v9 = vpop.eup %8226  ;;  %v6703_v28 = vmul.f32 1.442695, %v13805_v2  ;;  %v6705_v42 = vmul.f32 1.442695, %v13808_v5  ;;  %v6899_v58 = vsub.f32 %v13370_v48, %v6836_v59  ;;  %v6900_v50 = vsub.f32 %v15214_v56, %v6836_v59 }
 0x76a   : > { %7476 = vst [vmem:[%s13410_s21 + $0xd0] sm:$0xff] %v6897_v4  ;;  %v6798_v43 = vadd.f32 %v8227_v9, %v8225_v1  ;;  %v6707_v52 = vmul.f32 1.442695, %v13815_v45  ;;  %v6709_v57 = vmul.f32 1.442695, %v13818_v37 }
 0x76b   : > { %7477 = vst [vmem:[%s13410_s21 + $0xd8] sm:$0xff] %v6898_v18  ;;  %8230 = vpow2.f32 %v6703_v28 }
 0x76c   : > { %v8229_v8 = vpop.eup %8228  ;;  %7478 = vst [vmem:[%s13410_s21 + $0xe0] sm:$0xff] %v6899_v58  ;;  %8232 = vpow2.f32 %v6705_v42  ;;  %6799 = vadd.xlane.f32.xlu0 %v6798_v43 }
 0x76d   : > { %v6328_v46 = vmul.f32 0.6931472, %v8229_v8  ;;  %v6758_v38 = vpop.xlane.xlu1 %6757  ;;  %7479 = vst [vmem:[%s13410_s21 + $0xe8] sm:$0xff] %v6900_v50  ;;  %8234 = vpow2.f32 %v6707_v52  ;;  %v15215_v52 = vld [vmem:[#allocation104_spill] sm:$0xff] }
 0x76e   : > { %8236 = vpow2.f32 %v6709_v57  ;;  %v6252_v4 = vpop.xlane.xlu2 %6251 }
 0x76f   : > { %v6391_v48 = vsub.f32 %v13384_v30, %v6328_v46  ;;  %v6392_v1 = vsub.f32 %v13393_v10, %v6328_v46  ;;  %8238 = vlog2.f32 %v6252_v4  ;;  %v6255_v6 = vpop.xlane.xlu0 %6254  ;;  %v15216_v46 = vld [vmem:[#allocation14_spill] sm:$0xff] }
 0x770   : > { %8240 = vlog2.f32 %v6758_v38 }
 0x771   : > { %7482 = vst [vmem:[%s13293_s20 + $0x100] sm:$0xff] %v6391_v48  ;;  %v8231_v18 = vpop.eup %8230  ;;  %8242 = vlog2.f32 %v6255_v6 }
 0x772   : > { %7483 = vst [vmem:[%s13293_s20 + $0x108] sm:$0xff] %v6392_v1  ;;  %v8233_v59 = vpop.eup %8232 }
 0x773   : > { %v8235_v47 = vpop.eup %8234  ;;  %v6801_v9 = vadd.f32 %v8233_v59, %v8231_v18  ;;  %v15217_v18 = vld [vmem:[#allocation44_spill] sm:$0xff] }
 0x774   : > { %v8237_v28 = vpop.eup %8236 }
 0x775   : > { %v6258_v42 = vpop.xlane.xlu1 %6257  ;;  %v8239_v58 = vpop.eup %8238  ;;  %6802 = vadd.xlane.f32.xlu1 %v6801_v9  ;;  %v6804_v56 = vadd.f32 %v8237_v28, %v8235_v47  ;;  %v15218_v9 = vld [vmem:[#allocation70_spill] sm:$0xff] }
 0x776   : > { %8244 = vlog2.f32 %v6258_v42  ;;  %v8241_v30 = vpop.eup %8240  ;;  %v6330_v10 = vmul.f32 0.6931472, %v8239_v58  ;;  %v6761_v50 = vpop.xlane.xlu2 %6760 }
 0x777   : > { %v8243_v43 = vpop.eup %8242  ;;  %v6838_v8 = vmul.f32 0.6931472, %v8241_v30  ;;  %6805 = vadd.xlane.f32.xlu2 %v6804_v56  ;;  %8246 = vlog2.f32 %v6761_v50  ;;  %v6764_v1 = vpop.xlane.xlu0 %6763 }
 0x778   : > { %v6393_v57 = vsub.f32 %v15215_v52, %v6330_v10  ;;  %v6394_v38 = vsub.f32 %v15216_v46, %v6330_v10  ;;  %v6332_v48 = vmul.f32 0.6931472, %v8243_v43  ;;  %8248 = vlog2.f32 %v6764_v1 }
 0x779   : > { %v6901_v59 = vsub.f32 %v15217_v18, %v6838_v8  ;;  %v6902_v28 = vsub.f32 %v15218_v9, %v6838_v8 }
 0x77a   : > { %7484 = vst [vmem:[%s13293_s20 + $0x110] sm:$0xff] %v6393_v57  ;;  %v6395_v4 = vsub.f32 %v13449_v13, %v6332_v48  ;;  %v6396_v6 = vsub.f32 %v13462_v41, %v6332_v48 }
 0x77b   : > { %7485 = vst [vmem:[%s13293_s20 + $0x118] sm:$0xff] %v6394_v38 }
 0x77c   : > { %v8245_v47 = vpop.eup %8244  ;;  %7486 = vst [vmem:[%s13293_s20 + $0x120] sm:$0xff] %v6395_v4 }
 0x77d   : > { %v6334_v42 = vmul.f32 0.6931472, %v8245_v47  ;;  %v6767_v58 = vpop.xlane.xlu1 %6766  ;;  %v8247_v56 = vpop.eup %8246  ;;  %7487 = vst [vmem:[%s13293_s20 + $0x128] sm:$0xff] %v6396_v6 }
 0x77e   : > { %8250 = vlog2.f32 %v6767_v58  ;;  %7480 = vst [vmem:[%s13410_s21 + $0xf0] sm:$0xff] %v6901_v59  ;;  %v6840_v13 = vmul.f32 0.6931472, %v8247_v56  ;;  %v6261_v10 = vpop.xlane.xlu2 %6260  ;;  %v8249_v50 = vpop.eup %8248 }
 0x77f   : > { %v6397_v41 = vsub.f32 %v13472_v39, %v6334_v42  ;;  %v6398_v30 = vsub.f32 %v13486_v31, %v6334_v42  ;;  %7481 = vst [vmem:[%s13410_s21 + $0xf8] sm:$0xff] %v6902_v28  ;;  %8252 = vlog2.f32 %v6261_v10  ;;  %v6842_v52 = vmul.f32 0.6931472, %v8249_v50  ;;  %v6264_v57 = vpop.xlane.xlu0 %6263 }
 0x780   : > { %v6903_v43 = vsub.f32 %v13443_v53, %v6840_v13  ;;  %v6904_v8 = vsub.f32 %v13468_v29, %v6840_v13  ;;  %8254 = vlog2.f32 %v6264_v57 }
 0x781   : > { %7488 = vst [vmem:[%s13293_s20 + $0x130] sm:$0xff] %v6397_v41  ;;  %v6905_v39 = vsub.f32 %v13490_v55, %v6842_v52  ;;  %v6906_v31 = vsub.f32 %v13499_v3, %v6842_v52 }
 0x782   : > { %7489 = vst [vmem:[%s13293_s20 + $0x138] sm:$0xff] %v6398_v30 }
 0x783   : > { %7490 = vst [vmem:[%s13410_s21 + $0x100] sm:$0xff] %v6903_v43 }
 0x784   : > { %v8251_v46 = vpop.eup %8250  ;;  %7491 = vst [vmem:[%s13410_s21 + $0x108] sm:$0xff] %v6904_v8 }
 0x785   : > { %7492 = vst [vmem:[%s13410_s21 + $0x110] sm:$0xff] %v6905_v39  ;;  %v6844_v38 = vmul.f32 0.6931472, %v8251_v46  ;;  %v6267_v53 = vpop.xlane.xlu1 %6266  ;;  %v8253_v48 = vpop.eup %8252 }
 0x786   : > { %7493 = vst [vmem:[%s13410_s21 + $0x118] sm:$0xff] %v6906_v31  ;;  %8256 = vlog2.f32 %v6267_v53  ;;  %v6336_v29 = vmul.f32 0.6931472, %v8253_v48  ;;  %v6770_v55 = vpop.xlane.xlu2 %6769  ;;  %v8255_v3 = vpop.eup %8254  ;;  %v15220_v31 = vld [vmem:[#allocation66_spill] sm:$0xff]  ;;  %v15221_v48 = vld [vmem:[#allocation56_spill] sm:$0xff] }
 0x787   : > { %v6907_v1 = vsub.f32 %v13529_v7, %v6844_v38  ;;  %v6908_v4 = vsub.f32 %v13534_v16, %v6844_v38  ;;  %8258 = vlog2.f32 %v6770_v55  ;;  %v6338_v59 = vmul.f32 0.6931472, %v8255_v3  ;;  %v6773_v47 = vpop.xlane.xlu0 %6772 }
 0x788   : > { %v6399_v6 = vsub.f32 %v13511_v27, %v6336_v29  ;;  %v6400_v18 = vsub.f32 %v13523_v35, %v6336_v29  ;;  %8260 = vlog2.f32 %v6773_v47  ;;  %v15222_v29 = vld [vmem:[#allocation55_spill] sm:$0xff] }
 0x789   : > { %7494 = vst [vmem:[%s13410_s21 + $0x120] sm:$0xff] %v6907_v1  ;;  %v6401_v7 = vsub.f32 %v13540_v14, %v6338_v59  ;;  %v6402_v9 = vsub.f32 %v13549_v23, %v6338_v59 }
 0x78a   : > { %7495 = vst [vmem:[%s13410_s21 + $0x128] sm:$0xff] %v6908_v4 }
 0x78b   : > { %7498 = vst [vmem:[%s13293_s20 + $0x140] sm:$0xff] %v6399_v6 }
 0x78c   : > { %v8257_v16 = vpop.eup %8256  ;;  %7499 = vst [vmem:[%s13293_s20 + $0x148] sm:$0xff] %v6400_v18 }
 0x78d   : > { %7500 = vst [vmem:[%s13293_s20 + $0x150] sm:$0xff] %v6401_v7  ;;  %v6340_v28 = vmul.f32 0.6931472, %v8257_v16  ;;  %v6776_v27 = vpop.xlane.xlu1 %6775  ;;  %v8259_v42 = vpop.eup %8258  ;;  %v15223_v7 = vld [vmem:[#allocation54_spill] sm:$0xff] }
 0x78e   : > { %7501 = vst [vmem:[%s13293_s20 + $0x158] sm:$0xff] %v6402_v9  ;;  %8262 = vlog2.f32 %v6776_v27  ;;  %v6846_v35 = vmul.f32 0.6931472, %v8259_v42  ;;  %v6270_v14 = vpop.xlane.xlu2 %6269  ;;  %v8261_v23 = vpop.eup %8260 }
 0x78f   : > { %v6403_v58 = vsub.f32 %v13562_v51, %v6340_v28  ;;  %v6404_v56 = vsub.f32 %v13565_v22, %v6340_v28  ;;  %8264 = vlog2.f32 %v6270_v14  ;;  %v6848_v30 = vmul.f32 0.6931472, %v8261_v23  ;;  %v6273_v10 = vpop.xlane.xlu0 %6272 }
 0x790   : > { %v6909_v13 = vsub.f32 %v13555_v40, %v6846_v35  ;;  %v6910_v41 = vsub.f32 %v13558_v24, %v6846_v35  ;;  %8266 = vlog2.f32 %v6273_v10 }
 0x791   : > { %7502 = vst [vmem:[%s13293_s20 + $0x160] sm:$0xff] %v6403_v58  ;;  %v6911_v51 = vsub.f32 %v13572_v21, %v6848_v30  ;;  %v6912_v22 = vsub.f32 %v13581_v49, %v6848_v30  ;;  %v15219_v49 = vld [vmem:[#allocation58_spill] sm:$0xff] }
 0x792   : > { %7503 = vst [vmem:[%s13293_s20 + $0x168] sm:$0xff] %v6404_v56 }
 0x793   : > { %7496 = vst [vmem:[%s13410_s21 + $0x130] sm:$0xff] %v6909_v13 }
 0x794   : > { %v8263_v50 = vpop.eup %8262  ;;  %7497 = vst [vmem:[%s13410_s21 + $0x138] sm:$0xff] %v6910_v41 }
 0x795   : > { %7506 = vst [vmem:[%s13410_s21 + $0x140] sm:$0xff] %v6911_v51  ;;  %v6850_v43 = vmul.f32 0.6931472, %v8263_v50  ;;  %v8265_v40 = vpop.eup %8264  ;;  %v15226_v51 = vld [vmem:[#allocation72_spill] sm:$0xff] }
 0x796   : > { %7507 = vst [vmem:[%s13410_s21 + $0x148] sm:$0xff] %v6912_v22  ;;  %v6342_v24 = vmul.f32 0.6931472, %v8265_v40  ;;  %v6779_v57 = vpop.xlane.xlu2 %6778  ;;  %v8267_v21 = vpop.eup %8266 }
 0x797   : > { %v6913_v8 = vsub.f32 %v13596_v60, %v6850_v43  ;;  %v6914_v52 = vsub.f32 %v13599_v61, %v6850_v43  ;;  %8268 = vlog2.f32 %v6779_v57  ;;  %v6344_v38 = vmul.f32 0.6931472, %v8267_v21 }
 0x798   : > { %v6405_v39 = vsub.f32 %v15219_v49, %v6342_v24  ;;  %v6406_v46 = vsub.f32 %v15220_v31, %v6342_v24  ;;  %v6276_v53 = vpop.xlane.xlu1 %6275  ;;  %v15228_v24 = vld [vmem:[#allocation30_spill] sm:$0xff]  ;;  %v15229_v49 = vld [vmem:[#allocation48_spill] sm:$0xff] }
 0x799   : > { %7508 = vst [vmem:[%s13410_s21 + $0x150] sm:$0xff] %v6913_v8  ;;  %8270 = vlog2.f32 %v6276_v53  ;;  %v6407_v60 = vsub.f32 %v15221_v48, %v6344_v38  ;;  %v6408_v1 = vsub.f32 %v15222_v29, %v6344_v38  ;;  %v15230_v53 = vld [vmem:[#allocation107_spill] sm:$0xff] }
 0x79a   : > { %7509 = vst [vmem:[%s13410_s21 + $0x158] sm:$0xff] %v6914_v52 }
 0x79b   : > { %7504 = vst [vmem:[%s13293_s20 + $0x170] sm:$0xff] %v6405_v39 }
 0x79c   : > { %7505 = vst [vmem:[%s13293_s20 + $0x178] sm:$0xff] %v6406_v46 }
 0x79d   : > { %7514 = vst [vmem:[%s13293_s20 + $0x180] sm:$0xff] %v6407_v60  ;;  %v8269_v61 = vpop.eup %8268  ;;  %v15231_v60 = vld [vmem:[#allocation33_spill] sm:$0xff] }
 0x79e   : > { %7515 = vst [vmem:[%s13293_s20 + $0x188] sm:$0xff] %v6408_v1  ;;  %v6852_v4 = vmul.f32 0.6931472, %v8269_v61 }
 0x79f   : > { %v6782_v55 = vpop.xlane.xlu0 %6781  ;;  %v8271_v3 = vpop.eup %8270 }
 0x7a0   : > { %8272 = vlog2.f32 %v6782_v55  ;;  %v6915_v6 = vsub.f32 %v13619_v20, %v6852_v4  ;;  %v6916_v18 = vsub.f32 %v13622_v17, %v6852_v4  ;;  %v6346_v59 = vmul.f32 0.6931472, %v8271_v3  ;;  %v15224_v20 = vld [vmem:[#allocation115_spill] sm:$0xff]  ;;  %v15225_v17 = vld [vmem:[#allocation82_spill] sm:$0xff] }
 0x7a1   : > { %v6279_v16 = vpop.xlane.xlu2 %6278  ;;  %v15232_v4 = vld [vmem:[#allocation71_spill] sm:$0xff] }
 0x7a2   : > { %7510 = vst [vmem:[%s13410_s21 + $0x160] sm:$0xff] %v6915_v6  ;;  %v6409_v47 = vsub.f32 %v13633_v34, %v6346_v59  ;;  %v6410_v9 = vsub.f32 %v15223_v7, %v6346_v59  ;;  %8274 = vlog2.f32 %v6279_v16  ;;  %v15233_v3 = vld [vmem:[#allocation119_spill] sm:$0xff] }
 0x7a3   : > { %7511 = vst [vmem:[%s13410_s21 + $0x168] sm:$0xff] %v6916_v18 }
 0x7a4   : > { %7516 = vst [vmem:[%s13293_s20 + $0x190] sm:$0xff] %v6409_v47 }
 0x7a5   : > { %7517 = vst [vmem:[%s13293_s20 + $0x198] sm:$0xff] %v6410_v9 }
 0x7a6   : > { %v8273_v28 = vpop.eup %8272 }
 0x7a7   : > { %v6854_v27 = vmul.f32 0.6931472, %v8273_v28 }
 0x7a8   : > { %v6785_v58 = vpop.xlane.xlu1 %6784  ;;  %v8275_v56 = vpop.eup %8274 }
 0x7a9   : > { %v6917_v42 = vsub.f32 %v15224_v20, %v6854_v27  ;;  %v6918_v35 = vsub.f32 %v15225_v17, %v6854_v27  ;;  %8276 = vlog2.f32 %v6785_v58  ;;  %v6348_v34 = vmul.f32 0.6931472, %v8275_v56  ;;  %v15235_v56 = vld [vmem:[#allocation67_spill] sm:$0xff] }
 0x7ab   : > { %7512 = vst [vmem:[%s13410_s21 + $0x170] sm:$0xff] %v6917_v42  ;;  %v6411_v14 = vsub.f32 %v13655_v36, %v6348_v34  ;;  %v6412_v23 = vsub.f32 %v13658_v25, %v6348_v34  ;;  %v15227_v25 = vld [vmem:[#allocation77_spill] sm:$0xff] }
 0x7ac   : > { %7513 = vst [vmem:[%s13410_s21 + $0x178] sm:$0xff] %v6918_v35  ;;  %v15234_v35 = vld [vmem:[#allocation80_spill] sm:$0xff] }
 0x7ad   : > { %7518 = vst [vmem:[%s13293_s20 + $0x1a0] sm:$0xff] %v6411_v14 }
 0x7ae   : > { %7519 = vst [vmem:[%s13293_s20 + $0x1a8] sm:$0xff] %v6412_v23 }
 0x7af   : > { %v6282_v13 = vpop.xlane.xlu0 %6281  ;;  %v8277_v41 = vpop.eup %8276 }
 0x7b0   : > { %8278 = vlog2.f32 %v6282_v13  ;;  %v6856_v30 = vmul.f32 0.6931472, %v8277_v41 }
 0x7b1   : > { %v6788_v50 = vpop.xlane.xlu2 %6787 }
 0x7b2   : > { %v6919_v10 = vsub.f32 %v13669_v44, %v6856_v30  ;;  %v6920_v22 = vsub.f32 %v15226_v51, %v6856_v30  ;;  %8280 = vlog2.f32 %v6788_v50 }
 0x7b4   : > { %7522 = vst [vmem:[%s13410_s21 + $0x180] sm:$0xff] %v6919_v10 }
 0x7b5   : > { %7523 = vst [vmem:[%s13410_s21 + $0x188] sm:$0xff] %v6920_v22 }
 0x7b6   : > { %v8279_v43 = vpop.eup %8278 }
 0x7b7   : > { %v6350_v36 = vmul.f32 0.6931472, %v8279_v43 }
 0x7b8   : > { %v6285_v52 = vpop.xlane.xlu1 %6284  ;;  %v8281_v57 = vpop.eup %8280 }
 0x7b9   : > { %v6413_v40 = vsub.f32 %v15227_v25, %v6350_v36  ;;  %v6414_v8 = vsub.f32 %v15228_v24, %v6350_v36  ;;  %8282 = vlog2.f32 %v6285_v52  ;;  %v6858_v21 = vmul.f32 0.6931472, %v8281_v57 }
 0x7bb   : > { %7520 = vst [vmem:[%s13293_s20 + $0x1b0] sm:$0xff] %v6413_v40  ;;  %v6921_v44 = vsub.f32 %v13691_v33, %v6858_v21  ;;  %v6922_v39 = vsub.f32 %v15229_v49, %v6858_v21 }
 0x7bc   : > { %7521 = vst [vmem:[%s13293_s20 + $0x1b8] sm:$0xff] %v6414_v8 }
 0x7bd   : > { %7524 = vst [vmem:[%s13410_s21 + $0x190] sm:$0xff] %v6921_v44 }
 0x7be   : > { %7525 = vst [vmem:[%s13410_s21 + $0x198] sm:$0xff] %v6922_v39 }
 0x7bf   : > { %v6791_v31 = vpop.xlane.xlu0 %6790  ;;  %v8283_v46 = vpop.eup %8282 }
 0x7c0   : > { %8284 = vlog2.f32 %v6791_v31  ;;  %v6352_v38 = vmul.f32 0.6931472, %v8283_v46 }
 0x7c1   : > { %v6288_v1 = vpop.xlane.xlu2 %6287 }
 0x7c2   : > { %v6415_v48 = vsub.f32 %v15230_v53, %v6352_v38  ;;  %v6416_v29 = vsub.f32 %v15231_v60, %v6352_v38  ;;  %8286 = vlog2.f32 %v6288_v1 }
 0x7c4   : > { %7530 = vst [vmem:[%s13293_s20 + $0x1c0] sm:$0xff] %v6415_v48 }
 0x7c5   : > { %7531 = vst [vmem:[%s13293_s20 + $0x1c8] sm:$0xff] %v6416_v29 }
 0x7c6   : > { %v8285_v61 = vpop.eup %8284 }
 0x7c7   : > { %v6860_v33 = vmul.f32 0.6931472, %v8285_v61 }
 0x7c8   : > { %v6794_v18 = vpop.xlane.xlu1 %6793  ;;  %v8287_v59 = vpop.eup %8286 }
 0x7c9   : > { %v6923_v55 = vsub.f32 %v15232_v4, %v6860_v33  ;;  %v6924_v6 = vsub.f32 %v15233_v3, %v6860_v33  ;;  %8288 = vlog2.f32 %v6794_v18  ;;  %v6354_v47 = vmul.f32 0.6931472, %v8287_v59 }
 0x7cb   : > { %7526 = vst [vmem:[%s13410_s21 + $0x1a0] sm:$0xff] %v6923_v55  ;;  %v6417_v7 = vsub.f32 %v13727_v19, %v6354_v47  ;;  %v6418_v9 = vsub.f32 %v13730_v32, %v6354_v47 }
 0x7cc   : > { %7527 = vst [vmem:[%s13410_s21 + $0x1a8] sm:$0xff] %v6924_v6 }
 0x7cd   : > { %7532 = vst [vmem:[%s13293_s20 + $0x1d0] sm:$0xff] %v6417_v7 }
 0x7ce   : > { %7533 = vst [vmem:[%s13293_s20 + $0x1d8] sm:$0xff] %v6418_v9 }
 0x7cf   : > { %v6291_v16 = vpop.xlane.xlu0 %6290  ;;  %v8289_v28 = vpop.eup %8288 }
 0x7d0   : > { %8290 = vlog2.f32 %v6291_v16  ;;  %v6862_v27 = vmul.f32 0.6931472, %v8289_v28 }
 0x7d1   : > { %v6797_v17 = vpop.xlane.xlu2 %6796 }
 0x7d2   : > { %v6925_v20 = vsub.f32 %v13741_v12, %v6862_v27  ;;  %v6926_v42 = vsub.f32 %v13744_v15, %v6862_v27  ;;  %8292 = vlog2.f32 %v6797_v17 }
 0x7d4   : > { %7528 = vst [vmem:[%s13410_s21 + $0x1b0] sm:$0xff] %v6925_v20 }
 0x7d5   : > { %7529 = vst [vmem:[%s13410_s21 + $0x1b8] sm:$0xff] %v6926_v42 }
 0x7d6   : > { %v8291_v19 = vpop.eup %8290 }
 0x7d7   : > { %v6356_v32 = vmul.f32 0.6931472, %v8291_v19 }
 0x7d8   : > { %v6294_v14 = vpop.xlane.xlu1 %6293  ;;  %v8293_v23 = vpop.eup %8292 }
 0x7d9   : > { %v6419_v58 = vsub.f32 %v15234_v35, %v6356_v32  ;;  %v6420_v34 = vsub.f32 %v15235_v56, %v6356_v32  ;;  %8294 = vlog2.f32 %v6294_v14  ;;  %v6864_v12 = vmul.f32 0.6931472, %v8293_v23 }
 0x7db   : > { %7534 = vst [vmem:[%s13293_s20 + $0x1e0] sm:$0xff] %v6419_v58  ;;  %v6927_v15 = vsub.f32 %v13763_v54, %v6864_v12  ;;  %v6928_v13 = vsub.f32 %v13766_v26, %v6864_v12 }
 0x7dc   : > { %7535 = vst [vmem:[%s13293_s20 + $0x1e8] sm:$0xff] %v6420_v34 }
 0x7dd   : > { %7538 = vst [vmem:[%s13410_s21 + $0x1c0] sm:$0xff] %v6927_v15 }
 0x7de   : > { %7539 = vst [vmem:[%s13410_s21 + $0x1c8] sm:$0xff] %v6928_v13 }
 0x7df   : > { %v8295_v41 = vpop.eup %8294  ;;  %v6800_v30 = vpop.xlane.xlu0 %6799 }
 0x7e0   : > { %v6358_v10 = vmul.f32 0.6931472, %v8295_v41  ;;  %8296 = vlog2.f32 %v6800_v30 }
 0x7e2   : > { %v6421_v51 = vsub.f32 %v13777_v11, %v6358_v10  ;;  %v6422_v22 = vsub.f32 %v13780_v62, %v6358_v10 }
 0x7e4   : > { %7536 = vst [vmem:[%s13293_s20 + $0x1f0] sm:$0xff] %v6421_v51 }
 0x7e5   : > { %7537 = vst [vmem:[%s13293_s20 + $0x1f8] sm:$0xff] %v6422_v22 }
 0x7e6   : > { %v8297_v50 = vpop.eup %8296 }
 0x7e7   : > { %v6866_v43 = vmul.f32 0.6931472, %v8297_v50 }
 0x7e8   : > { %v6803_v36 = vpop.xlane.xlu1 %6802 }
 0x7e9   : > { %v6929_v54 = vsub.f32 %v13789_v0, %v6866_v43  ;;  %v6930_v26 = vsub.f32 %v13792_v63, %v6866_v43  ;;  %8298 = vlog2.f32 %v6803_v36 }
 0x7ea   : > { %v6806_v25 = vpop.xlane.xlu2 %6805 }
 0x7eb   : > { %7540 = vst [vmem:[%s13410_s21 + $0x1d0] sm:$0xff] %v6929_v54  ;;  %8300 = vlog2.f32 %v6806_v25 }
 0x7ec   : > { %7541 = vst [vmem:[%s13410_s21 + $0x1d8] sm:$0xff] %v6930_v26 }
 0x7ef   : > { %v8299_v11 = vpop.eup %8298 }
 0x7f0   : > { %v6868_v62 = vmul.f32 0.6931472, %v8299_v11 }
 0x7f1   : > { %v8301_v40 = vpop.eup %8300 }
 0x7f2   : > { %v6870_v24 = vmul.f32 0.6931472, %v8301_v40  ;;  %v6931_v8 = vsub.f32 %v13805_v2, %v6868_v62  ;;  %v6932_v0 = vsub.f32 %v13808_v5, %v6868_v62 }
 0x7f4   : > { %v6933_v52 = vsub.f32 %v13815_v45, %v6870_v24  ;;  %v6934_v63 = vsub.f32 %v13818_v37, %v6870_v24  ;;  %7542 = vst [vmem:[%s13410_s21 + $0x1e0] sm:$0xff] %v6931_v8 }
 0x7f5   : > { %7543 = vst [vmem:[%s13410_s21 + $0x1e8] sm:$0xff] %v6932_v0 }
 0x7f6   : > { %7544 = vst [vmem:[%s13410_s21 + $0x1f0] sm:$0xff] %v6933_v52 }
 0x7f7   : > { %7545 = vst [vmem:[%s13410_s21 + $0x1f8] sm:$0xff] %v6934_v63 }
 0x7f8   : > { %s7095_s11 = scalar_lea.hbm %s14028_s9, %s8535_s25  ;;  %s7106_s18 = sshll.u32 %s13293_s20, 4  ;;  %s7107_s18 = int_to_ptr.vmem [resolvable:$true] %s7106_s18 }
 0x7f9   : > { %s7108_s26 = sshll.u32 %s7095_s11, 4  ;;  %s8421_s17 = smov 1024   ;;  %s7109_s26 = int_to_ptr.hbm [resolvable:$true] %s7108_s26 }
 0x7fa   : > { %7674 = sst [smem:[#allocation9]] (%p8525_p5), %s8421_s17  ;;  %s8422_s27 = smov 2048  }
 0x7fb   : > { %7675 = sst [smem:[#allocation9 + $0x1]] (%p8525_p5), %s8422_s27  ;;  %s8423_s30 = smov 4  }
 0x7fc   : > { %7676 = sst [smem:[#allocation9 + $0x2]] (%p8525_p5), %s8423_s30  ;;  %s8424_s28 = smov 256  }
 0x7fd   : > { %7677 = sst [smem:[#allocation9 + $0x3]] (%p8525_p5), %s8424_s28  ;;  %s8425_s0 = smov 16  }
 0x7fe   : > { %7678 = sst [smem:[#allocation9 + $0x4]] (%p8525_p5), %s8424_s28  ;;  %s8426_s20 = smov [#allocation8]  }
 0x7ff   : > { %7679 = sst [smem:[#allocation9 + $0x5]] (%p8525_p5), %s8425_s0  ;;  %s8427_s11 = smov 0  }
 0x800   : > { %7680 = dma.general (%p8525_p5), %s7107_s18, 8192, %s7109_s26, %s7078_s29, %s8426_s20, [#allocation9], %s8427_s11, 0  }
 0x801   : > { %s7136_s27 = scalar_lea.hbm %s14029_s10, %s8535_s25  ;;  %s7147_s30 = sshll.u32 %s13410_s21, 4  ;;  %s7148_s30 = int_to_ptr.vmem [resolvable:$true] %s7147_s30 }
 0x802   : > { %s7149_s0 = sshll.u32 %s7136_s27, 4  ;;  %s8428_s28 = smov 1024   ;;  %s7150_s0 = int_to_ptr.hbm [resolvable:$true] %s7149_s0 }
 0x803   : > { %7681 = sst [smem:[#allocation11]] (%p8525_p5), %s8428_s28  ;;  %s8429_s29 = smov 2048  }
 0x804   : > { %7682 = sst [smem:[#allocation11 + $0x1]] (%p8525_p5), %s8429_s29  ;;  %s8430_s1 = smov 4  }
 0x805   : > { %7683 = sst [smem:[#allocation11 + $0x2]] (%p8525_p5), %s8430_s1  ;;  %s8431_s18 = smov 256  }
 0x806   : > { %7684 = sst [smem:[#allocation11 + $0x3]] (%p8525_p5), %s8431_s18  ;;  %s8432_s25 = smov 16  }
 0x807   : > { %7685 = sst [smem:[#allocation11 + $0x4]] (%p8525_p5), %s8431_s18  ;;  %s8433_s21 = smov [#allocation10]  }
 0x808   : > { %7686 = sst [smem:[#allocation11 + $0x5]] (%p8525_p5), %s8432_s25  ;;  %s8434_s26 = smov 0  }
 0x809   : > { %s15236_s20 = scalar_lea.sflag [#allocation7], %s13250_s12 }
 0x80a   : > { %7687 = dma.general (%p8525_p5), %s7148_s30, 8192, %s7150_s0, %s15236_s20, %s8433_s21, [#allocation11], %s8434_s26, 0  }
 0x80b PF: > { %p7697_p11 = scmp.ge.s32.totalorder %s8413_s16, 2  ;;  %s7177_s11 = sand.u32 1, %s8401_s13  }
 0x80c   : > { %s7178_s17 = scalar_lea.sflag [#allocation5], %s7177_s11 }
 0x80d   : > { %p7691_p12 = pnand %p7697_p11, %p8529_p6 }
 0x80f   : > { %p7692_p13 = pneg %p7691_p12 }
 0x811   : > { %8392 = dma.done.wait (%p7692_p13), %s7178_s17, 8192  }
 0x812   : > { %8394 = vsyncadd (%p7692_p13), %s7178_s17, 4294959104  ;;  %s7188_s27 = scalar_lea.sflag [#allocation7], %s7177_s11 }
 0x813   : > { %8396 = dma.done.wait (%p7692_p13), %s7188_s27, 8192  }
 0x814   : > { %8398 = vsyncadd (%p7692_p13), %s7188_s27, 4294959104  ;;  %p24_p0 = scmp.ge.s32.totalorder %s8513_s19, 4   ;;  %s15237_s13 = smov %s8405_s14 }
 0x815   : > { %s15238_s14 = smov %s8409_s15  ;;  %s15239_s15 = smov %s8523_s22 }
 0x816   : > { %s15240_s16 = smov %s8513_s19  ;;  %26 = sbr.rel (!%p24_p0) target bundleno = 8 (0x8), region = 226 }
 0x81b   :  { %7194 = vsyncpa [#allocation5], 1 }
 0x81c   :  { %7196 = vsyncpa [#allocation5 + $0x1], 1 }
 0x81d   :  { %7197 = vsyncpa [#allocation7], 1 }
 0x81e   :  { %7199 = vsyncpa [#allocation7 + $0x1], 1 }

</bundles_post_ra>
